<compile_context>
chip_gen: v7x
topology: tpu7x:2x2x1
jax: 0.10.0
libtpu: 0.0.40
codegen_flags: <defaults>
</compile_context>

<pallas_src>
import numpy as np
import jax
import jax.numpy as jnp
from jax.experimental import pallas as pl
from jax.experimental.pallas import tpu as pltpu

# ---- torchmetrics SSIM defaults (structural_similarity_index_measure, data_range=1.0) ----
KERNEL_SIZE = 11
SIGMA = 1.5
PAD = (KERNEL_SIZE - 1) // 2
DATA_RANGE = 1.0
K1, K2 = 0.01, 0.03
C1 = (K1 * DATA_RANGE) ** 2
C2 = (K2 * DATA_RANGE) ** 2


def _gauss_weights():
    # same construction as torchmetrics' _gaussian()
    d = np.arange(-(KERNEL_SIZE - 1) / 2.0, (KERNEL_SIZE + 1) / 2.0, 1.0)
    g = np.exp(-((d / SIGMA) ** 2) / 2.0)
    return g / g.sum()


def _filter_mats(H, W, Hp_pad, W_lanes):
    """Toeplitz band matrices for the separable 'valid' Gaussian on the padded canvas.

    A (H, Hp_pad): vertical pass (left-multiply).  Bm (W_lanes, W): horizontal pass
    (right-multiply).  Zero rows/cols beyond the reflect-padded region are inert.
    """
    g = _gauss_weights()
    A = np.zeros((H, Hp_pad), np.float32)
    Bm = np.zeros((W_lanes, W), np.float32)
    for i in range(H):
        A[i, i:i + KERNEL_SIZE] = g
    for j in range(W):
        Bm[j:j + KERNEL_SIZE, j] = g
    return A, Bm


def _make_ssim_kernel(C, pairs, H, W, Hp_pad, W_lanes, n_lanes):
    """One (batch, resolution) grid step: batched Gaussian stats + SSIM mean per pair."""
    n_pairs = len(pairs)
    n_chunks = 2 * C + n_pairs          # C mu inputs, C squared inputs, cross terms

    def kernel(vol_ref, w_ref, a_ref, b_ref, o_ref,
               pcat_ref, v_ref, v2_ref, f_ref):
        A = a_ref[...]                  # (H, Hp_pad)
        Bm = b_ref[...]                 # (W_lanes, W)
        w = w_ref[0]                    # (H, W): 1/n inside torchmetrics crop, else 0

        # ---- (1) build lane-stacked filter-input slab (chunk k at lanes [k*128, (k+1)*128)) ----
        def put(k, val):
            pcat_ref[:, pl.ds(k * W_lanes, W_lanes)] = val

        for c in range(C):
            put(c, vol_ref[0, c])                              # mu inputs
        for c in range(C):
            x = vol_ref[0, c]
            put(C + c, x * x)                                  # E[x^2] inputs
        for p, (bi, ci) in enumerate(pairs):
            put(2 * C + p, vol_ref[0, bi] * vol_ref[0, ci])    # E[x*y] inputs

        # ---- (2) vertical Gaussian: ONE fat MXU matmul over all chunks ----
        v_ref[...] = jnp.dot(A, pcat_ref[...], preferred_element_type=jnp.float32)

        # ---- (3) relayout lane-stacked -> row-stacked (aligned copies, no lane rotates) ----
        for k in range(n_chunks):
            v2_ref[pl.ds(k * H, H), :] = v_ref[:, pl.ds(k * W_lanes, W_lanes)]

        # ---- (4) horizontal Gaussian: ONE fat MXU matmul ----
        f_ref[...] = jnp.dot(v2_ref[...], Bm, preferred_element_type=jnp.float32)
        # f_ref row block k = fully filtered chunk k:
        #   k in [0, C)        -> mu_k
        #   k in [C, 2C)       -> E[x_k^2]
        #   k in [2C, 2C+P)    -> E[x_bi * x_ci] for pair k-2C

        # ---- (5) SSIM per pair from shared per-channel stats (held in VMEM scratch) ----
        lane = jax.lax.broadcasted_iota(jnp.int32, (1, n_lanes), 1)
        acc = jnp.zeros((1, n_lanes), jnp.float32)
        for p, (bi, ci) in enumerate(pairs):
            mu_x = f_ref[pl.ds(bi * H, H), :]
            mu_y = f_ref[pl.ds(ci * H, H), :]
            e_x2 = f_ref[pl.ds((C + bi) * H, H), :]
            e_y2 = f_ref[pl.ds((C + ci) * H, H), :]
            e_xy = f_ref[pl.ds((2 * C + p) * H, H), :]
            mu_x2 = mu_x * mu_x
            mu_y2 = mu_y * mu_y
            mu_xy = mu_x * mu_y
            s_xx = e_x2 - mu_x2
            s_yy = e_y2 - mu_y2
            s_xy = e_xy - mu_xy
            num = (2.0 * mu_xy + C1) * (2.0 * s_xy + C2)
            den = (mu_x2 + mu_y2 + C1) * (s_xx + s_yy + C2)     # >= ~C1*C2 > 0
            ssim_map = num * pl.reciprocal(den, approx=True)    # EUP slot
            # interior mean via weight-mask multiply (no unaligned crop slice)
            s = jnp.sum(ssim_map * w, axis=1, keepdims=True)    # (H, 1)
            m = jnp.sum(s, axis=0, keepdims=True)               # (1, 1)
            acc = acc + jnp.where(lane == p, m, 0.0)            # drop into lane p
        o_ref[...] = acc.reshape(1, 1, n_lanes)

    return kernel


def ssim_pair_table(chans_full, chans_low, pairs):
    """SSIM of every (b, c) channel pair at full and low resolution.

    chans_full: (B, C, H, W), chans_low: (B, C, Hl, Wl), values in [0, 1].
    Returns q: (B, 2, n_total) float32, q[:, 0] full-res, q[:, 1] low-res.
    """
    chans_full = chans_full.astype(jnp.float32)
    chans_low = chans_low.astype(jnp.float32)
    B, C, H, W = chans_full.shape
    Hl, Wl = chans_low.shape[-2:]
    Hp, Wp = H + 2 * PAD, W + 2 * PAD
    Hpl, Wpl = Hl + 2 * PAD, Wl + 2 * PAD

    # sublane/lane-aligned padded canvas (review: lane-dense HBM layout)
    Hp_pad = ((Hp + 7) // 8) * 8
    W_lanes = ((Wp + 127) // 128) * 128

    # reflect padding (torchmetrics SSIM); low-res images embedded top-left in a
    # full-size canvas so both resolutions share one pallas_call / one kernel.
    pf = jnp.pad(chans_full, ((0, 0), (0, 0), (PAD, PAD), (PAD, PAD)), mode="reflect")
    pf = jnp.pad(pf, ((0, 0), (0, 0), (0, Hp_pad - Hp), (0, W_lanes - Wp)))
    plo = jnp.pad(chans_low, ((0, 0), (0, 0), (PAD, PAD), (PAD, PAD)), mode="reflect")
    plo = jnp.pad(plo, ((0, 0), (0, 0), (0, Hp_pad - Hpl), (0, W_lanes - Wpl)))
    vol = jnp.stack([pf, plo], axis=1).reshape(B * 2, C, Hp_pad, W_lanes)

    # interior-mean weights (torchmetrics crops PAD from the SSIM map, then means);
    # duplicated per grid row so the index_map stays a plain identity.
    wm = np.zeros((2, H, W), np.float32)
    wm[0, PAD:H - PAD, PAD:W - PAD] = 1.0 / float((H - 2 * PAD) * (W - 2 * PAD))
    wm[1, PAD:Hl - PAD, PAD:Wl - PAD] = 1.0 / float((Hl - 2 * PAD) * (Wl - 2 * PAD))
    wm = jnp.asarray(np.tile(wm, (B, 1, 1)))          # (B*2, H, W), row s -> resolution s % 2

    A_np, B_np = _filter_mats(H, W, Hp_pad, W_lanes)
    A = jnp.asarray(A_np)      # (H, Hp_pad)
    Bm = jnp.asarray(B_np)     # (W_lanes, W)

    n_total = len(pairs)
    n_lanes = ((n_total + 127) // 128) * 128           # lane-dense output row
    n_chunks = 2 * C + n_total
    kernel = _make_ssim_kernel(C, tuple(pairs), H, W, Hp_pad, W_lanes, n_lanes)

    out = pl.pallas_call(
        kernel,
        out_shape=jax.ShapeDtypeStruct((B * 2, 1, n_lanes), jnp.float32),
        grid=(B * 2,),
        in_specs=[
            pl.BlockSpec((1, C, Hp_pad, W_lanes), lambda s: (s, 0, 0, 0)),
            pl.BlockSpec((1, H, W), lambda s: (s, 0, 0)),
            pl.BlockSpec((H, Hp_pad), lambda s: (0, 0)),      # constant block: DMA'd once
            pl.BlockSpec((W_lanes, W), lambda s: (0, 0)),     # constant block: DMA'd once
        ],
        out_specs=pl.BlockSpec((1, 1, n_lanes), lambda s: (s, 0, 0)),
        scratch_shapes=[
            pltpu.VMEM((Hp_pad, n_chunks * W_lanes), jnp.float32),   # lane-stacked filter inputs
            pltpu.VMEM((H, n_chunks * W_lanes), jnp.float32),        # vertical-pass result
            pltpu.VMEM((n_chunks * H, W_lanes), jnp.float32),        # relayout (row-stacked)
            pltpu.VMEM((n_chunks * H, W), jnp.float32),              # filtered stats per chunk
        ],
        compiler_params=pltpu.CompilerParams(
            dimension_semantics=("parallel",),
        ),
    )(vol, wm, A, Bm)

    return out[:, 0, :n_total].reshape(B, 2, n_total)


class QNRPallas:
    """QNR metric (Alparone et al. 2008) with the SSIM Q-index computed in Pallas."""

    def __init__(self, factor=4, alpha=1.0, beta=1.0, p=1.0, q=1.0, return_D=False):
        self.factor = factor
        self.alpha = alpha
        self.beta = beta
        self.p = p
        self.q = q
        self.return_D = return_D

    # ---- MultispectralUtils / physics glue (NCHW volumes: MS bands + PAN last) ----
    def hrms_from_volume(self, vol):
        return vol[:, :-1]

    def pan_from_volume(self, vol):
        return vol[:, -1:]

    def lrms_from_volume(self, vol, scale_factor):
        H, W = vol.shape[-2:]
        # LRMS stored in the top-left (H/f, W/f) corner of the MS channels
        return vol[:, :-1, : H // scale_factor, : W // scale_factor]

    def A_pan(self, pan):
        # TODO(synk): deepinv's Pansharpen.A_pan may apply an anti-aliasing filter;
        # here we use plain decimation by the physics factor.
        return pan[:, :, :: self.factor, :: self.factor]

    def __call__(self, x_hat, y):
        hrms = self.hrms_from_volume(x_hat)            # (B, nb, H, W)
        lrms = self.lrms_from_volume(y, self.factor)   # (B, nb, Hl, Wl)
        pan = self.pan_from_volume(y)                  # (B, 1, H, W)
        pan_lr = self.A_pan(pan)                       # (B, 1, Hl, Wl)

        nb = hrms.shape[1]
        band_pairs = [(b, c) for b in range(nb) for c in range(nb) if b != c]
        pan_pairs = [(b, nb) for b in range(nb)]       # band vs. PAN channel
        pairs = band_pairs + pan_pairs
        n_bp = len(band_pairs)

        chans_full = jnp.concatenate([hrms, pan], axis=1)     # (B, nb+1, H, W)
        chans_low = jnp.concatenate([lrms, pan_lr], axis=1)   # (B, nb+1, Hl, Wl)

        q = ssim_pair_table(chans_full, chans_low, pairs)     # (B, 2, n_total)
        # torchmetrics reduction='elementwise_mean' => mean over batch per pair
        q_full = jnp.mean(q[:, 0, :], axis=0)
        q_low = jnp.mean(q[:, 1, :], axis=0)

        d_lambda = (
            jnp.sum(jnp.abs(q_full[:n_bp] - q_low[:n_bp]) ** self.p) / (nb * (nb - 1))
        ) ** (1.0 / self.p)
        d_s = (
            jnp.sum(jnp.abs(q_full[n_bp:] - q_low[n_bp:]) ** self.q) / nb
        ) ** (1.0 / self.q)

        qnr = (1.0 - d_lambda) ** self.alpha * (1.0 - d_s) ** self.beta
        if self.return_D:
            return qnr, d_lambda, d_s
        return qnr


if __name__ == "__main__":
    key = jax.random.PRNGKey(0)
    # H/factor must exceed 2*PAD=10 for the low-res SSIM crop to be non-empty.
    B, n_bands, H, W, factor = 2, 4, 64, 64, 4

    k1, k2 = jax.random.split(key)
    # volumes: (B, n_bands + 1, H, W) — MS bands + PAN channel, values in [0, 1]
    x_hat = jax.random.uniform(k1, (B, n_bands + 1, H, W), dtype=jnp.float32)
    y = jax.random.uniform(k2, (B, n_bands + 1, H, W), dtype=jnp.float32)

    metric = QNRPallas(factor=factor, alpha=1.0, beta=1.0, p=1.0, q=1.0, return_D=True)
    qnr, d_lambda, d_s = metric(x_hat, y)
    jax.block_until_ready((qnr, d_lambda, d_s))

    assert np.isfinite(float(qnr)) and np.isfinite(float(d_lambda)) and np.isfinite(float(d_s))
    print("KERNEL_OK")
</pallas_src>

<mosaic_0001>
module attributes {stable_mosaic.version = 11 : i64} {
  func.func @kernel(%arg0: i32, %arg1: memref<1x5x80x128xf32, #tpu.memory_space<vmem>>, %arg2: memref<1x64x64xf32, #tpu.memory_space<vmem>>, %arg3: memref<64x80xf32, #tpu.memory_space<vmem>>, %arg4: memref<128x64xf32, #tpu.memory_space<vmem>>, %arg5: memref<1x1x128xf32, #tpu.memory_space<vmem>>, %arg6: memref<80x3328xf32, #tpu.memory_space<vmem>>, %arg7: memref<64x3328xf32, #tpu.memory_space<vmem>>, %arg8: memref<1664x128xf32, #tpu.memory_space<vmem>>, %arg9: memref<1664x64xf32, #tpu.memory_space<vmem>>) attributes {dimension_semantics = [#tpu.dimension_semantics<parallel>], iteration_bounds = array<i64: 4>, scalar_prefetch = 0 : i64, scratch_operands = 4 : i64, tpu.core_type = #tpu.core_type<tc>, window_params = [{transform_indices = @transform_0, window_bounds = array<i64: 1, 5, 80, 128>}, {transform_indices = @transform_1, window_bounds = array<i64: 1, 64, 64>}, {pipeline_mode = #tpu.pipeline_mode<synchronous>, transform_indices = @transform_2, window_bounds = array<i64: 64, 80>}, {pipeline_mode = #tpu.pipeline_mode<synchronous>, transform_indices = @transform_3, window_bounds = array<i64: 128, 64>}, {transform_indices = @transform_4, window_bounds = array<i64: 1, 1, 128>}]} {
    %c0 = arith.constant 0 : index
    %c0_0 = arith.constant 0 : index
    %0 = vector.load %arg3[%c0, %c0_0] : memref<64x80xf32, #tpu.memory_space<vmem>>, vector<64x80xf32>
    %c0_1 = arith.constant 0 : index
    %c0_2 = arith.constant 0 : index
    %1 = vector.load %arg4[%c0_1, %c0_2] : memref<128x64xf32, #tpu.memory_space<vmem>>, vector<128x64xf32>
    %c0_3 = arith.constant 0 : index
    %c0_4 = arith.constant 0 : index
    %c0_5 = arith.constant 0 : index
    %2 = vector.load %arg2[%c0_3, %c0_4, %c0_5] : memref<1x64x64xf32, #tpu.memory_space<vmem>>, vector<1x64x64xf32>
    %3 = vector.shape_cast %2 : vector<1x64x64xf32> to vector<64x64xf32>
    %c0_6 = arith.constant 0 : index
    %c0_7 = arith.constant 0 : index
    %c0_8 = arith.constant 0 : index
    %c0_9 = arith.constant 0 : index
    %4 = vector.load %arg1[%c0_6, %c0_7, %c0_8, %c0_9] : memref<1x5x80x128xf32, #tpu.memory_space<vmem>>, vector<1x1x80x128xf32>
    %5 = vector.shape_cast %4 : vector<1x1x80x128xf32> to vector<80x128xf32>
    %c0_10 = arith.constant 0 : index
    %c0_11 = arith.constant 0 : index
    %6 = vector.load %arg6[%c0_10, %c0_11] : memref<80x3328xf32, #tpu.memory_space<vmem>>, vector<80x128xf32>
    tpu.vector_store %arg6[%c0_10, %c0_11], %5 {strides = array<i32>} : memref<80x3328xf32, #tpu.memory_space<vmem>>, vector<80x128xf32>,
    %c0_12 = arith.constant 0 : index
    %c1 = arith.constant 1 : index
    %c0_13 = arith.constant 0 : index
    %c0_14 = arith.constant 0 : index
    %7 = vector.load %arg1[%c0_12, %c1, %c0_13, %c0_14] : memref<1x5x80x128xf32, #tpu.memory_space<vmem>>, vector<1x1x80x128xf32>
    %8 = vector.shape_cast %7 : vector<1x1x80x128xf32> to vector<80x128xf32>
    %c0_15 = arith.constant 0 : index
    %c128 = arith.constant 128 : index
    %9 = vector.load %arg6[%c0_15, %c128] : memref<80x3328xf32, #tpu.memory_space<vmem>>, vector<80x128xf32>
    tpu.vector_store %arg6[%c0_15, %c128], %8 {strides = array<i32>} : memref<80x3328xf32, #tpu.memory_space<vmem>>, vector<80x128xf32>,
    %c0_16 = arith.constant 0 : index
    %c2 = arith.constant 2 : index
    %c0_17 = arith.constant 0 : index
    %c0_18 = arith.constant 0 : index
    %10 = vector.load %arg1[%c0_16, %c2, %c0_17, %c0_18] : memref<1x5x80x128xf32, #tpu.memory_space<vmem>>, vector<1x1x80x128xf32>
    %11 = vector.shape_cast %10 : vector<1x1x80x128xf32> to vector<80x128xf32>
    %c0_19 = arith.constant 0 : index
    %c256 = arith.constant 256 : index
    %12 = vector.load %arg6[%c0_19, %c256] : memref<80x3328xf32, #tpu.memory_space<vmem>>, vector<80x128xf32>
    tpu.vector_store %arg6[%c0_19, %c256], %11 {strides = array<i32>} : memref<80x3328xf32, #tpu.memory_space<vmem>>, vector<80x128xf32>,
    %c0_20 = arith.constant 0 : index
    %c3 = arith.constant 3 : index
    %c0_21 = arith.constant 0 : index
    %c0_22 = arith.constant 0 : index
    %13 = vector.load %arg1[%c0_20, %c3, %c0_21, %c0_22] : memref<1x5x80x128xf32, #tpu.memory_space<vmem>>, vector<1x1x80x128xf32>
    %14 = vector.shape_cast %13 : vector<1x1x80x128xf32> to vector<80x128xf32>
    %c0_23 = arith.constant 0 : index
    %c384 = arith.constant 384 : index
    %15 = vector.load %arg6[%c0_23, %c384] : memref<80x3328xf32, #tpu.memory_space<vmem>>, vector<80x128xf32>
    tpu.vector_store %arg6[%c0_23, %c384], %14 {strides = array<i32>} : memref<80x3328xf32, #tpu.memory_space<vmem>>, vector<80x128xf32>,
    %c0_24 = arith.constant 0 : index
    %c4 = arith.constant 4 : index
    %c0_25 = arith.constant 0 : index
    %c0_26 = arith.constant 0 : index
    %16 = vector.load %arg1[%c0_24, %c4, %c0_25, %c0_26] : memref<1x5x80x128xf32, #tpu.memory_space<vmem>>, vector<1x1x80x128xf32>
    %17 = vector.shape_cast %16 : vector<1x1x80x128xf32> to vector<80x128xf32>
    %c0_27 = arith.constant 0 : index
    %c512 = arith.constant 512 : index
    %18 = vector.load %arg6[%c0_27, %c512] : memref<80x3328xf32, #tpu.memory_space<vmem>>, vector<80x128xf32>
    tpu.vector_store %arg6[%c0_27, %c512], %17 {strides = array<i32>} : memref<80x3328xf32, #tpu.memory_space<vmem>>, vector<80x128xf32>,
    %c0_28 = arith.constant 0 : index
    %c0_29 = arith.constant 0 : index
    %c0_30 = arith.constant 0 : index
    %c0_31 = arith.constant 0 : index
    %19 = vector.load %arg1[%c0_28, %c0_29, %c0_30, %c0_31] : memref<1x5x80x128xf32, #tpu.memory_space<vmem>>, vector<1x1x80x128xf32>
    %20 = vector.shape_cast %19 : vector<1x1x80x128xf32> to vector<80x128xf32>
    %21 = arith.mulf %20, %20 : vector<80x128xf32>
    %c0_32 = arith.constant 0 : index
    %c640 = arith.constant 640 : index
    %22 = vector.load %arg6[%c0_32, %c640] : memref<80x3328xf32, #tpu.memory_space<vmem>>, vector<80x128xf32>
    tpu.vector_store %arg6[%c0_32, %c640], %21 {strides = array<i32>} : memref<80x3328xf32, #tpu.memory_space<vmem>>, vector<80x128xf32>,
    %c0_33 = arith.constant 0 : index
    %c1_34 = arith.constant 1 : index
    %c0_35 = arith.constant 0 : index
    %c0_36 = arith.constant 0 : index
    %23 = vector.load %arg1[%c0_33, %c1_34, %c0_35, %c0_36] : memref<1x5x80x128xf32, #tpu.memory_space<vmem>>, vector<1x1x80x128xf32>
    %24 = vector.shape_cast %23 : vector<1x1x80x128xf32> to vector<80x128xf32>
    %25 = arith.mulf %24, %24 : vector<80x128xf32>
    %c0_37 = arith.constant 0 : index
    %c768 = arith.constant 768 : index
    %26 = vector.load %arg6[%c0_37, %c768] : memref<80x3328xf32, #tpu.memory_space<vmem>>, vector<80x128xf32>
    tpu.vector_store %arg6[%c0_37, %c768], %25 {strides = array<i32>} : memref<80x3328xf32, #tpu.memory_space<vmem>>, vector<80x128xf32>,
    %c0_38 = arith.constant 0 : index
    %c2_39 = arith.constant 2 : index
    %c0_40 = arith.constant 0 : index
    %c0_41 = arith.constant 0 : index
    %27 = vector.load %arg1[%c0_38, %c2_39, %c0_40, %c0_41] : memref<1x5x80x128xf32, #tpu.memory_space<vmem>>, vector<1x1x80x128xf32>
    %28 = vector.shape_cast %27 : vector<1x1x80x128xf32> to vector<80x128xf32>
    %29 = arith.mulf %28, %28 : vector<80x128xf32>
    %c0_42 = arith.constant 0 : index
    %c896 = arith.constant 896 : index
    %30 = vector.load %arg6[%c0_42, %c896] : memref<80x3328xf32, #tpu.memory_space<vmem>>, vector<80x128xf32>
    tpu.vector_store %arg6[%c0_42, %c896], %29 {strides = array<i32>} : memref<80x3328xf32, #tpu.memory_space<vmem>>, vector<80x128xf32>,
    %c0_43 = arith.constant 0 : index
    %c3_44 = arith.constant 3 : index
    %c0_45 = arith.constant 0 : index
    %c0_46 = arith.constant 0 : index
    %31 = vector.load %arg1[%c0_43, %c3_44, %c0_45, %c0_46] : memref<1x5x80x128xf32, #tpu.memory_space<vmem>>, vector<1x1x80x128xf32>
    %32 = vector.shape_cast %31 : vector<1x1x80x128xf32> to vector<80x128xf32>
    %33 = arith.mulf %32, %32 : vector<80x128xf32>
    %c0_47 = arith.constant 0 : index
    %c1024 = arith.constant 1024 : index
    %34 = vector.load %arg6[%c0_47, %c1024] : memref<80x3328xf32, #tpu.memory_space<vmem>>, vector<80x128xf32>
    tpu.vector_store %arg6[%c0_47, %c1024], %33 {strides = array<i32>} : memref<80x3328xf32, #tpu.memory_space<vmem>>, vector<80x128xf32>,
    %c0_48 = arith.constant 0 : index
    %c4_49 = arith.constant 4 : index
    %c0_50 = arith.constant 0 : index
    %c0_51 = arith.constant 0 : index
    %35 = vector.load %arg1[%c0_48, %c4_49, %c0_50, %c0_51] : memref<1x5x80x128xf32, #tpu.memory_space<vmem>>, vector<1x1x80x128xf32>
    %36 = vector.shape_cast %35 : vector<1x1x80x128xf32> to vector<80x128xf32>
    %37 = arith.mulf %36, %36 : vector<80x128xf32>
    %c0_52 = arith.constant 0 : index
    %c1152 = arith.constant 1152 : index
    %38 = vector.load %arg6[%c0_52, %c1152] : memref<80x3328xf32, #tpu.memory_space<vmem>>, vector<80x128xf32>
    tpu.vector_store %arg6[%c0_52, %c1152], %37 {strides = array<i32>} : memref<80x3328xf32, #tpu.memory_space<vmem>>, vector<80x128xf32>,
    %c0_53 = arith.constant 0 : index
    %c0_54 = arith.constant 0 : index
    %c0_55 = arith.constant 0 : index
    %c0_56 = arith.constant 0 : index
    %39 = vector.load %arg1[%c0_53, %c0_54, %c0_55, %c0_56] : memref<1x5x80x128xf32, #tpu.memory_space<vmem>>, vector<1x1x80x128xf32>
    %40 = vector.shape_cast %39 : vector<1x1x80x128xf32> to vector<80x128xf32>
    %c0_57 = arith.constant 0 : index
    %c1_58 = arith.constant 1 : index
    %c0_59 = arith.constant 0 : index
    %c0_60 = arith.constant 0 : index
    %41 = vector.load %arg1[%c0_57, %c1_58, %c0_59, %c0_60] : memref<1x5x80x128xf32, #tpu.memory_space<vmem>>, vector<1x1x80x128xf32>
    %42 = vector.shape_cast %41 : vector<1x1x80x128xf32> to vector<80x128xf32>
    %43 = arith.mulf %40, %42 : vector<80x128xf32>
    %c0_61 = arith.constant 0 : index
    %c1280 = arith.constant 1280 : index
    %44 = vector.load %arg6[%c0_61, %c1280] : memref<80x3328xf32, #tpu.memory_space<vmem>>, vector<80x128xf32>
    tpu.vector_store %arg6[%c0_61, %c1280], %43 {strides = array<i32>} : memref<80x3328xf32, #tpu.memory_space<vmem>>, vector<80x128xf32>,
    %c0_62 = arith.constant 0 : index
    %c0_63 = arith.constant 0 : index
    %c0_64 = arith.constant 0 : index
    %c0_65 = arith.constant 0 : index
    %45 = vector.load %arg1[%c0_62, %c0_63, %c0_64, %c0_65] : memref<1x5x80x128xf32, #tpu.memory_space<vmem>>, vector<1x1x80x128xf32>
    %46 = vector.shape_cast %45 : vector<1x1x80x128xf32> to vector<80x128xf32>
    %c0_66 = arith.constant 0 : index
    %c2_67 = arith.constant 2 : index
    %c0_68 = arith.constant 0 : index
    %c0_69 = arith.constant 0 : index
    %47 = vector.load %arg1[%c0_66, %c2_67, %c0_68, %c0_69] : memref<1x5x80x128xf32, #tpu.memory_space<vmem>>, vector<1x1x80x128xf32>
    %48 = vector.shape_cast %47 : vector<1x1x80x128xf32> to vector<80x128xf32>
    %49 = arith.mulf %46, %48 : vector<80x128xf32>
    %c0_70 = arith.constant 0 : index
    %c1408 = arith.constant 1408 : index
    %50 = vector.load %arg6[%c0_70, %c1408] : memref<80x3328xf32, #tpu.memory_space<vmem>>, vector<80x128xf32>
    tpu.vector_store %arg6[%c0_70, %c1408], %49 {strides = array<i32>} : memref<80x3328xf32, #tpu.memory_space<vmem>>, vector<80x128xf32>,
    %c0_71 = arith.constant 0 : index
    %c0_72 = arith.constant 0 : index
    %c0_73 = arith.constant 0 : index
    %c0_74 = arith.constant 0 : index
    %51 = vector.load %arg1[%c0_71, %c0_72, %c0_73, %c0_74] : memref<1x5x80x128xf32, #tpu.memory_space<vmem>>, vector<1x1x80x128xf32>
    %52 = vector.shape_cast %51 : vector<1x1x80x128xf32> to vector<80x128xf32>
    %c0_75 = arith.constant 0 : index
    %c3_76 = arith.constant 3 : index
    %c0_77 = arith.constant 0 : index
    %c0_78 = arith.constant 0 : index
    %53 = vector.load %arg1[%c0_75, %c3_76, %c0_77, %c0_78] : memref<1x5x80x128xf32, #tpu.memory_space<vmem>>, vector<1x1x80x128xf32>
    %54 = vector.shape_cast %53 : vector<1x1x80x128xf32> to vector<80x128xf32>
    %55 = arith.mulf %52, %54 : vector<80x128xf32>
    %c0_79 = arith.constant 0 : index
    %c1536 = arith.constant 1536 : index
    %56 = vector.load %arg6[%c0_79, %c1536] : memref<80x3328xf32, #tpu.memory_space<vmem>>, vector<80x128xf32>
    tpu.vector_store %arg6[%c0_79, %c1536], %55 {strides = array<i32>} : memref<80x3328xf32, #tpu.memory_space<vmem>>, vector<80x128xf32>,
    %c0_80 = arith.constant 0 : index
    %c1_81 = arith.constant 1 : index
    %c0_82 = arith.constant 0 : index
    %c0_83 = arith.constant 0 : index
    %57 = vector.load %arg1[%c0_80, %c1_81, %c0_82, %c0_83] : memref<1x5x80x128xf32, #tpu.memory_space<vmem>>, vector<1x1x80x128xf32>
    %58 = vector.shape_cast %57 : vector<1x1x80x128xf32> to vector<80x128xf32>
    %c0_84 = arith.constant 0 : index
    %c0_85 = arith.constant 0 : index
    %c0_86 = arith.constant 0 : index
    %c0_87 = arith.constant 0 : index
    %59 = vector.load %arg1[%c0_84, %c0_85, %c0_86, %c0_87] : memref<1x5x80x128xf32, #tpu.memory_space<vmem>>, vector<1x1x80x128xf32>
    %60 = vector.shape_cast %59 : vector<1x1x80x128xf32> to vector<80x128xf32>
    %61 = arith.mulf %58, %60 : vector<80x128xf32>
    %c0_88 = arith.constant 0 : index
    %c1664 = arith.constant 1664 : index
    %62 = vector.load %arg6[%c0_88, %c1664] : memref<80x3328xf32, #tpu.memory_space<vmem>>, vector<80x128xf32>
    tpu.vector_store %arg6[%c0_88, %c1664], %61 {strides = array<i32>} : memref<80x3328xf32, #tpu.memory_space<vmem>>, vector<80x128xf32>,
    %c0_89 = arith.constant 0 : index
    %c1_90 = arith.constant 1 : index
    %c0_91 = arith.constant 0 : index
    %c0_92 = arith.constant 0 : index
    %63 = vector.load %arg1[%c0_89, %c1_90, %c0_91, %c0_92] : memref<1x5x80x128xf32, #tpu.memory_space<vmem>>, vector<1x1x80x128xf32>
    %64 = vector.shape_cast %63 : vector<1x1x80x128xf32> to vector<80x128xf32>
    %c0_93 = arith.constant 0 : index
    %c2_94 = arith.constant 2 : index
    %c0_95 = arith.constant 0 : index
    %c0_96 = arith.constant 0 : index
    %65 = vector.load %arg1[%c0_93, %c2_94, %c0_95, %c0_96] : memref<1x5x80x128xf32, #tpu.memory_space<vmem>>, vector<1x1x80x128xf32>
    %66 = vector.shape_cast %65 : vector<1x1x80x128xf32> to vector<80x128xf32>
    %67 = arith.mulf %64, %66 : vector<80x128xf32>
    %c0_97 = arith.constant 0 : index
    %c1792 = arith.constant 1792 : index
    %68 = vector.load %arg6[%c0_97, %c1792] : memref<80x3328xf32, #tpu.memory_space<vmem>>, vector<80x128xf32>
    tpu.vector_store %arg6[%c0_97, %c1792], %67 {strides = array<i32>} : memref<80x3328xf32, #tpu.memory_space<vmem>>, vector<80x128xf32>,
    %c0_98 = arith.constant 0 : index
    %c1_99 = arith.constant 1 : index
    %c0_100 = arith.constant 0 : index
    %c0_101 = arith.constant 0 : index
    %69 = vector.load %arg1[%c0_98, %c1_99, %c0_100, %c0_101] : memref<1x5x80x128xf32, #tpu.memory_space<vmem>>, vector<1x1x80x128xf32>
    %70 = vector.shape_cast %69 : vector<1x1x80x128xf32> to vector<80x128xf32>
    %c0_102 = arith.constant 0 : index
    %c3_103 = arith.constant 3 : index
    %c0_104 = arith.constant 0 : index
    %c0_105 = arith.constant 0 : index
    %71 = vector.load %arg1[%c0_102, %c3_103, %c0_104, %c0_105] : memref<1x5x80x128xf32, #tpu.memory_space<vmem>>, vector<1x1x80x128xf32>
    %72 = vector.shape_cast %71 : vector<1x1x80x128xf32> to vector<80x128xf32>
    %73 = arith.mulf %70, %72 : vector<80x128xf32>
    %c0_106 = arith.constant 0 : index
    %c1920 = arith.constant 1920 : index
    %74 = vector.load %arg6[%c0_106, %c1920] : memref<80x3328xf32, #tpu.memory_space<vmem>>, vector<80x128xf32>
    tpu.vector_store %arg6[%c0_106, %c1920], %73 {strides = array<i32>} : memref<80x3328xf32, #tpu.memory_space<vmem>>, vector<80x128xf32>,
    %c0_107 = arith.constant 0 : index
    %c2_108 = arith.constant 2 : index
    %c0_109 = arith.constant 0 : index
    %c0_110 = arith.constant 0 : index
    %75 = vector.load %arg1[%c0_107, %c2_108, %c0_109, %c0_110] : memref<1x5x80x128xf32, #tpu.memory_space<vmem>>, vector<1x1x80x128xf32>
    %76 = vector.shape_cast %75 : vector<1x1x80x128xf32> to vector<80x128xf32>
    %c0_111 = arith.constant 0 : index
    %c0_112 = arith.constant 0 : index
    %c0_113 = arith.constant 0 : index
    %c0_114 = arith.constant 0 : index
    %77 = vector.load %arg1[%c0_111, %c0_112, %c0_113, %c0_114] : memref<1x5x80x128xf32, #tpu.memory_space<vmem>>, vector<1x1x80x128xf32>
    %78 = vector.shape_cast %77 : vector<1x1x80x128xf32> to vector<80x128xf32>
    %79 = arith.mulf %76, %78 : vector<80x128xf32>
    %c0_115 = arith.constant 0 : index
    %c2048 = arith.constant 2048 : index
    %80 = vector.load %arg6[%c0_115, %c2048] : memref<80x3328xf32, #tpu.memory_space<vmem>>, vector<80x128xf32>
    tpu.vector_store %arg6[%c0_115, %c2048], %79 {strides = array<i32>} : memref<80x3328xf32, #tpu.memory_space<vmem>>, vector<80x128xf32>,
    %c0_116 = arith.constant 0 : index
    %c2_117 = arith.constant 2 : index
    %c0_118 = arith.constant 0 : index
    %c0_119 = arith.constant 0 : index
    %81 = vector.load %arg1[%c0_116, %c2_117, %c0_118, %c0_119] : memref<1x5x80x128xf32, #tpu.memory_space<vmem>>, vector<1x1x80x128xf32>
    %82 = vector.shape_cast %81 : vector<1x1x80x128xf32> to vector<80x128xf32>
    %c0_120 = arith.constant 0 : index
    %c1_121 = arith.constant 1 : index
    %c0_122 = arith.constant 0 : index
    %c0_123 = arith.constant 0 : index
    %83 = vector.load %arg1[%c0_120, %c1_121, %c0_122, %c0_123] : memref<1x5x80x128xf32, #tpu.memory_space<vmem>>, vector<1x1x80x128xf32>
    %84 = vector.shape_cast %83 : vector<1x1x80x128xf32> to vector<80x128xf32>
    %85 = arith.mulf %82, %84 : vector<80x128xf32>
    %c0_124 = arith.constant 0 : index
    %c2176 = arith.constant 2176 : index
    %86 = vector.load %arg6[%c0_124, %c2176] : memref<80x3328xf32, #tpu.memory_space<vmem>>, vector<80x128xf32>
    tpu.vector_store %arg6[%c0_124, %c2176], %85 {strides = array<i32>} : memref<80x3328xf32, #tpu.memory_space<vmem>>, vector<80x128xf32>,
    %c0_125 = arith.constant 0 : index
    %c2_126 = arith.constant 2 : index
    %c0_127 = arith.constant 0 : index
    %c0_128 = arith.constant 0 : index
    %87 = vector.load %arg1[%c0_125, %c2_126, %c0_127, %c0_128] : memref<1x5x80x128xf32, #tpu.memory_space<vmem>>, vector<1x1x80x128xf32>
    %88 = vector.shape_cast %87 : vector<1x1x80x128xf32> to vector<80x128xf32>
    %c0_129 = arith.constant 0 : index
    %c3_130 = arith.constant 3 : index
    %c0_131 = arith.constant 0 : index
    %c0_132 = arith.constant 0 : index
    %89 = vector.load %arg1[%c0_129, %c3_130, %c0_131, %c0_132] : memref<1x5x80x128xf32, #tpu.memory_space<vmem>>, vector<1x1x80x128xf32>
    %90 = vector.shape_cast %89 : vector<1x1x80x128xf32> to vector<80x128xf32>
    %91 = arith.mulf %88, %90 : vector<80x128xf32>
    %c0_133 = arith.constant 0 : index
    %c2304 = arith.constant 2304 : index
    %92 = vector.load %arg6[%c0_133, %c2304] : memref<80x3328xf32, #tpu.memory_space<vmem>>, vector<80x128xf32>
    tpu.vector_store %arg6[%c0_133, %c2304], %91 {strides = array<i32>} : memref<80x3328xf32, #tpu.memory_space<vmem>>, vector<80x128xf32>,
    %c0_134 = arith.constant 0 : index
    %c3_135 = arith.constant 3 : index
    %c0_136 = arith.constant 0 : index
    %c0_137 = arith.constant 0 : index
    %93 = vector.load %arg1[%c0_134, %c3_135, %c0_136, %c0_137] : memref<1x5x80x128xf32, #tpu.memory_space<vmem>>, vector<1x1x80x128xf32>
    %94 = vector.shape_cast %93 : vector<1x1x80x128xf32> to vector<80x128xf32>
    %c0_138 = arith.constant 0 : index
    %c0_139 = arith.constant 0 : index
    %c0_140 = arith.constant 0 : index
    %c0_141 = arith.constant 0 : index
    %95 = vector.load %arg1[%c0_138, %c0_139, %c0_140, %c0_141] : memref<1x5x80x128xf32, #tpu.memory_space<vmem>>, vector<1x1x80x128xf32>
    %96 = vector.shape_cast %95 : vector<1x1x80x128xf32> to vector<80x128xf32>
    %97 = arith.mulf %94, %96 : vector<80x128xf32>
    %c0_142 = arith.constant 0 : index
    %c2432 = arith.constant 2432 : index
    %98 = vector.load %arg6[%c0_142, %c2432] : memref<80x3328xf32, #tpu.memory_space<vmem>>, vector<80x128xf32>
    tpu.vector_store %arg6[%c0_142, %c2432], %97 {strides = array<i32>} : memref<80x3328xf32, #tpu.memory_space<vmem>>, vector<80x128xf32>,
    %c0_143 = arith.constant 0 : index
    %c3_144 = arith.constant 3 : index
    %c0_145 = arith.constant 0 : index
    %c0_146 = arith.constant 0 : index
    %99 = vector.load %arg1[%c0_143, %c3_144, %c0_145, %c0_146] : memref<1x5x80x128xf32, #tpu.memory_space<vmem>>, vector<1x1x80x128xf32>
    %100 = vector.shape_cast %99 : vector<1x1x80x128xf32> to vector<80x128xf32>
    %c0_147 = arith.constant 0 : index
    %c1_148 = arith.constant 1 : index
    %c0_149 = arith.constant 0 : index
    %c0_150 = arith.constant 0 : index
    %101 = vector.load %arg1[%c0_147, %c1_148, %c0_149, %c0_150] : memref<1x5x80x128xf32, #tpu.memory_space<vmem>>, vector<1x1x80x128xf32>
    %102 = vector.shape_cast %101 : vector<1x1x80x128xf32> to vector<80x128xf32>
    %103 = arith.mulf %100, %102 : vector<80x128xf32>
    %c0_151 = arith.constant 0 : index
    %c2560 = arith.constant 2560 : index
    %104 = vector.load %arg6[%c0_151, %c2560] : memref<80x3328xf32, #tpu.memory_space<vmem>>, vector<80x128xf32>
    tpu.vector_store %arg6[%c0_151, %c2560], %103 {strides = array<i32>} : memref<80x3328xf32, #tpu.memory_space<vmem>>, vector<80x128xf32>,
    %c0_152 = arith.constant 0 : index
    %c3_153 = arith.constant 3 : index
    %c0_154 = arith.constant 0 : index
    %c0_155 = arith.constant 0 : index
    %105 = vector.load %arg1[%c0_152, %c3_153, %c0_154, %c0_155] : memref<1x5x80x128xf32, #tpu.memory_space<vmem>>, vector<1x1x80x128xf32>
    %106 = vector.shape_cast %105 : vector<1x1x80x128xf32> to vector<80x128xf32>
    %c0_156 = arith.constant 0 : index
    %c2_157 = arith.constant 2 : index
    %c0_158 = arith.constant 0 : index
    %c0_159 = arith.constant 0 : index
    %107 = vector.load %arg1[%c0_156, %c2_157, %c0_158, %c0_159] : memref<1x5x80x128xf32, #tpu.memory_space<vmem>>, vector<1x1x80x128xf32>
    %108 = vector.shape_cast %107 : vector<1x1x80x128xf32> to vector<80x128xf32>
    %109 = arith.mulf %106, %108 : vector<80x128xf32>
    %c0_160 = arith.constant 0 : index
    %c2688 = arith.constant 2688 : index
    %110 = vector.load %arg6[%c0_160, %c2688] : memref<80x3328xf32, #tpu.memory_space<vmem>>, vector<80x128xf32>
    tpu.vector_store %arg6[%c0_160, %c2688], %109 {strides = array<i32>} : memref<80x3328xf32, #tpu.memory_space<vmem>>, vector<80x128xf32>,
    %c0_161 = arith.constant 0 : index
    %c0_162 = arith.constant 0 : index
    %c0_163 = arith.constant 0 : index
    %c0_164 = arith.constant 0 : index
    %111 = vector.load %arg1[%c0_161, %c0_162, %c0_163, %c0_164] : memref<1x5x80x128xf32, #tpu.memory_space<vmem>>, vector<1x1x80x128xf32>
    %112 = vector.shape_cast %111 : vector<1x1x80x128xf32> to vector<80x128xf32>
    %c0_165 = arith.constant 0 : index
    %c4_166 = arith.constant 4 : index
    %c0_167 = arith.constant 0 : index
    %c0_168 = arith.constant 0 : index
    %113 = vector.load %arg1[%c0_165, %c4_166, %c0_167, %c0_168] : memref<1x5x80x128xf32, #tpu.memory_space<vmem>>, vector<1x1x80x128xf32>
    %114 = vector.shape_cast %113 : vector<1x1x80x128xf32> to vector<80x128xf32>
    %115 = arith.mulf %112, %114 : vector<80x128xf32>
    %c0_169 = arith.constant 0 : index
    %c2816 = arith.constant 2816 : index
    %116 = vector.load %arg6[%c0_169, %c2816] : memref<80x3328xf32, #tpu.memory_space<vmem>>, vector<80x128xf32>
    tpu.vector_store %arg6[%c0_169, %c2816], %115 {strides = array<i32>} : memref<80x3328xf32, #tpu.memory_space<vmem>>, vector<80x128xf32>,
    %c0_170 = arith.constant 0 : index
    %c1_171 = arith.constant 1 : index
    %c0_172 = arith.constant 0 : index
    %c0_173 = arith.constant 0 : index
    %117 = vector.load %arg1[%c0_170, %c1_171, %c0_172, %c0_173] : memref<1x5x80x128xf32, #tpu.memory_space<vmem>>, vector<1x1x80x128xf32>
    %118 = vector.shape_cast %117 : vector<1x1x80x128xf32> to vector<80x128xf32>
    %c0_174 = arith.constant 0 : index
    %c4_175 = arith.constant 4 : index
    %c0_176 = arith.constant 0 : index
    %c0_177 = arith.constant 0 : index
    %119 = vector.load %arg1[%c0_174, %c4_175, %c0_176, %c0_177] : memref<1x5x80x128xf32, #tpu.memory_space<vmem>>, vector<1x1x80x128xf32>
    %120 = vector.shape_cast %119 : vector<1x1x80x128xf32> to vector<80x128xf32>
    %121 = arith.mulf %118, %120 : vector<80x128xf32>
    %c0_178 = arith.constant 0 : index
    %c2944 = arith.constant 2944 : index
    %122 = vector.load %arg6[%c0_178, %c2944] : memref<80x3328xf32, #tpu.memory_space<vmem>>, vector<80x128xf32>
    tpu.vector_store %arg6[%c0_178, %c2944], %121 {strides = array<i32>} : memref<80x3328xf32, #tpu.memory_space<vmem>>, vector<80x128xf32>,
    %c0_179 = arith.constant 0 : index
    %c2_180 = arith.constant 2 : index
    %c0_181 = arith.constant 0 : index
    %c0_182 = arith.constant 0 : index
    %123 = vector.load %arg1[%c0_179, %c2_180, %c0_181, %c0_182] : memref<1x5x80x128xf32, #tpu.memory_space<vmem>>, vector<1x1x80x128xf32>
    %124 = vector.shape_cast %123 : vector<1x1x80x128xf32> to vector<80x128xf32>
    %c0_183 = arith.constant 0 : index
    %c4_184 = arith.constant 4 : index
    %c0_185 = arith.constant 0 : index
    %c0_186 = arith.constant 0 : index
    %125 = vector.load %arg1[%c0_183, %c4_184, %c0_185, %c0_186] : memref<1x5x80x128xf32, #tpu.memory_space<vmem>>, vector<1x1x80x128xf32>
    %126 = vector.shape_cast %125 : vector<1x1x80x128xf32> to vector<80x128xf32>
    %127 = arith.mulf %124, %126 : vector<80x128xf32>
    %c0_187 = arith.constant 0 : index
    %c3072 = arith.constant 3072 : index
    %128 = vector.load %arg6[%c0_187, %c3072] : memref<80x3328xf32, #tpu.memory_space<vmem>>, vector<80x128xf32>
    tpu.vector_store %arg6[%c0_187, %c3072], %127 {strides = array<i32>} : memref<80x3328xf32, #tpu.memory_space<vmem>>, vector<80x128xf32>,
    %c0_188 = arith.constant 0 : index
    %c3_189 = arith.constant 3 : index
    %c0_190 = arith.constant 0 : index
    %c0_191 = arith.constant 0 : index
    %129 = vector.load %arg1[%c0_188, %c3_189, %c0_190, %c0_191] : memref<1x5x80x128xf32, #tpu.memory_space<vmem>>, vector<1x1x80x128xf32>
    %130 = vector.shape_cast %129 : vector<1x1x80x128xf32> to vector<80x128xf32>
    %c0_192 = arith.constant 0 : index
    %c4_193 = arith.constant 4 : index
    %c0_194 = arith.constant 0 : index
    %c0_195 = arith.constant 0 : index
    %131 = vector.load %arg1[%c0_192, %c4_193, %c0_194, %c0_195] : memref<1x5x80x128xf32, #tpu.memory_space<vmem>>, vector<1x1x80x128xf32>
    %132 = vector.shape_cast %131 : vector<1x1x80x128xf32> to vector<80x128xf32>
    %133 = arith.mulf %130, %132 : vector<80x128xf32>
    %c0_196 = arith.constant 0 : index
    %c3200 = arith.constant 3200 : index
    %134 = vector.load %arg6[%c0_196, %c3200] : memref<80x3328xf32, #tpu.memory_space<vmem>>, vector<80x128xf32>
    tpu.vector_store %arg6[%c0_196, %c3200], %133 {strides = array<i32>} : memref<80x3328xf32, #tpu.memory_space<vmem>>, vector<80x128xf32>,
    %c0_197 = arith.constant 0 : index
    %c0_198 = arith.constant 0 : index
    %135 = vector.load %arg6[%c0_197, %c0_198] : memref<80x3328xf32, #tpu.memory_space<vmem>>, vector<80x3328xf32>
    %cst = arith.constant dense<0.000000e+00> : vector<64x3328xf32>
    %136 = tpu.matmul %0, %135, %cst {dimension_numbers = #tpu.dot_dimension_numbers<[1], [0], [0], [1], [0, 0, 1, 1], [], []>} : vector<64x80xf32>, vector<80x3328xf32>, vector<64x3328xf32> -> vector<64x3328xf32>
    %c0_199 = arith.constant 0 : index
    %c0_200 = arith.constant 0 : index
    %137 = vector.load %arg7[%c0_199, %c0_200] : memref<64x3328xf32, #tpu.memory_space<vmem>>, vector<64x3328xf32>
    tpu.vector_store %arg7[%c0_199, %c0_200], %136 {strides = array<i32>} : memref<64x3328xf32, #tpu.memory_space<vmem>>, vector<64x3328xf32>,
    %c0_201 = arith.constant 0 : index
    %c0_202 = arith.constant 0 : index
    %138 = vector.load %arg7[%c0_201, %c0_202] : memref<64x3328xf32, #tpu.memory_space<vmem>>, vector<64x128xf32>
    %c0_203 = arith.constant 0 : index
    %c0_204 = arith.constant 0 : index
    %139 = vector.load %arg8[%c0_203, %c0_204] : memref<1664x128xf32, #tpu.memory_space<vmem>>, vector<64x128xf32>
    tpu.vector_store %arg8[%c0_203, %c0_204], %138 {strides = array<i32>} : memref<1664x128xf32, #tpu.memory_space<vmem>>, vector<64x128xf32>,
    %c0_205 = arith.constant 0 : index
    %c128_206 = arith.constant 128 : index
    %140 = vector.load %arg7[%c0_205, %c128_206] : memref<64x3328xf32, #tpu.memory_space<vmem>>, vector<64x128xf32>
    %c64 = arith.constant 64 : index
    %c0_207 = arith.constant 0 : index
    %141 = vector.load %arg8[%c64, %c0_207] : memref<1664x128xf32, #tpu.memory_space<vmem>>, vector<64x128xf32>
    tpu.vector_store %arg8[%c64, %c0_207], %140 {strides = array<i32>} : memref<1664x128xf32, #tpu.memory_space<vmem>>, vector<64x128xf32>,
    %c0_208 = arith.constant 0 : index
    %c256_209 = arith.constant 256 : index
    %142 = vector.load %arg7[%c0_208, %c256_209] : memref<64x3328xf32, #tpu.memory_space<vmem>>, vector<64x128xf32>
    %c128_210 = arith.constant 128 : index
    %c0_211 = arith.constant 0 : index
    %143 = vector.load %arg8[%c128_210, %c0_211] : memref<1664x128xf32, #tpu.memory_space<vmem>>, vector<64x128xf32>
    tpu.vector_store %arg8[%c128_210, %c0_211], %142 {strides = array<i32>} : memref<1664x128xf32, #tpu.memory_space<vmem>>, vector<64x128xf32>,
    %c0_212 = arith.constant 0 : index
    %c384_213 = arith.constant 384 : index
    %144 = vector.load %arg7[%c0_212, %c384_213] : memref<64x3328xf32, #tpu.memory_space<vmem>>, vector<64x128xf32>
    %c192 = arith.constant 192 : index
    %c0_214 = arith.constant 0 : index
    %145 = vector.load %arg8[%c192, %c0_214] : memref<1664x128xf32, #tpu.memory_space<vmem>>, vector<64x128xf32>
    tpu.vector_store %arg8[%c192, %c0_214], %144 {strides = array<i32>} : memref<1664x128xf32, #tpu.memory_space<vmem>>, vector<64x128xf32>,
    %c0_215 = arith.constant 0 : index
    %c512_216 = arith.constant 512 : index
    %146 = vector.load %arg7[%c0_215, %c512_216] : memref<64x3328xf32, #tpu.memory_space<vmem>>, vector<64x128xf32>
    %c256_217 = arith.constant 256 : index
    %c0_218 = arith.constant 0 : index
    %147 = vector.load %arg8[%c256_217, %c0_218] : memref<1664x128xf32, #tpu.memory_space<vmem>>, vector<64x128xf32>
    tpu.vector_store %arg8[%c256_217, %c0_218], %146 {strides = array<i32>} : memref<1664x128xf32, #tpu.memory_space<vmem>>, vector<64x128xf32>,
    %c0_219 = arith.constant 0 : index
    %c640_220 = arith.constant 640 : index
    %148 = vector.load %arg7[%c0_219, %c640_220] : memref<64x3328xf32, #tpu.memory_space<vmem>>, vector<64x128xf32>
    %c320 = arith.constant 320 : index
    %c0_221 = arith.constant 0 : index
    %149 = vector.load %arg8[%c320, %c0_221] : memref<1664x128xf32, #tpu.memory_space<vmem>>, vector<64x128xf32>
    tpu.vector_store %arg8[%c320, %c0_221], %148 {strides = array<i32>} : memref<1664x128xf32, #tpu.memory_space<vmem>>, vector<64x128xf32>,
    %c0_222 = arith.constant 0 : index
    %c768_223 = arith.constant 768 : index
    %150 = vector.load %arg7[%c0_222, %c768_223] : memref<64x3328xf32, #tpu.memory_space<vmem>>, vector<64x128xf32>
    %c384_224 = arith.constant 384 : index
    %c0_225 = arith.constant 0 : index
    %151 = vector.load %arg8[%c384_224, %c0_225] : memref<1664x128xf32, #tpu.memory_space<vmem>>, vector<64x128xf32>
    tpu.vector_store %arg8[%c384_224, %c0_225], %150 {strides = array<i32>} : memref<1664x128xf32, #tpu.memory_space<vmem>>, vector<64x128xf32>,
    %c0_226 = arith.constant 0 : index
    %c896_227 = arith.constant 896 : index
    %152 = vector.load %arg7[%c0_226, %c896_227] : memref<64x3328xf32, #tpu.memory_space<vmem>>, vector<64x128xf32>
    %c448 = arith.constant 448 : index
    %c0_228 = arith.constant 0 : index
    %153 = vector.load %arg8[%c448, %c0_228] : memref<1664x128xf32, #tpu.memory_space<vmem>>, vector<64x128xf32>
    tpu.vector_store %arg8[%c448, %c0_228], %152 {strides = array<i32>} : memref<1664x128xf32, #tpu.memory_space<vmem>>, vector<64x128xf32>,
    %c0_229 = arith.constant 0 : index
    %c1024_230 = arith.constant 1024 : index
    %154 = vector.load %arg7[%c0_229, %c1024_230] : memref<64x3328xf32, #tpu.memory_space<vmem>>, vector<64x128xf32>
    %c512_231 = arith.constant 512 : index
    %c0_232 = arith.constant 0 : index
    %155 = vector.load %arg8[%c512_231, %c0_232] : memref<1664x128xf32, #tpu.memory_space<vmem>>, vector<64x128xf32>
    tpu.vector_store %arg8[%c512_231, %c0_232], %154 {strides = array<i32>} : memref<1664x128xf32, #tpu.memory_space<vmem>>, vector<64x128xf32>,
    %c0_233 = arith.constant 0 : index
    %c1152_234 = arith.constant 1152 : index
    %156 = vector.load %arg7[%c0_233, %c1152_234] : memref<64x3328xf32, #tpu.memory_space<vmem>>, vector<64x128xf32>
    %c576 = arith.constant 576 : index
    %c0_235 = arith.constant 0 : index
    %157 = vector.load %arg8[%c576, %c0_235] : memref<1664x128xf32, #tpu.memory_space<vmem>>, vector<64x128xf32>
    tpu.vector_store %arg8[%c576, %c0_235], %156 {strides = array<i32>} : memref<1664x128xf32, #tpu.memory_space<vmem>>, vector<64x128xf32>,
    %c0_236 = arith.constant 0 : index
    %c1280_237 = arith.constant 1280 : index
    %158 = vector.load %arg7[%c0_236, %c1280_237] : memref<64x3328xf32, #tpu.memory_space<vmem>>, vector<64x128xf32>
    %c640_238 = arith.constant 640 : index
    %c0_239 = arith.constant 0 : index
    %159 = vector.load %arg8[%c640_238, %c0_239] : memref<1664x128xf32, #tpu.memory_space<vmem>>, vector<64x128xf32>
    tpu.vector_store %arg8[%c640_238, %c0_239], %158 {strides = array<i32>} : memref<1664x128xf32, #tpu.memory_space<vmem>>, vector<64x128xf32>,
    %c0_240 = arith.constant 0 : index
    %c1408_241 = arith.constant 1408 : index
    %160 = vector.load %arg7[%c0_240, %c1408_241] : memref<64x3328xf32, #tpu.memory_space<vmem>>, vector<64x128xf32>
    %c704 = arith.constant 704 : index
    %c0_242 = arith.constant 0 : index
    %161 = vector.load %arg8[%c704, %c0_242] : memref<1664x128xf32, #tpu.memory_space<vmem>>, vector<64x128xf32>
    tpu.vector_store %arg8[%c704, %c0_242], %160 {strides = array<i32>} : memref<1664x128xf32, #tpu.memory_space<vmem>>, vector<64x128xf32>,
    %c0_243 = arith.constant 0 : index
    %c1536_244 = arith.constant 1536 : index
    %162 = vector.load %arg7[%c0_243, %c1536_244] : memref<64x3328xf32, #tpu.memory_space<vmem>>, vector<64x128xf32>
    %c768_245 = arith.constant 768 : index
    %c0_246 = arith.constant 0 : index
    %163 = vector.load %arg8[%c768_245, %c0_246] : memref<1664x128xf32, #tpu.memory_space<vmem>>, vector<64x128xf32>
    tpu.vector_store %arg8[%c768_245, %c0_246], %162 {strides = array<i32>} : memref<1664x128xf32, #tpu.memory_space<vmem>>, vector<64x128xf32>,
    %c0_247 = arith.constant 0 : index
    %c1664_248 = arith.constant 1664 : index
    %164 = vector.load %arg7[%c0_247, %c1664_248] : memref<64x3328xf32, #tpu.memory_space<vmem>>, vector<64x128xf32>
    %c832 = arith.constant 832 : index
    %c0_249 = arith.constant 0 : index
    %165 = vector.load %arg8[%c832, %c0_249] : memref<1664x128xf32, #tpu.memory_space<vmem>>, vector<64x128xf32>
    tpu.vector_store %arg8[%c832, %c0_249], %164 {strides = array<i32>} : memref<1664x128xf32, #tpu.memory_space<vmem>>, vector<64x128xf32>,
    %c0_250 = arith.constant 0 : index
    %c1792_251 = arith.constant 1792 : index
    %166 = vector.load %arg7[%c0_250, %c1792_251] : memref<64x3328xf32, #tpu.memory_space<vmem>>, vector<64x128xf32>
    %c896_252 = arith.constant 896 : index
    %c0_253 = arith.constant 0 : index
    %167 = vector.load %arg8[%c896_252, %c0_253] : memref<1664x128xf32, #tpu.memory_space<vmem>>, vector<64x128xf32>
    tpu.vector_store %arg8[%c896_252, %c0_253], %166 {strides = array<i32>} : memref<1664x128xf32, #tpu.memory_space<vmem>>, vector<64x128xf32>,
    %c0_254 = arith.constant 0 : index
    %c1920_255 = arith.constant 1920 : index
    %168 = vector.load %arg7[%c0_254, %c1920_255] : memref<64x3328xf32, #tpu.memory_space<vmem>>, vector<64x128xf32>
    %c960 = arith.constant 960 : index
    %c0_256 = arith.constant 0 : index
    %169 = vector.load %arg8[%c960, %c0_256] : memref<1664x128xf32, #tpu.memory_space<vmem>>, vector<64x128xf32>
    tpu.vector_store %arg8[%c960, %c0_256], %168 {strides = array<i32>} : memref<1664x128xf32, #tpu.memory_space<vmem>>, vector<64x128xf32>,
    %c0_257 = arith.constant 0 : index
    %c2048_258 = arith.constant 2048 : index
    %170 = vector.load %arg7[%c0_257, %c2048_258] : memref<64x3328xf32, #tpu.memory_space<vmem>>, vector<64x128xf32>
    %c1024_259 = arith.constant 1024 : index
    %c0_260 = arith.constant 0 : index
    %171 = vector.load %arg8[%c1024_259, %c0_260] : memref<1664x128xf32, #tpu.memory_space<vmem>>, vector<64x128xf32>
    tpu.vector_store %arg8[%c1024_259, %c0_260], %170 {strides = array<i32>} : memref<1664x128xf32, #tpu.memory_space<vmem>>, vector<64x128xf32>,
    %c0_261 = arith.constant 0 : index
    %c2176_262 = arith.constant 2176 : index
    %172 = vector.load %arg7[%c0_261, %c2176_262] : memref<64x3328xf32, #tpu.memory_space<vmem>>, vector<64x128xf32>
    %c1088 = arith.constant 1088 : index
    %c0_263 = arith.constant 0 : index
    %173 = vector.load %arg8[%c1088, %c0_263] : memref<1664x128xf32, #tpu.memory_space<vmem>>, vector<64x128xf32>
    tpu.vector_store %arg8[%c1088, %c0_263], %172 {strides = array<i32>} : memref<1664x128xf32, #tpu.memory_space<vmem>>, vector<64x128xf32>,
    %c0_264 = arith.constant 0 : index
    %c2304_265 = arith.constant 2304 : index
    %174 = vector.load %arg7[%c0_264, %c2304_265] : memref<64x3328xf32, #tpu.memory_space<vmem>>, vector<64x128xf32>
    %c1152_266 = arith.constant 1152 : index
    %c0_267 = arith.constant 0 : index
    %175 = vector.load %arg8[%c1152_266, %c0_267] : memref<1664x128xf32, #tpu.memory_space<vmem>>, vector<64x128xf32>
    tpu.vector_store %arg8[%c1152_266, %c0_267], %174 {strides = array<i32>} : memref<1664x128xf32, #tpu.memory_space<vmem>>, vector<64x128xf32>,
    %c0_268 = arith.constant 0 : index
    %c2432_269 = arith.constant 2432 : index
    %176 = vector.load %arg7[%c0_268, %c2432_269] : memref<64x3328xf32, #tpu.memory_space<vmem>>, vector<64x128xf32>
    %c1216 = arith.constant 1216 : index
    %c0_270 = arith.constant 0 : index
    %177 = vector.load %arg8[%c1216, %c0_270] : memref<1664x128xf32, #tpu.memory_space<vmem>>, vector<64x128xf32>
    tpu.vector_store %arg8[%c1216, %c0_270], %176 {strides = array<i32>} : memref<1664x128xf32, #tpu.memory_space<vmem>>, vector<64x128xf32>,
    %c0_271 = arith.constant 0 : index
    %c2560_272 = arith.constant 2560 : index
    %178 = vector.load %arg7[%c0_271, %c2560_272] : memref<64x3328xf32, #tpu.memory_space<vmem>>, vector<64x128xf32>
    %c1280_273 = arith.constant 1280 : index
    %c0_274 = arith.constant 0 : index
    %179 = vector.load %arg8[%c1280_273, %c0_274] : memref<1664x128xf32, #tpu.memory_space<vmem>>, vector<64x128xf32>
    tpu.vector_store %arg8[%c1280_273, %c0_274], %178 {strides = array<i32>} : memref<1664x128xf32, #tpu.memory_space<vmem>>, vector<64x128xf32>,
    %c0_275 = arith.constant 0 : index
    %c2688_276 = arith.constant 2688 : index
    %180 = vector.load %arg7[%c0_275, %c2688_276] : memref<64x3328xf32, #tpu.memory_space<vmem>>, vector<64x128xf32>
    %c1344 = arith.constant 1344 : index
    %c0_277 = arith.constant 0 : index
    %181 = vector.load %arg8[%c1344, %c0_277] : memref<1664x128xf32, #tpu.memory_space<vmem>>, vector<64x128xf32>
    tpu.vector_store %arg8[%c1344, %c0_277], %180 {strides = array<i32>} : memref<1664x128xf32, #tpu.memory_space<vmem>>, vector<64x128xf32>,
    %c0_278 = arith.constant 0 : index
    %c2816_279 = arith.constant 2816 : index
    %182 = vector.load %arg7[%c0_278, %c2816_279] : memref<64x3328xf32, #tpu.memory_space<vmem>>, vector<64x128xf32>
    %c1408_280 = arith.constant 1408 : index
    %c0_281 = arith.constant 0 : index
    %183 = vector.load %arg8[%c1408_280, %c0_281] : memref<1664x128xf32, #tpu.memory_space<vmem>>, vector<64x128xf32>
    tpu.vector_store %arg8[%c1408_280, %c0_281], %182 {strides = array<i32>} : memref<1664x128xf32, #tpu.memory_space<vmem>>, vector<64x128xf32>,
    %c0_282 = arith.constant 0 : index
    %c2944_283 = arith.constant 2944 : index
    %184 = vector.load %arg7[%c0_282, %c2944_283] : memref<64x3328xf32, #tpu.memory_space<vmem>>, vector<64x128xf32>
    %c1472 = arith.constant 1472 : index
    %c0_284 = arith.constant 0 : index
    %185 = vector.load %arg8[%c1472, %c0_284] : memref<1664x128xf32, #tpu.memory_space<vmem>>, vector<64x128xf32>
    tpu.vector_store %arg8[%c1472, %c0_284], %184 {strides = array<i32>} : memref<1664x128xf32, #tpu.memory_space<vmem>>, vector<64x128xf32>,
    %c0_285 = arith.constant 0 : index
    %c3072_286 = arith.constant 3072 : index
    %186 = vector.load %arg7[%c0_285, %c3072_286] : memref<64x3328xf32, #tpu.memory_space<vmem>>, vector<64x128xf32>
    %c1536_287 = arith.constant 1536 : index
    %c0_288 = arith.constant 0 : index
    %187 = vector.load %arg8[%c1536_287, %c0_288] : memref<1664x128xf32, #tpu.memory_space<vmem>>, vector<64x128xf32>
    tpu.vector_store %arg8[%c1536_287, %c0_288], %186 {strides = array<i32>} : memref<1664x128xf32, #tpu.memory_space<vmem>>, vector<64x128xf32>,
    %c0_289 = arith.constant 0 : index
    %c3200_290 = arith.constant 3200 : index
    %188 = vector.load %arg7[%c0_289, %c3200_290] : memref<64x3328xf32, #tpu.memory_space<vmem>>, vector<64x128xf32>
    %c1600 = arith.constant 1600 : index
    %c0_291 = arith.constant 0 : index
    %189 = vector.load %arg8[%c1600, %c0_291] : memref<1664x128xf32, #tpu.memory_space<vmem>>, vector<64x128xf32>
    tpu.vector_store %arg8[%c1600, %c0_291], %188 {strides = array<i32>} : memref<1664x128xf32, #tpu.memory_space<vmem>>, vector<64x128xf32>,
    %c0_292 = arith.constant 0 : index
    %c0_293 = arith.constant 0 : index
    %190 = vector.load %arg8[%c0_292, %c0_293] : memref<1664x128xf32, #tpu.memory_space<vmem>>, vector<1664x128xf32>
    %cst_294 = arith.constant dense<0.000000e+00> : vector<1664x64xf32>
    %191 = tpu.matmul %190, %1, %cst_294 {dimension_numbers = #tpu.dot_dimension_numbers<[1], [0], [0], [1], [0, 0, 1, 1], [], []>} : vector<1664x128xf32>, vector<128x64xf32>, vector<1664x64xf32> -> vector<1664x64xf32>
    %c0_295 = arith.constant 0 : index
    %c0_296 = arith.constant 0 : index
    %192 = vector.load %arg9[%c0_295, %c0_296] : memref<1664x64xf32, #tpu.memory_space<vmem>>, vector<1664x64xf32>
    tpu.vector_store %arg9[%c0_295, %c0_296], %191 {strides = array<i32>} : memref<1664x64xf32, #tpu.memory_space<vmem>>, vector<1664x64xf32>,
    %193 = tpu.iota {dimensions = array<i32: 1>} : vector<1x128xi32>
    %cst_297 = arith.constant 0.000000e+00 : f32
    %194 = vector.broadcast %cst_297 : f32 to vector<1x128xf32>
    %c0_298 = arith.constant 0 : index
    %c0_299 = arith.constant 0 : index
    %195 = vector.load %arg9[%c0_298, %c0_299] : memref<1664x64xf32, #tpu.memory_space<vmem>>, vector<64x64xf32>
    %c64_300 = arith.constant 64 : index
    %c0_301 = arith.constant 0 : index
    %196 = vector.load %arg9[%c64_300, %c0_301] : memref<1664x64xf32, #tpu.memory_space<vmem>>, vector<64x64xf32>
    %c320_302 = arith.constant 320 : index
    %c0_303 = arith.constant 0 : index
    %197 = vector.load %arg9[%c320_302, %c0_303] : memref<1664x64xf32, #tpu.memory_space<vmem>>, vector<64x64xf32>
    %c384_304 = arith.constant 384 : index
    %c0_305 = arith.constant 0 : index
    %198 = vector.load %arg9[%c384_304, %c0_305] : memref<1664x64xf32, #tpu.memory_space<vmem>>, vector<64x64xf32>
    %c640_306 = arith.constant 640 : index
    %c0_307 = arith.constant 0 : index
    %199 = vector.load %arg9[%c640_306, %c0_307] : memref<1664x64xf32, #tpu.memory_space<vmem>>, vector<64x64xf32>
    %200 = arith.mulf %195, %195 : vector<64x64xf32>
    %201 = arith.mulf %196, %196 : vector<64x64xf32>
    %202 = arith.mulf %195, %196 : vector<64x64xf32>
    %203 = arith.subf %197, %200 : vector<64x64xf32>
    %204 = arith.subf %198, %201 : vector<64x64xf32>
    %205 = arith.subf %199, %202 : vector<64x64xf32>
    %cst_308 = arith.constant 2.000000e+00 : f32
    %206 = vector.broadcast %cst_308 : f32 to vector<64x64xf32>
    %207 = arith.mulf %206, %202 : vector<64x64xf32>
    %cst_309 = arith.constant 9.99999974E-5 : f32
    %208 = vector.broadcast %cst_309 : f32 to vector<64x64xf32>
    %209 = arith.addf %207, %208 : vector<64x64xf32>
    %cst_310 = arith.constant 2.000000e+00 : f32
    %210 = vector.broadcast %cst_310 : f32 to vector<64x64xf32>
    %211 = arith.mulf %210, %205 : vector<64x64xf32>
    %cst_311 = arith.constant 8.99999984E-4 : f32
    %212 = vector.broadcast %cst_311 : f32 to vector<64x64xf32>
    %213 = arith.addf %211, %212 : vector<64x64xf32>
    %214 = arith.mulf %209, %213 : vector<64x64xf32>
    %215 = arith.addf %200, %201 : vector<64x64xf32>
    %cst_312 = arith.constant 9.99999974E-5 : f32
    %216 = vector.broadcast %cst_312 : f32 to vector<64x64xf32>
    %217 = arith.addf %215, %216 : vector<64x64xf32>
    %218 = arith.addf %203, %204 : vector<64x64xf32>
    %cst_313 = arith.constant 8.99999984E-4 : f32
    %219 = vector.broadcast %cst_313 : f32 to vector<64x64xf32>
    %220 = arith.addf %218, %219 : vector<64x64xf32>
    %221 = arith.mulf %217, %220 : vector<64x64xf32>
    %222 = tpu.reciprocal %221 {approx = true} : vector<64x64xf32> -> vector<64x64xf32>
    %223 = arith.mulf %214, %222 : vector<64x64xf32>
    %224 = arith.mulf %223, %3 : vector<64x64xf32>
    %cst_314 = arith.constant dense<0.000000e+00> : vector<64xf32>
    %225 = vector.multi_reduction <add>, %224, %cst_314 [1] : vector<64x64xf32> to vector<64xf32>
    %226 = vector.shape_cast %225 : vector<64xf32> to vector<64x1xf32>
    %cst_315 = arith.constant dense<0.000000e+00> : vector<1xf32>
    %227 = vector.multi_reduction <add>, %226, %cst_315 [0] : vector<64x1xf32> to vector<1xf32>
    %228 = vector.shape_cast %227 : vector<1xf32> to vector<1x1xf32>
    %c0_i32 = arith.constant 0 : i32
    %229 = vector.broadcast %c0_i32 : i32 to vector<1x128xi32>
    %230 = arith.cmpi eq, %193, %229 : vector<1x128xi32>
    %cst_316 = arith.constant 0.000000e+00 : f32
    %231 = vector.shape_cast %228 : vector<1x1xf32> to vector<1x1xf32>
    %232 = vector.broadcast %231 : vector<1x1xf32> to vector<1x128xf32>
    %233 = vector.broadcast %cst_316 : f32 to vector<1x128xf32>
    %234 = arith.select %230, %232, %233 : vector<1x128xi1>, vector<1x128xf32>
    %235 = arith.addf %194, %234 : vector<1x128xf32>
    %c0_317 = arith.constant 0 : index
    %c0_318 = arith.constant 0 : index
    %236 = vector.load %arg9[%c0_317, %c0_318] : memref<1664x64xf32, #tpu.memory_space<vmem>>, vector<64x64xf32>
    %c128_319 = arith.constant 128 : index
    %c0_320 = arith.constant 0 : index
    %237 = vector.load %arg9[%c128_319, %c0_320] : memref<1664x64xf32, #tpu.memory_space<vmem>>, vector<64x64xf32>
    %c320_321 = arith.constant 320 : index
    %c0_322 = arith.constant 0 : index
    %238 = vector.load %arg9[%c320_321, %c0_322] : memref<1664x64xf32, #tpu.memory_space<vmem>>, vector<64x64xf32>
    %c448_323 = arith.constant 448 : index
    %c0_324 = arith.constant 0 : index
    %239 = vector.load %arg9[%c448_323, %c0_324] : memref<1664x64xf32, #tpu.memory_space<vmem>>, vector<64x64xf32>
    %c704_325 = arith.constant 704 : index
    %c0_326 = arith.constant 0 : index
    %240 = vector.load %arg9[%c704_325, %c0_326] : memref<1664x64xf32, #tpu.memory_space<vmem>>, vector<64x64xf32>
    %241 = arith.mulf %236, %236 : vector<64x64xf32>
    %242 = arith.mulf %237, %237 : vector<64x64xf32>
    %243 = arith.mulf %236, %237 : vector<64x64xf32>
    %244 = arith.subf %238, %241 : vector<64x64xf32>
    %245 = arith.subf %239, %242 : vector<64x64xf32>
    %246 = arith.subf %240, %243 : vector<64x64xf32>
    %cst_327 = arith.constant 2.000000e+00 : f32
    %247 = vector.broadcast %cst_327 : f32 to vector<64x64xf32>
    %248 = arith.mulf %247, %243 : vector<64x64xf32>
    %cst_328 = arith.constant 9.99999974E-5 : f32
    %249 = vector.broadcast %cst_328 : f32 to vector<64x64xf32>
    %250 = arith.addf %248, %249 : vector<64x64xf32>
    %cst_329 = arith.constant 2.000000e+00 : f32
    %251 = vector.broadcast %cst_329 : f32 to vector<64x64xf32>
    %252 = arith.mulf %251, %246 : vector<64x64xf32>
    %cst_330 = arith.constant 8.99999984E-4 : f32
    %253 = vector.broadcast %cst_330 : f32 to vector<64x64xf32>
    %254 = arith.addf %252, %253 : vector<64x64xf32>
    %255 = arith.mulf %250, %254 : vector<64x64xf32>
    %256 = arith.addf %241, %242 : vector<64x64xf32>
    %cst_331 = arith.constant 9.99999974E-5 : f32
    %257 = vector.broadcast %cst_331 : f32 to vector<64x64xf32>
    %258 = arith.addf %256, %257 : vector<64x64xf32>
    %259 = arith.addf %244, %245 : vector<64x64xf32>
    %cst_332 = arith.constant 8.99999984E-4 : f32
    %260 = vector.broadcast %cst_332 : f32 to vector<64x64xf32>
    %261 = arith.addf %259, %260 : vector<64x64xf32>
    %262 = arith.mulf %258, %261 : vector<64x64xf32>
    %263 = tpu.reciprocal %262 {approx = true} : vector<64x64xf32> -> vector<64x64xf32>
    %264 = arith.mulf %255, %263 : vector<64x64xf32>
    %265 = arith.mulf %264, %3 : vector<64x64xf32>
    %cst_333 = arith.constant dense<0.000000e+00> : vector<64xf32>
    %266 = vector.multi_reduction <add>, %265, %cst_333 [1] : vector<64x64xf32> to vector<64xf32>
    %267 = vector.shape_cast %266 : vector<64xf32> to vector<64x1xf32>
    %cst_334 = arith.constant dense<0.000000e+00> : vector<1xf32>
    %268 = vector.multi_reduction <add>, %267, %cst_334 [0] : vector<64x1xf32> to vector<1xf32>
    %269 = vector.shape_cast %268 : vector<1xf32> to vector<1x1xf32>
    %c1_i32 = arith.constant 1 : i32
    %270 = vector.broadcast %c1_i32 : i32 to vector<1x128xi32>
    %271 = arith.cmpi eq, %193, %270 : vector<1x128xi32>
    %cst_335 = arith.constant 0.000000e+00 : f32
    %272 = vector.shape_cast %269 : vector<1x1xf32> to vector<1x1xf32>
    %273 = vector.broadcast %272 : vector<1x1xf32> to vector<1x128xf32>
    %274 = vector.broadcast %cst_335 : f32 to vector<1x128xf32>
    %275 = arith.select %271, %273, %274 : vector<1x128xi1>, vector<1x128xf32>
    %276 = arith.addf %235, %275 : vector<1x128xf32>
    %c0_336 = arith.constant 0 : index
    %c0_337 = arith.constant 0 : index
    %277 = vector.load %arg9[%c0_336, %c0_337] : memref<1664x64xf32, #tpu.memory_space<vmem>>, vector<64x64xf32>
    %c192_338 = arith.constant 192 : index
    %c0_339 = arith.constant 0 : index
    %278 = vector.load %arg9[%c192_338, %c0_339] : memref<1664x64xf32, #tpu.memory_space<vmem>>, vector<64x64xf32>
    %c320_340 = arith.constant 320 : index
    %c0_341 = arith.constant 0 : index
    %279 = vector.load %arg9[%c320_340, %c0_341] : memref<1664x64xf32, #tpu.memory_space<vmem>>, vector<64x64xf32>
    %c512_342 = arith.constant 512 : index
    %c0_343 = arith.constant 0 : index
    %280 = vector.load %arg9[%c512_342, %c0_343] : memref<1664x64xf32, #tpu.memory_space<vmem>>, vector<64x64xf32>
    %c768_344 = arith.constant 768 : index
    %c0_345 = arith.constant 0 : index
    %281 = vector.load %arg9[%c768_344, %c0_345] : memref<1664x64xf32, #tpu.memory_space<vmem>>, vector<64x64xf32>
    %282 = arith.mulf %277, %277 : vector<64x64xf32>
    %283 = arith.mulf %278, %278 : vector<64x64xf32>
    %284 = arith.mulf %277, %278 : vector<64x64xf32>
    %285 = arith.subf %279, %282 : vector<64x64xf32>
    %286 = arith.subf %280, %283 : vector<64x64xf32>
    %287 = arith.subf %281, %284 : vector<64x64xf32>
    %cst_346 = arith.constant 2.000000e+00 : f32
    %288 = vector.broadcast %cst_346 : f32 to vector<64x64xf32>
    %289 = arith.mulf %288, %284 : vector<64x64xf32>
    %cst_347 = arith.constant 9.99999974E-5 : f32
    %290 = vector.broadcast %cst_347 : f32 to vector<64x64xf32>
    %291 = arith.addf %289, %290 : vector<64x64xf32>
    %cst_348 = arith.constant 2.000000e+00 : f32
    %292 = vector.broadcast %cst_348 : f32 to vector<64x64xf32>
    %293 = arith.mulf %292, %287 : vector<64x64xf32>
    %cst_349 = arith.constant 8.99999984E-4 : f32
    %294 = vector.broadcast %cst_349 : f32 to vector<64x64xf32>
    %295 = arith.addf %293, %294 : vector<64x64xf32>
    %296 = arith.mulf %291, %295 : vector<64x64xf32>
    %297 = arith.addf %282, %283 : vector<64x64xf32>
    %cst_350 = arith.constant 9.99999974E-5 : f32
    %298 = vector.broadcast %cst_350 : f32 to vector<64x64xf32>
    %299 = arith.addf %297, %298 : vector<64x64xf32>
    %300 = arith.addf %285, %286 : vector<64x64xf32>
    %cst_351 = arith.constant 8.99999984E-4 : f32
    %301 = vector.broadcast %cst_351 : f32 to vector<64x64xf32>
    %302 = arith.addf %300, %301 : vector<64x64xf32>
    %303 = arith.mulf %299, %302 : vector<64x64xf32>
    %304 = tpu.reciprocal %303 {approx = true} : vector<64x64xf32> -> vector<64x64xf32>
    %305 = arith.mulf %296, %304 : vector<64x64xf32>
    %306 = arith.mulf %305, %3 : vector<64x64xf32>
    %cst_352 = arith.constant dense<0.000000e+00> : vector<64xf32>
    %307 = vector.multi_reduction <add>, %306, %cst_352 [1] : vector<64x64xf32> to vector<64xf32>
    %308 = vector.shape_cast %307 : vector<64xf32> to vector<64x1xf32>
    %cst_353 = arith.constant dense<0.000000e+00> : vector<1xf32>
    %309 = vector.multi_reduction <add>, %308, %cst_353 [0] : vector<64x1xf32> to vector<1xf32>
    %310 = vector.shape_cast %309 : vector<1xf32> to vector<1x1xf32>
    %c2_i32 = arith.constant 2 : i32
    %311 = vector.broadcast %c2_i32 : i32 to vector<1x128xi32>
    %312 = arith.cmpi eq, %193, %311 : vector<1x128xi32>
    %cst_354 = arith.constant 0.000000e+00 : f32
    %313 = vector.shape_cast %310 : vector<1x1xf32> to vector<1x1xf32>
    %314 = vector.broadcast %313 : vector<1x1xf32> to vector<1x128xf32>
    %315 = vector.broadcast %cst_354 : f32 to vector<1x128xf32>
    %316 = arith.select %312, %314, %315 : vector<1x128xi1>, vector<1x128xf32>
    %317 = arith.addf %276, %316 : vector<1x128xf32>
    %c64_355 = arith.constant 64 : index
    %c0_356 = arith.constant 0 : index
    %318 = vector.load %arg9[%c64_355, %c0_356] : memref<1664x64xf32, #tpu.memory_space<vmem>>, vector<64x64xf32>
    %c0_357 = arith.constant 0 : index
    %c0_358 = arith.constant 0 : index
    %319 = vector.load %arg9[%c0_357, %c0_358] : memref<1664x64xf32, #tpu.memory_space<vmem>>, vector<64x64xf32>
    %c384_359 = arith.constant 384 : index
    %c0_360 = arith.constant 0 : index
    %320 = vector.load %arg9[%c384_359, %c0_360] : memref<1664x64xf32, #tpu.memory_space<vmem>>, vector<64x64xf32>
    %c320_361 = arith.constant 320 : index
    %c0_362 = arith.constant 0 : index
    %321 = vector.load %arg9[%c320_361, %c0_362] : memref<1664x64xf32, #tpu.memory_space<vmem>>, vector<64x64xf32>
    %c832_363 = arith.constant 832 : index
    %c0_364 = arith.constant 0 : index
    %322 = vector.load %arg9[%c832_363, %c0_364] : memref<1664x64xf32, #tpu.memory_space<vmem>>, vector<64x64xf32>
    %323 = arith.mulf %318, %318 : vector<64x64xf32>
    %324 = arith.mulf %319, %319 : vector<64x64xf32>
    %325 = arith.mulf %318, %319 : vector<64x64xf32>
    %326 = arith.subf %320, %323 : vector<64x64xf32>
    %327 = arith.subf %321, %324 : vector<64x64xf32>
    %328 = arith.subf %322, %325 : vector<64x64xf32>
    %cst_365 = arith.constant 2.000000e+00 : f32
    %329 = vector.broadcast %cst_365 : f32 to vector<64x64xf32>
    %330 = arith.mulf %329, %325 : vector<64x64xf32>
    %cst_366 = arith.constant 9.99999974E-5 : f32
    %331 = vector.broadcast %cst_366 : f32 to vector<64x64xf32>
    %332 = arith.addf %330, %331 : vector<64x64xf32>
    %cst_367 = arith.constant 2.000000e+00 : f32
    %333 = vector.broadcast %cst_367 : f32 to vector<64x64xf32>
    %334 = arith.mulf %333, %328 : vector<64x64xf32>
    %cst_368 = arith.constant 8.99999984E-4 : f32
    %335 = vector.broadcast %cst_368 : f32 to vector<64x64xf32>
    %336 = arith.addf %334, %335 : vector<64x64xf32>
    %337 = arith.mulf %332, %336 : vector<64x64xf32>
    %338 = arith.addf %323, %324 : vector<64x64xf32>
    %cst_369 = arith.constant 9.99999974E-5 : f32
    %339 = vector.broadcast %cst_369 : f32 to vector<64x64xf32>
    %340 = arith.addf %338, %339 : vector<64x64xf32>
    %341 = arith.addf %326, %327 : vector<64x64xf32>
    %cst_370 = arith.constant 8.99999984E-4 : f32
    %342 = vector.broadcast %cst_370 : f32 to vector<64x64xf32>
    %343 = arith.addf %341, %342 : vector<64x64xf32>
    %344 = arith.mulf %340, %343 : vector<64x64xf32>
    %345 = tpu.reciprocal %344 {approx = true} : vector<64x64xf32> -> vector<64x64xf32>
    %346 = arith.mulf %337, %345 : vector<64x64xf32>
    %347 = arith.mulf %346, %3 : vector<64x64xf32>
    %cst_371 = arith.constant dense<0.000000e+00> : vector<64xf32>
    %348 = vector.multi_reduction <add>, %347, %cst_371 [1] : vector<64x64xf32> to vector<64xf32>
    %349 = vector.shape_cast %348 : vector<64xf32> to vector<64x1xf32>
    %cst_372 = arith.constant dense<0.000000e+00> : vector<1xf32>
    %350 = vector.multi_reduction <add>, %349, %cst_372 [0] : vector<64x1xf32> to vector<1xf32>
    %351 = vector.shape_cast %350 : vector<1xf32> to vector<1x1xf32>
    %c3_i32 = arith.constant 3 : i32
    %352 = vector.broadcast %c3_i32 : i32 to vector<1x128xi32>
    %353 = arith.cmpi eq, %193, %352 : vector<1x128xi32>
    %cst_373 = arith.constant 0.000000e+00 : f32
    %354 = vector.shape_cast %351 : vector<1x1xf32> to vector<1x1xf32>
    %355 = vector.broadcast %354 : vector<1x1xf32> to vector<1x128xf32>
    %356 = vector.broadcast %cst_373 : f32 to vector<1x128xf32>
    %357 = arith.select %353, %355, %356 : vector<1x128xi1>, vector<1x128xf32>
    %358 = arith.addf %317, %357 : vector<1x128xf32>
    %c64_374 = arith.constant 64 : index
    %c0_375 = arith.constant 0 : index
    %359 = vector.load %arg9[%c64_374, %c0_375] : memref<1664x64xf32, #tpu.memory_space<vmem>>, vector<64x64xf32>
    %c128_376 = arith.constant 128 : index
    %c0_377 = arith.constant 0 : index
    %360 = vector.load %arg9[%c128_376, %c0_377] : memref<1664x64xf32, #tpu.memory_space<vmem>>, vector<64x64xf32>
    %c384_378 = arith.constant 384 : index
    %c0_379 = arith.constant 0 : index
    %361 = vector.load %arg9[%c384_378, %c0_379] : memref<1664x64xf32, #tpu.memory_space<vmem>>, vector<64x64xf32>
    %c448_380 = arith.constant 448 : index
    %c0_381 = arith.constant 0 : index
    %362 = vector.load %arg9[%c448_380, %c0_381] : memref<1664x64xf32, #tpu.memory_space<vmem>>, vector<64x64xf32>
    %c896_382 = arith.constant 896 : index
    %c0_383 = arith.constant 0 : index
    %363 = vector.load %arg9[%c896_382, %c0_383] : memref<1664x64xf32, #tpu.memory_space<vmem>>, vector<64x64xf32>
    %364 = arith.mulf %359, %359 : vector<64x64xf32>
    %365 = arith.mulf %360, %360 : vector<64x64xf32>
    %366 = arith.mulf %359, %360 : vector<64x64xf32>
    %367 = arith.subf %361, %364 : vector<64x64xf32>
    %368 = arith.subf %362, %365 : vector<64x64xf32>
    %369 = arith.subf %363, %366 : vector<64x64xf32>
    %cst_384 = arith.constant 2.000000e+00 : f32
    %370 = vector.broadcast %cst_384 : f32 to vector<64x64xf32>
    %371 = arith.mulf %370, %366 : vector<64x64xf32>
    %cst_385 = arith.constant 9.99999974E-5 : f32
    %372 = vector.broadcast %cst_385 : f32 to vector<64x64xf32>
    %373 = arith.addf %371, %372 : vector<64x64xf32>
    %cst_386 = arith.constant 2.000000e+00 : f32
    %374 = vector.broadcast %cst_386 : f32 to vector<64x64xf32>
    %375 = arith.mulf %374, %369 : vector<64x64xf32>
    %cst_387 = arith.constant 8.99999984E-4 : f32
    %376 = vector.broadcast %cst_387 : f32 to vector<64x64xf32>
    %377 = arith.addf %375, %376 : vector<64x64xf32>
    %378 = arith.mulf %373, %377 : vector<64x64xf32>
    %379 = arith.addf %364, %365 : vector<64x64xf32>
    %cst_388 = arith.constant 9.99999974E-5 : f32
    %380 = vector.broadcast %cst_388 : f32 to vector<64x64xf32>
    %381 = arith.addf %379, %380 : vector<64x64xf32>
    %382 = arith.addf %367, %368 : vector<64x64xf32>
    %cst_389 = arith.constant 8.99999984E-4 : f32
    %383 = vector.broadcast %cst_389 : f32 to vector<64x64xf32>
    %384 = arith.addf %382, %383 : vector<64x64xf32>
    %385 = arith.mulf %381, %384 : vector<64x64xf32>
    %386 = tpu.reciprocal %385 {approx = true} : vector<64x64xf32> -> vector<64x64xf32>
    %387 = arith.mulf %378, %386 : vector<64x64xf32>
    %388 = arith.mulf %387, %3 : vector<64x64xf32>
    %cst_390 = arith.constant dense<0.000000e+00> : vector<64xf32>
    %389 = vector.multi_reduction <add>, %388, %cst_390 [1] : vector<64x64xf32> to vector<64xf32>
    %390 = vector.shape_cast %389 : vector<64xf32> to vector<64x1xf32>
    %cst_391 = arith.constant dense<0.000000e+00> : vector<1xf32>
    %391 = vector.multi_reduction <add>, %390, %cst_391 [0] : vector<64x1xf32> to vector<1xf32>
    %392 = vector.shape_cast %391 : vector<1xf32> to vector<1x1xf32>
    %c4_i32 = arith.constant 4 : i32
    %393 = vector.broadcast %c4_i32 : i32 to vector<1x128xi32>
    %394 = arith.cmpi eq, %193, %393 : vector<1x128xi32>
    %cst_392 = arith.constant 0.000000e+00 : f32
    %395 = vector.shape_cast %392 : vector<1x1xf32> to vector<1x1xf32>
    %396 = vector.broadcast %395 : vector<1x1xf32> to vector<1x128xf32>
    %397 = vector.broadcast %cst_392 : f32 to vector<1x128xf32>
    %398 = arith.select %394, %396, %397 : vector<1x128xi1>, vector<1x128xf32>
    %399 = arith.addf %358, %398 : vector<1x128xf32>
    %c64_393 = arith.constant 64 : index
    %c0_394 = arith.constant 0 : index
    %400 = vector.load %arg9[%c64_393, %c0_394] : memref<1664x64xf32, #tpu.memory_space<vmem>>, vector<64x64xf32>
    %c192_395 = arith.constant 192 : index
    %c0_396 = arith.constant 0 : index
    %401 = vector.load %arg9[%c192_395, %c0_396] : memref<1664x64xf32, #tpu.memory_space<vmem>>, vector<64x64xf32>
    %c384_397 = arith.constant 384 : index
    %c0_398 = arith.constant 0 : index
    %402 = vector.load %arg9[%c384_397, %c0_398] : memref<1664x64xf32, #tpu.memory_space<vmem>>, vector<64x64xf32>
    %c512_399 = arith.constant 512 : index
    %c0_400 = arith.constant 0 : index
    %403 = vector.load %arg9[%c512_399, %c0_400] : memref<1664x64xf32, #tpu.memory_space<vmem>>, vector<64x64xf32>
    %c960_401 = arith.constant 960 : index
    %c0_402 = arith.constant 0 : index
    %404 = vector.load %arg9[%c960_401, %c0_402] : memref<1664x64xf32, #tpu.memory_space<vmem>>, vector<64x64xf32>
    %405 = arith.mulf %400, %400 : vector<64x64xf32>
    %406 = arith.mulf %401, %401 : vector<64x64xf32>
    %407 = arith.mulf %400, %401 : vector<64x64xf32>
    %408 = arith.subf %402, %405 : vector<64x64xf32>
    %409 = arith.subf %403, %406 : vector<64x64xf32>
    %410 = arith.subf %404, %407 : vector<64x64xf32>
    %cst_403 = arith.constant 2.000000e+00 : f32
    %411 = vector.broadcast %cst_403 : f32 to vector<64x64xf32>
    %412 = arith.mulf %411, %407 : vector<64x64xf32>
    %cst_404 = arith.constant 9.99999974E-5 : f32
    %413 = vector.broadcast %cst_404 : f32 to vector<64x64xf32>
    %414 = arith.addf %412, %413 : vector<64x64xf32>
    %cst_405 = arith.constant 2.000000e+00 : f32
    %415 = vector.broadcast %cst_405 : f32 to vector<64x64xf32>
    %416 = arith.mulf %415, %410 : vector<64x64xf32>
    %cst_406 = arith.constant 8.99999984E-4 : f32
    %417 = vector.broadcast %cst_406 : f32 to vector<64x64xf32>
    %418 = arith.addf %416, %417 : vector<64x64xf32>
    %419 = arith.mulf %414, %418 : vector<64x64xf32>
    %420 = arith.addf %405, %406 : vector<64x64xf32>
    %cst_407 = arith.constant 9.99999974E-5 : f32
    %421 = vector.broadcast %cst_407 : f32 to vector<64x64xf32>
    %422 = arith.addf %420, %421 : vector<64x64xf32>
    %423 = arith.addf %408, %409 : vector<64x64xf32>
    %cst_408 = arith.constant 8.99999984E-4 : f32
    %424 = vector.broadcast %cst_408 : f32 to vector<64x64xf32>
    %425 = arith.addf %423, %424 : vector<64x64xf32>
    %426 = arith.mulf %422, %425 : vector<64x64xf32>
    %427 = tpu.reciprocal %426 {approx = true} : vector<64x64xf32> -> vector<64x64xf32>
    %428 = arith.mulf %419, %427 : vector<64x64xf32>
    %429 = arith.mulf %428, %3 : vector<64x64xf32>
    %cst_409 = arith.constant dense<0.000000e+00> : vector<64xf32>
    %430 = vector.multi_reduction <add>, %429, %cst_409 [1] : vector<64x64xf32> to vector<64xf32>
    %431 = vector.shape_cast %430 : vector<64xf32> to vector<64x1xf32>
    %cst_410 = arith.constant dense<0.000000e+00> : vector<1xf32>
    %432 = vector.multi_reduction <add>, %431, %cst_410 [0] : vector<64x1xf32> to vector<1xf32>
    %433 = vector.shape_cast %432 : vector<1xf32> to vector<1x1xf32>
    %c5_i32 = arith.constant 5 : i32
    %434 = vector.broadcast %c5_i32 : i32 to vector<1x128xi32>
    %435 = arith.cmpi eq, %193, %434 : vector<1x128xi32>
    %cst_411 = arith.constant 0.000000e+00 : f32
    %436 = vector.shape_cast %433 : vector<1x1xf32> to vector<1x1xf32>
    %437 = vector.broadcast %436 : vector<1x1xf32> to vector<1x128xf32>
    %438 = vector.broadcast %cst_411 : f32 to vector<1x128xf32>
    %439 = arith.select %435, %437, %438 : vector<1x128xi1>, vector<1x128xf32>
    %440 = arith.addf %399, %439 : vector<1x128xf32>
    %c128_412 = arith.constant 128 : index
    %c0_413 = arith.constant 0 : index
    %441 = vector.load %arg9[%c128_412, %c0_413] : memref<1664x64xf32, #tpu.memory_space<vmem>>, vector<64x64xf32>
    %c0_414 = arith.constant 0 : index
    %c0_415 = arith.constant 0 : index
    %442 = vector.load %arg9[%c0_414, %c0_415] : memref<1664x64xf32, #tpu.memory_space<vmem>>, vector<64x64xf32>
    %c448_416 = arith.constant 448 : index
    %c0_417 = arith.constant 0 : index
    %443 = vector.load %arg9[%c448_416, %c0_417] : memref<1664x64xf32, #tpu.memory_space<vmem>>, vector<64x64xf32>
    %c320_418 = arith.constant 320 : index
    %c0_419 = arith.constant 0 : index
    %444 = vector.load %arg9[%c320_418, %c0_419] : memref<1664x64xf32, #tpu.memory_space<vmem>>, vector<64x64xf32>
    %c1024_420 = arith.constant 1024 : index
    %c0_421 = arith.constant 0 : index
    %445 = vector.load %arg9[%c1024_420, %c0_421] : memref<1664x64xf32, #tpu.memory_space<vmem>>, vector<64x64xf32>
    %446 = arith.mulf %441, %441 : vector<64x64xf32>
    %447 = arith.mulf %442, %442 : vector<64x64xf32>
    %448 = arith.mulf %441, %442 : vector<64x64xf32>
    %449 = arith.subf %443, %446 : vector<64x64xf32>
    %450 = arith.subf %444, %447 : vector<64x64xf32>
    %451 = arith.subf %445, %448 : vector<64x64xf32>
    %cst_422 = arith.constant 2.000000e+00 : f32
    %452 = vector.broadcast %cst_422 : f32 to vector<64x64xf32>
    %453 = arith.mulf %452, %448 : vector<64x64xf32>
    %cst_423 = arith.constant 9.99999974E-5 : f32
    %454 = vector.broadcast %cst_423 : f32 to vector<64x64xf32>
    %455 = arith.addf %453, %454 : vector<64x64xf32>
    %cst_424 = arith.constant 2.000000e+00 : f32
    %456 = vector.broadcast %cst_424 : f32 to vector<64x64xf32>
    %457 = arith.mulf %456, %451 : vector<64x64xf32>
    %cst_425 = arith.constant 8.99999984E-4 : f32
    %458 = vector.broadcast %cst_425 : f32 to vector<64x64xf32>
    %459 = arith.addf %457, %458 : vector<64x64xf32>
    %460 = arith.mulf %455, %459 : vector<64x64xf32>
    %461 = arith.addf %446, %447 : vector<64x64xf32>
    %cst_426 = arith.constant 9.99999974E-5 : f32
    %462 = vector.broadcast %cst_426 : f32 to vector<64x64xf32>
    %463 = arith.addf %461, %462 : vector<64x64xf32>
    %464 = arith.addf %449, %450 : vector<64x64xf32>
    %cst_427 = arith.constant 8.99999984E-4 : f32
    %465 = vector.broadcast %cst_427 : f32 to vector<64x64xf32>
    %466 = arith.addf %464, %465 : vector<64x64xf32>
    %467 = arith.mulf %463, %466 : vector<64x64xf32>
    %468 = tpu.reciprocal %467 {approx = true} : vector<64x64xf32> -> vector<64x64xf32>
    %469 = arith.mulf %460, %468 : vector<64x64xf32>
    %470 = arith.mulf %469, %3 : vector<64x64xf32>
    %cst_428 = arith.constant dense<0.000000e+00> : vector<64xf32>
    %471 = vector.multi_reduction <add>, %470, %cst_428 [1] : vector<64x64xf32> to vector<64xf32>
    %472 = vector.shape_cast %471 : vector<64xf32> to vector<64x1xf32>
    %cst_429 = arith.constant dense<0.000000e+00> : vector<1xf32>
    %473 = vector.multi_reduction <add>, %472, %cst_429 [0] : vector<64x1xf32> to vector<1xf32>
    %474 = vector.shape_cast %473 : vector<1xf32> to vector<1x1xf32>
    %c6_i32 = arith.constant 6 : i32
    %475 = vector.broadcast %c6_i32 : i32 to vector<1x128xi32>
    %476 = arith.cmpi eq, %193, %475 : vector<1x128xi32>
    %cst_430 = arith.constant 0.000000e+00 : f32
    %477 = vector.shape_cast %474 : vector<1x1xf32> to vector<1x1xf32>
    %478 = vector.broadcast %477 : vector<1x1xf32> to vector<1x128xf32>
    %479 = vector.broadcast %cst_430 : f32 to vector<1x128xf32>
    %480 = arith.select %476, %478, %479 : vector<1x128xi1>, vector<1x128xf32>
    %481 = arith.addf %440, %480 : vector<1x128xf32>
    %c128_431 = arith.constant 128 : index
    %c0_432 = arith.constant 0 : index
    %482 = vector.load %arg9[%c128_431, %c0_432] : memref<1664x64xf32, #tpu.memory_space<vmem>>, vector<64x64xf32>
    %c64_433 = arith.constant 64 : index
    %c0_434 = arith.constant 0 : index
    %483 = vector.load %arg9[%c64_433, %c0_434] : memref<1664x64xf32, #tpu.memory_space<vmem>>, vector<64x64xf32>
    %c448_435 = arith.constant 448 : index
    %c0_436 = arith.constant 0 : index
    %484 = vector.load %arg9[%c448_435, %c0_436] : memref<1664x64xf32, #tpu.memory_space<vmem>>, vector<64x64xf32>
    %c384_437 = arith.constant 384 : index
    %c0_438 = arith.constant 0 : index
    %485 = vector.load %arg9[%c384_437, %c0_438] : memref<1664x64xf32, #tpu.memory_space<vmem>>, vector<64x64xf32>
    %c1088_439 = arith.constant 1088 : index
    %c0_440 = arith.constant 0 : index
    %486 = vector.load %arg9[%c1088_439, %c0_440] : memref<1664x64xf32, #tpu.memory_space<vmem>>, vector<64x64xf32>
    %487 = arith.mulf %482, %482 : vector<64x64xf32>
    %488 = arith.mulf %483, %483 : vector<64x64xf32>
    %489 = arith.mulf %482, %483 : vector<64x64xf32>
    %490 = arith.subf %484, %487 : vector<64x64xf32>
    %491 = arith.subf %485, %488 : vector<64x64xf32>
    %492 = arith.subf %486, %489 : vector<64x64xf32>
    %cst_441 = arith.constant 2.000000e+00 : f32
    %493 = vector.broadcast %cst_441 : f32 to vector<64x64xf32>
    %494 = arith.mulf %493, %489 : vector<64x64xf32>
    %cst_442 = arith.constant 9.99999974E-5 : f32
    %495 = vector.broadcast %cst_442 : f32 to vector<64x64xf32>
    %496 = arith.addf %494, %495 : vector<64x64xf32>
    %cst_443 = arith.constant 2.000000e+00 : f32
    %497 = vector.broadcast %cst_443 : f32 to vector<64x64xf32>
    %498 = arith.mulf %497, %492 : vector<64x64xf32>
    %cst_444 = arith.constant 8.99999984E-4 : f32
    %499 = vector.broadcast %cst_444 : f32 to vector<64x64xf32>
    %500 = arith.addf %498, %499 : vector<64x64xf32>
    %501 = arith.mulf %496, %500 : vector<64x64xf32>
    %502 = arith.addf %487, %488 : vector<64x64xf32>
    %cst_445 = arith.constant 9.99999974E-5 : f32
    %503 = vector.broadcast %cst_445 : f32 to vector<64x64xf32>
    %504 = arith.addf %502, %503 : vector<64x64xf32>
    %505 = arith.addf %490, %491 : vector<64x64xf32>
    %cst_446 = arith.constant 8.99999984E-4 : f32
    %506 = vector.broadcast %cst_446 : f32 to vector<64x64xf32>
    %507 = arith.addf %505, %506 : vector<64x64xf32>
    %508 = arith.mulf %504, %507 : vector<64x64xf32>
    %509 = tpu.reciprocal %508 {approx = true} : vector<64x64xf32> -> vector<64x64xf32>
    %510 = arith.mulf %501, %509 : vector<64x64xf32>
    %511 = arith.mulf %510, %3 : vector<64x64xf32>
    %cst_447 = arith.constant dense<0.000000e+00> : vector<64xf32>
    %512 = vector.multi_reduction <add>, %511, %cst_447 [1] : vector<64x64xf32> to vector<64xf32>
    %513 = vector.shape_cast %512 : vector<64xf32> to vector<64x1xf32>
    %cst_448 = arith.constant dense<0.000000e+00> : vector<1xf32>
    %514 = vector.multi_reduction <add>, %513, %cst_448 [0] : vector<64x1xf32> to vector<1xf32>
    %515 = vector.shape_cast %514 : vector<1xf32> to vector<1x1xf32>
    %c7_i32 = arith.constant 7 : i32
    %516 = vector.broadcast %c7_i32 : i32 to vector<1x128xi32>
    %517 = arith.cmpi eq, %193, %516 : vector<1x128xi32>
    %cst_449 = arith.constant 0.000000e+00 : f32
    %518 = vector.shape_cast %515 : vector<1x1xf32> to vector<1x1xf32>
    %519 = vector.broadcast %518 : vector<1x1xf32> to vector<1x128xf32>
    %520 = vector.broadcast %cst_449 : f32 to vector<1x128xf32>
    %521 = arith.select %517, %519, %520 : vector<1x128xi1>, vector<1x128xf32>
    %522 = arith.addf %481, %521 : vector<1x128xf32>
    %c128_450 = arith.constant 128 : index
    %c0_451 = arith.constant 0 : index
    %523 = vector.load %arg9[%c128_450, %c0_451] : memref<1664x64xf32, #tpu.memory_space<vmem>>, vector<64x64xf32>
    %c192_452 = arith.constant 192 : index
    %c0_453 = arith.constant 0 : index
    %524 = vector.load %arg9[%c192_452, %c0_453] : memref<1664x64xf32, #tpu.memory_space<vmem>>, vector<64x64xf32>
    %c448_454 = arith.constant 448 : index
    %c0_455 = arith.constant 0 : index
    %525 = vector.load %arg9[%c448_454, %c0_455] : memref<1664x64xf32, #tpu.memory_space<vmem>>, vector<64x64xf32>
    %c512_456 = arith.constant 512 : index
    %c0_457 = arith.constant 0 : index
    %526 = vector.load %arg9[%c512_456, %c0_457] : memref<1664x64xf32, #tpu.memory_space<vmem>>, vector<64x64xf32>
    %c1152_458 = arith.constant 1152 : index
    %c0_459 = arith.constant 0 : index
    %527 = vector.load %arg9[%c1152_458, %c0_459] : memref<1664x64xf32, #tpu.memory_space<vmem>>, vector<64x64xf32>
    %528 = arith.mulf %523, %523 : vector<64x64xf32>
    %529 = arith.mulf %524, %524 : vector<64x64xf32>
    %530 = arith.mulf %523, %524 : vector<64x64xf32>
    %531 = arith.subf %525, %528 : vector<64x64xf32>
    %532 = arith.subf %526, %529 : vector<64x64xf32>
    %533 = arith.subf %527, %530 : vector<64x64xf32>
    %cst_460 = arith.constant 2.000000e+00 : f32
    %534 = vector.broadcast %cst_460 : f32 to vector<64x64xf32>
    %535 = arith.mulf %534, %530 : vector<64x64xf32>
    %cst_461 = arith.constant 9.99999974E-5 : f32
    %536 = vector.broadcast %cst_461 : f32 to vector<64x64xf32>
    %537 = arith.addf %535, %536 : vector<64x64xf32>
    %cst_462 = arith.constant 2.000000e+00 : f32
    %538 = vector.broadcast %cst_462 : f32 to vector<64x64xf32>
    %539 = arith.mulf %538, %533 : vector<64x64xf32>
    %cst_463 = arith.constant 8.99999984E-4 : f32
    %540 = vector.broadcast %cst_463 : f32 to vector<64x64xf32>
    %541 = arith.addf %539, %540 : vector<64x64xf32>
    %542 = arith.mulf %537, %541 : vector<64x64xf32>
    %543 = arith.addf %528, %529 : vector<64x64xf32>
    %cst_464 = arith.constant 9.99999974E-5 : f32
    %544 = vector.broadcast %cst_464 : f32 to vector<64x64xf32>
    %545 = arith.addf %543, %544 : vector<64x64xf32>
    %546 = arith.addf %531, %532 : vector<64x64xf32>
    %cst_465 = arith.constant 8.99999984E-4 : f32
    %547 = vector.broadcast %cst_465 : f32 to vector<64x64xf32>
    %548 = arith.addf %546, %547 : vector<64x64xf32>
    %549 = arith.mulf %545, %548 : vector<64x64xf32>
    %550 = tpu.reciprocal %549 {approx = true} : vector<64x64xf32> -> vector<64x64xf32>
    %551 = arith.mulf %542, %550 : vector<64x64xf32>
    %552 = arith.mulf %551, %3 : vector<64x64xf32>
    %cst_466 = arith.constant dense<0.000000e+00> : vector<64xf32>
    %553 = vector.multi_reduction <add>, %552, %cst_466 [1] : vector<64x64xf32> to vector<64xf32>
    %554 = vector.shape_cast %553 : vector<64xf32> to vector<64x1xf32>
    %cst_467 = arith.constant dense<0.000000e+00> : vector<1xf32>
    %555 = vector.multi_reduction <add>, %554, %cst_467 [0] : vector<64x1xf32> to vector<1xf32>
    %556 = vector.shape_cast %555 : vector<1xf32> to vector<1x1xf32>
    %c8_i32 = arith.constant 8 : i32
    %557 = vector.broadcast %c8_i32 : i32 to vector<1x128xi32>
    %558 = arith.cmpi eq, %193, %557 : vector<1x128xi32>
    %cst_468 = arith.constant 0.000000e+00 : f32
    %559 = vector.shape_cast %556 : vector<1x1xf32> to vector<1x1xf32>
    %560 = vector.broadcast %559 : vector<1x1xf32> to vector<1x128xf32>
    %561 = vector.broadcast %cst_468 : f32 to vector<1x128xf32>
    %562 = arith.select %558, %560, %561 : vector<1x128xi1>, vector<1x128xf32>
    %563 = arith.addf %522, %562 : vector<1x128xf32>
    %c192_469 = arith.constant 192 : index
    %c0_470 = arith.constant 0 : index
    %564 = vector.load %arg9[%c192_469, %c0_470] : memref<1664x64xf32, #tpu.memory_space<vmem>>, vector<64x64xf32>
    %c0_471 = arith.constant 0 : index
    %c0_472 = arith.constant 0 : index
    %565 = vector.load %arg9[%c0_471, %c0_472] : memref<1664x64xf32, #tpu.memory_space<vmem>>, vector<64x64xf32>
    %c512_473 = arith.constant 512 : index
    %c0_474 = arith.constant 0 : index
    %566 = vector.load %arg9[%c512_473, %c0_474] : memref<1664x64xf32, #tpu.memory_space<vmem>>, vector<64x64xf32>
    %c320_475 = arith.constant 320 : index
    %c0_476 = arith.constant 0 : index
    %567 = vector.load %arg9[%c320_475, %c0_476] : memref<1664x64xf32, #tpu.memory_space<vmem>>, vector<64x64xf32>
    %c1216_477 = arith.constant 1216 : index
    %c0_478 = arith.constant 0 : index
    %568 = vector.load %arg9[%c1216_477, %c0_478] : memref<1664x64xf32, #tpu.memory_space<vmem>>, vector<64x64xf32>
    %569 = arith.mulf %564, %564 : vector<64x64xf32>
    %570 = arith.mulf %565, %565 : vector<64x64xf32>
    %571 = arith.mulf %564, %565 : vector<64x64xf32>
    %572 = arith.subf %566, %569 : vector<64x64xf32>
    %573 = arith.subf %567, %570 : vector<64x64xf32>
    %574 = arith.subf %568, %571 : vector<64x64xf32>
    %cst_479 = arith.constant 2.000000e+00 : f32
    %575 = vector.broadcast %cst_479 : f32 to vector<64x64xf32>
    %576 = arith.mulf %575, %571 : vector<64x64xf32>
    %cst_480 = arith.constant 9.99999974E-5 : f32
    %577 = vector.broadcast %cst_480 : f32 to vector<64x64xf32>
    %578 = arith.addf %576, %577 : vector<64x64xf32>
    %cst_481 = arith.constant 2.000000e+00 : f32
    %579 = vector.broadcast %cst_481 : f32 to vector<64x64xf32>
    %580 = arith.mulf %579, %574 : vector<64x64xf32>
    %cst_482 = arith.constant 8.99999984E-4 : f32
    %581 = vector.broadcast %cst_482 : f32 to vector<64x64xf32>
    %582 = arith.addf %580, %581 : vector<64x64xf32>
    %583 = arith.mulf %578, %582 : vector<64x64xf32>
    %584 = arith.addf %569, %570 : vector<64x64xf32>
    %cst_483 = arith.constant 9.99999974E-5 : f32
    %585 = vector.broadcast %cst_483 : f32 to vector<64x64xf32>
    %586 = arith.addf %584, %585 : vector<64x64xf32>
    %587 = arith.addf %572, %573 : vector<64x64xf32>
    %cst_484 = arith.constant 8.99999984E-4 : f32
    %588 = vector.broadcast %cst_484 : f32 to vector<64x64xf32>
    %589 = arith.addf %587, %588 : vector<64x64xf32>
    %590 = arith.mulf %586, %589 : vector<64x64xf32>
    %591 = tpu.reciprocal %590 {approx = true} : vector<64x64xf32> -> vector<64x64xf32>
    %592 = arith.mulf %583, %591 : vector<64x64xf32>
    %593 = arith.mulf %592, %3 : vector<64x64xf32>
    %cst_485 = arith.constant dense<0.000000e+00> : vector<64xf32>
    %594 = vector.multi_reduction <add>, %593, %cst_485 [1] : vector<64x64xf32> to vector<64xf32>
    %595 = vector.shape_cast %594 : vector<64xf32> to vector<64x1xf32>
    %cst_486 = arith.constant dense<0.000000e+00> : vector<1xf32>
    %596 = vector.multi_reduction <add>, %595, %cst_486 [0] : vector<64x1xf32> to vector<1xf32>
    %597 = vector.shape_cast %596 : vector<1xf32> to vector<1x1xf32>
    %c9_i32 = arith.constant 9 : i32
    %598 = vector.broadcast %c9_i32 : i32 to vector<1x128xi32>
    %599 = arith.cmpi eq, %193, %598 : vector<1x128xi32>
    %cst_487 = arith.constant 0.000000e+00 : f32
    %600 = vector.shape_cast %597 : vector<1x1xf32> to vector<1x1xf32>
    %601 = vector.broadcast %600 : vector<1x1xf32> to vector<1x128xf32>
    %602 = vector.broadcast %cst_487 : f32 to vector<1x128xf32>
    %603 = arith.select %599, %601, %602 : vector<1x128xi1>, vector<1x128xf32>
    %604 = arith.addf %563, %603 : vector<1x128xf32>
    %c192_488 = arith.constant 192 : index
    %c0_489 = arith.constant 0 : index
    %605 = vector.load %arg9[%c192_488, %c0_489] : memref<1664x64xf32, #tpu.memory_space<vmem>>, vector<64x64xf32>
    %c64_490 = arith.constant 64 : index
    %c0_491 = arith.constant 0 : index
    %606 = vector.load %arg9[%c64_490, %c0_491] : memref<1664x64xf32, #tpu.memory_space<vmem>>, vector<64x64xf32>
    %c512_492 = arith.constant 512 : index
    %c0_493 = arith.constant 0 : index
    %607 = vector.load %arg9[%c512_492, %c0_493] : memref<1664x64xf32, #tpu.memory_space<vmem>>, vector<64x64xf32>
    %c384_494 = arith.constant 384 : index
    %c0_495 = arith.constant 0 : index
    %608 = vector.load %arg9[%c384_494, %c0_495] : memref<1664x64xf32, #tpu.memory_space<vmem>>, vector<64x64xf32>
    %c1280_496 = arith.constant 1280 : index
    %c0_497 = arith.constant 0 : index
    %609 = vector.load %arg9[%c1280_496, %c0_497] : memref<1664x64xf32, #tpu.memory_space<vmem>>, vector<64x64xf32>
    %610 = arith.mulf %605, %605 : vector<64x64xf32>
    %611 = arith.mulf %606, %606 : vector<64x64xf32>
    %612 = arith.mulf %605, %606 : vector<64x64xf32>
    %613 = arith.subf %607, %610 : vector<64x64xf32>
    %614 = arith.subf %608, %611 : vector<64x64xf32>
    %615 = arith.subf %609, %612 : vector<64x64xf32>
    %cst_498 = arith.constant 2.000000e+00 : f32
    %616 = vector.broadcast %cst_498 : f32 to vector<64x64xf32>
    %617 = arith.mulf %616, %612 : vector<64x64xf32>
    %cst_499 = arith.constant 9.99999974E-5 : f32
    %618 = vector.broadcast %cst_499 : f32 to vector<64x64xf32>
    %619 = arith.addf %617, %618 : vector<64x64xf32>
    %cst_500 = arith.constant 2.000000e+00 : f32
    %620 = vector.broadcast %cst_500 : f32 to vector<64x64xf32>
    %621 = arith.mulf %620, %615 : vector<64x64xf32>
    %cst_501 = arith.constant 8.99999984E-4 : f32
    %622 = vector.broadcast %cst_501 : f32 to vector<64x64xf32>
    %623 = arith.addf %621, %622 : vector<64x64xf32>
    %624 = arith.mulf %619, %623 : vector<64x64xf32>
    %625 = arith.addf %610, %611 : vector<64x64xf32>
    %cst_502 = arith.constant 9.99999974E-5 : f32
    %626 = vector.broadcast %cst_502 : f32 to vector<64x64xf32>
    %627 = arith.addf %625, %626 : vector<64x64xf32>
    %628 = arith.addf %613, %614 : vector<64x64xf32>
    %cst_503 = arith.constant 8.99999984E-4 : f32
    %629 = vector.broadcast %cst_503 : f32 to vector<64x64xf32>
    %630 = arith.addf %628, %629 : vector<64x64xf32>
    %631 = arith.mulf %627, %630 : vector<64x64xf32>
    %632 = tpu.reciprocal %631 {approx = true} : vector<64x64xf32> -> vector<64x64xf32>
    %633 = arith.mulf %624, %632 : vector<64x64xf32>
    %634 = arith.mulf %633, %3 : vector<64x64xf32>
    %cst_504 = arith.constant dense<0.000000e+00> : vector<64xf32>
    %635 = vector.multi_reduction <add>, %634, %cst_504 [1] : vector<64x64xf32> to vector<64xf32>
    %636 = vector.shape_cast %635 : vector<64xf32> to vector<64x1xf32>
    %cst_505 = arith.constant dense<0.000000e+00> : vector<1xf32>
    %637 = vector.multi_reduction <add>, %636, %cst_505 [0] : vector<64x1xf32> to vector<1xf32>
    %638 = vector.shape_cast %637 : vector<1xf32> to vector<1x1xf32>
    %c10_i32 = arith.constant 10 : i32
    %639 = vector.broadcast %c10_i32 : i32 to vector<1x128xi32>
    %640 = arith.cmpi eq, %193, %639 : vector<1x128xi32>
    %cst_506 = arith.constant 0.000000e+00 : f32
    %641 = vector.shape_cast %638 : vector<1x1xf32> to vector<1x1xf32>
    %642 = vector.broadcast %641 : vector<1x1xf32> to vector<1x128xf32>
    %643 = vector.broadcast %cst_506 : f32 to vector<1x128xf32>
    %644 = arith.select %640, %642, %643 : vector<1x128xi1>, vector<1x128xf32>
    %645 = arith.addf %604, %644 : vector<1x128xf32>
    %c192_507 = arith.constant 192 : index
    %c0_508 = arith.constant 0 : index
    %646 = vector.load %arg9[%c192_507, %c0_508] : memref<1664x64xf32, #tpu.memory_space<vmem>>, vector<64x64xf32>
    %c128_509 = arith.constant 128 : index
    %c0_510 = arith.constant 0 : index
    %647 = vector.load %arg9[%c128_509, %c0_510] : memref<1664x64xf32, #tpu.memory_space<vmem>>, vector<64x64xf32>
    %c512_511 = arith.constant 512 : index
    %c0_512 = arith.constant 0 : index
    %648 = vector.load %arg9[%c512_511, %c0_512] : memref<1664x64xf32, #tpu.memory_space<vmem>>, vector<64x64xf32>
    %c448_513 = arith.constant 448 : index
    %c0_514 = arith.constant 0 : index
    %649 = vector.load %arg9[%c448_513, %c0_514] : memref<1664x64xf32, #tpu.memory_space<vmem>>, vector<64x64xf32>
    %c1344_515 = arith.constant 1344 : index
    %c0_516 = arith.constant 0 : index
    %650 = vector.load %arg9[%c1344_515, %c0_516] : memref<1664x64xf32, #tpu.memory_space<vmem>>, vector<64x64xf32>
    %651 = arith.mulf %646, %646 : vector<64x64xf32>
    %652 = arith.mulf %647, %647 : vector<64x64xf32>
    %653 = arith.mulf %646, %647 : vector<64x64xf32>
    %654 = arith.subf %648, %651 : vector<64x64xf32>
    %655 = arith.subf %649, %652 : vector<64x64xf32>
    %656 = arith.subf %650, %653 : vector<64x64xf32>
    %cst_517 = arith.constant 2.000000e+00 : f32
    %657 = vector.broadcast %cst_517 : f32 to vector<64x64xf32>
    %658 = arith.mulf %657, %653 : vector<64x64xf32>
    %cst_518 = arith.constant 9.99999974E-5 : f32
    %659 = vector.broadcast %cst_518 : f32 to vector<64x64xf32>
    %660 = arith.addf %658, %659 : vector<64x64xf32>
    %cst_519 = arith.constant 2.000000e+00 : f32
    %661 = vector.broadcast %cst_519 : f32 to vector<64x64xf32>
    %662 = arith.mulf %661, %656 : vector<64x64xf32>
    %cst_520 = arith.constant 8.99999984E-4 : f32
    %663 = vector.broadcast %cst_520 : f32 to vector<64x64xf32>
    %664 = arith.addf %662, %663 : vector<64x64xf32>
    %665 = arith.mulf %660, %664 : vector<64x64xf32>
    %666 = arith.addf %651, %652 : vector<64x64xf32>
    %cst_521 = arith.constant 9.99999974E-5 : f32
    %667 = vector.broadcast %cst_521 : f32 to vector<64x64xf32>
    %668 = arith.addf %666, %667 : vector<64x64xf32>
    %669 = arith.addf %654, %655 : vector<64x64xf32>
    %cst_522 = arith.constant 8.99999984E-4 : f32
    %670 = vector.broadcast %cst_522 : f32 to vector<64x64xf32>
    %671 = arith.addf %669, %670 : vector<64x64xf32>
    %672 = arith.mulf %668, %671 : vector<64x64xf32>
    %673 = tpu.reciprocal %672 {approx = true} : vector<64x64xf32> -> vector<64x64xf32>
    %674 = arith.mulf %665, %673 : vector<64x64xf32>
    %675 = arith.mulf %674, %3 : vector<64x64xf32>
    %cst_523 = arith.constant dense<0.000000e+00> : vector<64xf32>
    %676 = vector.multi_reduction <add>, %675, %cst_523 [1] : vector<64x64xf32> to vector<64xf32>
    %677 = vector.shape_cast %676 : vector<64xf32> to vector<64x1xf32>
    %cst_524 = arith.constant dense<0.000000e+00> : vector<1xf32>
    %678 = vector.multi_reduction <add>, %677, %cst_524 [0] : vector<64x1xf32> to vector<1xf32>
    %679 = vector.shape_cast %678 : vector<1xf32> to vector<1x1xf32>
    %c11_i32 = arith.constant 11 : i32
    %680 = vector.broadcast %c11_i32 : i32 to vector<1x128xi32>
    %681 = arith.cmpi eq, %193, %680 : vector<1x128xi32>
    %cst_525 = arith.constant 0.000000e+00 : f32
    %682 = vector.shape_cast %679 : vector<1x1xf32> to vector<1x1xf32>
    %683 = vector.broadcast %682 : vector<1x1xf32> to vector<1x128xf32>
    %684 = vector.broadcast %cst_525 : f32 to vector<1x128xf32>
    %685 = arith.select %681, %683, %684 : vector<1x128xi1>, vector<1x128xf32>
    %686 = arith.addf %645, %685 : vector<1x128xf32>
    %c0_526 = arith.constant 0 : index
    %c0_527 = arith.constant 0 : index
    %687 = vector.load %arg9[%c0_526, %c0_527] : memref<1664x64xf32, #tpu.memory_space<vmem>>, vector<64x64xf32>
    %c256_528 = arith.constant 256 : index
    %c0_529 = arith.constant 0 : index
    %688 = vector.load %arg9[%c256_528, %c0_529] : memref<1664x64xf32, #tpu.memory_space<vmem>>, vector<64x64xf32>
    %c320_530 = arith.constant 320 : index
    %c0_531 = arith.constant 0 : index
    %689 = vector.load %arg9[%c320_530, %c0_531] : memref<1664x64xf32, #tpu.memory_space<vmem>>, vector<64x64xf32>
    %c576_532 = arith.constant 576 : index
    %c0_533 = arith.constant 0 : index
    %690 = vector.load %arg9[%c576_532, %c0_533] : memref<1664x64xf32, #tpu.memory_space<vmem>>, vector<64x64xf32>
    %c1408_534 = arith.constant 1408 : index
    %c0_535 = arith.constant 0 : index
    %691 = vector.load %arg9[%c1408_534, %c0_535] : memref<1664x64xf32, #tpu.memory_space<vmem>>, vector<64x64xf32>
    %692 = arith.mulf %687, %687 : vector<64x64xf32>
    %693 = arith.mulf %688, %688 : vector<64x64xf32>
    %694 = arith.mulf %687, %688 : vector<64x64xf32>
    %695 = arith.subf %689, %692 : vector<64x64xf32>
    %696 = arith.subf %690, %693 : vector<64x64xf32>
    %697 = arith.subf %691, %694 : vector<64x64xf32>
    %cst_536 = arith.constant 2.000000e+00 : f32
    %698 = vector.broadcast %cst_536 : f32 to vector<64x64xf32>
    %699 = arith.mulf %698, %694 : vector<64x64xf32>
    %cst_537 = arith.constant 9.99999974E-5 : f32
    %700 = vector.broadcast %cst_537 : f32 to vector<64x64xf32>
    %701 = arith.addf %699, %700 : vector<64x64xf32>
    %cst_538 = arith.constant 2.000000e+00 : f32
    %702 = vector.broadcast %cst_538 : f32 to vector<64x64xf32>
    %703 = arith.mulf %702, %697 : vector<64x64xf32>
    %cst_539 = arith.constant 8.99999984E-4 : f32
    %704 = vector.broadcast %cst_539 : f32 to vector<64x64xf32>
    %705 = arith.addf %703, %704 : vector<64x64xf32>
    %706 = arith.mulf %701, %705 : vector<64x64xf32>
    %707 = arith.addf %692, %693 : vector<64x64xf32>
    %cst_540 = arith.constant 9.99999974E-5 : f32
    %708 = vector.broadcast %cst_540 : f32 to vector<64x64xf32>
    %709 = arith.addf %707, %708 : vector<64x64xf32>
    %710 = arith.addf %695, %696 : vector<64x64xf32>
    %cst_541 = arith.constant 8.99999984E-4 : f32
    %711 = vector.broadcast %cst_541 : f32 to vector<64x64xf32>
    %712 = arith.addf %710, %711 : vector<64x64xf32>
    %713 = arith.mulf %709, %712 : vector<64x64xf32>
    %714 = tpu.reciprocal %713 {approx = true} : vector<64x64xf32> -> vector<64x64xf32>
    %715 = arith.mulf %706, %714 : vector<64x64xf32>
    %716 = arith.mulf %715, %3 : vector<64x64xf32>
    %cst_542 = arith.constant dense<0.000000e+00> : vector<64xf32>
    %717 = vector.multi_reduction <add>, %716, %cst_542 [1] : vector<64x64xf32> to vector<64xf32>
    %718 = vector.shape_cast %717 : vector<64xf32> to vector<64x1xf32>
    %cst_543 = arith.constant dense<0.000000e+00> : vector<1xf32>
    %719 = vector.multi_reduction <add>, %718, %cst_543 [0] : vector<64x1xf32> to vector<1xf32>
    %720 = vector.shape_cast %719 : vector<1xf32> to vector<1x1xf32>
    %c12_i32 = arith.constant 12 : i32
    %721 = vector.broadcast %c12_i32 : i32 to vector<1x128xi32>
    %722 = arith.cmpi eq, %193, %721 : vector<1x128xi32>
    %cst_544 = arith.constant 0.000000e+00 : f32
    %723 = vector.shape_cast %720 : vector<1x1xf32> to vector<1x1xf32>
    %724 = vector.broadcast %723 : vector<1x1xf32> to vector<1x128xf32>
    %725 = vector.broadcast %cst_544 : f32 to vector<1x128xf32>
    %726 = arith.select %722, %724, %725 : vector<1x128xi1>, vector<1x128xf32>
    %727 = arith.addf %686, %726 : vector<1x128xf32>
    %c64_545 = arith.constant 64 : index
    %c0_546 = arith.constant 0 : index
    %728 = vector.load %arg9[%c64_545, %c0_546] : memref<1664x64xf32, #tpu.memory_space<vmem>>, vector<64x64xf32>
    %c256_547 = arith.constant 256 : index
    %c0_548 = arith.constant 0 : index
    %729 = vector.load %arg9[%c256_547, %c0_548] : memref<1664x64xf32, #tpu.memory_space<vmem>>, vector<64x64xf32>
    %c384_549 = arith.constant 384 : index
    %c0_550 = arith.constant 0 : index
    %730 = vector.load %arg9[%c384_549, %c0_550] : memref<1664x64xf32, #tpu.memory_space<vmem>>, vector<64x64xf32>
    %c576_551 = arith.constant 576 : index
    %c0_552 = arith.constant 0 : index
    %731 = vector.load %arg9[%c576_551, %c0_552] : memref<1664x64xf32, #tpu.memory_space<vmem>>, vector<64x64xf32>
    %c1472_553 = arith.constant 1472 : index
    %c0_554 = arith.constant 0 : index
    %732 = vector.load %arg9[%c1472_553, %c0_554] : memref<1664x64xf32, #tpu.memory_space<vmem>>, vector<64x64xf32>
    %733 = arith.mulf %728, %728 : vector<64x64xf32>
    %734 = arith.mulf %729, %729 : vector<64x64xf32>
    %735 = arith.mulf %728, %729 : vector<64x64xf32>
    %736 = arith.subf %730, %733 : vector<64x64xf32>
    %737 = arith.subf %731, %734 : vector<64x64xf32>
    %738 = arith.subf %732, %735 : vector<64x64xf32>
    %cst_555 = arith.constant 2.000000e+00 : f32
    %739 = vector.broadcast %cst_555 : f32 to vector<64x64xf32>
    %740 = arith.mulf %739, %735 : vector<64x64xf32>
    %cst_556 = arith.constant 9.99999974E-5 : f32
    %741 = vector.broadcast %cst_556 : f32 to vector<64x64xf32>
    %742 = arith.addf %740, %741 : vector<64x64xf32>
    %cst_557 = arith.constant 2.000000e+00 : f32
    %743 = vector.broadcast %cst_557 : f32 to vector<64x64xf32>
    %744 = arith.mulf %743, %738 : vector<64x64xf32>
    %cst_558 = arith.constant 8.99999984E-4 : f32
    %745 = vector.broadcast %cst_558 : f32 to vector<64x64xf32>
    %746 = arith.addf %744, %745 : vector<64x64xf32>
    %747 = arith.mulf %742, %746 : vector<64x64xf32>
    %748 = arith.addf %733, %734 : vector<64x64xf32>
    %cst_559 = arith.constant 9.99999974E-5 : f32
    %749 = vector.broadcast %cst_559 : f32 to vector<64x64xf32>
    %750 = arith.addf %748, %749 : vector<64x64xf32>
    %751 = arith.addf %736, %737 : vector<64x64xf32>
    %cst_560 = arith.constant 8.99999984E-4 : f32
    %752 = vector.broadcast %cst_560 : f32 to vector<64x64xf32>
    %753 = arith.addf %751, %752 : vector<64x64xf32>
    %754 = arith.mulf %750, %753 : vector<64x64xf32>
    %755 = tpu.reciprocal %754 {approx = true} : vector<64x64xf32> -> vector<64x64xf32>
    %756 = arith.mulf %747, %755 : vector<64x64xf32>
    %757 = arith.mulf %756, %3 : vector<64x64xf32>
    %cst_561 = arith.constant dense<0.000000e+00> : vector<64xf32>
    %758 = vector.multi_reduction <add>, %757, %cst_561 [1] : vector<64x64xf32> to vector<64xf32>
    %759 = vector.shape_cast %758 : vector<64xf32> to vector<64x1xf32>
    %cst_562 = arith.constant dense<0.000000e+00> : vector<1xf32>
    %760 = vector.multi_reduction <add>, %759, %cst_562 [0] : vector<64x1xf32> to vector<1xf32>
    %761 = vector.shape_cast %760 : vector<1xf32> to vector<1x1xf32>
    %c13_i32 = arith.constant 13 : i32
    %762 = vector.broadcast %c13_i32 : i32 to vector<1x128xi32>
    %763 = arith.cmpi eq, %193, %762 : vector<1x128xi32>
    %cst_563 = arith.constant 0.000000e+00 : f32
    %764 = vector.shape_cast %761 : vector<1x1xf32> to vector<1x1xf32>
    %765 = vector.broadcast %764 : vector<1x1xf32> to vector<1x128xf32>
    %766 = vector.broadcast %cst_563 : f32 to vector<1x128xf32>
    %767 = arith.select %763, %765, %766 : vector<1x128xi1>, vector<1x128xf32>
    %768 = arith.addf %727, %767 : vector<1x128xf32>
    %c128_564 = arith.constant 128 : index
    %c0_565 = arith.constant 0 : index
    %769 = vector.load %arg9[%c128_564, %c0_565] : memref<1664x64xf32, #tpu.memory_space<vmem>>, vector<64x64xf32>
    %c256_566 = arith.constant 256 : index
    %c0_567 = arith.constant 0 : index
    %770 = vector.load %arg9[%c256_566, %c0_567] : memref<1664x64xf32, #tpu.memory_space<vmem>>, vector<64x64xf32>
    %c448_568 = arith.constant 448 : index
    %c0_569 = arith.constant 0 : index
    %771 = vector.load %arg9[%c448_568, %c0_569] : memref<1664x64xf32, #tpu.memory_space<vmem>>, vector<64x64xf32>
    %c576_570 = arith.constant 576 : index
    %c0_571 = arith.constant 0 : index
    %772 = vector.load %arg9[%c576_570, %c0_571] : memref<1664x64xf32, #tpu.memory_space<vmem>>, vector<64x64xf32>
    %c1536_572 = arith.constant 1536 : index
    %c0_573 = arith.constant 0 : index
    %773 = vector.load %arg9[%c1536_572, %c0_573] : memref<1664x64xf32, #tpu.memory_space<vmem>>, vector<64x64xf32>
    %774 = arith.mulf %769, %769 : vector<64x64xf32>
    %775 = arith.mulf %770, %770 : vector<64x64xf32>
    %776 = arith.mulf %769, %770 : vector<64x64xf32>
    %777 = arith.subf %771, %774 : vector<64x64xf32>
    %778 = arith.subf %772, %775 : vector<64x64xf32>
    %779 = arith.subf %773, %776 : vector<64x64xf32>
    %cst_574 = arith.constant 2.000000e+00 : f32
    %780 = vector.broadcast %cst_574 : f32 to vector<64x64xf32>
    %781 = arith.mulf %780, %776 : vector<64x64xf32>
    %cst_575 = arith.constant 9.99999974E-5 : f32
    %782 = vector.broadcast %cst_575 : f32 to vector<64x64xf32>
    %783 = arith.addf %781, %782 : vector<64x64xf32>
    %cst_576 = arith.constant 2.000000e+00 : f32
    %784 = vector.broadcast %cst_576 : f32 to vector<64x64xf32>
    %785 = arith.mulf %784, %779 : vector<64x64xf32>
    %cst_577 = arith.constant 8.99999984E-4 : f32
    %786 = vector.broadcast %cst_577 : f32 to vector<64x64xf32>
    %787 = arith.addf %785, %786 : vector<64x64xf32>
    %788 = arith.mulf %783, %787 : vector<64x64xf32>
    %789 = arith.addf %774, %775 : vector<64x64xf32>
    %cst_578 = arith.constant 9.99999974E-5 : f32
    %790 = vector.broadcast %cst_578 : f32 to vector<64x64xf32>
    %791 = arith.addf %789, %790 : vector<64x64xf32>
    %792 = arith.addf %777, %778 : vector<64x64xf32>
    %cst_579 = arith.constant 8.99999984E-4 : f32
    %793 = vector.broadcast %cst_579 : f32 to vector<64x64xf32>
    %794 = arith.addf %792, %793 : vector<64x64xf32>
    %795 = arith.mulf %791, %794 : vector<64x64xf32>
    %796 = tpu.reciprocal %795 {approx = true} : vector<64x64xf32> -> vector<64x64xf32>
    %797 = arith.mulf %788, %796 : vector<64x64xf32>
    %798 = arith.mulf %797, %3 : vector<64x64xf32>
    %cst_580 = arith.constant dense<0.000000e+00> : vector<64xf32>
    %799 = vector.multi_reduction <add>, %798, %cst_580 [1] : vector<64x64xf32> to vector<64xf32>
    %800 = vector.shape_cast %799 : vector<64xf32> to vector<64x1xf32>
    %cst_581 = arith.constant dense<0.000000e+00> : vector<1xf32>
    %801 = vector.multi_reduction <add>, %800, %cst_581 [0] : vector<64x1xf32> to vector<1xf32>
    %802 = vector.shape_cast %801 : vector<1xf32> to vector<1x1xf32>
    %c14_i32 = arith.constant 14 : i32
    %803 = vector.broadcast %c14_i32 : i32 to vector<1x128xi32>
    %804 = arith.cmpi eq, %193, %803 : vector<1x128xi32>
    %cst_582 = arith.constant 0.000000e+00 : f32
    %805 = vector.shape_cast %802 : vector<1x1xf32> to vector<1x1xf32>
    %806 = vector.broadcast %805 : vector<1x1xf32> to vector<1x128xf32>
    %807 = vector.broadcast %cst_582 : f32 to vector<1x128xf32>
    %808 = arith.select %804, %806, %807 : vector<1x128xi1>, vector<1x128xf32>
    %809 = arith.addf %768, %808 : vector<1x128xf32>
    %c192_583 = arith.constant 192 : index
    %c0_584 = arith.constant 0 : index
    %810 = vector.load %arg9[%c192_583, %c0_584] : memref<1664x64xf32, #tpu.memory_space<vmem>>, vector<64x64xf32>
    %c256_585 = arith.constant 256 : index
    %c0_586 = arith.constant 0 : index
    %811 = vector.load %arg9[%c256_585, %c0_586] : memref<1664x64xf32, #tpu.memory_space<vmem>>, vector<64x64xf32>
    %c512_587 = arith.constant 512 : index
    %c0_588 = arith.constant 0 : index
    %812 = vector.load %arg9[%c512_587, %c0_588] : memref<1664x64xf32, #tpu.memory_space<vmem>>, vector<64x64xf32>
    %c576_589 = arith.constant 576 : index
    %c0_590 = arith.constant 0 : index
    %813 = vector.load %arg9[%c576_589, %c0_590] : memref<1664x64xf32, #tpu.memory_space<vmem>>, vector<64x64xf32>
    %c1600_591 = arith.constant 1600 : index
    %c0_592 = arith.constant 0 : index
    %814 = vector.load %arg9[%c1600_591, %c0_592] : memref<1664x64xf32, #tpu.memory_space<vmem>>, vector<64x64xf32>
    %815 = arith.mulf %810, %810 : vector<64x64xf32>
    %816 = arith.mulf %811, %811 : vector<64x64xf32>
    %817 = arith.mulf %810, %811 : vector<64x64xf32>
    %818 = arith.subf %812, %815 : vector<64x64xf32>
    %819 = arith.subf %813, %816 : vector<64x64xf32>
    %820 = arith.subf %814, %817 : vector<64x64xf32>
    %cst_593 = arith.constant 2.000000e+00 : f32
    %821 = vector.broadcast %cst_593 : f32 to vector<64x64xf32>
    %822 = arith.mulf %821, %817 : vector<64x64xf32>
    %cst_594 = arith.constant 9.99999974E-5 : f32
    %823 = vector.broadcast %cst_594 : f32 to vector<64x64xf32>
    %824 = arith.addf %822, %823 : vector<64x64xf32>
    %cst_595 = arith.constant 2.000000e+00 : f32
    %825 = vector.broadcast %cst_595 : f32 to vector<64x64xf32>
    %826 = arith.mulf %825, %820 : vector<64x64xf32>
    %cst_596 = arith.constant 8.99999984E-4 : f32
    %827 = vector.broadcast %cst_596 : f32 to vector<64x64xf32>
    %828 = arith.addf %826, %827 : vector<64x64xf32>
    %829 = arith.mulf %824, %828 : vector<64x64xf32>
    %830 = arith.addf %815, %816 : vector<64x64xf32>
    %cst_597 = arith.constant 9.99999974E-5 : f32
    %831 = vector.broadcast %cst_597 : f32 to vector<64x64xf32>
    %832 = arith.addf %830, %831 : vector<64x64xf32>
    %833 = arith.addf %818, %819 : vector<64x64xf32>
    %cst_598 = arith.constant 8.99999984E-4 : f32
    %834 = vector.broadcast %cst_598 : f32 to vector<64x64xf32>
    %835 = arith.addf %833, %834 : vector<64x64xf32>
    %836 = arith.mulf %832, %835 : vector<64x64xf32>
    %837 = tpu.reciprocal %836 {approx = true} : vector<64x64xf32> -> vector<64x64xf32>
    %838 = arith.mulf %829, %837 : vector<64x64xf32>
    %839 = arith.mulf %838, %3 : vector<64x64xf32>
    %cst_599 = arith.constant dense<0.000000e+00> : vector<64xf32>
    %840 = vector.multi_reduction <add>, %839, %cst_599 [1] : vector<64x64xf32> to vector<64xf32>
    %841 = vector.shape_cast %840 : vector<64xf32> to vector<64x1xf32>
    %cst_600 = arith.constant dense<0.000000e+00> : vector<1xf32>
    %842 = vector.multi_reduction <add>, %841, %cst_600 [0] : vector<64x1xf32> to vector<1xf32>
    %843 = vector.shape_cast %842 : vector<1xf32> to vector<1x1xf32>
    %c15_i32 = arith.constant 15 : i32
    %844 = vector.broadcast %c15_i32 : i32 to vector<1x128xi32>
    %845 = arith.cmpi eq, %193, %844 : vector<1x128xi32>
    %cst_601 = arith.constant 0.000000e+00 : f32
    %846 = vector.shape_cast %843 : vector<1x1xf32> to vector<1x1xf32>
    %847 = vector.broadcast %846 : vector<1x1xf32> to vector<1x128xf32>
    %848 = vector.broadcast %cst_601 : f32 to vector<1x128xf32>
    %849 = arith.select %845, %847, %848 : vector<1x128xi1>, vector<1x128xf32>
    %850 = arith.addf %809, %849 : vector<1x128xf32>
    %851 = vector.shape_cast %850 : vector<1x128xf32> to vector<1x1x128xf32>
    %c0_602 = arith.constant 0 : index
    %c0_603 = arith.constant 0 : index
    %c0_604 = arith.constant 0 : index
    %852 = vector.load %arg5[%c0_602, %c0_603, %c0_604] : memref<1x1x128xf32, #tpu.memory_space<vmem>>, vector<1x1x128xf32>
    tpu.vector_store %arg5[%c0_602, %c0_603, %c0_604], %851 {strides = array<i32>} : memref<1x1x128xf32, #tpu.memory_space<vmem>>, vector<1x1x128xf32>,
    return
  }
  func.func @transform_0(%arg0: i32) -> (i32, i32, i32, i32) {
    %c0_i32 = arith.constant 0 : i32
    %c0_i32_0 = arith.constant 0 : i32
    %c0_i32_1 = arith.constant 0 : i32
    %c0_i32_2 = arith.constant 0 : i32
    return %arg0, %c0_i32, %c0_i32_0, %c0_i32_1 : i32, i32, i32, i32
  }
  func.func @transform_1(%arg0: i32) -> (i32, i32, i32) {
    %c0_i32 = arith.constant 0 : i32
    %c0_i32_0 = arith.constant 0 : i32
    %c0_i32_1 = arith.constant 0 : i32
    return %arg0, %c0_i32, %c0_i32_0 : i32, i32, i32
  }
  func.func @transform_2(%arg0: i32) -> (i32, i32) {
    %c0_i32 = arith.constant 0 : i32
    %c0_i32_0 = arith.constant 0 : i32
    %c0_i32_1 = arith.constant 0 : i32
    return %c0_i32, %c0_i32_0 : i32, i32
  }
  func.func @transform_3(%arg0: i32) -> (i32, i32) {
    %c0_i32 = arith.constant 0 : i32
    %c0_i32_0 = arith.constant 0 : i32
    %c0_i32_1 = arith.constant 0 : i32
    return %c0_i32, %c0_i32_0 : i32, i32
  }
  func.func @transform_4(%arg0: i32) -> (i32, i32, i32) {
    %c0_i32 = arith.constant 0 : i32
    %c0_i32_0 = arith.constant 0 : i32
    %c0_i32_1 = arith.constant 0 : i32
    return %arg0, %c0_i32, %c0_i32_0 : i32, i32, i32
  }
}

</mosaic_0001>

<bundles_post_ra>
// kernel: tpu_custom_call.1
= control target key start
LH: loop header
LB: loop body
LE: loop exit
PB: predicated region body
PF: predicated region fallthrough
CT: control target
= control target key end

     0   :  { %9 = vsyncpa [#allocation7], 0  ;;  %s14037_s0 = inlined_call_operand.hbm [shape: f32[4,5,80,128], index: 0, kind: input, shape index: {}]   ;;  %s14038_s1 = inlined_call_operand.hbm [shape: f32[4,64,64], index: 1, kind: input, shape index: {}]   ;;  %s14039_s2 = inlined_call_operand.vmem [shape: f32[64,80], index: 2, kind: input, shape index: {}]   ;;  %s14040_s3 = inlined_call_operand.vmem [shape: f32[128,64], index: 3, kind: input, shape index: {}]   ;;  %s14041_s4 = inlined_call_operand.hbm [shape: f32[4,1,128], index: 4, kind: output, shape index: {}]  }
   0x1   :  { %11 = vsyncpa [#allocation7 + $0x1], 0 }
   0x2   :  { %12 = vsyncpa [#allocation10], 0 }
   0x3   :  { %14 = vsyncpa [#allocation10 + $0x1], 0 }
   0x4   :  { %15 = vsyncpa [#allocation8], 0 }
   0x5   :  { %17 = vsyncpa [#allocation8 + $0x1], 0  ;;  %s9375_s15 = smov 0   ;;  %s9377_s16 = smov 0  }
   0x6   :  { %s9379_s17 = smov 0   ;;  %s9381_s18 = smov 0  }
   0x7 LB: > { %s9396_s19 = sadd.s32 4294967295, %s9342_s18   ;;  %s7602_s20 = sadd.s32 4294967294, %s9342_s18   ;;  %s9342_s18 = sphi %s9381_s18, %s15222_s18   ;;  %s9338_s17 = sphi %s9379_s17, %s15221_s17   ;;  %s9334_s16 = sphi %s9377_s16, %s15220_s16   ;;  %s9330_s15 = sphi %s9375_s15, %s15219_s15  }
   0x8   : > { %s9400_s21 = sadd.s32 1, %s9342_s18   ;;  %s30_s22 = sadd.s32 1, %s9338_s17 }
   0x9   : > { %s27_s23 = ssub.s32 %s9342_s18, %s9400_s21  ;;  %p37_p0 = scmp.ne.s32.totalorder %s9338_s17, %s9334_s16 }
   0xa   : > { %p28_p1 = scmp.eq.s32.totalorder %s27_s23, 0  ;;  %p38_p2 = scmp.eq.s32.totalorder %s9342_s18, 0 }
   0xb   : > { %p43_p3 = scmp.ne.s32.totalorder %s9334_s16, %s9330_s15  ;;  %p44_p4 = scmp.eq.s32.totalorder %s9396_s19, 0 }
   0xc   : > { %s9412_s24 = scalar_select %p28_p1, %s9338_s17, %s30_s22  }
   0xd   : > { %p39_p5 = por %p38_p2, %p37_p0  ;;  %p9414_p6 = por %p44_p4, %p43_p3 }
   0xe   : > { %p135_p7 = scmp.eq.s32.totalorder %s9396_s19, 3  ;;  %p141_p8 = scmp.eq.s32.totalorder %s7602_s20, 3 }
   0xf   : > { %s14405_s25 = scalar_select %p9414_p6, 1, 0 }
  0x10   : > { %p8945_p9 = scmp.lt.s32.totalorder %s9342_s18, 4  ;;  %p9420_p10 = por %p135_p7, %p37_p0 }
  0x11   : > { %p9424_p11 = por %p141_p8, %p43_p3  ;;  %s9429_s28 = sand.u32 1, %s9338_s17  }
  0x12   : > { %s14406_s26 = scalar_select %p9420_p10, 1, 0 }
  0x13   : > { %s14407_s27 = scalar_select %p9424_p11, 1, 0 }
  0x14   : > { %s8926_s29 = smul.u32 6400, %s9342_s18  ;;  %p9438_p12 = pnand %p8945_p9, %p39_p5 }
  0x15   : > { %s8925_s30 = smul.u32 400, %s9429_s28  ;;  %s168_s11 = scalar_lea.sflag [#allocation7], %s9429_s28 }
  0x16   : > { %s9436_s7 = scalar_lea.hbm %s14037_s0, %s8926_s29  ;;  %p9214_p0 = pneg %p9438_p12 }
  0x17   : > { %s171_s9 = scalar_lea.vmem [#allocation6], %s8925_s30  ;;  %s9212_s12 = scalar_lea.hbm %s9436_s7, 6400 }
  0x18   : > { %s178_s10 = sshll.u32 %s171_s9, 4  ;;  %p9213_p13 = scmp.ne.s32.totalorder %s9436_s7, %s9212_s12  ;;  %s9442_s10 = int_to_ptr.vmem [resolvable:$true] %s178_s10 }
  0x19   : > { %s9217_s20 = scalar_lea.hbm %s14037_s0, 25600  ;;  %p9218_p3 = scmp.lt.u32.totalorder %s9436_s7, %s14037_s0 }
  0x1a   : > { %p9215_p1 = pnand %p9214_p0, %p9213_p13  ;;  %p9219_p4 = scmp.lt.u32.totalorder %s9217_s20, %s9212_s12 }
  0x1b   : > { %p9221_p7 = scmp.lt.u32.totalorder %s9212_s12, %s9436_s7 }
  0x1c   : > { %p9216_p2 = pneg %p9215_p1  ;;  %p9220_p5 = por %p9219_p4, %p9218_p3 }
  0x1e   : > { %p9222_p8 = por %p9221_p7, %p9220_p5 }
  0x20   : > { %p9223_p9 = pnand %p9222_p8, %p9216_p2 }
  0x22   : > { %9226 = shalt.err (!%p9223_p9)
}
  0x23   : > { %s9227_s29 = scalar_lea.vmem %s9442_s10, 6400  ;;  %s9344_s30 = smov [#allocation6]  }
  0x24   : > { %p9228_p13 = scmp.ne.s32.totalorder %s9442_s10, %s9227_s29  ;;  %s9232_s5 = sshll.u32 %s9344_s30, 4  ;;  %s9233_s5 = int_to_ptr.vmem [resolvable:$false] %s9232_s5 }
  0x25   : > { %s9234_s6 = scalar_lea.vmem %s9233_s5, 12800  ;;  %p9235_p10 = scmp.lt.s32.totalorder %s9442_s10, %s9233_s5 }
  0x26   : > { %p9230_p1 = pnand %p9228_p13, %p9214_p0  ;;  %p9236_p3 = scmp.lt.s32.totalorder %s9234_s6, %s9227_s29 }
  0x28   : > { %p9231_p11 = pneg %p9230_p1  ;;  %p9237_p4 = por %p9236_p3, %p9235_p10 }
  0x2a   : > { %p9238_p5 = pnand %p9237_p4, %p9231_p11 }
  0x2c   : > { %9241 = shalt.err (!%p9238_p5)
}
  0x2d   : > { %s9345_s9 = smov 128   ;;  %s9346_s12 = smov 8  }
  0x2e   : > { %8937 = dma.hbm_to_vmem [thread:$0]  (!%p9438_p12), %s9436_s7, 6400, %s9442_s10, %s168_s11, %s9345_s9, %s9345_s9, %s9346_s12  }
  0x2f   : > { %p7609_p10 = scmp.ge.s32.totalorder %s9342_s18, 1  ;;  %p207_p11 = scmp.lt.s32.totalorder %s9342_s18, 5 }
  0x30   : > { %s7606_s13 = sshll.u32 %s9429_s28, 6  ;;  %s8048_s20 = sshll.u32 %s9342_s18, 10 }
  0x31   : > { %p9478_p2 = pnand %p7609_p10, %p207_p11  ;;  %s192_s22 = scalar_lea.vmem [#allocation9], %s7606_s13 }
  0x32   : > { %s199_s23 = sshll.u32 %s192_s22, 4  ;;  %s9486_s5 = scalar_lea.hbm %s14038_s1, %s8048_s20  ;;  %s9488_s23 = int_to_ptr.vmem [resolvable:$true] %s199_s23 }
  0x33   : > { %s189_s7 = scalar_lea.sflag [#allocation10], %s9429_s28  ;;  %s9242_s10 = scalar_lea.hbm %s9486_s5, 1024 }
  0x34   : > { %p9243_p7 = scmp.ne.s32.totalorder %s9486_s5, %s9242_s10  ;;  %s9247_s13 = scalar_lea.hbm %s14038_s1, 4096 }
  0x35   : > { %p9248_p13 = scmp.lt.u32.totalorder %s9486_s5, %s14038_s1  ;;  %p9249_p1 = scmp.lt.u32.totalorder %s9247_s13, %s9242_s10 }
  0x36   : > { %p9245_p8 = pnand %p9243_p7, %p9214_p0  ;;  %p9251_p4 = scmp.lt.u32.totalorder %s9242_s10, %s9486_s5 }
  0x37   : > { %p9250_p3 = por %p9249_p1, %p9248_p13 }
  0x38   : > { %p9246_p9 = pneg %p9245_p8 }
  0x39   : > { %p9252_p5 = por %p9251_p4, %p9250_p3 }
  0x3b   : > { %p9253_p10 = pnand %p9252_p5, %p9246_p9 }
  0x3d   : > { %9256 = shalt.err (!%p9253_p10)
}
  0x3e   : > { %s9257_s29 = scalar_lea.vmem %s9488_s23, 1024  ;;  %s9347_s30 = smov [#allocation9]  }
  0x3f   : > { %p9258_p11 = scmp.ne.s32.totalorder %s9488_s23, %s9257_s29  ;;  %s9262_s11 = sshll.u32 %s9347_s30, 4  ;;  %s9263_s11 = int_to_ptr.vmem [resolvable:$false] %s9262_s11 }
  0x40   : > { %s9264_s6 = scalar_lea.vmem %s9263_s11, 2048  ;;  %p9265_p6 = scmp.lt.s32.totalorder %s9488_s23, %s9263_s11 }
  0x41   : > { %p9260_p7 = pnand %p9258_p11, %p9214_p0  ;;  %p9266_p13 = scmp.lt.s32.totalorder %s9264_s6, %s9257_s29 }
  0x43   : > { %p9261_p8 = pneg %p9260_p7  ;;  %p9267_p1 = por %p9266_p13, %p9265_p6 }
  0x45   : > { %p9268_p3 = pnand %p9267_p1, %p9261_p8 }
  0x47   : > { %9271 = shalt.err (!%p9268_p3)
}
  0x48   : > { %8940 = dma.hbm_to_vmem [thread:$0]  (!%p9438_p12), %s9486_s5, 1024, %s9488_s23, %s189_s7, %s9345_s9, %s9345_s9, %s9346_s12  }
  0x49   : > { %211 = sbr.rel (%p9478_p2) target bundleno = 1268 (0x4f4), region = 36 }
  0x50   : > { %s9522_s10 = sand.u32 1, %s9334_s16   ;;  %p14410_p6 = scmp.ne.s32.totalorder %s14405_s25, 0 }
  0x51   : > { %s8927_s13 = smul.u32 400, %s9522_s10  ;;  %s214_s22 = scalar_lea.sflag [#allocation7], %s9522_s10 }
  0x53   : > { %s9526_s8 = scalar_lea.vmem [#allocation6], %s8927_s13 }
  0x54   : > { %9317 = dma.done.wait (%p14410_p6), %s214_s22, 6400  }
  0x55   : > { %9319 = vsyncadd (%p14410_p6), %s214_s22, 4294960896  ;;  %s7610_s28 = sshll.u32 %s9522_s10, 6  ;;  %s223_s9 = scalar_lea.sflag [#allocation10], %s9522_s10 }
  0x56   : > { %s9534_s12 = scalar_lea.vmem [#allocation9], %s7610_s28 }
  0x57   : > { %9321 = dma.done.wait (%p14410_p6), %s223_s9, 1024  }
  0x58   : > { %9323 = vsyncadd (%p14410_p6), %s223_s9, 4294966272  ;;  %v14044_v0 = vmov 0.0   ;;  %v9543_v1 = vld [vmem:[%s9526_s8 + $0x50] sm:$0xff]  ;;  %v9546_v2 = vld [vmem:[%s9526_s8 + $0x58] sm:$0xff]  ;;  %vm1441_vm0 = vcmask 654336   ;;  %vm4872_vm1 = vcmask 523264  }
  0x59   : > { %1530 = vmatprep.mubr.f32.mxu0 %v14044_v0  ;;  %1643 = vmatprep.mubr.f32.mxu1 %v14044_v0  ;;  %14411 = vst [vmem:[#allocation15_spill] sm:$0xff] %v9543_v1  ;;  %14412 = vst [vmem:[#allocation16_spill] sm:$0xff] %v9546_v2  ;;  %v9549_v3 = vld [vmem:[%s9526_s8] sm:$0xff]  ;;  %v8617_v4 = vpack.c.bf16 %v9546_v2, %v9543_v1  ;;  %v9554_v5 = vld [vmem:[%s9526_s8 + $0x8] sm:$0xff]  ;;  %v9700_v62 = vmul.f32 %v9543_v1, %v9543_v1  ;;  %s254_s7 = scalar_lea.vmem [#allocation11], %s9522_s10  ;;  %s7501_s6 = scalar_lea.sflag [#allocation8], %s9522_s10 }
  0x5a   : > { %v9557_v6 = vld [vmem:[%s9526_s8 + $0x60] sm:$0xff]  ;;  %v9560_v7 = vld [vmem:[%s9526_s8 + $0x68] sm:$0xff]  ;;  %v8619_v8 = vpack.c.bf16 %v9554_v5, %v9549_v3  ;;  %v9567_v10 = vld [vmem:[%s9526_s8 + $0x10] sm:$0xff]  ;;  %v401_v35 = vmul.f32 %v9549_v3, %v9549_v3  ;;  %v402_v36 = vmul.f32 %v9554_v5, %v9554_v5  ;;  %v9704_v63 = vmul.f32 %v9546_v2, %v9546_v2  ;;  %s7513_s20 = sshll.u32 %s254_s7, 4  ;;  %p15217_p0 = scmp.ne.s32.totalorder %s14406_s26, 0  ;;  %s13996_s20 = int_to_ptr.vmem [resolvable:$true] %s7513_s20 }
  0x5b   : > { %14413 = vst [vmem:[#allocation17_spill] sm:$0xff] %v9557_v6  ;;  %14414 = vst [vmem:[#allocation18_spill] sm:$0xff] %v9560_v7  ;;  %v8621_v9 = vpack.c.bf16 %v9560_v7, %v9557_v6  ;;  %v9570_v11 = vld [vmem:[%s9526_s8 + $0x18] sm:$0xff]  ;;  %v9573_v12 = vld [vmem:[%s9526_s8 + $0x70] sm:$0xff]  ;;  %8618 = vmatprep.subr.bf16.mxu0 %v8617_v4  ;;  %v403_v49 = vmul.f32 %v9567_v10, %v9567_v10  ;;  %v9769_v0 = vmul.f32 %v9560_v7, %v9560_v7  ;;  %v14429_v2 = vmov 0.0   ;;  %s9272_s13 = scalar_lea.vmem %s13996_s20, 16 }
  0x5c   : > { %v9576_v13 = vld [vmem:[%s9526_s8 + $0x78] sm:$0xff]  ;;  %8620 = vmatpush1.bf16.msra.mxu0 %v8619_v8  ;;  %v8623_v14 = vpack.c.bf16 %v9570_v11, %v9567_v10  ;;  %v9583_v16 = vld [vmem:[%s9526_s8 + $0x20] sm:$0xff]  ;;  %v9586_v17 = vld [vmem:[%s9526_s8 + $0x28] sm:$0xff]  ;;  %v404_v50 = vmul.f32 %v9570_v11, %v9570_v11  ;;  %v8657_v54 = vpack.c.bf16 %v402_v36, %v401_v35  ;;  %p9273_p12 = scmp.ne.s32.totalorder %s13996_s20, %s9272_s13 }
  0x5d   : > { %14415 = vst [vmem:[#allocation19_spill] sm:$0xff] %v9576_v13  ;;  %8622 = vmatprep.subr.bf16.mxu0 %v8621_v9  ;;  %v8625_v15 = vpack.c.bf16 %v9576_v13, %v9573_v12  ;;  %v9589_v18 = vld [vmem:[%s9526_s8 + $0x80] sm:$0xff]  ;;  %v9592_v19 = vld [vmem:[%s9526_s8 + $0x88] sm:$0xff]  ;;  %v8627_v20 = vpack.c.bf16 %v9586_v17, %v9583_v16  ;;  %v9597_v21 = vld [vmem:[%s9526_s8 + $0x30] sm:$0xff]  ;;  %v9688_v58 = vmul.f32 %v9583_v16, %v9583_v16 }
  0x5e   : > { %14416 = vst [vmem:[#allocation20_spill] sm:$0xff] %v9589_v18  ;;  %14417 = vst [vmem:[#allocation21_spill] sm:$0xff] %v9592_v19  ;;  %v9600_v22 = vld [vmem:[%s9526_s8 + $0x38] sm:$0xff]  ;;  %v8629_v23 = vpack.c.bf16 %v9592_v19, %v9589_v18  ;;  %v9605_v24 = vld [vmem:[%s9526_s8 + $0x90] sm:$0xff]  ;;  %v8661_v4 = vpack.c.bf16 %v404_v50, %v403_v49  ;;  %v406_v8 = vmul.f32 %v9586_v17, %v9586_v17  ;;  %p9274_p2 = pnand %p9273_p12, %p15217_p0 }
  0x5f   : > { %14418 = vst [vmem:[#allocation22_spill] sm:$0xff] %v9605_v24  ;;  %v9608_v25 = vld [vmem:[%s9526_s8 + $0xf0] sm:$0xff]  ;;  %v9611_v26 = vld [vmem:[%s9526_s8 + $0xf8] sm:$0xff]  ;;  %v9619_v29 = vld [vmem:[%s9526_s8 + $0xa0] sm:$0xff]  ;;  %v8631_v34 = vpack.c.bf16 %v9600_v22, %v9597_v21  ;;  %v9710_v9 = vmul.f32 %v9597_v21, %v9597_v21 }
  0x60   : > { %8624 = vmatpush1.bf16.msra.mxu0 %v8623_v14  ;;  %v9614_v27 = vld [vmem:[%s9526_s8 + $0x98] sm:$0xff]  ;;  %v8637_v28 = vpack.c.bf16 %v9611_v26, %v9608_v25  ;;  %v9622_v30 = vld [vmem:[%s9526_s8 + $0xa8] sm:$0xff]  ;;  %v9625_v31 = vld [vmem:[%s9526_s8 + $0x40] sm:$0xff]  ;;  %v9714_v14 = vmul.f32 %v9600_v22, %v9600_v22  ;;  %p9275_p9 = pneg %p9274_p2 }
  0x61   : > { %8626 = vmatprep.subr.bf16.mxu0 %v8625_v15  ;;  %14419 = vst [vmem:[#allocation23_spill] sm:$0xff] %v9614_v27  ;;  %v8639_v32 = vpack.c.bf16 %v9622_v30, %v9619_v29  ;;  %v9630_v33 = vld [vmem:[%s9526_s8 + $0x100] sm:$0xff]  ;;  %v9639_v37 = vld [vmem:[%s9526_s8 + $0x108] sm:$0xff]  ;;  %v9642_v38 = vld [vmem:[%s9526_s8 + $0xb0] sm:$0xff]  ;;  %v8633_v40 = vpack.c.bf16 %v9614_v27, %v9605_v24 }
  0x62   : > { %8638 = vmatprep.subr.bf16.mxu1 %v8637_v28  ;;  %14420 = vst [vmem:[#allocation24_spill] sm:$0xff] %v9642_v38  ;;  %v9645_v39 = vld [vmem:[%s9526_s8 + $0xb8] sm:$0xff]  ;;  %v9650_v41 = vld [vmem:[%s9526_s8 + $0x48] sm:$0xff]  ;;  %v8641_v42 = vpack.c.bf16 %v9639_v37, %v9630_v33  ;;  %v9657_v44 = vld [vmem:[%s9526_s8 + $0x110] sm:$0xff] }
  0x63   : > { %14421 = vst [vmem:[#allocation25_spill] sm:$0xff] %v9645_v39  ;;  %14422 = vst [vmem:[#allocation26_spill] sm:$0xff] %v9650_v41  ;;  %8640 = vmatpush1.bf16.msra.mxu1 %v8639_v32  ;;  %v8643_v43 = vpack.c.bf16 %v9645_v39, %v9642_v38  ;;  %v9660_v45 = vld [vmem:[%s9526_s8 + $0x118] sm:$0xff]  ;;  %v9665_v47 = vld [vmem:[%s9526_s8 + $0xc0] sm:$0xff]  ;;  %v8635_v52 = vpack.c.bf16 %v9650_v41, %v9625_v31  ;;  %v9734_v35 = vmul.f32 %v9650_v41, %v9650_v41 }
  0x64   : > { %8628 = vmatpush1.bf16.msra.mxu0 %v8627_v20  ;;  %v8645_v46 = vpack.c.bf16 %v9660_v45, %v9657_v44  ;;  %14423 = vst [vmem:[#allocation27_spill] sm:$0xff] %v9665_v47  ;;  %v9668_v48 = vld [vmem:[%s9526_s8 + $0xc8] sm:$0xff]  ;;  %8642 = vmatprep.subr.bf16.mxu1 %v8641_v42  ;;  %v9675_v51 = vld [vmem:[%s9526_s8 + $0x120] sm:$0xff]  ;;  %v9693_v60 = vld [vmem:[%s9526_s8 + $0xd0] sm:$0xff]  ;;  %v9790_v41 = vmul.f32 %v9608_v25, %v9608_v25 }
  0x65   : > { %8630 = vmatprep.subr.bf16.mxu0 %v8629_v23  ;;  %v9680_v53 = vld [vmem:[%s9526_s8 + $0x128] sm:$0xff]  ;;  %v7641_v55 = vld [vmem:[%s9526_s8 + $0x140] sm:$0xff]  ;;  %v8647_v57 = vpack.c.bf16 %v9668_v48, %v9665_v47  ;;  %v9696_v61 = vld [vmem:[%s9526_s8 + $0xd8] sm:$0xff] }
  0x66   : > { %v7642_v56 = vld [vmem:[%s9526_s8 + $0x148] sm:$0xff]  ;;  %v8649_v59 = vpack.c.bf16 %v9680_v53, %v9675_v51  ;;  %v9717_v15 = vld [vmem:[%s9526_s8 + $0x130] sm:$0xff]  ;;  %v9720_v20 = vld [vmem:[%s9526_s8 + $0x138] sm:$0xff]  ;;  %v9736_v36 = vmul.f32 %v7641_v55, %v7641_v55  ;;  %v8651_v42 = vpack.c.bf16 %v9696_v61, %v9693_v60 }
  0x67   : > { %8644 = vmatpush1.bf16.msra.mxu1 %v8643_v43  ;;  %14424 = vst [vmem:[#allocation28_spill] sm:$0xff] %v9720_v20  ;;  %v9725_v23 = vld [vmem:[%s14039_s2] sm:$0xff]  ;;  %v8659_v28 = vpack.c.bf16 %v7642_v56, %v7641_v55  ;;  %v9741_v43 = vmul.f32 %v7642_v56, %v7642_v56  ;;  %v8653_v49 = vpack.c.bf16 %v9720_v20, %v9717_v15  ;;  %v9775_v1 = vld [vmem:[%s14039_s2 + $0x8] sm:$0xff] }
  0x68   : > { %8632 = vmatpush1.bf16.msra.mxu0 %v8631_v34  ;;  %8646 = vmatprep.subr.bf16.mxu1 %v8645_v46  ;;  %v7643_v32 = vld [vmem:[%s9526_s8 + $0x150] sm:$0xff]  ;;  %v9730_v34 = vmul.f32 %v9625_v31, %v9625_v31  ;;  %v9748_v50 = vld [vmem:[%s9526_s8 + $0xe0] sm:$0xff]  ;;  %v462_v55 = vmul.f32 %v9622_v30, %v9622_v30  ;;  %v9784_v7 = vld [vmem:[%s9526_s8 + $0x168] sm:$0xff] }
  0x69   : > { %8634 = vmatprep.subr.bf16.mxu0 %v8633_v40  ;;  %v7644_v40 = vld [vmem:[%s9526_s8 + $0x158] sm:$0xff]  ;;  %v9743_v46 = vmul.f32 %v7643_v32, %v7643_v32  ;;  %14426 = vst [vmem:[#allocation30_spill] sm:$0xff] %v9748_v50  ;;  %14430 = vst [vmem:[#allocation33_spill] sm:$0xff] %v9784_v7 }
  0x6a   : > { %v9757_v56 = vmul.f32 %v7644_v40, %v7644_v40  ;;  %v8663_v20 = vpack.c.bf16 %v7644_v40, %v7643_v32  ;;  %v9805_v32 = vld [vmem:[%s9526_s8 + $0x170] sm:$0xff]  ;;  %v9808_v40 = vld [vmem:[%s9526_s8 + $0x178] sm:$0xff] }
  0x6b   : > { %8648 = vmatpush1.bf16.msra.mxu1 %v8647_v57  ;;  %14425 = vst [vmem:[#allocation29_spill] sm:$0xff] %v9743_v46  ;;  %v8679_v57 = vpack.c.bf16 %v9704_v63, %v9700_v62  ;;  %v8665_v62 = vpack.c.bf16 %v406_v8, %v9688_v58  ;;  %v8669_v63 = vpack.c.bf16 %v9714_v14, %v9710_v9  ;;  %v9831_v14 = vld [vmem:[%s9526_s8 + $0x180] sm:$0xff] }
  0x6c   : > { %8636 = vmatpush1.bf16.msra.mxu0 %v8635_v52  ;;  %8650 = vmatprep.subr.bf16.mxu1 %v8649_v59  ;;  %v9751_v52 = vld [vmem:[%s9526_s8 + $0xe8] sm:$0xff]  ;;  %14428 = vst [vmem:[#allocation32_spill] sm:$0xff] %v9757_v56  ;;  %v9765_v59 = vmul.f32 %v9557_v6, %v9557_v6  ;;  %v9781_v6 = vld [vmem:[%s9526_s8 + $0x160] sm:$0xff]  ;;  %v9794_v58 = vmul.f32 %v9611_v26, %v9611_v26 }
  0x6d   : > { %8658 = vmatprep.subr.bf16.mxu0 %v8657_v54  ;;  %14427 = vst [vmem:[#allocation31_spill] sm:$0xff] %v9751_v52  ;;  %v461_v54 = vmul.f32 %v9619_v29, %v9619_v29  ;;  %v8673_v8 = vpack.c.bf16 %v9734_v35, %v9730_v34  ;;  %v463_v34 = vmul.f32 %v9642_v38, %v9642_v38 }
  0x6e   : > { %v464_v35 = vmul.f32 %v9645_v39, %v9645_v39  ;;  %v465_v46 = vmul.f32 %v9665_v47, %v9665_v47  ;;  %v466_v56 = vmul.f32 %v9668_v48, %v9668_v48  ;;  %v8671_v38 = vpack.c.bf16 %v9808_v40, %v9805_v32 }
  0x6f   : > { %7941 = vmatmul.mubr.msk.f32.vlgmr.msra.gmra.mrb[0].mxu0 %vm1441_vm0, %v9725_v23  ;;  %8652 = vmatpush1.bf16.msra.mxu1 %v8651_v42  ;;  %v8677_v9 = vpack.c.bf16 %v462_v55, %v461_v54  ;;  %v9816_v42 = vmul.f32 %v9608_v25, %v9549_v3  ;;  %v9826_v54 = vld [vmem:[%s14039_s2 + $0x10] sm:$0xff]  ;;  %v8667_v55 = vpack.c.bf16 %v9784_v7, %v9781_v6 }
  0x70   : > { %8660 = vmatpush1.bf16.msra.mxu0 %v8659_v28  ;;  %1536 = vmatprep.mubr.f32.mxu0 %v14429_v2  ;;  %v8655_v28 = vpack.c.bf16 %v9751_v52, %v9748_v50  ;;  %v8683_v47 = vpack.c.bf16 %v9769_v0, %v9765_v59  ;;  %v8681_v39 = vpack.c.bf16 %v464_v35, %v463_v34  ;;  %v9872_v59 = vld [vmem:[%s14039_s2 + $0x18] sm:$0xff] }
  0x71   : > { %8662 = vmatprep.subr.bf16.mxu0 %v8661_v4  ;;  %8654 = vmatprep.subr.bf16.mxu1 %v8653_v49  ;;  %14431 = vst [vmem:[#allocation34_spill] sm:$0xff] %v9816_v42  ;;  %v9820_v49 = vmul.f32 %v9611_v26, %v9554_v5  ;;  %v9834_v4 = vld [vmem:[%s9526_s8 + $0x188] sm:$0xff]  ;;  %v436_v0 = vmul.f32 %v9576_v13, %v9576_v13 }
  0x72   : > { %v8675_v7 = vpack.c.bf16 %v9834_v4, %v9831_v14  ;;  %v8685_v42 = vpack.c.bf16 %v466_v56, %v465_v46  ;;  %v468_v35 = vmul.f32 %v9696_v61, %v9696_v61  ;;  %v9884_v13 = vmul.f32 %v9657_v44, %v9583_v16 }
  0x73   : > { %7942 = vmatmul.mubr.msk.f32.gmra.mrb[2].mxu0 %vm1441_vm0, %v9775_v1  ;;  %14432 = vst [vmem:[#allocation35_spill] sm:$0xff] %v9820_v49  ;;  %8656 = vmatpush1.bf16.msra.mxu1 %v8655_v28  ;;  %v9858_v28 = vmul.f32 %v9639_v37, %v9570_v11  ;;  %v467_v49 = vmul.f32 %v9693_v60, %v9693_v60 }
  0x74   : > { %1542 = vmatprep.mubr.f32.mxu0 %v14429_v2  ;;  %8664 = vmatpush1.bf16.msra.mxu0 %v8663_v20  ;;  %v9844_v20 = vmul.f32 %v9630_v33, %v9630_v33  ;;  %14435 = vst [vmem:[#allocation38_spill] sm:$0xff] %v9884_v13  ;;  %v9888_v46 = vmul.f32 %v9660_v45, %v9586_v17 }
  0x75   : > { %8666 = vmatprep.subr.bf16.mxu0 %v8665_v62  ;;  %8678 = vmatprep.subr.bf16.mxu1 %v8677_v9  ;;  %v9854_v62 = vmul.f32 %v9630_v33, %v9567_v10  ;;  %14434 = vst [vmem:[#allocation37_spill] sm:$0xff] %v9858_v28  ;;  %v435_v9 = vmul.f32 %v9573_v12, %v9573_v12  ;;  %v9919_v28 = vld [vmem:[%s14039_s2 + $0x20] sm:$0xff] }
  0x76   : > { %7949 = vmatmul.mubr.msk.f32.vlgmr.msra.gmra.mrb[0].mxu1 %vm1441_vm0, %v9725_v23  ;;  %14436 = vst [vmem:[#allocation39_spill] sm:$0xff] %v9888_v46  ;;  %v9893_v56 = vmul.f32 %v9589_v18, %v9589_v18  ;;  %v9907_v34 = vmul.f32 %v9751_v52, %v9751_v52  ;;  %v9927_v52 = vmul.f32 %v9675_v51, %v9597_v21  ;;  %v9968_v18 = vld [vmem:[%s9526_s8 + $0x58] sm:$0xff] }
  0x77   : > { %14433 = vst [vmem:[#allocation36_spill] sm:$0xff] %v9854_v62  ;;  %7943 = vmatmul.mubr.msk.f32.gmra.mrb[4].mxu0 %vm1441_vm0, %v9826_v54  ;;  %1649 = vmatprep.mubr.f32.mxu1 %v14429_v2  ;;  %v9941_v62 = vmul.f32 %v9781_v6, %v9781_v6  ;;  %v8687_v13 = vpack.c.bf16 %v436_v0, %v435_v9  ;;  %v14440_v9 = vld [vmem:[#allocation26_spill] sm:$0xff]  ;;  %v14441_v0 = vld [vmem:[#allocation28_spill] sm:$0xff]  ;;  %14444 = vst [vmem:[#allocation43_spill] sm:$0xff] %v9968_v18 }
  0x78   : > { %1548 = vmatprep.mubr.f32.mxu0 %v14429_v2  ;;  %8668 = vmatpush1.bf16.msra.mxu0 %v8667_v55  ;;  %v9901_v55 = vmul.f32 %v9748_v50, %v9748_v50  ;;  %14437 = vst [vmem:[#allocation40_spill] sm:$0xff] %v9927_v52  ;;  %v9946_v46 = vmul.f32 %v9619_v29, %v9549_v3 }
  0x79   : > { %8670 = vmatprep.subr.bf16.mxu0 %v8669_v63  ;;  %8680 = vmatpush1.bf16.msra.mxu1 %v8679_v57  ;;  %v9897_v63 = vmul.f32 %v9592_v19, %v9592_v19  ;;  %v9911_v57 = vmul.f32 %v9605_v24, %v9605_v24  ;;  %v9931_v24 = vmul.f32 %v9680_v53, %v9600_v22  ;;  %v9965_v19 = vld [vmem:[%s9526_s8 + $0x50] sm:$0xff] }
  0x7a   : > { %8682 = vmatprep.subr.bf16.mxu1 %v8681_v39  ;;  %v9923_v39 = vmul.f32 %v9614_v27, %v9614_v27  ;;  %7950 = vmatmul.mubr.msk.f32.gmra.mrb[2].mxu1 %vm1441_vm0, %v9775_v1  ;;  %v8689_v6 = vpack.c.bf16 %v468_v35, %v467_v49  ;;  %v9962_v50 = vmul.f32 %v14441_v0, %v14440_v9 }
  0x7b   : > { %7944 = vmatmul.mubr.msk.f32.gmra.mrb[6].mxu0 %vm1441_vm0, %v9872_v59  ;;  %14438 = vst [vmem:[#allocation41_spill] sm:$0xff] %v9931_v24  ;;  %1655 = vmatprep.mubr.f32.mxu1 %v14429_v2  ;;  %14443 = vst [vmem:[#allocation28_spill] sm:$0xff] %v9965_v19  ;;  %v8691_v49 = vpack.c.bf16 %v9897_v63, %v9893_v56  ;;  %v8693_v35 = vpack.c.bf16 %v9907_v34, %v9901_v55  ;;  %v14446_v24 = vld [vmem:[#allocation15_spill] sm:$0xff]  ;;  %v14447_v63 = vld [vmem:[#allocation16_spill] sm:$0xff] }
  0x7c   : > { %1554 = vmatprep.mubr.f32.mxu0 %v14429_v2  ;;  %8672 = vmatpush1.bf16.msra.mxu0 %v8671_v38  ;;  %v9937_v38 = vmul.f32 %v9639_v37, %v9639_v37  ;;  %14442 = vst [vmem:[#allocation26_spill] sm:$0xff] %v9962_v50  ;;  %v8695_v27 = vpack.c.bf16 %v9923_v39, %v9911_v57  ;;  %v9998_v55 = vld [vmem:[%s9526_s8] sm:$0xff]  ;;  %v10001_v57 = vld [vmem:[%s9526_s8 + $0x8] sm:$0xff] }
  0x7d   : > { %8674 = vmatprep.subr.bf16.mxu0 %v8673_v8  ;;  %8684 = vmatpush1.bf16.msra.mxu1 %v8683_v47  ;;  %v9950_v8 = vmul.f32 %v9622_v30, %v9554_v5  ;;  %v9958_v47 = vmul.f32 %v9717_v15, %v9625_v31  ;;  %v14445_v52 = vpack.c.bf16 %v9741_v43, %v9736_v36  ;;  %v10004_v36 = vld [vmem:[%s9526_s8 + $0x60] sm:$0xff] }
  0x7e   : > { %8686 = vmatprep.subr.bf16.mxu1 %v8685_v42  ;;  %v9974_v42 = vld [vmem:[%s14039_s2 + $0x28] sm:$0xff]  ;;  %7951 = vmatmul.mubr.msk.f32.gmra.mrb[4].mxu1 %vm1441_vm0, %v9826_v54  ;;  %v9991_v56 = vmul.f32 %v9608_v25, %v14446_v24  ;;  %v9995_v34 = vmul.f32 %v9611_v26, %v14447_v63  ;;  %14448 = vst [vmem:[#allocation15_spill] sm:$0xff] %v9998_v55  ;;  %14449 = vst [vmem:[#allocation16_spill] sm:$0xff] %v10001_v57 }
  0x7f   : > { %7945 = vmatmul.mubr.msk.f32.gmra.mrb[8].mxu0 %vm1441_vm0, %v9919_v28  ;;  %14439 = vst [vmem:[#allocation42_spill] sm:$0xff] %v9958_v47  ;;  %14450 = vst [vmem:[#allocation44_spill] sm:$0xff] %v10004_v36  ;;  %1661 = vmatprep.mubr.f32.mxu1 %v14429_v2  ;;  %v8717_v43 = vpack.c.bf16 %v9950_v8, %v9946_v46  ;;  %v721_v25 = vmul.f32 %v9965_v19, %v9619_v29  ;;  %v10024_v46 = vld [vmem:[%s14039_s2 + $0x30] sm:$0xff]  ;;  %v10054_v19 = vld [vmem:[%s9526_s8 + $0x18] sm:$0xff] }
  0x80   : > { %1560 = vmatprep.mubr.f32.mxu0 %v14429_v2  ;;  %8676 = vmatpush1.bf16.msra.mxu0 %v8675_v7  ;;  %v722_v26 = vmul.f32 %v9968_v18, %v9622_v30  ;;  %v10030_v8 = vmul.f32 %v9619_v29, %v9998_v55  ;;  %v10034_v7 = vmul.f32 %v9622_v30, %v10001_v57  ;;  %v14456_v29 = vld [vmem:[#allocation24_spill] sm:$0xff]  ;;  %v14457_v18 = vld [vmem:[#allocation25_spill] sm:$0xff] }
  0x81   : > { %8698 = vmatprep.subr.bf16.mxu0 %v14445_v52  ;;  %8688 = vmatpush1.bf16.msra.mxu1 %v8687_v13  ;;  %v10014_v52 = vld [vmem:[%s9526_s8 + $0x68] sm:$0xff]  ;;  %v10041_v13 = vld [vmem:[%s9526_s8 + $0x10] sm:$0xff]  ;;  %14458 = vst [vmem:[#allocation24_spill] sm:$0xff] %v10054_v19  ;;  %v10060_v57 = vld [vmem:[%s9526_s8 + $0x78] sm:$0xff] }
  0x82   : > { %14451 = vst [vmem:[#allocation45_spill] sm:$0xff] %v10014_v52  ;;  %8690 = vmatprep.subr.bf16.mxu1 %v8689_v6  ;;  %v10026_v39 = vpack.c.bf16 %v722_v26, %v721_v25  ;;  %14452 = vst [vmem:[#allocation46_spill] sm:$0xff] %v10030_v8  ;;  %v10038_v6 = vmul.f32 %v10004_v36, %v9630_v33  ;;  %7952 = vmatmul.mubr.msk.f32.gmra.mrb[6].mxu1 %vm1441_vm0, %v9872_v59  ;;  %v10057_v33 = vld [vmem:[%s9526_s8 + $0x70] sm:$0xff]  ;;  %v10076_v47 = vld [vmem:[%s9526_s8 + $0x20] sm:$0xff] }
  0x83   : > { %7946 = vmatmul.mubr.msk.f32.gmra.mrb[10].mxu0 %vm1441_vm0, %v9974_v42  ;;  %14453 = vst [vmem:[#allocation47_spill] sm:$0xff] %v10034_v7  ;;  %14455 = vst [vmem:[#allocation49_spill] sm:$0xff] %v10041_v13  ;;  %v10047_v25 = vmul.f32 %v10014_v52, %v9639_v37  ;;  %v723_v26 = vmul.f32 %v10004_v36, %v14456_v29  ;;  %v724_v30 = vmul.f32 %v10014_v52, %v14457_v18  ;;  %v10097_v37 = vld [vmem:[%s9526_s8 + $0x28] sm:$0xff]  ;;  %v10106_v8 = vld [vmem:[%s9526_s8 + $0x80] sm:$0xff] }
  0x84   : > { %1566 = vmatprep.mubr.f32.mxu0 %v14429_v2  ;;  %14454 = vst [vmem:[#allocation48_spill] sm:$0xff] %v10038_v6  ;;  %14459 = vst [vmem:[#allocation25_spill] sm:$0xff] %v10057_v33  ;;  %1667 = vmatprep.mubr.f32.mxu1 %v14429_v2  ;;  %v10073_v55 = vmul.f32 %v14456_v29, %v10041_v13  ;;  %v14465_v52 = vld [vmem:[#allocation27_spill] sm:$0xff] }
  0x85   : > { %14460 = vst [vmem:[#allocation50_spill] sm:$0xff] %v10060_v57  ;;  %8692 = vmatpush1.bf16.msra.mxu1 %v8691_v49  ;;  %v10069_v36 = vpack.c.bf16 %v724_v30, %v723_v26  ;;  %14463 = vst [vmem:[#allocation53_spill] sm:$0xff] %v10076_v47  ;;  %v10082_v49 = vld [vmem:[%s14039_s2 + $0x38] sm:$0xff]  ;;  %v10090_v26 = vmul.f32 %v10057_v33, %v9657_v44  ;;  %v10094_v30 = vmul.f32 %v10060_v57, %v9660_v45 }
  0x86   : > { %8694 = vmatprep.subr.bf16.mxu1 %v8693_v35  ;;  %14462 = vst [vmem:[#allocation52_spill] sm:$0xff] %v10073_v55  ;;  %v10086_v35 = vmul.f32 %v14457_v18, %v10054_v19  ;;  %14464 = vst [vmem:[#allocation54_spill] sm:$0xff] %v10097_v37  ;;  %7953 = vmatmul.mubr.msk.f32.gmra.mrb[8].mxu1 %vm1441_vm0, %v9919_v28  ;;  %v725_v13 = vmul.f32 %v10057_v33, %v14465_v52  ;;  %v10109_v7 = vld [vmem:[%s9526_s8 + $0x88] sm:$0xff] }
  0x87   : > { %7947 = vmatmul.mubr.msk.f32.gmra.mrb[12].mxu0 %vm1441_vm0, %v10024_v46  ;;  %14461 = vst [vmem:[#allocation51_spill] sm:$0xff] %v10069_v36  ;;  %v726_v19 = vmul.f32 %v10060_v57, %v9668_v48  ;;  %14466 = vst [vmem:[#allocation27_spill] sm:$0xff] %v10106_v8  ;;  %1673 = vmatprep.mubr.f32.mxu1 %v14429_v2  ;;  %v10118_v6 = vmul.f32 %v14465_v52, %v10076_v47 }
  0x88   : > { %1572 = vmatprep.mubr.f32.mxu0 %v14429_v2  ;;  %14467 = vst [vmem:[#allocation55_spill] sm:$0xff] %v10109_v7  ;;  %v10126_v33 = vmul.f32 %v9668_v48, %v10097_v37  ;;  %v10135_v50 = vmul.f32 %v10109_v7, %v9680_v53  ;;  %v847_v36 = vmul.f32 %v10106_v8, %v9693_v60 }
  0x89   : > { %8696 = vmatpush1.bf16.msra.mxu1 %v8695_v27  ;;  %14468 = vst [vmem:[#allocation56_spill] sm:$0xff] %v10118_v6  ;;  %v10122_v57 = vpack.c.bf16 %v726_v19, %v725_v13  ;;  %v10131_v27 = vmul.f32 %v10106_v8, %v9675_v51  ;;  %v848_v19 = vmul.f32 %v10109_v7, %v9696_v61 }
  0x8a   : > { %8718 = vmatprep.subr.bf16.mxu1 %v8717_v43  ;;  %v14469_v43 = vld [vmem:[#allocation33_spill] sm:$0xff]  ;;  %7954 = vmatmul.mubr.msk.f32.gmra.mrb[10].mxu1 %vm1441_vm0, %v9974_v42  ;;  %v14470_v7 = vpack.c.bf16 %v9794_v58, %v9790_v41  ;;  %v495_v37 = vmul.f32 %v9657_v44, %v9657_v44  ;;  %v496_v47 = vmul.f32 %v9660_v45, %v9660_v45 }
  0x8b   : > { %7948 = vmatmul.mubr.msk.f32.gmra.mrb[14].mxu0 %vm1441_vm0, %v10082_v49  ;;  %v526_v13 = vmul.f32 %v14469_v43, %v14469_v43  ;;  %1679 = vmatprep.mubr.f32.mxu1 %v14429_v2  ;;  %v10150_v55 = vpack.c.bf16 %v848_v19, %v847_v36  ;;  %v8703_v43 = vpack.c.bf16 %v9937_v38, %v9844_v20  ;;  %v14471_v36 = vld [vmem:[#allocation32_spill] sm:$0xff]  ;;  %v14472_v19 = vld [vmem:[#allocation29_spill] sm:$0xff] }
  0x8c   : > { %1756 = vmatprep.mubr.f32.mxu0 %v14429_v2  ;;  %v14473_v8 = vpack.c.bf16 %v14471_v36, %v14472_v19  ;;  %v527_v41 = vmul.f32 %v9805_v32, %v9805_v32  ;;  %v528_v58 = vmul.f32 %v9808_v40, %v9808_v40  ;;  %v681_v44 = vmul.f32 %v14446_v24, %v9549_v3  ;;  %v14479_v19 = vld [vmem:[#allocation30_spill] sm:$0xff] }
  0x8d   : > { %v8705_v6 = vpack.c.bf16 %v526_v13, %v9941_v62  ;;  %v682_v45 = vmul.f32 %v14447_v63, %v9554_v5  ;;  %v603_v32 = vmul.f32 %v14456_v29, %v9567_v10  ;;  %v604_v40 = vmul.f32 %v14457_v18, %v9570_v11  ;;  %v14476_v29 = vld [vmem:[#allocation19_spill] sm:$0xff] }
  0x8e   : > { %7955 = vmatmul.mubr.msk.f32.gmra.mrb[12].mxu1 %vm1441_vm0, %v10024_v46  ;;  %v8707_v20 = vpack.c.bf16 %v496_v47, %v495_v37  ;;  %v497_v62 = vmul.f32 %v9675_v51, %v9675_v51  ;;  %v498_v3 = vmul.f32 %v9680_v53, %v9680_v53  ;;  %v8709_v5 = vpack.c.bf16 %v528_v58, %v527_v41  ;;  %v14474_v47 = vld [vmem:[#allocation17_spill] sm:$0xff]  ;;  %v14480_v58 = vld [vmem:[#allocation31_spill] sm:$0xff] }
  0x8f   : > { %7957 = vmatmul.mubr.msk.f32.vlgmr.msra.gmra.mrb[16].mxu0 %vm1441_vm0, %v9725_v23  ;;  %1685 = vmatprep.mubr.f32.mxu1 %v14429_v2  ;;  %v529_v24 = vmul.f32 %v9831_v14, %v9831_v14  ;;  %v530_v38 = vmul.f32 %v9834_v4, %v9834_v4  ;;  %v8737_v18 = vpack.c.bf16 %v682_v45, %v681_v44 }
  0x90   : > { %8700 = vmatpush1.bf16.msra.mxu0 %v14470_v7  ;;  %1762 = vmatprep.mubr.f32.mxu0 %v14429_v2  ;;  %v683_v51 = vmul.f32 %v14474_v47, %v9567_v10  ;;  %v14475_v7 = vld [vmem:[#allocation18_spill] sm:$0xff]  ;;  %v8721_v63 = vpack.c.bf16 %v604_v40, %v603_v32  ;;  %v605_v14 = vmul.f32 %v14465_v52, %v9583_v16  ;;  %v14482_v32 = vld [vmem:[#allocation23_spill] sm:$0xff] }
  0x91   : > { %8702 = vmatprep.subr.bf16.mxu0 %v14473_v8  ;;  %v684_v53 = vmul.f32 %v14475_v7, %v9570_v11  ;;  %v606_v4 = vmul.f32 %v9668_v48, %v9586_v17  ;;  %v8711_v8 = vpack.c.bf16 %v498_v3, %v497_v62  ;;  %v499_v10 = vmul.f32 %v9717_v15, %v9717_v15  ;;  %v10260_v62 = vld [vmem:[%s9526_s8 + $0x170] sm:$0xff]  ;;  %v10268_v3 = vld [vmem:[%s9526_s8 + $0x180] sm:$0xff]  ;;  %v10295_v7 = vld [vmem:[%s9526_s8 + $0x138] sm:$0xff] }
  0x92   : > { %7956 = vmatmul.mubr.msk.f32.gmra.mrb[14].mxu1 %vm1441_vm0, %v10082_v49  ;;  %v500_v11 = vmul.f32 %v14441_v0, %v14441_v0  ;;  %v685_v48 = vmul.f32 %v9573_v12, %v9583_v16  ;;  %v686_v37 = vmul.f32 %v14476_v29, %v9586_v17  ;;  %v607_v0 = vmul.f32 %v9693_v60, %v9597_v21  ;;  %v14477_v16 = vld [vmem:[#allocation20_spill] sm:$0xff]  ;;  %v14478_v60 = vld [vmem:[#allocation21_spill] sm:$0xff]  ;;  %v14490_v29 = vld [vmem:[#allocation34_spill] sm:$0xff] }
  0x93   : > { %7958 = vmatmul.mubr.msk.f32.gmra.mrb[18].mxu0 %vm1441_vm0, %v9775_v1  ;;  %1869 = vmatprep.mubr.f32.mxu1 %v14429_v2  ;;  %v10215_v52 = vpack.c.bf16 %v684_v53, %v683_v51  ;;  %v8725_v15 = vpack.c.bf16 %v606_v4, %v605_v14  ;;  %v608_v13 = vmul.f32 %v9696_v61, %v9600_v22  ;;  %v10307_v14 = vld [vmem:[%s9526_s8 + $0xe0] sm:$0xff]  ;;  %v10310_v4 = vld [vmem:[%s9526_s8 + $0xe8] sm:$0xff] }
  0x94   : > { %1768 = vmatprep.mubr.f32.mxu0 %v14429_v2  ;;  %8704 = vmatpush1.bf16.msra.mxu0 %v8703_v43  ;;  %v8715_v43 = vpack.c.bf16 %v500_v11, %v499_v10  ;;  %v10232_v12 = vpack.c.bf16 %v686_v37, %v685_v48  ;;  %v687_v17 = vmul.f32 %v14477_v16, %v9597_v21  ;;  %v14489_v48 = vld [vmem:[#allocation35_spill] sm:$0xff] }
  0x95   : > { %8706 = vmatprep.subr.bf16.mxu0 %v8705_v6  ;;  %v8713_v6 = vpack.c.bf16 %v530_v38, %v529_v24  ;;  %v688_v61 = vmul.f32 %v14478_v60, %v9600_v22  ;;  %v8729_v36 = vpack.c.bf16 %v608_v13, %v607_v0  ;;  %v609_v41 = vmul.f32 %v14479_v19, %v9625_v31  ;;  %v14481_v22 = vld [vmem:[#allocation22_spill] sm:$0xff]  ;;  %v14493_v0 = vld [vmem:[#allocation36_spill] sm:$0xff]  ;;  %v14500_v60 = vld [vmem:[#allocation41_spill] sm:$0xff] }
  0x96   : > { %7965 = vmatmul.mubr.msk.f32.vlgmr.msra.gmra.mrb[16].mxu1 %vm1441_vm0, %v9725_v23  ;;  %v610_v44 = vmul.f32 %v14480_v58, %v14440_v9  ;;  %v689_v45 = vmul.f32 %v14481_v22, %v9625_v31  ;;  %v690_v40 = vmul.f32 %v14482_v32, %v14440_v9  ;;  %v10263_v9 = vld [vmem:[%s9526_s8 + $0x178] sm:$0xff]  ;;  %v10278_v38 = vld [vmem:[%s9526_s8 + $0x188] sm:$0xff]  ;;  %v10321_v11 = vmul.f32 %v10268_v3, %v10307_v14  ;;  %v10374_v19 = vld [vmem:[%s9526_s8 + $0x90] sm:$0xff] }
  0x97   : > { %7959 = vmatmul.mubr.msk.f32.gmra.mrb[20].mxu0 %vm1441_vm0, %v9826_v54  ;;  %1875 = vmatprep.mubr.f32.mxu1 %v14429_v2  ;;  %v8749_v21 = vpack.c.bf16 %v688_v61, %v687_v17  ;;  %v10275_v24 = vld [vmem:[%s9526_s8 + $0xd8] sm:$0xff]  ;;  %v10316_v10 = vmul.f32 %v10278_v38, %v10295_v7  ;;  %v14491_v37 = vpack.c.bf16 %v14489_v48, %v14490_v29 }
  0x98   : > { %1774 = vmatprep.mubr.f32.mxu0 %v14429_v2  ;;  %8708 = vmatpush1.bf16.msra.mxu0 %v8707_v20  ;;  %v8733_v20 = vpack.c.bf16 %v610_v44, %v609_v41  ;;  %v8753_v31 = vpack.c.bf16 %v690_v40, %v689_v45  ;;  %v10291_v51 = vmul.f32 %v10263_v9, %v10275_v24  ;;  %v14501_v61 = vld [vmem:[#allocation40_spill] sm:$0xff]  ;;  %v14505_v22 = vld [vmem:[#allocation26_spill] sm:$0xff] }
  0x99   : > { %8710 = vmatprep.subr.bf16.mxu0 %v8709_v5  ;;  %8720 = vmatpush1.bf16.msra.mxu1 %v8737_v18  ;;  %v10272_v5 = vld [vmem:[%s9526_s8 + $0xd0] sm:$0xff]  ;;  %14486 = vst [vmem:[#allocation29_spill] sm:$0xff] %v10316_v10  ;;  %14487 = vst [vmem:[#allocation17_spill] sm:$0xff] %v10321_v11  ;;  %v10377_v41 = vld [vmem:[%s9526_s8 + $0x98] sm:$0xff]  ;;  %v14504_v58 = vpack.c.bf16 %v10094_v30, %v10090_v26  ;;  %v729_v26 = vmul.f32 %v10307_v14, %v10374_v19 }
  0x9a   : > { %8722 = vmatprep.subr.bf16.mxu1 %v8721_v63  ;;  %7966 = vmatmul.mubr.msk.f32.gmra.mrb[18].mxu1 %vm1441_vm0, %v9775_v1  ;;  %v10287_v47 = vmul.f32 %v10260_v62, %v10272_v5  ;;  %v14485_v63 = vpack.c.bf16 %v9995_v34, %v9991_v56  ;;  %v10325_v56 = vmul.f32 %v10278_v38, %v10310_v4  ;;  %v14506_v45 = vld [vmem:[#allocation42_spill] sm:$0xff]  ;;  %v14510_v29 = vld [vmem:[#allocation16_spill] sm:$0xff] }
  0x9b   : > { %7960 = vmatmul.mubr.msk.f32.gmra.mrb[22].mxu0 %vm1441_vm0, %v9872_v59  ;;  %1881 = vmatprep.mubr.f32.mxu1 %v14429_v2  ;;  %v14507_v32 = vpack.c.bf16 %v14505_v22, %v14506_v45  ;;  %v730_v30 = vmul.f32 %v10310_v4, %v10377_v41  ;;  %v10406_v40 = vld [vmem:[%s9526_s8 + $0xf0] sm:$0xff] }
  0x9c   : > { %1780 = vmatprep.mubr.f32.mxu0 %v14429_v2  ;;  %8712 = vmatpush1.bf16.msra.mxu0 %v8711_v8  ;;  %14483 = vst [vmem:[#allocation33_spill] sm:$0xff] %v10287_v47  ;;  %14488 = vst [vmem:[#allocation18_spill] sm:$0xff] %v10325_v56  ;;  %v14515_v22 = vld [vmem:[#allocation24_spill] sm:$0xff] }
  0x9d   : > { %8714 = vmatprep.subr.bf16.mxu0 %v8713_v6  ;;  %8724 = vmatpush1.bf16.msra.mxu1 %v10215_v52  ;;  %v10543_v6 = vld [vmem:[%s9526_s8 + $0x128] sm:$0xff]  ;;  %v1023_v11 = vld [vmem:[%s9526_s8 + $0x10] sm:$0xff]  ;;  %v1024_v56 = vld [vmem:[%s9526_s8 + $0x18] sm:$0xff] }
  0x9e   : > { %8726 = vmatprep.subr.bf16.mxu1 %v8725_v15  ;;  %7967 = vmatmul.mubr.msk.f32.gmra.mrb[20].mxu1 %vm1441_vm0, %v9826_v54  ;;  %v14492_v15 = vld [vmem:[#allocation37_spill] sm:$0xff] }
  0x9f   : > { %7961 = vmatmul.mubr.msk.f32.gmra.mrb[24].mxu0 %vm1441_vm0, %v9919_v28  ;;  %1887 = vmatprep.mubr.f32.mxu1 %v14429_v2  ;;  %v14494_v13 = vpack.c.bf16 %v14492_v15, %v14493_v0  ;;  %v10446_v15 = vld [vmem:[%s9526_s8 + $0x30] sm:$0xff]  ;;  %v10449_v0 = vld [vmem:[%s9526_s8 + $0x38] sm:$0xff] }
  0xa0   : > { %1786 = vmatprep.mubr.f32.mxu0 %v14429_v2  ;;  %8716 = vmatpush1.bf16.msra.mxu0 %v8715_v43  ;;  %v14496_v43 = vld [vmem:[#allocation38_spill] sm:$0xff]  ;;  %v928_v34 = vmul.f32 %v10543_v6, %v10449_v0 }
  0xa1   : > { %8738 = vmatprep.subr.bf16.mxu0 %v8737_v18  ;;  %8728 = vmatpush1.bf16.msra.mxu1 %v10232_v12  ;;  %v10283_v18 = vld [vmem:[%s9526_s8 + $0x130] sm:$0xff]  ;;  %v7886_v47 = vld [vmem:[%s9526_s8 + $0x78] sm:$0xff] }
  0xa2   : > { %8730 = vmatprep.subr.bf16.mxu1 %v8729_v36  ;;  %7968 = vmatmul.mubr.msk.f32.gmra.mrb[22].mxu1 %vm1441_vm0, %v9872_v59  ;;  %v10299_v53 = vmul.f32 %v10268_v3, %v10283_v18  ;;  %v14502_v36 = vpack.c.bf16 %v14500_v60, %v14501_v61  ;;  %v769_v44 = vmul.f32 %v10283_v18, %v10374_v19  ;;  %v10470_v61 = vld [vmem:[%s9526_s8 + $0x100] sm:$0xff]  ;;  %v7885_v10 = vld [vmem:[%s9526_s8 + $0x70] sm:$0xff] }
  0xa3   : > { %7962 = vmatmul.mubr.msk.f32.gmra.mrb[26].mxu0 %vm1441_vm0, %v9974_v42  ;;  %1893 = vmatprep.mubr.f32.mxu1 %v14429_v2  ;;  %v808_v60 = vmul.f32 %v10275_v24, %v10449_v0 }
  0xa4   : > { %1792 = vmatprep.mubr.f32.mxu0 %v14429_v2  ;;  %14484 = vst [vmem:[#allocation32_spill] sm:$0xff] %v10299_v53 }
  0xa5   : > { %8732 = vmatpush1.bf16.msra.mxu1 %v8749_v21 }
  0xa6   : > { %8734 = vmatprep.subr.bf16.mxu1 %v8733_v20  ;;  %7969 = vmatmul.mubr.msk.f32.gmra.mrb[24].mxu1 %vm1441_vm0, %v9919_v28  ;;  %v10409_v20 = vld [vmem:[%s9526_s8 + $0xf8] sm:$0xff] }
  0xa7   : > { %7963 = vmatmul.mubr.msk.f32.gmra.mrb[28].mxu0 %vm1441_vm0, %v10024_v46  ;;  %1899 = vmatprep.mubr.f32.mxu1 %v14429_v2 }
  0xa8   : > { %1798 = vmatprep.mubr.f32.mxu0 %v14429_v2 }
  0xa9   : > { %8736 = vmatpush1.bf16.msra.mxu1 %v8753_v31 }
  0xaa   : > { %8758 = vmatprep.subr.bf16.mxu1 %v14485_v63  ;;  %7970 = vmatmul.mubr.msk.f32.gmra.mrb[26].mxu1 %vm1441_vm0, %v9974_v42  ;;  %v14509_v63 = vld [vmem:[#allocation15_spill] sm:$0xff] }
  0xab   : > { %7964 = vmatmul.mubr.msk.f32.gmra.mrb[30].mxu0 %vm1441_vm0, %v10082_v49  ;;  %1905 = vmatprep.mubr.f32.mxu1 %v14429_v2  ;;  %v921_v48 = vmul.f32 %v10406_v40, %v14509_v63  ;;  %v10499_v63 = vld [vmem:[%s9526_s8 + $0xb0] sm:$0xff] }
  0xac   : > { %1982 = vmatprep.mubr.f32.mxu0 %v14429_v2 }
  0xae   : > { %7971 = vmatmul.mubr.msk.f32.gmra.mrb[28].mxu1 %vm1441_vm0, %v10024_v46 }
  0xaf   : > { %7973 = vmatmul.mubr.msk.f32.vlgmr.msra.gmra.mrb[32].mxu0 %vm1441_vm0, %v9725_v23  ;;  %1911 = vmatprep.mubr.f32.mxu1 %v14429_v2 }
  0xb0   : > { %8740 = vmatpush1.bf16.msra.mxu0 %v14491_v37  ;;  %1988 = vmatprep.mubr.f32.mxu0 %v14429_v2  ;;  %v922_v37 = vmul.f32 %v10409_v20, %v14510_v29 }
  0xb1   : > { %8742 = vmatprep.subr.bf16.mxu0 %v10215_v52  ;;  %v14495_v52 = vld [vmem:[#allocation39_spill] sm:$0xff] }
  0xb2   : > { %7972 = vmatmul.mubr.msk.f32.gmra.mrb[30].mxu1 %vm1441_vm0, %v10082_v49  ;;  %v14497_v16 = vpack.c.bf16 %v14495_v52, %v14496_v43  ;;  %v14512_v52 = vld [vmem:[#allocation46_spill] sm:$0xff] }
  0xb3   : > { %7974 = vmatmul.mubr.msk.f32.gmra.mrb[34].mxu0 %vm1441_vm0, %v9775_v1  ;;  %2095 = vmatprep.mubr.f32.mxu1 %v14429_v2 }
  0xb4   : > { %1994 = vmatprep.mubr.f32.mxu0 %v14429_v2  ;;  %8744 = vmatpush1.bf16.msra.mxu0 %v14494_v13  ;;  %v14511_v13 = vld [vmem:[#allocation47_spill] sm:$0xff] }
  0xb5   : > { %8746 = vmatprep.subr.bf16.mxu0 %v10232_v12  ;;  %v14498_v12 = vld [vmem:[#allocation48_spill] sm:$0xff]  ;;  %v14513_v43 = vpack.c.bf16 %v14511_v13, %v14512_v52 }
  0xb6   : > { %7981 = vmatmul.mubr.msk.f32.vlgmr.msra.gmra.mrb[32].mxu1 %vm1441_vm0, %v9725_v23  ;;  %v14499_v17 = vpack.c.bf16 %v10047_v25, %v14498_v12  ;;  %v14503_v25 = vld [vmem:[#allocation51_spill] sm:$0xff] }
  0xb7   : > { %7975 = vmatmul.mubr.msk.f32.gmra.mrb[36].mxu0 %vm1441_vm0, %v9826_v54  ;;  %2101 = vmatprep.mubr.f32.mxu1 %v14429_v2  ;;  %v10462_v12 = vld [vmem:[%s9526_s8 + $0xa8] sm:$0xff] }
  0xb8   : > { %2000 = vmatprep.mubr.f32.mxu0 %v14429_v2  ;;  %8748 = vmatpush1.bf16.msra.mxu0 %v14497_v16  ;;  %v10459_v16 = vld [vmem:[%s9526_s8 + $0xa0] sm:$0xff] }
  0xb9   : > { %8750 = vmatprep.subr.bf16.mxu0 %v8749_v21  ;;  %8760 = vmatpush1.bf16.msra.mxu1 %v10026_v39  ;;  %v770_v21 = vmul.f32 %v10295_v7, %v10377_v41 }
  0xba   : > { %8762 = vmatprep.subr.bf16.mxu1 %v14499_v17  ;;  %7982 = vmatmul.mubr.msk.f32.gmra.mrb[34].mxu1 %vm1441_vm0, %v9775_v1  ;;  %v807_v17 = vmul.f32 %v10272_v5, %v10446_v15 }
  0xbb   : > { %7976 = vmatmul.mubr.msk.f32.gmra.mrb[38].mxu0 %vm1441_vm0, %v9872_v59  ;;  %2107 = vmatprep.mubr.f32.mxu1 %v14429_v2 }
  0xbc   : > { %2006 = vmatprep.mubr.f32.mxu0 %v14429_v2  ;;  %8752 = vmatpush1.bf16.msra.mxu0 %v14502_v36  ;;  %v10473_v36 = vld [vmem:[%s9526_s8 + $0x108] sm:$0xff]  ;;  %v8791_v29 = vpack.c.bf16 %v808_v60, %v807_v17 }
  0xbd   : > { %8754 = vmatprep.subr.bf16.mxu0 %v8753_v31  ;;  %8764 = vmatpush1.bf16.msra.mxu1 %v14503_v25  ;;  %v10416_v31 = vpack.c.bf16 %v770_v21, %v769_v44  ;;  %v14514_v44 = vld [vmem:[#allocation49_spill] sm:$0xff]  ;;  %v924_v45 = vmul.f32 %v10473_v36, %v14515_v22 }
  0xbe   : > { %8766 = vmatprep.subr.bf16.mxu1 %v14504_v58  ;;  %7983 = vmatmul.mubr.msk.f32.gmra.mrb[36].mxu1 %vm1441_vm0, %v9826_v54  ;;  %v882_v58 = vmul.f32 %v10462_v12, %v10409_v20  ;;  %v923_v21 = vmul.f32 %v10470_v61, %v14514_v44  ;;  %v14518_v17 = vld [vmem:[#allocation53_spill] sm:$0xff]  ;;  %v14519_v44 = vld [vmem:[#allocation54_spill] sm:$0xff] }
  0xbf   : > { %7977 = vmatmul.mubr.msk.f32.gmra.mrb[40].mxu0 %vm1441_vm0, %v9919_v28  ;;  %2113 = vmatprep.mubr.f32.mxu1 %v14429_v2 }
  0xc0   : > { %2012 = vmatprep.mubr.f32.mxu0 %v14429_v2  ;;  %8756 = vmatpush1.bf16.msra.mxu0 %v14507_v32  ;;  %v14516_v32 = vld [vmem:[#allocation52_spill] sm:$0xff] }
  0xc1   : > { %8778 = vmatprep.subr.bf16.mxu0 %v10026_v39  ;;  %8768 = vmatpush1.bf16.msra.mxu1 %v10122_v57  ;;  %v14508_v39 = vpack.c.bf16 %v10135_v50, %v10131_v27  ;;  %v10427_v50 = vpack.c.bf16 %v730_v30, %v729_v26  ;;  %v8797_v27 = vpack.c.bf16 %v922_v37, %v921_v48  ;;  %v10490_v30 = vld [vmem:[%s9526_s8 + $0x40] sm:$0xff]  ;;  %v10502_v48 = vld [vmem:[%s9526_s8 + $0xb8] sm:$0xff]  ;;  %v10506_v37 = vld [vmem:[%s9526_s8 + $0x110] sm:$0xff] }
  0xc2   : > { %7984 = vmatmul.mubr.msk.f32.gmra.mrb[38].mxu1 %vm1441_vm0, %v9872_v59  ;;  %v14517_v26 = vpack.c.bf16 %v10086_v35, %v14516_v32  ;;  %v10509_v35 = vld [vmem:[%s9526_s8 + $0x118] sm:$0xff]  ;;  %v884_v13 = vmul.f32 %v10502_v48, %v10473_v36  ;;  %v809_v52 = vmul.f32 %v10307_v14, %v10490_v30  ;;  %v925_v60 = vmul.f32 %v10506_v37, %v14518_v17 }
  0xc3   : > { %7978 = vmatmul.mubr.msk.f32.gmra.mrb[42].mxu0 %vm1441_vm0, %v9974_v42  ;;  %8770 = vmatprep.subr.bf16.mxu1 %v14508_v39  ;;  %v10496_v39 = vld [vmem:[%s9526_s8 + $0x48] sm:$0xff] }
  0xc4   : > { %2018 = vmatprep.mubr.f32.mxu0 %v14429_v2  ;;  %2119 = vmatprep.mubr.f32.mxu1 %v14429_v2  ;;  %v810_v32 = vmul.f32 %v10310_v4, %v10496_v39 }
  0xc5   : > { %8772 = vmatpush1.bf16.msra.mxu1 %v10150_v55 }
  0xc6   : > { %8774 = vmatprep.subr.bf16.mxu1 %v10416_v31  ;;  %7985 = vmatmul.mubr.msk.f32.gmra.mrb[40].mxu1 %vm1441_vm0, %v9919_v28 }
  0xc7   : > { %7979 = vmatmul.mubr.msk.f32.gmra.mrb[44].mxu0 %vm1441_vm0, %v10024_v46  ;;  %2125 = vmatprep.mubr.f32.mxu1 %v14429_v2 }
  0xc8   : > { %2024 = vmatprep.mubr.f32.mxu0 %v14429_v2 }
  0xc9   : > { %8776 = vmatpush1.bf16.msra.mxu1 %v10427_v50 }
  0xca   : > { %8798 = vmatprep.subr.bf16.mxu1 %v8797_v27  ;;  %7986 = vmatmul.mubr.msk.f32.gmra.mrb[42].mxu1 %vm1441_vm0, %v9974_v42 }
  0xcb   : > { %7980 = vmatmul.mubr.msk.f32.gmra.mrb[46].mxu0 %vm1441_vm0, %v10082_v49  ;;  %2131 = vmatprep.mubr.f32.mxu1 %v14429_v2 }
  0xcc   : > { %2208 = vmatprep.mubr.f32.mxu0 %v14429_v2 }
  0xce   : > { %7987 = vmatmul.mubr.msk.f32.gmra.mrb[44].mxu1 %vm1441_vm0, %v10024_v46 }
  0xcf   : > { %7989 = vmatmul.mubr.msk.f32.vlgmr.msra.gmra.mrb[48].mxu0 %vm1441_vm0, %v9725_v23  ;;  %2137 = vmatprep.mubr.f32.mxu1 %v14429_v2 }
  0xd0   : > { %2214 = vmatprep.mubr.f32.mxu0 %v14429_v2  ;;  %8780 = vmatpush1.bf16.msra.mxu0 %v14513_v43  ;;  %v8801_v43 = vpack.c.bf16 %v924_v45, %v923_v21  ;;  %v10533_v21 = vld [vmem:[%s9526_s8 + $0xc0] sm:$0xff]  ;;  %v10536_v45 = vld [vmem:[%s9526_s8 + $0xc8] sm:$0xff] }
  0xd1   : > { %8782 = vmatprep.subr.bf16.mxu0 %v14503_v25  ;;  %v881_v25 = vmul.f32 %v10459_v16, %v10406_v40 }
  0xd2   : > { %7988 = vmatmul.mubr.msk.f32.gmra.mrb[46].mxu1 %vm1441_vm0, %v10082_v49 }
  0xd3   : > { %7990 = vmatmul.mubr.msk.f32.gmra.mrb[50].mxu0 %vm1441_vm0, %v9775_v1  ;;  %2321 = vmatprep.mubr.f32.mxu1 %v14429_v2  ;;  %v8799_v27 = vpack.c.bf16 %v882_v58, %v881_v25  ;;  %v926_v25 = vmul.f32 %v10509_v35, %v14519_v44  ;;  %v14520_v58 = vld [vmem:[#allocation56_spill] sm:$0xff] }
  0xd4   : > { %2220 = vmatprep.mubr.f32.mxu0 %v14429_v2  ;;  %8784 = vmatpush1.bf16.msra.mxu0 %v14517_v26  ;;  %v14521_v22 = vpack.c.bf16 %v10126_v33, %v14520_v58  ;;  %v10540_v26 = vld [vmem:[%s9526_s8 + $0x120] sm:$0xff]  ;;  %v885_v58 = vmul.f32 %v10533_v21, %v10506_v37 }
  0xd5   : > { %8786 = vmatprep.subr.bf16.mxu0 %v10122_v57  ;;  %v883_v57 = vmul.f32 %v10499_v63, %v10470_v61 }
  0xd6   : > { %7997 = vmatmul.mubr.msk.f32.vlgmr.msra.gmra.mrb[48].mxu1 %vm1441_vm0, %v9725_v23  ;;  %v8805_v23 = vpack.c.bf16 %v926_v25, %v925_v60  ;;  %v929_v60 = vmul.f32 %v10283_v18, %v10490_v30  ;;  %v10581_v25 = vld [vmem:[%s9526_s8 + $0x140] sm:$0xff] }
  0xd7   : > { %7991 = vmatmul.mubr.msk.f32.gmra.mrb[52].mxu0 %vm1441_vm0, %v9826_v54  ;;  %2327 = vmatprep.mubr.f32.mxu1 %v14429_v2  ;;  %v10545_v33 = vpack.c.bf16 %v884_v13, %v883_v57  ;;  %v8795_v57 = vpack.c.bf16 %v810_v32, %v809_v52  ;;  %v887_v13 = vmul.f32 %v10540_v26, %v10272_v5  ;;  %v7881_v52 = vld [vmem:[%s9526_s8 + $0x50] sm:$0xff] }
  0xd8   : > { %2226 = vmatprep.mubr.f32.mxu0 %v14429_v2  ;;  %8788 = vmatpush1.bf16.msra.mxu0 %v14521_v22  ;;  %v927_v22 = vmul.f32 %v10540_v26, %v10446_v15 }
  0xd9   : > { %8790 = vmatprep.subr.bf16.mxu0 %v10150_v55  ;;  %8800 = vmatpush1.bf16.msra.mxu1 %v8799_v27  ;;  %v886_v55 = vmul.f32 %v10536_v45, %v10509_v35 }
  0xda   : > { %8802 = vmatprep.subr.bf16.mxu1 %v8801_v43  ;;  %7998 = vmatmul.mubr.msk.f32.gmra.mrb[50].mxu1 %vm1441_vm0, %v9775_v1  ;;  %v888_v43 = vmul.f32 %v10543_v6, %v10275_v24  ;;  %v7882_v24 = vld [vmem:[%s9526_s8 + $0x58] sm:$0xff] }
  0xdb   : > { %7992 = vmatmul.mubr.msk.f32.gmra.mrb[54].mxu0 %vm1441_vm0, %v9872_v59  ;;  %2333 = vmatprep.mubr.f32.mxu1 %v14429_v2  ;;  %v10571_v5 = vpack.c.bf16 %v886_v55, %v885_v58  ;;  %v10587_v55 = vld [vmem:[%s9526_s8 + $0x148] sm:$0xff] }
  0xdc   : > { %2232 = vmatprep.mubr.f32.mxu0 %v14429_v2  ;;  %8792 = vmatpush1.bf16.msra.mxu0 %v8791_v29  ;;  %v930_v29 = vmul.f32 %v10295_v7, %v10496_v39  ;;  %v10583_v32 = vpack.c.bf16 %v888_v43, %v887_v13  ;;  %v14523_v43 = vld [vmem:[#allocation55_spill] sm:$0xff] }
  0xdd   : > { %8794 = vmatprep.subr.bf16.mxu0 %v10427_v50  ;;  %8804 = vmatpush1.bf16.msra.mxu1 %v10545_v33  ;;  %v8809_v50 = vpack.c.bf16 %v928_v34, %v927_v22  ;;  %v889_v34 = vmul.f32 %v10307_v14, %v10283_v18  ;;  %v1082_v22 = vmul.f32 %v10587_v55, %v7882_v24  ;;  %v14525_v24 = vld [vmem:[#allocation43_spill] sm:$0xff] }
  0xde   : > { %8806 = vmatprep.subr.bf16.mxu1 %v8805_v23  ;;  %7999 = vmatmul.mubr.msk.f32.gmra.mrb[52].mxu1 %vm1441_vm0, %v9826_v54  ;;  %v8813_v58 = vpack.c.bf16 %v930_v29, %v929_v60  ;;  %v1081_v23 = vmul.f32 %v10581_v25, %v7881_v52  ;;  %v10604_v60 = vmul.f32 %v10263_v9, %v14523_v43  ;;  %v7884_v18 = vld [vmem:[%s9526_s8 + $0x68] sm:$0xff] }
  0xdf   : > { %7993 = vmatmul.mubr.msk.f32.gmra.mrb[56].mxu0 %vm1441_vm0, %v9919_v28  ;;  %2339 = vmatprep.mubr.f32.mxu1 %v14429_v2  ;;  %v10623_v29 = vmul.f32 %v10278_v38, %v10377_v41 }
  0xe0   : > { %2238 = vmatprep.mubr.f32.mxu0 %v14429_v2  ;;  %8796 = vmatpush1.bf16.msra.mxu0 %v8795_v57  ;;  %v14522_v57 = vld [vmem:[#allocation27_spill] sm:$0xff]  ;;  %v8837_v14 = vpack.c.bf16 %v1082_v22, %v1081_v23  ;;  %v14527_v23 = vld [vmem:[#allocation45_spill] sm:$0xff] }
  0xe1   : > { %8818 = vmatprep.subr.bf16.mxu0 %v8799_v27  ;;  %8808 = vmatpush1.bf16.msra.mxu1 %v10571_v5  ;;  %v890_v27 = vmul.f32 %v10310_v4, %v10295_v7  ;;  %v10600_v13 = vmul.f32 %v10260_v62, %v14522_v57  ;;  %v10619_v4 = vmul.f32 %v10268_v3, %v10374_v19  ;;  %v7883_v19 = vld [vmem:[%s9526_s8 + $0x60] sm:$0xff] }
  0xe2   : > { %8810 = vmatprep.subr.bf16.mxu1 %v8809_v50  ;;  %8000 = vmatmul.mubr.msk.f32.gmra.mrb[54].mxu1 %vm1441_vm0, %v9872_v59  ;;  %v14524_v50 = vld [vmem:[#allocation28_spill] sm:$0xff]  ;;  %v964_v22 = vmul.f32 %v10473_v36, %v14527_v23  ;;  %v14529_v23 = vld [vmem:[#allocation50_spill] sm:$0xff] }
  0xe3   : > { %7994 = vmatmul.mubr.msk.f32.gmra.mrb[58].mxu0 %vm1441_vm0, %v9974_v42  ;;  %2345 = vmatprep.mubr.f32.mxu1 %v14429_v2  ;;  %v10613_v7 = vpack.c.bf16 %v890_v27, %v889_v34  ;;  %v961_v52 = vmul.f32 %v10406_v40, %v14524_v50  ;;  %v962_v34 = vmul.f32 %v10409_v20, %v14525_v24  ;;  %v1021_v50 = vld [vmem:[%s9526_s8] sm:$0xff] }
  0xe4   : > { %2244 = vmatprep.mubr.f32.mxu0 %v14429_v2  ;;  %v966_v8 = vmul.f32 %v10509_v35, %v14529_v23 }
  0xe5   : > { %8812 = vmatpush1.bf16.msra.mxu1 %v10583_v32  ;;  %v8819_v41 = vpack.c.bf16 %v962_v34, %v961_v52  ;;  %v1022_v52 = vld [vmem:[%s9526_s8 + $0x8] sm:$0xff] }
  0xe6   : > { %8814 = vmatprep.subr.bf16.mxu1 %v8813_v58  ;;  %8001 = vmatmul.mubr.msk.f32.gmra.mrb[56].mxu1 %vm1441_vm0, %v9919_v28  ;;  %v14526_v58 = vld [vmem:[#allocation44_spill] sm:$0xff]  ;;  %v14528_v34 = vld [vmem:[#allocation25_spill] sm:$0xff] }
  0xe7   : > { %7995 = vmatmul.mubr.msk.f32.gmra.mrb[60].mxu0 %vm1441_vm0, %v10024_v46  ;;  %2351 = vmatprep.mubr.f32.mxu1 %v14429_v2  ;;  %v963_v27 = vmul.f32 %v10470_v61, %v14526_v58  ;;  %v965_v58 = vmul.f32 %v10506_v37, %v14528_v34  ;;  %v1042_v34 = vmul.f32 %v10587_v55, %v1022_v52 }
  0xe8   : > { %2250 = vmatprep.mubr.f32.mxu0 %v14429_v2  ;;  %v968_v52 = vmul.f32 %v10543_v6, %v14523_v43 }
  0xe9   : > { %8816 = vmatpush1.bf16.msra.mxu1 %v10613_v7  ;;  %v8823_v24 = vpack.c.bf16 %v964_v22, %v963_v27  ;;  %v10670_v27 = vld [vmem:[%s9526_s8 + $0x158] sm:$0xff]  ;;  %v1041_v22 = vmul.f32 %v10581_v25, %v1021_v50  ;;  %v8827_v53 = vpack.c.bf16 %v966_v8, %v965_v58  ;;  %v967_v50 = vmul.f32 %v10540_v26, %v14522_v57 }
  0xea   : > { %8838 = vmatprep.subr.bf16.mxu1 %v8837_v14  ;;  %8002 = vmatmul.mubr.msk.f32.gmra.mrb[58].mxu1 %vm1441_vm0, %v9974_v42  ;;  %v10649_v14 = vld [vmem:[%s14039_s2] sm:$0xff]  ;;  %v1084_v23 = vmul.f32 %v10670_v27, %v7884_v18  ;;  %v10694_v18 = vld [vmem:[%s9526_s8 + $0x168] sm:$0xff]  ;;  %v1044_v57 = vmul.f32 %v10670_v27, %v1024_v56 }
  0xeb   : > { %7996 = vmatmul.mubr.msk.f32.gmra.mrb[62].mxu0 %vm1441_vm0, %v10082_v49  ;;  %2357 = vmatprep.mubr.f32.mxu1 %v14429_v2  ;;  %v8839_v8 = vpack.c.bf16 %v1042_v34, %v1041_v22  ;;  %v8831_v58 = vpack.c.bf16 %v968_v52, %v967_v50  ;;  %v1161_v22 = vmul.f32 %v10581_v25, %v10406_v40  ;;  %v10723_v40 = vld [vmem:[%s14039_s2 + $0x8] sm:$0xff] }
  0xec   : > { %2434 = vmatprep.mubr.f32.mxu0 %v14429_v2  ;;  %v14535_v50 = vld [vmem:[#allocation32_spill] sm:$0xff] }
  0xee   : > { %8003 = vmatmul.mubr.msk.f32.gmra.mrb[60].mxu1 %vm1441_vm0, %v10024_v46 }
  0xef   : > { %8005 = vmatmul.mubr.msk.f32.vlgmr.msra.gmra.mrb[64].mxu0 %vm1441_vm0, %v10649_v14  ;;  %2363 = vmatprep.mubr.f32.mxu1 %v14429_v2 }
  0xf0   : > { %2440 = vmatprep.mubr.f32.mxu0 %v14429_v2  ;;  %8820 = vmatpush1.bf16.msra.mxu0 %v8819_v41  ;;  %v10667_v41 = vld [vmem:[%s9526_s8 + $0x150] sm:$0xff] }
  0xf1   : > { %8822 = vmatprep.subr.bf16.mxu0 %v10545_v33  ;;  %v1083_v33 = vmul.f32 %v10667_v41, %v7883_v19  ;;  %v1043_v19 = vmul.f32 %v10667_v41, %v1023_v11  ;;  %v1162_v11 = vmul.f32 %v10587_v55, %v10409_v20  ;;  %v1047_v20 = vmul.f32 %v10260_v62, %v10446_v15 }
  0xf2   : > { %8004 = vmatmul.mubr.msk.f32.gmra.mrb[62].mxu1 %vm1441_vm0, %v10082_v49 }
  0xf3   : > { %8006 = vmatmul.mubr.msk.f32.gmra.mrb[66].mxu0 %vm1441_vm0, %v9775_v1  ;;  %v10691_v1 = vld [vmem:[%s9526_s8 + $0x160] sm:$0xff]  ;;  %2547 = vmatprep.mubr.f32.mxu1 %v14429_v2  ;;  %v8841_v43 = vpack.c.bf16 %v1084_v23, %v1083_v33  ;;  %v8857_v56 = vpack.c.bf16 %v1162_v11, %v1161_v22  ;;  %v274_v11 = vld [vmem:[%s14040_s3 + $0x58] sm:$0xff] }
  0xf4   : > { %2446 = vmatprep.mubr.f32.mxu0 %v14429_v2  ;;  %8824 = vmatpush1.bf16.msra.mxu0 %v8823_v24  ;;  %v1086_v24 = vmul.f32 %v10694_v18, %v7886_v47  ;;  %v1045_v47 = vmul.f32 %v10691_v1, %v14518_v17  ;;  %v1048_v17 = vmul.f32 %v10263_v9, %v10449_v0  ;;  %v14534_v23 = vld [vmem:[#allocation29_spill] sm:$0xff] }
  0xf5   : > { %8826 = vmatprep.subr.bf16.mxu0 %v10571_v5  ;;  %v1085_v5 = vmul.f32 %v10691_v1, %v7885_v10  ;;  %v1050_v0 = vmul.f32 %v10278_v38, %v10496_v39  ;;  %v1121_v39 = vmul.f32 %v10581_v25, %v10459_v16  ;;  %v1165_v25 = vmul.f32 %v10691_v1, %v10506_v37  ;;  %v273_v22 = vld [vmem:[%s14040_s3 + $0x50] sm:$0xff] }
  0xf6   : > { %8013 = vmatmul.mubr.msk.f32.vlgmr.msra.gmra.mrb[64].mxu1 %vm1441_vm0, %v10649_v14  ;;  %v8851_v15 = vpack.c.bf16 %v1048_v17, %v1047_v20  ;;  %v1126_v37 = vmul.f32 %v10694_v18, %v10536_v45  ;;  %v14536_v52 = vpack.c.bf16 %v14534_v23, %v14535_v50  ;;  %v277_v20 = vld [vmem:[%s14040_s3 + $0x70] sm:$0xff]  ;;  %v278_v17 = vld [vmem:[%s14040_s3 + $0x78] sm:$0xff] }
  0xf7   : > { %8007 = vmatmul.mubr.msk.f32.gmra.mrb[68].mxu0 %vm1441_vm0, %v9826_v54  ;;  %2553 = vmatprep.mubr.f32.mxu1 %v14429_v2  ;;  %v8843_v54 = vpack.c.bf16 %v1044_v57, %v1043_v19  ;;  %v8845_v10 = vpack.c.bf16 %v1086_v24, %v1085_v5  ;;  %v14538_v19 = vld [vmem:[#allocation17_spill] sm:$0xff]  ;;  %v271_v5 = vld [vmem:[%s14040_s3 + $0x40] sm:$0xff]  ;;  %v272_v24 = vld [vmem:[%s14040_s3 + $0x48] sm:$0xff] }
  0xf8   : > { %2452 = vmatprep.mubr.f32.mxu0 %v14429_v2  ;;  %8828 = vmatpush1.bf16.msra.mxu0 %v8827_v53  ;;  %v1046_v53 = vmul.f32 %v10694_v18, %v14519_v44  ;;  %v10739_v44 = vld [vmem:[%s14039_s2 + $0x10] sm:$0xff] }
  0xf9   : > { %8830 = vmatprep.subr.bf16.mxu0 %v10583_v32  ;;  %8840 = vmatpush1.bf16.msra.mxu1 %v8839_v8  ;;  %v10757_v32 = vld [vmem:[%s14039_s2 + $0x18] sm:$0xff] }
  0xfa   : > { %8842 = vmatprep.subr.bf16.mxu1 %v8841_v43  ;;  %8014 = vmatmul.mubr.msk.f32.gmra.mrb[66].mxu1 %vm1441_vm0, %v10723_v40  ;;  %v270_v8 = vld [vmem:[%s14040_s3 + $0x38] sm:$0xff] }
  0xfb   : > { %8008 = vmatmul.mubr.msk.f32.gmra.mrb[70].mxu0 %vm1441_vm0, %v9872_v59  ;;  %2559 = vmatprep.mubr.f32.mxu1 %v14429_v2  ;;  %v8847_v59 = vpack.c.bf16 %v1046_v53, %v1045_v47  ;;  %v8897_v47 = vpack.c.bf16 %v274_v11, %v273_v22  ;;  %v275_v53 = vld [vmem:[%s14040_s3 + $0x60] sm:$0xff] }
  0xfc   : > { %2458 = vmatprep.mubr.f32.mxu0 %v14429_v2  ;;  %8832 = vmatpush1.bf16.msra.mxu0 %v8831_v58  ;;  %v8893_v58 = vpack.c.bf16 %v272_v24, %v271_v5 }
  0xfd   : > { %8834 = vmatprep.subr.bf16.mxu0 %v10613_v7  ;;  %8844 = vmatpush1.bf16.msra.mxu1 %v8843_v54  ;;  %v1164_v7 = vmul.f32 %v10670_v27, %v10473_v36  ;;  %v9148_v54 = vld [vmem:[%s14039_s2 + $0x30] sm:$0xff] }
  0xfe   : > { %8846 = vmatprep.subr.bf16.mxu1 %v8845_v10  ;;  %8015 = vmatmul.mubr.msk.f32.gmra.mrb[68].mxu1 %vm1441_vm0, %v10739_v44  ;;  %v276_v10 = vld [vmem:[%s14040_s3 + $0x68] sm:$0xff] }
  0xff   : > { %8009 = vmatmul.mubr.msk.f32.gmra.mrb[72].mxu0 %vm1441_vm0, %v9919_v28  ;;  %2565 = vmatprep.mubr.f32.mxu1 %v14429_v2  ;;  %v1049_v28 = vmul.f32 %v10268_v3, %v10490_v30  ;;  %v263_v3 = vld [vmem:[%s14040_s3] sm:$0xff]  ;;  %v14531_v30 = vpack.c.bf16 %v10623_v29, %v10619_v4  ;;  %v10807_v29 = vld [vmem:[%s14039_s2 + $0x28] sm:$0xff] }
 0x100   : > { %2464 = vmatprep.mubr.f32.mxu0 %v14429_v2  ;;  %8836 = vmatpush1.bf16.msra.mxu0 %v10416_v31  ;;  %v14530_v31 = vpack.c.bf16 %v10604_v60, %v10600_v13  ;;  %v1122_v13 = vmul.f32 %v10587_v55, %v10462_v12  ;;  %v1163_v60 = vmul.f32 %v10667_v41, %v10470_v61  ;;  %v10787_v4 = vld [vmem:[%s14039_s2 + $0x20] sm:$0xff] }
 0x101   : > { %8858 = vmatprep.subr.bf16.mxu0 %v8857_v56  ;;  %8848 = vmatpush1.bf16.msra.mxu1 %v8847_v59  ;;  %v8855_v38 = vpack.c.bf16 %v1050_v0, %v1049_v28  ;;  %v1123_v12 = vmul.f32 %v10667_v41, %v10499_v63  ;;  %v1124_v61 = vmul.f32 %v10670_v27, %v10502_v48  ;;  %v9149_v56 = vld [vmem:[%s14039_s2 + $0x38] sm:$0xff] }
 0x102   : > { %8850 = vmatprep.subr.bf16.mxu1 %v14530_v31  ;;  %8016 = vmatmul.mubr.msk.f32.gmra.mrb[70].mxu1 %vm1441_vm0, %v10757_v32  ;;  %v8859_v16 = vpack.c.bf16 %v1122_v13, %v1121_v39  ;;  %v8861_v36 = vpack.c.bf16 %v1164_v7, %v1163_v60  ;;  %v1166_v55 = vmul.f32 %v10694_v18, %v10509_v35  ;;  %v269_v18 = vld [vmem:[%s14040_s3 + $0x30] sm:$0xff] }
 0x103   : > { %8010 = vmatmul.mubr.msk.f32.gmra.mrb[74].mxu0 %vm1441_vm0, %v9974_v42  ;;  %v264_v42 = vld [vmem:[%s14040_s3 + $0x8] sm:$0xff]  ;;  %2571 = vmatprep.mubr.f32.mxu1 %v14429_v2  ;;  %v8863_v63 = vpack.c.bf16 %v1124_v61, %v1123_v12  ;;  %v1125_v48 = vmul.f32 %v10691_v1, %v10533_v21  ;;  %v1167_v41 = vmul.f32 %v10260_v62, %v10540_v26  ;;  %v265_v62 = vld [vmem:[%s14040_s3 + $0x10] sm:$0xff] }
 0x104   : > { %2470 = vmatprep.mubr.f32.mxu0 %v14429_v2  ;;  %v10782_v34 = vpack.c.bf16 %v264_v42, %v263_v3  ;;  %v8865_v35 = vpack.c.bf16 %v1166_v55, %v1165_v25  ;;  %v1168_v27 = vmul.f32 %v10263_v9, %v10543_v6  ;;  %v268_v6 = vld [vmem:[%s14040_s3 + $0x28] sm:$0xff]  ;;  %v14532_v26 = vld [vmem:[#allocation33_spill] sm:$0xff]  ;;  %v8889_v43 = vpack.c.bf16 %v270_v8, %v269_v18 }
 0x105   : > { %8852 = vmatpush1.bf16.msra.mxu1 %v8851_v15  ;;  %v8867_v21 = vpack.c.bf16 %v1126_v37, %v1125_v48  ;;  %v14533_v33 = vpack.c.bf16 %v10291_v51, %v14532_v26  ;;  %v14537_v51 = vld [vmem:[#allocation18_spill] sm:$0xff]  ;;  %v8901_v59 = vpack.c.bf16 %v276_v10, %v275_v53  ;;  %v8905_v15 = vpack.c.bf16 %v278_v17, %v277_v20 }
 0x106   : > { %8854 = vmatprep.subr.bf16.mxu1 %v14531_v30  ;;  %8017 = vmatmul.mubr.msk.f32.gmra.mrb[72].mxu1 %vm1441_vm0, %v10787_v4  ;;  %v8869_v45 = vpack.c.bf16 %v1168_v27, %v1167_v41  ;;  %v14539_v57 = vpack.c.bf16 %v14537_v51, %v14538_v19 }
 0x107   : > { %8011 = vmatmul.mubr.msk.f32.gmra.mrb[76].mxu0 %vm1441_vm0, %v10024_v46  ;;  %2577 = vmatprep.mubr.f32.mxu1 %v14429_v2 }
 0x108   : > { %2476 = vmatprep.mubr.f32.mxu0 %v14429_v2 }
 0x109   : > { %8856 = vmatpush1.bf16.msra.mxu1 %v8855_v38 }
 0x10a   : > { %8909 = vmatprep.subr.bf16.mxu1 %v10782_v34  ;;  %8018 = vmatmul.mubr.msk.f32.gmra.mrb[74].mxu1 %vm1441_vm0, %v10807_v29 }
 0x10b   : > { %8012 = vmatmul.mubr.msk.f32.gmra.mrb[78].mxu0 %vm1441_vm0, %v10082_v49  ;;  %2583 = vmatprep.mubr.f32.mxu1 %v14429_v2 }
 0x10c   : > { %2660 = vmatprep.mubr.f32.mxu0 %v14429_v2 }
 0x10e   : > { %8019 = vmatmul.mubr.msk.f32.gmra.mrb[76].mxu1 %vm1441_vm0, %v10024_v46  ;;  %v266_v46 = vld [vmem:[%s14040_s3 + $0x18] sm:$0xff] }
 0x10f   : > { %8021 = vmatmul.mubr.msk.f32.vlgmr.msra.gmra.mrb[80].mxu0 %vm1441_vm0, %v10649_v14  ;;  %2589 = vmatprep.mubr.f32.mxu1 %v14429_v2  ;;  %v10841_v9 = vpack.c.bf16 %v266_v46, %v265_v62 }
 0x110   : > { %2666 = vmatprep.mubr.f32.mxu0 %v14429_v2  ;;  %8860 = vmatpush1.bf16.msra.mxu0 %v8859_v16 }
 0x111   : > { %8862 = vmatprep.subr.bf16.mxu0 %v8861_v36 }
 0x112   : > { %8020 = vmatmul.mubr.msk.f32.gmra.mrb[78].mxu1 %vm1441_vm0, %v10082_v49  ;;  %v267_v49 = vld [vmem:[%s14040_s3 + $0x20] sm:$0xff] }
 0x113   : > { %8022 = vmatmul.mubr.msk.f32.gmra.mrb[82].mxu0 %vm1441_vm0, %v10723_v40  ;;  %2773 = vmatprep.mubr.f32.mxu1 %v14429_v2  ;;  %v10863_v1 = vpack.c.bf16 %v268_v6, %v267_v49 }
 0x114   : > { %2672 = vmatprep.mubr.f32.mxu0 %v14429_v2  ;;  %8864 = vmatpush1.bf16.msra.mxu0 %v8863_v63 }
 0x115   : > { %8866 = vmatprep.subr.bf16.mxu0 %v8865_v35 }
 0x116   : > { %8029 = vmatmul.mubr.msk.f32.vlgmr.msra.gmra.mrb[80].mxu1 %vm1441_vm0, %v10649_v14 }
 0x117   : > { %8023 = vmatmul.mubr.msk.f32.gmra.mrb[84].mxu0 %vm1441_vm0, %v10739_v44  ;;  %2779 = vmatprep.mubr.f32.mxu1 %v14429_v2 }
 0x118   : > { %2678 = vmatprep.mubr.f32.mxu0 %v14429_v2  ;;  %8868 = vmatpush1.bf16.msra.mxu0 %v8867_v21 }
 0x119   : > { %8870 = vmatprep.subr.bf16.mxu0 %v8869_v45  ;;  %8917 = vmatpush3.bf16.msra.mxu1 %v10782_v34 }
 0x11a   : > { %8910 = vmatprep.subr.bf16.mxu1 %v10841_v9  ;;  %8030 = vmatmul.mubr.msk.f32.gmra.mrb[82].mxu1 %vm1441_vm0, %v10723_v40 }
 0x11b   : > { %8024 = vmatmul.mubr.msk.f32.gmra.mrb[86].mxu0 %vm1441_vm0, %v10757_v32  ;;  %2785 = vmatprep.mubr.f32.mxu1 %v14429_v2 }
 0x11c   : > { %2684 = vmatprep.mubr.f32.mxu0 %v14429_v2  ;;  %8872 = vmatpush1.bf16.msra.mxu0 %v14533_v33 }
 0x11d   : > { %8874 = vmatprep.subr.bf16.mxu0 %v14536_v52  ;;  %8918 = vmatpush3.bf16.msra.mxu1 %v10841_v9 }
 0x11e   : > { %8911 = vmatprep.subr.bf16.mxu1 %v10863_v1  ;;  %8031 = vmatmul.mubr.msk.f32.gmra.mrb[84].mxu1 %vm1441_vm0, %v10739_v44 }
 0x11f   : > { %8025 = vmatmul.mubr.msk.f32.gmra.mrb[88].mxu0 %vm1441_vm0, %v10787_v4  ;;  %2791 = vmatprep.mubr.f32.mxu1 %v14429_v2 }
 0x120   : > { %2690 = vmatprep.mubr.f32.mxu0 %v14429_v2  ;;  %8876 = vmatpush1.bf16.msra.mxu0 %v14539_v57 }
 0x121   : > { %8878 = vmatprep.subr.bf16.mxu0 %v10782_v34  ;;  %8919 = vmatpush3.bf16.msra.mxu1 %v10863_v1 }
 0x122   : > { %8912 = vmatprep.subr.bf16.mxu1 %v8889_v43  ;;  %8032 = vmatmul.mubr.msk.f32.gmra.mrb[86].mxu1 %vm1441_vm0, %v10757_v32 }
 0x123   : > { %8026 = vmatmul.mubr.msk.f32.gmra.mrb[90].mxu0 %vm1441_vm0, %v10807_v29  ;;  %2797 = vmatprep.mubr.f32.mxu1 %v14429_v2 }
 0x124   : > { %2696 = vmatprep.mubr.f32.mxu0 %v14429_v2 }
 0x125   : > { %8920 = vmatpush3.bf16.msra.mxu1 %v8889_v43 }
 0x126   : > { %8913 = vmatprep.subr.bf16.mxu1 %v8893_v58  ;;  %8033 = vmatmul.mubr.msk.f32.gmra.mrb[88].mxu1 %vm1441_vm0, %v10787_v4 }
 0x127   : > { %8027 = vmatmul.mubr.msk.f32.gmra.mrb[92].mxu0 %vm1441_vm0, %v9148_v54  ;;  %2803 = vmatprep.mubr.f32.mxu1 %v14429_v2 }
 0x128   : > { %2702 = vmatprep.mubr.f32.mxu0 %v14429_v2 }
 0x129   : > { %8921 = vmatpush3.bf16.msra.mxu1 %v8893_v58 }
 0x12a   : > { %8914 = vmatprep.subr.bf16.mxu1 %v8897_v47  ;;  %8034 = vmatmul.mubr.msk.f32.gmra.mrb[90].mxu1 %vm1441_vm0, %v10807_v29 }
 0x12b   : > { %8028 = vmatmul.mubr.msk.f32.gmra.mrb[94].mxu0 %vm1441_vm0, %v9149_v56  ;;  %2809 = vmatprep.mubr.f32.mxu1 %v14429_v2 }
 0x12c   : > { %2886 = vmatprep.mubr.f32.mxu0 %v14429_v2 }
 0x12d   : > { %8922 = vmatpush3.bf16.msra.mxu1 %v8897_v47 }
 0x12e   : > { %8915 = vmatprep.subr.bf16.mxu1 %v8901_v59  ;;  %8035 = vmatmul.mubr.msk.f32.gmra.mrb[92].mxu1 %vm1441_vm0, %v9148_v54 }
 0x12f   : > { %8037 = vmatmul.mubr.msk.f32.vlgmr.msra.gmra.mrb[96].mxu0 %vm1441_vm0, %v10649_v14  ;;  %2815 = vmatprep.mubr.f32.mxu1 %v14429_v2 }
 0x130   : > { %8880 = vmatpush3.bf16.msra.mxu0 %v10782_v34  ;;  %2892 = vmatprep.mubr.f32.mxu0 %v14429_v2 }
 0x131   : > { %8882 = vmatprep.subr.bf16.mxu0 %v10841_v9  ;;  %8923 = vmatpush3.bf16.msra.mxu1 %v8901_v59 }
 0x132   : > { %8916 = vmatprep.subr.bf16.mxu1 %v8905_v15  ;;  %8036 = vmatmul.mubr.msk.f32.gmra.mrb[94].mxu1 %vm1441_vm0, %v9149_v56 }
 0x133   : > { %8038 = vmatmul.mubr.msk.f32.gmra.mrb[98].mxu0 %vm1441_vm0, %v10723_v40 }
 0x134   : > { %8884 = vmatpush3.bf16.msra.mxu0 %v10841_v9  ;;  %2898 = vmatprep.mubr.f32.mxu0 %v14429_v2 }
 0x135   : > { %8886 = vmatprep.subr.bf16.mxu0 %v10863_v1  ;;  %8924 = vmatpush3.bf16.msra.mxu1 %v8905_v15 }
 0x137   : > { %8039 = vmatmul.mubr.msk.f32.gmra.mrb[100].mxu0 %vm1441_vm0, %v10739_v44 }
 0x138   : > { %8888 = vmatpush3.bf16.msra.mxu0 %v10863_v1  ;;  %2904 = vmatprep.mubr.f32.mxu0 %v14429_v2 }
 0x139   : > { %8890 = vmatprep.subr.bf16.mxu0 %v8889_v43 }
 0x13b   : > { %8040 = vmatmul.mubr.msk.f32.gmra.mrb[102].mxu0 %vm1441_vm0, %v10757_v32 }
 0x13c   : > { %8892 = vmatpush3.bf16.msra.mxu0 %v8889_v43  ;;  %2910 = vmatprep.mubr.f32.mxu0 %v14429_v2 }
 0x13d   : > { %8894 = vmatprep.subr.bf16.mxu0 %v8893_v58 }
 0x13f   : > { %8041 = vmatmul.mubr.msk.f32.gmra.mrb[104].mxu0 %vm1441_vm0, %v10787_v4 }
 0x140   : > { %8896 = vmatpush3.bf16.msra.mxu0 %v8893_v58  ;;  %2916 = vmatprep.mubr.f32.mxu0 %v14429_v2 }
 0x141   : > { %8898 = vmatprep.subr.bf16.mxu0 %v8897_v47 }
 0x142   : > { %v1532_v14 = vpop.f32.mrb[0].mxu0 }
 0x143   : > { %v1534_v40 = vpop.f32.mrb[1].mxu0  ;;  %8042 = vmatmul.mubr.msk.f32.gmra.mrb[106].mxu0 %vm1441_vm0, %v10807_v29 }
 0x144   : > { %8900 = vmatpush3.bf16.msra.mxu0 %v8897_v47  ;;  %2922 = vmatprep.mubr.f32.mxu0 %v14429_v2 }
 0x145   : > { %8902 = vmatprep.subr.bf16.mxu0 %v8901_v59 }
 0x146   : > { %v1538_v44 = vpop.f32.mrb[2].mxu0 }
 0x147   : > { %v1540_v28 = vpop.f32.mrb[3].mxu0  ;;  %8043 = vmatmul.mubr.msk.f32.gmra.mrb[108].mxu0 %vm1441_vm0, %v9148_v54 }
 0x148   : > { %8904 = vmatpush3.bf16.msra.mxu0 %v8901_v59  ;;  %2928 = vmatprep.mubr.f32.mxu0 %v14429_v2 }
 0x149   : > { %8906 = vmatprep.subr.bf16.mxu0 %v8905_v15  ;;  %v1645_v32 = vpop.f32.mrb[0].mxu1 }
 0x14a   : > { %v1544_v0 = vpop.f32.mrb[4].mxu0  ;;  %v10962_v3 = vpop.f32.mrb[1].mxu1 }
 0x14b   : > { %v1546_v31 = vpop.f32.mrb[5].mxu0  ;;  %8044 = vmatmul.mubr.msk.f32.gmra.mrb[110].mxu0 %vm1441_vm0, %v9149_v56 }
 0x14c   : > { %8908 = vmatpush3.bf16.msra.mxu0 %v8905_v15  ;;  %8305 = vmatprep.mubr.f32.mxu0 %v1532_v14 }
 0x14d   : > { %v1651_v30 = vpop.f32.mrb[2].mxu1 }
 0x14e   : > { %v1550_v42 = vpop.f32.mrb[6].mxu0  ;;  %v10964_v39 = vpop.f32.mrb[3].mxu1 }
 0x14f   : > { %v1552_v38 = vpop.f32.mrb[7].mxu0  ;;  %8306 = vmatmul.mubr.f32.vlgmr.msra.gmra.mrb[112].mxu0 %v1538_v44 }
 0x150   : > { %8308 = vmatprep.mubr.f32.mxu0 %v1544_v0 }
 0x151   : > { %v1657_v2 = vpop.f32.mrb[4].mxu1 }
 0x152   : > { %v1556_v13 = vpop.f32.mrb[8].mxu0  ;;  %v10966_v7 = vpop.f32.mrb[5].mxu1 }
 0x153   : > { %v1558_v60 = vpop.f32.mrb[9].mxu0  ;;  %8309 = vmatmul.mubr.f32.gmra.mrb[114].mxu0 %v1550_v42 }
 0x154   : > { %8311 = vmatprep.mubr.f32.mxu0 %v1556_v13 }
 0x155   : > { %v1663_v16 = vpop.f32.mrb[6].mxu1 }
 0x156   : > { %v1562_v34 = vpop.f32.mrb[10].mxu0  ;;  %v10968_v12 = vpop.f32.mrb[7].mxu1 }
 0x157   : > { %v1564_v4 = vpop.f32.mrb[11].mxu0  ;;  %8312 = vmatmul.mubr.f32.gmra.mrb[116].mxu0 %v1562_v34 }
 0x159   : > { %v1669_v25 = vpop.f32.mrb[8].mxu1 }
 0x15a   : > { %v1568_v61 = vpop.f32.mrb[12].mxu0  ;;  %v10970_v55 = vpop.f32.mrb[9].mxu1 }
 0x15b   : > { %v1570_v36 = vpop.f32.mrb[13].mxu0  ;;  %8314 = vmatprep.mubr.f32.mxu0 %v1568_v61 }
 0x15d   : > { %v1675_v48 = vpop.f32.mrb[10].mxu1 }
 0x15e   : > { %v1574_v29 = vpop.f32.mrb[14].mxu0  ;;  %v1677_v37 = vpop.f32.mrb[11].mxu1 }
 0x15f   : > { %v1576_v63 = vpop.f32.mrb[15].mxu0  ;;  %8315 = vmatmul.mubr.f32.gmra.mrb[118].mxu0 %v1574_v29 }
 0x160   : > { %8317 = vmatprep.mubr.f32.mxu0 %v1534_v40 }
 0x161   : > { %v1681_v27 = vpop.f32.mrb[12].mxu1 }
 0x162   : > { %v10972_v35 = vpop.f32.mrb[16].mxu0  ;;  %v1683_v21 = vpop.f32.mrb[13].mxu1 }
 0x163   : > { %v10974_v41 = vpop.f32.mrb[17].mxu0  ;;  %8318 = vmatmul.mubr.f32.gmra.mrb[120].mxu0 %v1540_v28 }
 0x164   : > { %8320 = vmatprep.mubr.f32.mxu0 %v1546_v31 }
 0x165   : > { %v1687_v46 = vpop.f32.mrb[14].mxu1 }
 0x166   : > { %v10976_v45 = vpop.f32.mrb[18].mxu0  ;;  %v1689_v9 = vpop.f32.mrb[15].mxu1 }
 0x167   : > { %v10978_v62 = vpop.f32.mrb[19].mxu0  ;;  %8321 = vmatmul.mubr.f32.gmra.mrb[122].mxu0 %v1552_v38 }
 0x168   : > { %8323 = vmatprep.mubr.f32.mxu0 %v1558_v60 }
 0x169   : > { %v10982_v26 = vpop.f32.mrb[16].mxu1 }
 0x16a   : > { %v1770_v49 = vpop.f32.mrb[20].mxu0  ;;  %v10984_v33 = vpop.f32.mrb[17].mxu1 }
 0x16b   : > { %v10980_v6 = vpop.f32.mrb[21].mxu0  ;;  %8324 = vmatmul.mubr.f32.gmra.mrb[124].mxu0 %v1564_v4 }
 0x16c   : > { %8326 = vmatprep.mubr.f32.mxu0 %v1570_v36 }
 0x16d   : > { %v10988_v52 = vpop.f32.mrb[18].mxu1 }
 0x16e   : > { %v1776_v23 = vpop.f32.mrb[22].mxu0  ;;  %v10990_v1 = vpop.f32.mrb[19].mxu1 }
 0x16f   : > { %v10986_v50 = vpop.f32.mrb[23].mxu0  ;;  %8327 = vmatmul.mubr.f32.gmra.mrb[126].mxu0 %v1576_v63 }
 0x170   : > { %8329 = vmatprep.mubr.f32.mxu0 %v1645_v32 }
 0x171   : > { %v10994_v51 = vpop.f32.mrb[20].mxu1 }
 0x172   : > { %v1782_v18 = vpop.f32.mrb[24].mxu0  ;;  %v10996_v19 = vpop.f32.mrb[21].mxu1 }
 0x173   : > { %v10992_v8 = vpop.f32.mrb[25].mxu0  ;;  %8330 = vmatmul.mubr.f32.gmra.mrb[128].mxu0 %v1651_v30 }
 0x174   : > { %8332 = vmatprep.mubr.f32.mxu0 %v1657_v2 }
 0x175   : > { %v11000_v5 = vpop.f32.mrb[22].mxu1 }
 0x176   : > { %v1788_v57 = vpop.f32.mrb[26].mxu0  ;;  %v11002_v24 = vpop.f32.mrb[23].mxu1 }
 0x177   : > { %v10998_v43 = vpop.f32.mrb[27].mxu0  ;;  %8333 = vmatmul.mubr.f32.gmra.mrb[130].mxu0 %v1663_v16 }
 0x178   : > { %8335 = vmatprep.mubr.f32.mxu0 %v1669_v25 }
 0x179   : > { %v11006_v11 = vpop.f32.mrb[24].mxu1 }
 0x17a   : > { %v1794_v58 = vpop.f32.mrb[28].mxu0  ;;  %v11008_v54 = vpop.f32.mrb[25].mxu1 }
 0x17b   : > { %v11004_v22 = vpop.f32.mrb[29].mxu0  ;;  %8336 = vmatmul.mubr.f32.gmra.mrb[132].mxu0 %v1675_v48 }
 0x17c   : > { %8338 = vmatprep.mubr.f32.mxu0 %v1681_v27 }
 0x17d   : > { %v11013_v10 = vpop.f32.mrb[26].mxu1 }
 0x17e   : > { %v1800_v47 = vpop.f32.mrb[30].mxu0  ;;  %v11015_v56 = vpop.f32.mrb[27].mxu1 }
 0x17f   : > { %v11010_v53 = vpop.f32.mrb[31].mxu0  ;;  %8339 = vmatmul.mubr.f32.gmra.mrb[134].mxu0 %v1687_v46 }
 0x180   : > { %8341 = vmatprep.mubr.f32.mxu0 %v10962_v3 }
 0x181   : > { %v11023_v17 = vpop.f32.mrb[28].mxu1 }
 0x182   : > { %v11017_v59 = vpop.f32.mrb[32].mxu0  ;;  %v11025_v15 = vpop.f32.mrb[29].mxu1 }
 0x183   : > { %v11019_v20 = vpop.f32.mrb[33].mxu0  ;;  %8342 = vmatmul.mubr.f32.gmra.mrb[136].mxu0 %v10964_v39 }
 0x184   : > { %8344 = vmatprep.mubr.f32.mxu0 %v10966_v7 }
 0x185   : > { %v11033_v44 = vpop.f32.mrb[30].mxu1 }
 0x186   : > { %v11027_v14 = vpop.f32.mrb[34].mxu0  ;;  %v11035_v28 = vpop.f32.mrb[31].mxu1 }
 0x187   : > { %v11029_v40 = vpop.f32.mrb[35].mxu0  ;;  %8345 = vmatmul.mubr.f32.gmra.mrb[138].mxu0 %v10968_v12 }
 0x188   : > { %8347 = vmatprep.mubr.f32.mxu0 %v10970_v55 }
 0x189   : > { %v11041_v32 = vpop.f32.mrb[32].mxu1 }
 0x18a   : > { %v11037_v0 = vpop.f32.mrb[36].mxu0  ;;  %v11043_v3 = vpop.f32.mrb[33].mxu1 }
 0x18b   : > { %v11039_v31 = vpop.f32.mrb[37].mxu0  ;;  %8348 = vmatmul.mubr.f32.gmra.mrb[140].mxu0 %v1677_v37 }
 0x18c   : > { %8350 = vmatprep.mubr.f32.mxu0 %v1683_v21 }
 0x18d   : > { %v11050_v30 = vpop.f32.mrb[34].mxu1 }
 0x18e   : > { %v11045_v42 = vpop.f32.mrb[38].mxu0  ;;  %v11052_v39 = vpop.f32.mrb[35].mxu1 }
 0x18f   : > { %v11047_v38 = vpop.f32.mrb[39].mxu0  ;;  %8351 = vmatmul.mubr.f32.gmra.mrb[142].mxu0 %v1689_v9 }
 0x190   : > { %8353 = vmatprep.mubr.f32.mxu0 %v10972_v35 }
 0x191   : > { %v11059_v2 = vpop.f32.mrb[36].mxu1 }
 0x192   : > { %v11054_v13 = vpop.f32.mrb[40].mxu0  ;;  %v11061_v7 = vpop.f32.mrb[37].mxu1 }
 0x193   : > { %v11056_v60 = vpop.f32.mrb[41].mxu0  ;;  %8354 = vmatmul.mubr.f32.gmra.mrb[144].mxu0 %v10976_v45 }
 0x194   : > { %8356 = vmatprep.mubr.f32.mxu0 %v1770_v49 }
 0x195   : > { %v11067_v16 = vpop.f32.mrb[38].mxu1 }
 0x196   : > { %v11063_v34 = vpop.f32.mrb[42].mxu0  ;;  %v11069_v12 = vpop.f32.mrb[39].mxu1 }
 0x197   : > { %v11065_v4 = vpop.f32.mrb[43].mxu0  ;;  %8357 = vmatmul.mubr.f32.gmra.mrb[146].mxu0 %v1776_v23 }
 0x198   : > { %8359 = vmatprep.mubr.f32.mxu0 %v1782_v18 }
 0x199   : > { %v11075_v25 = vpop.f32.mrb[40].mxu1 }
 0x19a   : > { %v11071_v61 = vpop.f32.mrb[44].mxu0  ;;  %v11077_v55 = vpop.f32.mrb[41].mxu1 }
 0x19b   : > { %v11073_v36 = vpop.f32.mrb[45].mxu0  ;;  %8360 = vmatmul.mubr.f32.gmra.mrb[148].mxu0 %v1788_v57 }
 0x19c   : > { %8362 = vmatprep.mubr.f32.mxu0 %v1794_v58 }
 0x19d   : > { %v11084_v48 = vpop.f32.mrb[42].mxu1 }
 0x19e   : > { %v11079_v29 = vpop.f32.mrb[46].mxu0  ;;  %v11086_v37 = vpop.f32.mrb[43].mxu1 }
 0x19f   : > { %v11081_v63 = vpop.f32.mrb[47].mxu0  ;;  %8363 = vmatmul.mubr.f32.gmra.mrb[150].mxu0 %v1800_v47 }
 0x1a0   : > { %8365 = vmatprep.mubr.f32.mxu0 %v10974_v41 }
 0x1a1   : > { %v11090_v21 = vpop.f32.mrb[44].mxu1 }
 0x1a2   : > { %v2210_v35 = vpop.f32.mrb[48].mxu0  ;;  %v11092_v45 = vpop.f32.mrb[45].mxu1 }
 0x1a3   : > { %v2212_v27 = vpop.f32.mrb[49].mxu0  ;;  %8366 = vmatmul.mubr.f32.gmra.mrb[152].mxu0 %v10978_v62  ;;  %8449 = vmatprep.mubr.f32.mxu1 %v2210_v35  ;;  %14540 = vst [vmem:[#allocation19_spill] sm:$0xff] %v11092_v45 }
 0x1a4   : > { %8368 = vmatprep.mubr.f32.mxu0 %v10980_v6 }
 0x1a5   : > { %v11096_v41 = vpop.f32.mrb[46].mxu1 }
 0x1a6   : > { %v2216_v46 = vpop.f32.mrb[50].mxu0  ;;  %v11098_v49 = vpop.f32.mrb[47].mxu1 }
 0x1a7   : > { %v2218_v9 = vpop.f32.mrb[51].mxu0  ;;  %8369 = vmatmul.mubr.f32.gmra.mrb[154].mxu0 %v10986_v50  ;;  %8450 = vmatmul.mubr.f32.vlgmr.msra.gmra.mrb[96].mxu1 %v2216_v46  ;;  %14541 = vst [vmem:[#allocation20_spill] sm:$0xff] %v11098_v49 }
 0x1a8   : > { %8371 = vmatprep.mubr.f32.mxu0 %v10992_v8 }
 0x1a9   : > { %v11102_v6 = vpop.f32.mrb[48].mxu1 }
 0x1aa   : > { %v2222_v23 = vpop.f32.mrb[52].mxu0  ;;  %v11104_v18 = vpop.f32.mrb[49].mxu1 }
 0x1ab   : > { %v2224_v62 = vpop.f32.mrb[53].mxu0  ;;  %8372 = vmatmul.mubr.f32.gmra.mrb[156].mxu0 %v10998_v43  ;;  %8452 = vmatprep.mubr.f32.mxu1 %v2222_v23 }
 0x1ac   : > { %8374 = vmatprep.mubr.f32.mxu0 %v11004_v22 }
 0x1ad   : > { %v11108_v8 = vpop.f32.mrb[50].mxu1 }
 0x1ae   : > { %v2228_v57 = vpop.f32.mrb[54].mxu0  ;;  %v11110_v58 = vpop.f32.mrb[51].mxu1 }
 0x1af   : > { %v2230_v50 = vpop.f32.mrb[55].mxu0  ;;  %8375 = vmatmul.mubr.f32.gmra.mrb[158].mxu0 %v11010_v53  ;;  %8453 = vmatmul.mubr.f32.gmra.mrb[98].mxu1 %v2228_v57 }
 0x1b0   : > { %8377 = vmatprep.mubr.f32.mxu0 %v10982_v26 }
 0x1b1   : > { %v2335_v22 = vpop.f32.mrb[52].mxu1 }
 0x1b2   : > { %v2234_v47 = vpop.f32.mrb[56].mxu0  ;;  %v11114_v35 = vpop.f32.mrb[53].mxu1 }
 0x1b3   : > { %v2236_v43 = vpop.f32.mrb[57].mxu0  ;;  %8378 = vmatmul.mubr.f32.gmra.mrb[160].mxu0 %v10988_v52  ;;  %8455 = vmatprep.mubr.f32.mxu1 %v2234_v47 }
 0x1b4   : > { %8380 = vmatprep.mubr.f32.mxu0 %v10994_v51 }
 0x1b5   : > { %v2341_v26 = vpop.f32.mrb[54].mxu1 }
 0x1b6   : > { %v2240_v46 = vpop.f32.mrb[58].mxu0  ;;  %v11118_v53 = vpop.f32.mrb[55].mxu1 }
 0x1b7   : > { %v2242_v23 = vpop.f32.mrb[59].mxu0  ;;  %8381 = vmatmul.mubr.f32.gmra.mrb[162].mxu0 %v11000_v5  ;;  %8456 = vmatmul.mubr.f32.gmra.mrb[100].mxu1 %v2240_v46 }
 0x1b8   : > { %8383 = vmatprep.mubr.f32.mxu0 %v11006_v11 }
 0x1b9   : > { %v2347_v52 = vpop.f32.mrb[56].mxu1 }
 0x1ba   : > { %v2246_v57 = vpop.f32.mrb[60].mxu0  ;;  %v11122_v51 = vpop.f32.mrb[57].mxu1 }
 0x1bb   : > { %v2248_v49 = vpop.f32.mrb[61].mxu0  ;;  %8384 = vmatmul.mubr.f32.gmra.mrb[164].mxu0 %v11013_v10  ;;  %8458 = vmatprep.mubr.f32.mxu1 %v2246_v57 }
 0x1bc   : > { %8386 = vmatprep.mubr.f32.mxu0 %v11023_v17 }
 0x1bd   : > { %v2353_v5 = vpop.f32.mrb[58].mxu1 }
 0x1be   : > { %v2252_v47 = vpop.f32.mrb[62].mxu0  ;;  %v11126_v11 = vpop.f32.mrb[59].mxu1 }
 0x1bf   : > { %v2254_v45 = vpop.f32.mrb[63].mxu0  ;;  %8387 = vmatmul.mubr.f32.gmra.mrb[166].mxu0 %v11033_v44  ;;  %8459 = vmatmul.mubr.f32.gmra.mrb[102].mxu1 %v2252_v47 }
 0x1c0   : > { %8389 = vmatprep.mubr.f32.mxu0 %v10984_v33  ;;  %8461 = vmatprep.mubr.f32.mxu1 %v2212_v27 }
 0x1c1   : > { %v2359_v17 = vpop.f32.mrb[60].mxu1 }
 0x1c2   : > { %v11128_v46 = vpop.f32.mrb[64].mxu0  ;;  %v11134_v57 = vpop.f32.mrb[61].mxu1 }
 0x1c3   : > { %8390 = vmatmul.mubr.f32.gmra.mrb[168].mxu0 %v10990_v1  ;;  %8462 = vmatmul.mubr.f32.gmra.mrb[104].mxu1 %v2218_v9  ;;  %v11131_v10 = vpop.f32.mrb[65].mxu0 }
 0x1c4   : > { %8392 = vmatprep.mubr.f32.mxu0 %v10996_v19  ;;  %8464 = vmatprep.mubr.f32.mxu1 %v2224_v62 }
 0x1c5   : > { %v2365_v1 = vpop.f32.mrb[62].mxu1 }
 0x1c6   : > { %v11136_v44 = vpop.f32.mrb[66].mxu0  ;;  %v11142_v27 = vpop.f32.mrb[63].mxu1 }
 0x1c7   : > { %8393 = vmatmul.mubr.f32.gmra.mrb[170].mxu0 %v11002_v24  ;;  %8465 = vmatmul.mubr.f32.gmra.mrb[106].mxu1 %v2230_v50  ;;  %v11139_v33 = vpop.f32.mrb[67].mxu0 }
 0x1c8   : > { %8395 = vmatprep.mubr.f32.mxu0 %v11008_v54  ;;  %8467 = vmatprep.mubr.f32.mxu1 %v2236_v43 }
 0x1c9   : > { %v11150_v24 = vpop.f32.mrb[64].mxu1 }
 0x1ca   : > { %v11144_v9 = vpop.f32.mrb[68].mxu0  ;;  %v11152_v62 = vpop.f32.mrb[65].mxu1 }
 0x1cb   : > { %8396 = vmatmul.mubr.f32.gmra.mrb[172].mxu0 %v11015_v56  ;;  %8468 = vmatmul.mubr.f32.gmra.mrb[108].mxu1 %v2242_v23  ;;  %v11147_v19 = vpop.f32.mrb[69].mxu0 }
 0x1cc   : > { %8398 = vmatprep.mubr.f32.mxu0 %v11025_v15  ;;  %8470 = vmatprep.mubr.f32.mxu1 %v2248_v49 }
 0x1cd   : > { %v11161_v56 = vpop.f32.mrb[66].mxu1 }
 0x1ce   : > { %v11154_v50 = vpop.f32.mrb[70].mxu0  ;;  %v11163_v43 = vpop.f32.mrb[67].mxu1 }
 0x1cf   : > { %8399 = vmatmul.mubr.f32.gmra.mrb[174].mxu0 %v11035_v28  ;;  %8471 = vmatmul.mubr.f32.gmra.mrb[110].mxu1 %v2254_v45  ;;  %v11157_v54 = vpop.f32.mrb[71].mxu0 }
 0x1d0   : > { %8401 = vmatprep.mubr.f32.mxu0 %v11017_v59  ;;  %8473 = vmatprep.mubr.f32.mxu1 %v11102_v6 }
 0x1d1   : > { %v11172_v28 = vpop.f32.mrb[68].mxu1 }
 0x1d2   : > { %v11165_v15 = vpop.f32.mrb[72].mxu0  ;;  %v11174_v59 = vpop.f32.mrb[69].mxu1 }
 0x1d3   : > { %8402 = vmatmul.mubr.f32.gmra.mrb[176].mxu0 %v11027_v14  ;;  %8474 = vmatmul.mubr.f32.gmra.mrb[112].mxu1 %v11108_v8  ;;  %v11169_v49 = vpop.f32.mrb[73].mxu0 }
 0x1d4   : > { %8404 = vmatprep.mubr.f32.mxu0 %v11037_v0  ;;  %8476 = vmatprep.mubr.f32.mxu1 %v2335_v22 }
 0x1d5   : > { %v11182_v14 = vpop.f32.mrb[70].mxu1 }
 0x1d6   : > { %v11176_v45 = vpop.f32.mrb[74].mxu0  ;;  %v11184_v8 = vpop.f32.mrb[71].mxu1 }
 0x1d7   : > { %8405 = vmatmul.mubr.f32.gmra.mrb[178].mxu0 %v11045_v42  ;;  %8477 = vmatmul.mubr.f32.gmra.mrb[114].mxu1 %v2341_v26  ;;  %v11179_v6 = vpop.f32.mrb[75].mxu0 }
 0x1d8   : > { %8407 = vmatprep.mubr.f32.mxu0 %v11054_v13  ;;  %8479 = vmatprep.mubr.f32.mxu1 %v2347_v52 }
 0x1d9   : > { %v11192_v42 = vpop.f32.mrb[72].mxu1 }
 0x1da   : > { %v11186_v0 = vpop.f32.mrb[76].mxu0  ;;  %v11194_v23 = vpop.f32.mrb[73].mxu1 }
 0x1db   : > { %8408 = vmatmul.mubr.f32.gmra.mrb[180].mxu0 %v11063_v34  ;;  %8480 = vmatmul.mubr.f32.gmra.mrb[116].mxu1 %v2353_v5  ;;  %v11189_v22 = vpop.f32.mrb[77].mxu0 }
 0x1dc   : > { %8410 = vmatprep.mubr.f32.mxu0 %v11071_v61  ;;  %8482 = vmatprep.mubr.f32.mxu1 %v2359_v17 }
 0x1dd   : > { %v11203_v34 = vpop.f32.mrb[74].mxu1 }
 0x1de   : > { %v11196_v13 = vpop.f32.mrb[78].mxu0  ;;  %v11205_v52 = vpop.f32.mrb[75].mxu1 }
 0x1df   : > { %8411 = vmatmul.mubr.f32.gmra.mrb[182].mxu0 %v11079_v29  ;;  %8483 = vmatmul.mubr.f32.gmra.mrb[118].mxu1 %v2365_v1  ;;  %v11199_v26 = vpop.f32.mrb[79].mxu0 }
 0x1e0   : > { %8413 = vmatprep.mubr.f32.mxu0 %v11019_v20  ;;  %8485 = vmatprep.mubr.f32.mxu1 %v11104_v18 }
 0x1e1   : > { %v11215_v29 = vpop.f32.mrb[76].mxu1 }
 0x1e2   : > { %v11207_v61 = vpop.f32.mrb[80].mxu0  ;;  %v11217_v20 = vpop.f32.mrb[77].mxu1 }
 0x1e3   : > { %8414 = vmatmul.mubr.f32.gmra.mrb[184].mxu0 %v11029_v40  ;;  %8486 = vmatmul.mubr.f32.gmra.mrb[120].mxu1 %v11110_v58  ;;  %v11211_v47 = vpop.f32.mrb[81].mxu0 }
 0x1e4   : > { %8416 = vmatprep.mubr.f32.mxu0 %v11039_v31  ;;  %8488 = vmatprep.mubr.f32.mxu1 %v11114_v35 }
 0x1e5   : > { %v11227_v40 = vpop.f32.mrb[78].mxu1 }
 0x1e6   : > { %v11219_v18 = vpop.f32.mrb[82].mxu0  ;;  %v11229_v31 = vpop.f32.mrb[79].mxu1 }
 0x1e7   : > { %8417 = vmatmul.mubr.f32.gmra.mrb[186].mxu0 %v11047_v38  ;;  %8489 = vmatmul.mubr.f32.gmra.mrb[122].mxu1 %v11118_v53  ;;  %v11223_v5 = vpop.f32.mrb[83].mxu0 }
 0x1e8   : > { %8419 = vmatprep.mubr.f32.mxu0 %v11056_v60  ;;  %8491 = vmatprep.mubr.f32.mxu1 %v11122_v51 }
 0x1e9   : > { %v11239_v38 = vpop.f32.mrb[80].mxu1 }
 0x1ea   : > { %v11231_v58 = vpop.f32.mrb[84].mxu0  ;;  %v11241_v60 = vpop.f32.mrb[81].mxu1 }
 0x1eb   : > { %8420 = vmatmul.mubr.f32.gmra.mrb[188].mxu0 %v11065_v4  ;;  %8492 = vmatmul.mubr.f32.gmra.mrb[124].mxu1 %v11126_v11  ;;  %v11235_v35 = vpop.f32.mrb[85].mxu0 }
 0x1ec   : > { %8422 = vmatprep.mubr.f32.mxu0 %v11073_v36  ;;  %8494 = vmatprep.mubr.f32.mxu1 %v11134_v57 }
 0x1ed   : > { %v11251_v4 = vpop.f32.mrb[82].mxu1 }
 0x1ee   : > { %v11243_v53 = vpop.f32.mrb[86].mxu0  ;;  %v11253_v36 = vpop.f32.mrb[83].mxu1 }
 0x1ef   : > { %8423 = vmatmul.mubr.f32.gmra.mrb[190].mxu0 %v11081_v63  ;;  %8495 = vmatmul.mubr.f32.gmra.mrb[126].mxu1 %v11142_v27  ;;  %v11247_v51 = vpop.f32.mrb[87].mxu0 }
 0x1f0   : > { %8425 = vmatprep.mubr.f32.mxu0 %v11041_v32  ;;  %8497 = vmatprep.mubr.f32.mxu1 %v11128_v46 }
 0x1f1   : > { %v11263_v63 = vpop.f32.mrb[84].mxu1 }
 0x1f2   : > { %v11255_v11 = vpop.f32.mrb[88].mxu0  ;;  %v11265_v32 = vpop.f32.mrb[85].mxu1 }
 0x1f3   : > { %8426 = vmatmul.mubr.f32.gmra.mrb[192].mxu0 %v11050_v30  ;;  %8498 = vmatmul.mubr.f32.gmra.mrb[128].mxu1 %v11136_v44  ;;  %v11259_v17 = vpop.f32.mrb[89].mxu0 }
 0x1f4   : > { %8428 = vmatprep.mubr.f32.mxu0 %v11059_v2  ;;  %8500 = vmatprep.mubr.f32.mxu1 %v11144_v9 }
 0x1f5   : > { %v11275_v30 = vpop.f32.mrb[86].mxu1 }
 0x1f6   : > { %v11267_v46 = vpop.f32.mrb[90].mxu0  ;;  %v11277_v2 = vpop.f32.mrb[87].mxu1 }
 0x1f7   : > { %8429 = vmatmul.mubr.f32.gmra.mrb[194].mxu0 %v11067_v16  ;;  %8501 = vmatmul.mubr.f32.gmra.mrb[130].mxu1 %v11154_v50  ;;  %v11271_v57 = vpop.f32.mrb[91].mxu0 }
 0x1f8   : > { %8431 = vmatprep.mubr.f32.mxu0 %v11075_v25  ;;  %8503 = vmatprep.mubr.f32.mxu1 %v11165_v15 }
 0x1f9   : > { %v11287_v16 = vpop.f32.mrb[88].mxu1 }
 0x1fa   : > { %v11279_v44 = vpop.f32.mrb[92].mxu0  ;;  %v11289_v25 = vpop.f32.mrb[89].mxu1 }
 0x1fb   : > { %8432 = vmatmul.mubr.f32.gmra.mrb[196].mxu0 %v11084_v48  ;;  %8504 = vmatmul.mubr.f32.gmra.mrb[132].mxu1 %v11176_v45  ;;  %v11283_v1 = vpop.f32.mrb[93].mxu0 }
 0x1fc   : > { %8434 = vmatprep.mubr.f32.mxu0 %v11090_v21  ;;  %8506 = vmatprep.mubr.f32.mxu1 %v11186_v0 }
 0x1fd   : > { %v11299_v48 = vpop.f32.mrb[90].mxu1 }
 0x1fe   : > { %v11291_v27 = vpop.f32.mrb[94].mxu0  ;;  %v11301_v21 = vpop.f32.mrb[91].mxu1 }
 0x1ff   : > { %8435 = vmatmul.mubr.f32.gmra.mrb[198].mxu0 %v11096_v41  ;;  %8507 = vmatmul.mubr.f32.gmra.mrb[134].mxu1 %v11196_v13  ;;  %v11295_v9 = vpop.f32.mrb[95].mxu0 }
 0x200   : > { %8437 = vmatprep.mubr.f32.mxu0 %v11043_v3  ;;  %8509 = vmatprep.mubr.f32.mxu1 %v11131_v10 }
 0x201   : > { %v11311_v41 = vpop.f32.mrb[92].mxu1 }
 0x202   : > { %v11303_v50 = vpop.f32.mrb[96].mxu0  ;;  %v11313_v3 = vpop.f32.mrb[93].mxu1 }
 0x203   : > { %8438 = vmatmul.mubr.f32.gmra.mrb[200].mxu0 %v11052_v39  ;;  %8510 = vmatmul.mubr.f32.gmra.mrb[136].mxu1 %v11139_v33  ;;  %v11307_v15 = vpop.f32.mrb[97].mxu0 }
 0x204   : > { %14542 = vst [vmem:[#allocation21_spill] sm:$0xff] %v11307_v15  ;;  %8440 = vmatprep.mubr.f32.mxu0 %v11061_v7  ;;  %8512 = vmatprep.mubr.f32.mxu1 %v11147_v19 }
 0x205   : > { %v11323_v39 = vpop.f32.mrb[94].mxu1 }
 0x206   : > { %v11315_v10 = vpop.f32.mrb[98].mxu0  ;;  %v11325_v7 = vpop.f32.mrb[95].mxu1 }
 0x207   : > { %8441 = vmatmul.mubr.f32.gmra.mrb[202].mxu0 %v11069_v12  ;;  %8513 = vmatmul.mubr.f32.gmra.mrb[138].mxu1 %v11157_v54  ;;  %v11319_v45 = vpop.f32.mrb[99].mxu0  ;;  %v14546_v12 = vld [vmem:[#allocation19_spill] sm:$0xff] }
 0x208   : > { %14543 = vst [vmem:[#allocation30_spill] sm:$0xff] %v11319_v45  ;;  %8443 = vmatprep.mubr.f32.mxu0 %v11077_v55  ;;  %8515 = vmatprep.mubr.f32.mxu1 %v11169_v49  ;;  %v14548_v55 = vld [vmem:[#allocation20_spill] sm:$0xff] }
 0x20a   : > { %v11327_v33 = vpop.f32.mrb[100].mxu0 }
 0x20b   : > { %14544 = vst [vmem:[#allocation31_spill] sm:$0xff] %v11327_v33  ;;  %8444 = vmatmul.mubr.f32.gmra.mrb[204].mxu0 %v11086_v37  ;;  %8516 = vmatmul.mubr.f32.gmra.mrb[140].mxu1 %v11179_v6  ;;  %v11331_v19 = vpop.f32.mrb[101].mxu0 }
 0x20c   : > { %14545 = vst [vmem:[#allocation22_spill] sm:$0xff] %v11331_v19  ;;  %8446 = vmatprep.mubr.f32.mxu0 %v14546_v12  ;;  %8518 = vmatprep.mubr.f32.mxu1 %v11189_v22 }
 0x20e   : > { %v11335_v54 = vpop.f32.mrb[102].mxu0 }
 0x20f   : > { %14547 = vst [vmem:[#allocation23_spill] sm:$0xff] %v11335_v54  ;;  %8447 = vmatmul.mubr.f32.gmra.mrb[206].mxu0 %v14548_v55  ;;  %8519 = vmatmul.mubr.f32.gmra.mrb[142].mxu1 %v11199_v26  ;;  %v11339_v49 = vpop.f32.mrb[103].mxu0 }
 0x210   : > { %14549 = vst [vmem:[#allocation35_spill] sm:$0xff] %v11339_v49  ;;  %8521 = vmatprep.mubr.f32.mxu1 %v11150_v24 }
 0x212   : > { %v11342_v0 = vpop.f32.mrb[104].mxu0 }
 0x213   : > { %14550 = vst [vmem:[#allocation34_spill] sm:$0xff] %v11342_v0  ;;  %8522 = vmatmul.mubr.f32.gmra.mrb[144].mxu1 %v11161_v56  ;;  %v11345_v37 = vpop.f32.mrb[105].mxu0 }
 0x214   : > { %14551 = vst [vmem:[#allocation37_spill] sm:$0xff] %v11345_v37  ;;  %8524 = vmatprep.mubr.f32.mxu1 %v11172_v28 }
 0x216   : > { %v11348_v6 = vpop.f32.mrb[106].mxu0 }
 0x217   : > { %14552 = vst [vmem:[#allocation36_spill] sm:$0xff] %v11348_v6  ;;  %8525 = vmatmul.mubr.f32.gmra.mrb[146].mxu1 %v11182_v14  ;;  %v11351_v22 = vpop.f32.mrb[107].mxu0 }
 0x218   : > { %14553 = vst [vmem:[#allocation39_spill] sm:$0xff] %v11351_v22  ;;  %8527 = vmatprep.mubr.f32.mxu1 %v11192_v42 }
 0x21a   : > { %v11354_v13 = vpop.f32.mrb[108].mxu0 }
 0x21b   : > { %14554 = vst [vmem:[#allocation38_spill] sm:$0xff] %v11354_v13  ;;  %8528 = vmatmul.mubr.f32.gmra.mrb[148].mxu1 %v11203_v34  ;;  %v11357_v24 = vpop.f32.mrb[109].mxu0 }
 0x21c   : > { %14555 = vst [vmem:[#allocation48_spill] sm:$0xff] %v11357_v24  ;;  %8530 = vmatprep.mubr.f32.mxu1 %v11215_v29 }
 0x21e   : > { %v11360_v56 = vpop.f32.mrb[110].mxu0 }
 0x21f   : > { %14556 = vst [vmem:[#allocation41_spill] sm:$0xff] %v11360_v56  ;;  %8531 = vmatmul.mubr.f32.gmra.mrb[150].mxu1 %v11227_v40  ;;  %v11363_v28 = vpop.f32.mrb[111].mxu0 }
 0x220   : > { %14557 = vst [vmem:[#allocation40_spill] sm:$0xff] %v11363_v28  ;;  %8533 = vmatprep.mubr.f32.mxu1 %v11152_v62 }
 0x222   : > { %v8307_v14 = vpop.f32.mrb[112].mxu0 }
 0x223   : > { %4874 = vst.msk [vmem:[#allocation5 + $0x8] sm:$0xff] %vm4872_vm1, %v8307_v14  ;;  %v3833_v42 = vpop.f32.mrb[113].mxu0  ;;  %8534 = vmatmul.mubr.f32.gmra.mrb[152].mxu1 %v11163_v43 }
 0x224   : > { %4873 = vst.msk [vmem:[#allocation5] sm:$0xff] %vm4872_vm1, %v3833_v42  ;;  %8536 = vmatprep.mubr.f32.mxu1 %v11174_v59 }
 0x226   : > { %v8310_v26 = vpop.f32.mrb[114].mxu0 }
 0x227   : > { %4876 = vst.msk [vmem:[#allocation5 + $0x18] sm:$0xff] %vm4872_vm1, %v8310_v26  ;;  %v3843_v34 = vpop.f32.mrb[115].mxu0  ;;  %8537 = vmatmul.mubr.f32.gmra.mrb[154].mxu1 %v11184_v8 }
 0x228   : > { %4875 = vst.msk [vmem:[#allocation5 + $0x10] sm:$0xff] %vm4872_vm1, %v3843_v34  ;;  %8539 = vmatprep.mubr.f32.mxu1 %v11194_v23 }
 0x22a   : > { %v8313_v62 = vpop.f32.mrb[116].mxu0 }
 0x22b   : > { %4878 = vst.msk [vmem:[#allocation5 + $0x28] sm:$0xff] %vm4872_vm1, %v8313_v62  ;;  %v3853_v29 = vpop.f32.mrb[117].mxu0  ;;  %8540 = vmatmul.mubr.f32.gmra.mrb[156].mxu1 %v11205_v52 }
 0x22c   : > { %4877 = vst.msk [vmem:[#allocation5 + $0x20] sm:$0xff] %vm4872_vm1, %v3853_v29  ;;  %8542 = vmatprep.mubr.f32.mxu1 %v11217_v20 }
 0x22f   : > { %8543 = vmatmul.mubr.f32.gmra.mrb[158].mxu1 %v11229_v31  ;;  %v11428_v14 = vld [vmem:[#allocation5 + $0x10] sm:$0xff] }
 0x230   : > { %8545 = vmatprep.mubr.f32.mxu1 %v11207_v61 }
 0x232   : > { %v8316_v43 = vpop.f32.mrb[118].mxu0 }
 0x233   : > { %4880 = vst.msk [vmem:[#allocation5 + $0x38] sm:$0xff] %vm4872_vm1, %v8316_v43  ;;  %v3863_v59 = vpop.f32.mrb[119].mxu0  ;;  %8546 = vmatmul.mubr.f32.gmra.mrb[160].mxu1 %v11219_v18  ;;  %v11441_v29 = vld [vmem:[#allocation5 + $0x20] sm:$0xff] }
 0x234   : > { %4879 = vst.msk [vmem:[#allocation5 + $0x30] sm:$0xff] %vm4872_vm1, %v3863_v59  ;;  %8548 = vmatprep.mubr.f32.mxu1 %v11231_v58 }
 0x236   : > { %v8319_v8 = vpop.f32.mrb[120].mxu0 }
 0x237   : > { %4882 = vst.msk [vmem:[#allocation5 + $0x48] sm:$0xff] %vm4872_vm1, %v8319_v8  ;;  %v3873_v23 = vpop.f32.mrb[121].mxu0  ;;  %8549 = vmatmul.mubr.f32.gmra.mrb[162].mxu1 %v11243_v53 }
 0x238   : > { %4881 = vst.msk [vmem:[#allocation5 + $0x40] sm:$0xff] %vm4872_vm1, %v3873_v23  ;;  %8551 = vmatprep.mubr.f32.mxu1 %v11255_v11  ;;  %v11402_v11 = vld [vmem:[#allocation5 + $0x8] sm:$0xff] }
 0x239   : > { %v11447_v43 = vmul.f32 %v11402_v11, %v11402_v11 }
 0x23a   : > { %v8322_v52 = vpop.f32.mrb[122].mxu0 }
 0x23b   : > { %4884 = vst.msk [vmem:[#allocation5 + $0x58] sm:$0xff] %vm4872_vm1, %v8322_v52  ;;  %v3883_v61 = vpop.f32.mrb[123].mxu0  ;;  %8552 = vmatmul.mubr.f32.gmra.mrb[164].mxu1 %v11267_v46  ;;  %14562 = vst [vmem:[#allocation16_spill] sm:$0xff] %v11447_v43  ;;  %v11463_v52 = vld [vmem:[#allocation5 + $0x38] sm:$0xff]  ;;  %v11527_v19 = vld [vmem:[#allocation5 + $0x30] sm:$0xff] }
 0x23c   : > { %4883 = vst.msk [vmem:[#allocation5 + $0x50] sm:$0xff] %vm4872_vm1, %v3883_v61  ;;  %8554 = vmatprep.mubr.f32.mxu1 %v11279_v44  ;;  %14566 = vst [vmem:[#allocation24_spill] sm:$0xff] %v11463_v52  ;;  %v11471_v61 = vmul.f32 %v11428_v14, %v11428_v14  ;;  %v11508_v37 = vmul.f32 %v11463_v52, %v11463_v52 }
 0x23d   : > { %14579 = vst [vmem:[#allocation33_spill] sm:$0xff] %v11527_v19 }
 0x23e   : > { %v8325_v20 = vpop.f32.mrb[124].mxu0  ;;  %v11400_v58 = vld [vmem:[#allocation5 + $0x48] sm:$0xff]  ;;  %14568 = vst [vmem:[#allocation53_spill] sm:$0xff] %v11471_v61  ;;  %14575 = vst [vmem:[#allocation44_spill] sm:$0xff] %v11508_v37 }
 0x23f   : > { %4886 = vst.msk [vmem:[#allocation5 + $0x68] sm:$0xff] %vm4872_vm1, %v8325_v20  ;;  %v3893_v18 = vpop.f32.mrb[125].mxu0  ;;  %8555 = vmatmul.mubr.f32.gmra.mrb[166].mxu1 %v11291_v27  ;;  %v11410_v44 = vld [vmem:[#allocation5 + $0x40] sm:$0xff] }
 0x240   : > { %4885 = vst.msk [vmem:[#allocation5 + $0x60] sm:$0xff] %vm4872_vm1, %v3893_v18  ;;  %8557 = vmatprep.mubr.f32.mxu1 %v11211_v47  ;;  %v11408_v47 = vmul.f32 %v11400_v58, %v11402_v11  ;;  %v11439_v62 = vmul.f32 %v11410_v44, %v11410_v44 }
 0x242   : > { %v8328_v40 = vpop.f32.mrb[126].mxu0  ;;  %14558 = vst [vmem:[#allocation51_spill] sm:$0xff] %v11408_v47  ;;  %v11418_v27 = vld [vmem:[#allocation5 + $0x58] sm:$0xff]  ;;  %v5172_v34 = vmul.f32 2.0, %v11408_v47  ;;  %14561 = vst [vmem:[#allocation15_spill] sm:$0xff] %v11439_v62 }
 0x243   : > { %4888 = vst.msk [vmem:[#allocation5 + $0x78] sm:$0xff] %vm4872_vm1, %v8328_v40  ;;  %v3903_v31 = vpop.f32.mrb[127].mxu0  ;;  %8558 = vmatmul.mubr.f32.gmra.mrb[168].mxu1 %v11223_v5  ;;  %v11414_v5 = vld [vmem:[#allocation5] sm:$0xff]  ;;  %v11430_v42 = vld [vmem:[#allocation5 + $0x50] sm:$0xff] }
 0x244   : > { %4887 = vst.msk [vmem:[#allocation5 + $0x70] sm:$0xff] %vm4872_vm1, %v3903_v31  ;;  %8560 = vmatprep.mubr.f32.mxu1 %v11235_v35  ;;  %v11416_v35 = vld [vmem:[#allocation5 + $0x18] sm:$0xff]  ;;  %v11426_v55 = vmul.f32 %v11410_v44, %v11414_v5  ;;  %v11451_v59 = vmul.f32 %v11414_v5, %v11414_v5  ;;  %v11475_v20 = vmul.f32 %v11430_v42, %v11428_v14  ;;  %v11498_v24 = vadd.f32 0.0001, %v5172_v34 }
 0x245   : > { %v11459_v8 = vmul.f32 %v11418_v27, %v11416_v35 }
 0x246   : > { %v8331_v53 = vpop.f32.mrb[128].mxu0  ;;  %14560 = vst [vmem:[#allocation42_spill] sm:$0xff] %v11426_v55  ;;  %14563 = vst [vmem:[#allocation47_spill] sm:$0xff] %v11451_v59  ;;  %v11461_v23 = vld [vmem:[#allocation5 + $0x68] sm:$0xff] }
 0x247   : > { %4890 = vst.msk [vmem:[#allocation5 + $0x88] sm:$0xff] %vm4872_vm1, %v8331_v53  ;;  %v3913_v46 = vpop.f32.mrb[129].mxu0  ;;  %8561 = vmatmul.mubr.f32.gmra.mrb[170].mxu1 %v11247_v51  ;;  %v11422_v51 = vmul.f32 %v11400_v58, %v11400_v58  ;;  %14565 = vst [vmem:[#allocation49_spill] sm:$0xff] %v11459_v8  ;;  %v11481_v40 = vld [vmem:[#allocation5 + $0x60] sm:$0xff]  ;;  %v11517_v34 = vmul.f32 %v11461_v23, %v11461_v23 }
 0x248   : > { %4889 = vst.msk [vmem:[#allocation5 + $0x80] sm:$0xff] %vm4872_vm1, %v3913_v46  ;;  %8563 = vmatprep.mubr.f32.mxu1 %v11259_v17  ;;  %v11432_v17 = vld [vmem:[#allocation5 + $0x28] sm:$0xff]  ;;  %14569 = vst [vmem:[#allocation54_spill] sm:$0xff] %v11475_v20  ;;  %v5171_v46 = vmul.f32 2.0, %v11426_v55  ;;  %v5211_v55 = vadd.f32 %v11439_v62, %v11451_v59 }
 0x249   : > { %14559 = vst [vmem:[#allocation26_spill] sm:$0xff] %v11422_v51  ;;  %v11479_v18 = vmul.f32 %v11432_v17, %v11432_v17  ;;  %v5212_v53 = vadd.f32 %v11422_v51, %v11447_v43  ;;  %14573 = vst [vmem:[#allocation28_spill] sm:$0xff] %v11498_v24  ;;  %v11504_v22 = vmul.f32 %v11461_v23, %v11432_v17 }
 0x24a   : > { %v8334_v12 = vpop.f32.mrb[130].mxu0  ;;  %v11494_v47 = vld [vmem:[#allocation5 + $0x78] sm:$0xff]  ;;  %14576 = vst [vmem:[#allocation45_spill] sm:$0xff] %v11517_v34  ;;  %v11525_v24 = vmul.f32 %v11481_v40, %v11441_v29  ;;  %v11542_v13 = vadd.f32 0.0001, %v5171_v46 }
 0x24b   : > { %4892 = vst.msk [vmem:[#allocation5 + $0x98] sm:$0xff] %vm4872_vm1, %v8334_v12  ;;  %v3923_v26 = vpop.f32.mrb[131].mxu0  ;;  %8564 = vmatmul.mubr.f32.gmra.mrb[172].mxu1 %v11271_v57  ;;  %v11455_v57 = vmul.f32 %v11416_v35, %v11416_v35  ;;  %14570 = vst [vmem:[#allocation56_spill] sm:$0xff] %v11479_v18  ;;  %v11488_v12 = vmul.f32 %v11430_v42, %v11430_v42  ;;  %v11510_v49 = vld [vmem:[#allocation5 + $0x70] sm:$0xff]  ;;  %v11538_v45 = vmul.f32 %v11494_v47, %v11463_v52 }
 0x24c   : > { %4891 = vst.msk [vmem:[#allocation5 + $0x90] sm:$0xff] %vm4872_vm1, %v3923_v26  ;;  %8566 = vmatprep.mubr.f32.mxu1 %v11283_v1  ;;  %v11467_v1 = vmul.f32 %v11418_v27, %v11418_v27  ;;  %v11492_v26 = vmul.f32 %v11441_v29, %v11441_v29  ;;  %14574 = vst [vmem:[#allocation43_spill] sm:$0xff] %v11504_v22  ;;  %v11540_v56 = vadd.f32 0.0001, %v5212_v53  ;;  %v11552_v54 = vadd.f32 0.0001, %v5211_v55 }
 0x24d   : > { %14564 = vst [vmem:[#allocation46_spill] sm:$0xff] %v11455_v57  ;;  %14571 = vst [vmem:[#allocation27_spill] sm:$0xff] %v11488_v12  ;;  %v5213_v6 = vadd.f32 %v11488_v12, %v11471_v61  ;;  %v11548_v0 = vmul.f32 %v11510_v49, %v11527_v19  ;;  %v5176_v33 = vmul.f32 2.0, %v11504_v22  ;;  %v11557_v53 = vmul.f32 %v11527_v19, %v11527_v19 }
 0x24e   : > { %14567 = vst [vmem:[#allocation52_spill] sm:$0xff] %v11467_v1  ;;  %v8337_v31 = vpop.f32.mrb[132].mxu0  ;;  %14572 = vst [vmem:[#allocation55_spill] sm:$0xff] %v11492_v26  ;;  %v11561_v46 = vmul.f32 %v11510_v49, %v11510_v49  ;;  %v5175_v55 = vmul.f32 2.0, %v11525_v24 }
 0x24f   : > { %4894 = vst.msk [vmem:[#allocation5 + $0xa8] sm:$0xff] %vm4872_vm1, %v8337_v31  ;;  %v3933_v28 = vpop.f32.mrb[133].mxu0  ;;  %8567 = vmatmul.mubr.f32.gmra.mrb[174].mxu1 %v11295_v9  ;;  %v5174_v9 = vmul.f32 2.0, %v11459_v8  ;;  %v11521_v31 = vmul.f32 %v11481_v40, %v11481_v40  ;;  %14578 = vst [vmem:[#allocation50_spill] sm:$0xff] %v11525_v24  ;;  %v11534_v8 = vmul.f32 %v11494_v47, %v11494_v47  ;;  %v5177_v52 = vmul.f32 2.0, %v11548_v0 }
 0x250   : > { %4893 = vst.msk [vmem:[#allocation5 + $0xa0] sm:$0xff] %vm4872_vm1, %v3933_v28  ;;  %8569 = vmatprep.mubr.f32.mxu1 %v11239_v38  ;;  %v5214_v28 = vadd.f32 %v11467_v1, %v11455_v57  ;;  %v5173_v38 = vmul.f32 2.0, %v11475_v20  ;;  %14581 = vst [vmem:[#allocation32_spill] sm:$0xff] %v11538_v45 }
 0x251   : > { %14577 = vst [vmem:[#allocation25_spill] sm:$0xff] %v11521_v31  ;;  %14580 = vst [vmem:[#allocation29_spill] sm:$0xff] %v11534_v8  ;;  %v5215_v22 = vadd.f32 %v11521_v31, %v11492_v26 }
 0x252   : > { %v8340_v15 = vpop.f32.mrb[134].mxu0  ;;  %14582 = vst [vmem:[#allocation18_spill] sm:$0xff] %v11540_v56  ;;  %14583 = vst [vmem:[#allocation17_spill] sm:$0xff] %v11542_v13  ;;  %v11563_v13 = vld [vmem:[#allocation5 + $0x88] sm:$0xff]  ;;  %v11576_v56 = vadd.f32 0.0001, %v5214_v28 }
 0x253   : > { %14584 = vst [vmem:[#allocation19_spill] sm:$0xff] %v11548_v0  ;;  %4896 = vst.msk [vmem:[#allocation5 + $0xb8] sm:$0xff] %vm4872_vm1, %v8340_v15  ;;  %v3943_v20 = vpop.f32.mrb[135].mxu0  ;;  %8570 = vmatmul.mubr.f32.gmra.mrb[176].mxu1 %v11251_v4  ;;  %v11567_v15 = vadd.f32 0.0001, %v5174_v9  ;;  %v5216_v4 = vadd.f32 %v11517_v34, %v11479_v18  ;;  %v11588_v24 = vmul.f32 %v11563_v13, %v11563_v13 }
 0x254   : > { %14585 = vst [vmem:[#allocation20_spill] sm:$0xff] %v11552_v54  ;;  %14586 = vst [vmem:[#allocation57_spill] sm:$0xff] %v11557_v53  ;;  %8572 = vmatprep.mubr.f32.mxu1 %v11263_v63  ;;  %v11574_v54 = vld [vmem:[#allocation5 + $0x80] sm:$0xff]  ;;  %v11578_v19 = vadd.f32 0.0001, %v5173_v38  ;;  %v5218_v63 = vadd.f32 %v11534_v8, %v11508_v37  ;;  %v11592_v28 = vmul.f32 %v11563_v13, %v11400_v58  ;;  %v11594_v38 = vld [vmem:[#allocation5 + $0x98] sm:$0xff] }
 0x255   : > { %14587 = vst [vmem:[#allocation58_spill] sm:$0xff] %v11561_v46  ;;  %14588 = vst [vmem:[#allocation59_spill] sm:$0xff] %v11563_v13  ;;  %v11604_v0 = vmul.f32 %v11574_v54, %v11574_v54  ;;  %v11626_v37 = vmul.f32 %v11594_v38, %v11594_v38  ;;  %v11630_v26 = vmul.f32 %v11594_v38, %v11418_v27 }
 0x256   : > { %4895 = vst.msk [vmem:[#allocation5 + $0xb0] sm:$0xff] %vm4872_vm1, %v3943_v20  ;;  %14589 = vst [vmem:[#allocation60_spill] sm:$0xff] %v11567_v15  ;;  %v5178_v20 = vmul.f32 2.0, %v11538_v45  ;;  %v8343_v9 = vpop.f32.mrb[136].mxu0  ;;  %v11583_v15 = vadd.f32 0.0001, %v5213_v6  ;;  %v5217_v6 = vadd.f32 %v11561_v46, %v11557_v53 }
 0x257   : > { %14590 = vst [vmem:[#allocation61_spill] sm:$0xff] %v11574_v54  ;;  %14591 = vst [vmem:[#allocation62_spill] sm:$0xff] %v11576_v56  ;;  %v3953_v45 = vpop.f32.mrb[137].mxu0  ;;  %8573 = vmatmul.mubr.f32.gmra.mrb[178].mxu1 %v11275_v30  ;;  %v11610_v56 = vld [vmem:[#allocation5 + $0x90] sm:$0xff]  ;;  %v11614_v30 = vadd.f32 0.0001, %v5216_v4 }
 0x258   : > { %14592 = vst [vmem:[#allocation63_spill] sm:$0xff] %v11578_v19  ;;  %14593 = vst [vmem:[#allocation64_spill] sm:$0xff] %v11583_v15  ;;  %v11598_v19 = vadd.f32 0.0001, %v5176_v33  ;;  %v11608_v15 = vmul.f32 %v11574_v54, %v11410_v44  ;;  %8575 = vmatprep.mubr.f32.mxu1 %v11287_v16  ;;  %v11616_v33 = vadd.f32 0.0001, %v5175_v55  ;;  %v11639_v55 = vmul.f32 %v11610_v56, %v11430_v42 }
 0x259   : > { %14594 = vst [vmem:[#allocation65_spill] sm:$0xff] %v11588_v24  ;;  %14595 = vst [vmem:[#allocation66_spill] sm:$0xff] %v11592_v28  ;;  %v11622_v53 = vadd.f32 0.0001, %v5218_v63  ;;  %v11632_v16 = vadd.f32 0.0001, %v5177_v52 }
 0x25a   : > { %14596 = vst [vmem:[#allocation67_spill] sm:$0xff] %v11594_v38  ;;  %4898 = vst.msk [vmem:[#allocation5 + $0xc8] sm:$0xff] %vm4872_vm1, %v8343_v9  ;;  %v11618_v9 = vadd.f32 0.0001, %v5215_v22  ;;  %v5836_v4 = vmul.f32 2.0, %v11592_v28  ;;  %v5876_v22 = vadd.f32 %v11588_v24, %v11422_v51  ;;  %v5835_v52 = vmul.f32 2.0, %v11608_v15 }
 0x25b   : > { %14597 = vst [vmem:[#allocation68_spill] sm:$0xff] %v11598_v19  ;;  %14598 = vst [vmem:[#allocation69_spill] sm:$0xff] %v11604_v0  ;;  %v11620_v19 = vadd.f32 0.0001, %v5178_v20  ;;  %v11641_v20 = vld [vmem:[#allocation5 + $0xa8] sm:$0xff]  ;;  %8576 = vmatmul.mubr.f32.gmra.mrb[180].mxu1 %v11299_v48  ;;  %v11652_v28 = vmul.f32 %v11610_v56, %v11610_v56  ;;  %v11660_v48 = vmul.f32 %v11563_v13, %v11402_v11 }
 0x25c   : > { %14599 = vst [vmem:[#allocation70_spill] sm:$0xff] %v11608_v15  ;;  %4897 = vst.msk [vmem:[#allocation5 + $0xc0] sm:$0xff] %vm4872_vm1, %v3953_v45  ;;  %v8346_v45 = vpop.f32.mrb[138].mxu0  ;;  %8578 = vmatprep.mubr.f32.mxu1 %v11311_v41  ;;  %v11670_v15 = vadd.f32 %v11604_v0, %v11451_v59  ;;  %v5878_v41 = vadd.f32 %v11626_v37, %v11467_v1  ;;  %v11694_v13 = vadd.f32 0.0001, %v5835_v52 }
 0x25d   : > { %14600 = vst [vmem:[#allocation71_spill] sm:$0xff] %v11614_v30  ;;  %14601 = vst [vmem:[#allocation72_spill] sm:$0xff] %v11616_v33  ;;  %v3963_v63 = vpop.f32.mrb[139].mxu0  ;;  %v11654_v33 = vld [vmem:[#allocation5 + $0xa0] sm:$0xff]  ;;  %v11683_v30 = vadd.f32 0.0001, %v5836_v4  ;;  %v5877_v4 = vadd.f32 %v11652_v28, %v11488_v12 }
 0x25e   : > { %14602 = vst [vmem:[#allocation73_spill] sm:$0xff] %v11618_v9  ;;  %14603 = vst [vmem:[#allocation74_spill] sm:$0xff] %v11620_v19  ;;  %v11645_v19 = vadd.f32 0.0001, %v5217_v6  ;;  %v5412_v6 = vadd.f32 %v11588_v24, %v11447_v43  ;;  %v8349_v9 = vpop.f32.mrb[140].mxu0 }
 0x25f   : > { %14604 = vst [vmem:[#allocation75_spill] sm:$0xff] %v11622_v53  ;;  %14605 = vst [vmem:[#allocation76_spill] sm:$0xff] %v11626_v37  ;;  %v11681_v53 = vmul.f32 %v11641_v20, %v11461_v23  ;;  %v11685_v24 = vadd.f32 0.0001, %v5876_v22  ;;  %8579 = vmatmul.mubr.f32.gmra.mrb[182].mxu1 %v11323_v39  ;;  %v11702_v22 = vmul.f32 %v11654_v33, %v11654_v33  ;;  %v5372_v39 = vmul.f32 2.0, %v11660_v48 }
 0x260   : > { %14606 = vst [vmem:[#allocation77_spill] sm:$0xff] %v11630_v26  ;;  %14607 = vst [vmem:[#allocation78_spill] sm:$0xff] %v11632_v16  ;;  %v5875_v16 = vadd.f32 %v11604_v0, %v11439_v62  ;;  %v5837_v0 = vmul.f32 2.0, %v11639_v55  ;;  %8581 = vmatprep.mubr.f32.mxu1 %v11241_v60  ;;  %v11711_v52 = vadd.f32 0.0001, %v5412_v6 }
 0x261   : > { %14608 = vst [vmem:[#allocation79_spill] sm:$0xff] %v11639_v55  ;;  %14609 = vst [vmem:[#allocation80_spill] sm:$0xff] %v11641_v20 }
 0x262   : > { %4900 = vst.msk [vmem:[#allocation5 + $0xd8] sm:$0xff] %vm4872_vm1, %v8346_v45  ;;  %14610 = vst [vmem:[#allocation81_spill] sm:$0xff] %v11645_v19  ;;  %v11666_v45 = vmul.f32 %v11574_v54, %v11414_v5  ;;  %v5838_v19 = vmul.f32 2.0, %v11630_v26  ;;  %v11690_v26 = vmul.f32 %v11654_v33, %v11481_v40  ;;  %v3973_v54 = vpop.f32.mrb[141].mxu0 }
 0x263   : > { %14611 = vst [vmem:[#allocation82_spill] sm:$0xff] %v11652_v28  ;;  %4899 = vst.msk [vmem:[#allocation5 + $0xd0] sm:$0xff] %vm4872_vm1, %v3963_v63  ;;  %v11677_v63 = vmul.f32 %v11641_v20, %v11641_v20  ;;  %v11696_v20 = vadd.f32 0.0001, %v5875_v16  ;;  %v11715_v16 = vmul.f32 %v11594_v38, %v11416_v35  ;;  %8582 = vmatmul.mubr.f32.gmra.mrb[184].mxu1 %v11253_v36  ;;  %v11757_v36 = vadd.f32 0.0001, %v5372_v39 }
 0x264   : > { %14612 = vst [vmem:[#allocation83_spill] sm:$0xff] %v11660_v48  ;;  %14613 = vst [vmem:[#allocation84_spill] sm:$0xff] %v11666_v45  ;;  %v11719_v55 = vadd.f32 0.0001, %v5838_v19  ;;  %v11726_v48 = vadd.f32 0.0001, %v5837_v0  ;;  %v5879_v0 = vadd.f32 %v11702_v22, %v11521_v31  ;;  %8584 = vmatprep.mubr.f32.mxu1 %v11265_v32 }
 0x265   : > { %14614 = vst [vmem:[#allocation85_spill] sm:$0xff] %v11677_v63  ;;  %14615 = vst [vmem:[#allocation86_spill] sm:$0xff] %v11681_v53  ;;  %v5880_v60 = vadd.f32 %v11677_v63, %v11517_v34  ;;  %v5839_v6 = vmul.f32 2.0, %v11690_v26 }
 0x266   : > { %14616 = vst [vmem:[#allocation87_spill] sm:$0xff] %v11683_v30  ;;  %14617 = vst [vmem:[#allocation88_spill] sm:$0xff] %v11685_v24  ;;  %v11704_v30 = vld [vmem:[#allocation5 + $0xb8] sm:$0xff]  ;;  %v8352_v24 = vpop.f32.mrb[142].mxu0 }
 0x267   : > { %14618 = vst [vmem:[#allocation89_spill] sm:$0xff] %v11690_v26  ;;  %4902 = vst.msk [vmem:[#allocation5 + $0xe8] sm:$0xff] %vm4872_vm1, %v8349_v9  ;;  %v11708_v9 = vld [vmem:[#allocation5 + $0xb0] sm:$0xff]  ;;  %v11733_v38 = vmul.f32 %v11704_v30, %v11704_v30  ;;  %v11737_v19 = vmul.f32 %v11704_v30, %v11494_v47  ;;  %8585 = vmatmul.mubr.f32.gmra.mrb[186].mxu1 %v11277_v2 }
 0x268   : > { %14619 = vst [vmem:[#allocation90_spill] sm:$0xff] %v11694_v13  ;;  %14620 = vst [vmem:[#allocation91_spill] sm:$0xff] %v11696_v20  ;;  %v5414_v13 = vadd.f32 %v11626_v37, %v11455_v57  ;;  %v11721_v20 = vadd.f32 0.0001, %v5878_v41  ;;  %v3983_v41 = vpop.f32.mrb[143].mxu0  ;;  %v11749_v26 = vmul.f32 %v11708_v9, %v11708_v9  ;;  %8587 = vmatprep.mubr.f32.mxu1 %v11289_v25 }
 0x269   : > { %14621 = vst [vmem:[#allocation92_spill] sm:$0xff] %v11702_v22  ;;  %4901 = vst.msk [vmem:[#allocation5 + $0xe0] sm:$0xff] %vm4872_vm1, %v3973_v54  ;;  %v5840_v54 = vmul.f32 2.0, %v11681_v53  ;;  %v11753_v53 = vmul.f32 %v11708_v9, %v11510_v49  ;;  %v11765_v37 = vadd.f32 0.0001, %v5880_v60  ;;  %v11775_v32 = vld [vmem:[#allocation5 + $0xd8] sm:$0xff]  ;;  %v5882_v60 = vadd.f32 %v11733_v38, %v11534_v8 }
 0x26a   : > { %14622 = vst [vmem:[#allocation93_spill] sm:$0xff] %v11708_v9  ;;  %14623 = vst [vmem:[#allocation94_spill] sm:$0xff] %v11711_v52  ;;  %v11729_v52 = vld [vmem:[#allocation5 + $0xc8] sm:$0xff]  ;;  %v8355_v39 = vpop.f32.mrb[144].mxu0 }
 0x26b   : > { %14624 = vst [vmem:[#allocation95_spill] sm:$0xff] %v11715_v16  ;;  %14625 = vst [vmem:[#allocation96_spill] sm:$0xff] %v11719_v55  ;;  %v11741_v55 = vadd.f32 0.0001, %v5877_v4  ;;  %v11760_v4 = vadd.f32 0.0001, %v5414_v13  ;;  %v11769_v9 = vmul.f32 %v11729_v52, %v11729_v52  ;;  %8588 = vmatmul.mubr.f32.gmra.mrb[188].mxu1 %v11301_v21  ;;  %v11849_v21 = vmul.f32 %v11729_v52, %v11400_v58 }
 0x26c   : > { %14626 = vst [vmem:[#allocation97_spill] sm:$0xff] %v11721_v20  ;;  %14627 = vst [vmem:[#allocation98_spill] sm:$0xff] %v11726_v48  ;;  %v11745_v48 = vld [vmem:[#allocation5 + $0xc0] sm:$0xff]  ;;  %v11763_v20 = vadd.f32 0.0001, %v5840_v54  ;;  %v5842_v54 = vmul.f32 2.0, %v11737_v19  ;;  %8590 = vmatprep.mubr.f32.mxu1 %v11313_v3 }
 0x26d   : > { %14628 = vst [vmem:[#allocation99_spill] sm:$0xff] %v11733_v38  ;;  %14629 = vst [vmem:[#allocation100_spill] sm:$0xff] %v11737_v19  ;;  %v11781_v13 = vmul.f32 %v11745_v48, %v11414_v5  ;;  %v5841_v5 = vmul.f32 2.0, %v11753_v53  ;;  %v5612_v19 = vadd.f32 %v11769_v9, %v11447_v43 }
 0x26e   : > { %4904 = vst.msk [vmem:[#allocation5 + $0xf8] sm:$0xff] %vm4872_vm1, %v8352_v24  ;;  %14630 = vst [vmem:[#allocation101_spill] sm:$0xff] %v11741_v55  ;;  %v5374_v24 = vmul.f32 2.0, %v11715_v16  ;;  %v5371_v55 = vmul.f32 2.0, %v11666_v45  ;;  %v11786_v45 = vld [vmem:[#allocation5 + $0xd0] sm:$0xff]  ;;  %v5881_v16 = vadd.f32 %v11749_v26, %v11561_v46 }
 0x26f   : > { %14631 = vst [vmem:[#allocation102_spill] sm:$0xff] %v11749_v26  ;;  %14632 = vst [vmem:[#allocation103_spill] sm:$0xff] %v11753_v53  ;;  %v11821_v25 = vmul.f32 %v11786_v45, %v11428_v14  ;;  %8591 = vmatmul.mubr.f32.gmra.mrb[190].mxu1 %v11325_v7 }
 0x270   : > { %4903 = vst.msk [vmem:[#allocation5 + $0xf0] sm:$0xff] %vm4872_vm1, %v3983_v41  ;;  %14633 = vst [vmem:[#allocation104_spill] sm:$0xff] %v11757_v36  ;;  %v11773_v41 = vmul.f32 %v11729_v52, %v11402_v11  ;;  %v11777_v36 = vadd.f32 0.0001, %v5839_v6  ;;  %v3993_v11 = vpop.f32.mrb[145].mxu0  ;;  %v11794_v6 = vmul.f32 %v11745_v48, %v11745_v48  ;;  %8593 = vmatprep.mubr.f32.mxu1 %v11303_v50 }
 0x271   : > { %14634 = vst [vmem:[#allocation105_spill] sm:$0xff] %v11760_v4  ;;  %14635 = vst [vmem:[#allocation106_spill] sm:$0xff] %v11763_v20  ;;  %v11790_v4 = vadd.f32 0.0001, %v5879_v0  ;;  %v11805_v2 = vadd.f32 0.0001, %v5374_v24  ;;  %v11908_v50 = vmul.f32 %v11775_v32, %v11418_v27 }
 0x272   : > { %14636 = vst [vmem:[#allocation107_spill] sm:$0xff] %v11765_v37  ;;  %14637 = vst [vmem:[#allocation108_spill] sm:$0xff] %v11769_v9  ;;  %v11807_v0 = vadd.f32 0.0001, %v5371_v55  ;;  %v5572_v53 = vmul.f32 2.0, %v11773_v41  ;;  %v5571_v55 = vmul.f32 2.0, %v11781_v13 }
 0x273   : > { %14638 = vst [vmem:[#allocation109_spill] sm:$0xff] %v11773_v41  ;;  %14639 = vst [vmem:[#allocation110_spill] sm:$0xff] %v11777_v36  ;;  %v11810_v36 = vadd.f32 0.0001, %v11670_v15  ;;  %v11824_v24 = vadd.f32 0.0001, %v5842_v54  ;;  %v6044_v54 = vadd.f32 %v11769_v9, %v11422_v51  ;;  %8594 = vmatmul.mubr.f32.gmra.mrb[192].mxu1 %v11315_v10 }
 0x274   : > { %14640 = vst [vmem:[#allocation111_spill] sm:$0xff] %v11781_v13  ;;  %4906 = vst.msk [vmem:[#allocation5 + $0x108] sm:$0xff] %vm4872_vm1, %v8355_v39  ;;  %v11803_v39 = vmul.f32 %v11775_v32, %v11416_v35  ;;  %v8358_v35 = vpop.f32.mrb[146].mxu0  ;;  %v11826_v15 = vadd.f32 0.0001, %v5882_v60  ;;  %v11842_v60 = vld [vmem:[#allocation5 + $0xe8] sm:$0xff] }
 0x275   : > { %14641 = vst [vmem:[#allocation112_spill] sm:$0xff] %v11790_v4  ;;  %14642 = vst [vmem:[#allocation113_spill] sm:$0xff] %v11794_v6  ;;  %v11836_v4 = vadd.f32 0.0001, %v5841_v5  ;;  %v11838_v20 = vadd.f32 0.0001, %v5881_v16  ;;  %v11853_v5 = vmul.f32 %v11745_v48, %v11410_v44  ;;  %v6043_v16 = vadd.f32 %v11794_v6, %v11439_v62 }
 0x276   : > { %4905 = vst.msk [vmem:[#allocation5 + $0x100] sm:$0xff] %vm4872_vm1, %v3993_v11  ;;  %14643 = vst [vmem:[#allocation114_spill] sm:$0xff] %v11803_v39  ;;  %v11817_v11 = vmul.f32 %v11775_v32, %v11775_v32  ;;  %v11872_v37 = vmul.f32 %v11842_v60, %v11842_v60  ;;  %v14672_v27 = vld [vmem:[#allocation55_spill] sm:$0xff]  ;;  %v6006_v51 = vmul.f32 2.0, %v11908_v50 }
 0x277   : > { %14644 = vst [vmem:[#allocation115_spill] sm:$0xff] %v11805_v2  ;;  %14645 = vst [vmem:[#allocation116_spill] sm:$0xff] %v11807_v0  ;;  %v11830_v0 = vmul.f32 %v11786_v45, %v11786_v45  ;;  %v4003_v2 = vpop.f32.mrb[147].mxu0 }
 0x278   : > { %14646 = vst [vmem:[#allocation117_spill] sm:$0xff] %v11810_v36  ;;  %14647 = vst [vmem:[#allocation118_spill] sm:$0xff] %v11817_v11  ;;  %v5611_v36 = vadd.f32 %v11794_v6, %v11451_v59  ;;  %v5614_v3 = vadd.f32 %v11817_v11, %v11455_v57  ;;  %v8361_v58 = vpop.f32.mrb[148].mxu0  ;;  %v6004_v57 = vmul.f32 2.0, %v11849_v21 }
 0x279   : > { %14648 = vst [vmem:[#allocation119_spill] sm:$0xff] %v11821_v25  ;;  %14649 = vst [vmem:[#allocation120_spill] sm:$0xff] %v11824_v24  ;;  %v5573_v24 = vmul.f32 2.0, %v11821_v25  ;;  %v5613_v44 = vadd.f32 %v11830_v0, %v11471_v61 }
 0x27a   : > { %14650 = vst [vmem:[#allocation121_spill] sm:$0xff] %v11826_v15  ;;  %14651 = vst [vmem:[#allocation122_spill] sm:$0xff] %v11830_v0  ;;  %v11866_v15 = vadd.f32 0.0001, %v5571_v55  ;;  %v11882_v55 = vadd.f32 0.0001, %v6044_v54 }
 0x27b   : > { %4908 = vst.msk [vmem:[#allocation5 + $0x118] sm:$0xff] %vm4872_vm1, %v8358_v35  ;;  %14652 = vst [vmem:[#allocation123_spill] sm:$0xff] %v11836_v4  ;;  %v5574_v35 = vmul.f32 2.0, %v11803_v39  ;;  %v11857_v4 = vld [vmem:[#allocation5 + $0xe0] sm:$0xff]  ;;  %v11901_v54 = vadd.f32 0.0001, %v5614_v3 }
 0x27c   : > { %14653 = vst [vmem:[#allocation124_spill] sm:$0xff] %v11838_v20  ;;  %4907 = vst.msk [vmem:[#allocation5 + $0x110] sm:$0xff] %vm4872_vm1, %v4003_v2  ;;  %v11859_v20 = vadd.f32 0.0001, %v5572_v53  ;;  %v11861_v2 = vadd.f32 0.0001, %v5612_v19  ;;  %v11876_v53 = vmul.f32 %v11842_v60, %v11432_v17  ;;  %v11897_v7 = vmul.f32 %v11857_v4, %v11441_v29 }
 0x27d   : > { %14654 = vst [vmem:[#allocation125_spill] sm:$0xff] %v11849_v21  ;;  %14655 = vst [vmem:[#allocation126_spill] sm:$0xff] %v11853_v5  ;;  %v4013_v19 = vpop.f32.mrb[149].mxu0 }
 0x27e   : > { %14656 = vst [vmem:[#allocation127_spill] sm:$0xff] %v11859_v20  ;;  %14657 = vst [vmem:[#allocation128_spill] sm:$0xff] %v11861_v2  ;;  %v11880_v2 = vadd.f32 0.0001, %v5611_v36  ;;  %v11890_v20 = vadd.f32 0.0001, %v5574_v35 }
 0x27f   : > { %14658 = vst [vmem:[#allocation129_spill] sm:$0xff] %v11866_v15  ;;  %14659 = vst [vmem:[#allocation130_spill] sm:$0xff] %v11872_v37  ;;  %v11886_v15 = vmul.f32 %v11857_v4, %v11857_v4  ;;  %v11899_v36 = vld [vmem:[#allocation5 + $0xf8] sm:$0xff]  ;;  %v11910_v35 = vld [vmem:[#allocation5 + $0xf0] sm:$0xff]  ;;  %v5576_v21 = vmul.f32 2.0, %v11876_v53  ;;  %v5575_v10 = vmul.f32 2.0, %v11897_v7 }
 0x280   : > { %14660 = vst [vmem:[#allocation131_spill] sm:$0xff] %v11876_v53  ;;  %4910 = vst.msk [vmem:[#allocation5 + $0x128] sm:$0xff] %vm4872_vm1, %v8361_v58  ;;  %v11893_v58 = vadd.f32 0.0001, %v6043_v16  ;;  %v8364_v16 = vpop.f32.mrb[150].mxu0  ;;  %v14679_v53 = vld [vmem:[#allocation33_spill] sm:$0xff] }
 0x281   : > { %14661 = vst [vmem:[#allocation132_spill] sm:$0xff] %v11880_v2  ;;  %14662 = vst [vmem:[#allocation133_spill] sm:$0xff] %v11882_v55  ;;  %v11903_v55 = vadd.f32 0.0001, %v5573_v24  ;;  %v5616_v2 = vadd.f32 %v11872_v37, %v11479_v18  ;;  %v11919_v24 = vmul.f32 %v11786_v45, %v11430_v42  ;;  %v4023_v3 = vpop.f32.mrb[151].mxu0  ;;  %v14676_v42 = vld [vmem:[#allocation31_spill] sm:$0xff] }
 0x282   : > { %14663 = vst [vmem:[#allocation134_spill] sm:$0xff] %v11886_v15  ;;  %4909 = vst.msk [vmem:[#allocation5 + $0x120] sm:$0xff] %vm4872_vm1, %v4013_v19  ;;  %v6003_v19 = vmul.f32 2.0, %v11853_v5  ;;  %v14674_v5 = vld [vmem:[#allocation24_spill] sm:$0xff]  ;;  %8596 = vmatprep.mubr.f32.mxu1 %v14676_v42  ;;  %v8367_v42 = vpop.f32.mrb[152].mxu0 }
 0x283   : > { %14664 = vst [vmem:[#allocation135_spill] sm:$0xff] %v11890_v20  ;;  %14665 = vst [vmem:[#allocation136_spill] sm:$0xff] %v11893_v58  ;;  %v11912_v58 = vadd.f32 0.0001, %v5613_v44  ;;  %v6046_v44 = vadd.f32 %v11817_v11, %v11467_v1  ;;  %v11942_v20 = vmul.f32 %v11910_v35, %v11910_v35  ;;  %v11946_v1 = vmul.f32 %v11910_v35, %v14679_v53 }
 0x284   : > { %14666 = vst [vmem:[#allocation137_spill] sm:$0xff] %v11897_v7  ;;  %14667 = vst [vmem:[#allocation138_spill] sm:$0xff] %v11901_v54  ;;  %v5615_v54 = vadd.f32 %v11886_v15, %v14672_v27  ;;  %v11948_v62 = vadd.f32 0.0001, %v6003_v19  ;;  %v11959_v7 = vadd.f32 0.0001, %v5616_v2  ;;  %v11964_v19 = vmul.f32 %v11857_v4, %v11481_v40 }
 0x285   : > { %14668 = vst [vmem:[#allocation139_spill] sm:$0xff] %v11903_v55  ;;  %14669 = vst [vmem:[#allocation140_spill] sm:$0xff] %v11908_v50  ;;  %v11933_v55 = vmul.f32 %v11899_v36, %v14674_v5  ;;  %v6005_v25 = vmul.f32 2.0, %v11919_v24  ;;  %v14686_v50 = vld [vmem:[#allocation23_spill] sm:$0xff]  ;;  %v11977_v40 = vadd.f32 0.0001, %v5575_v10 }
 0x286   : > { %14670 = vst [vmem:[#allocation141_spill] sm:$0xff] %v11912_v58  ;;  %14671 = vst [vmem:[#allocation142_spill] sm:$0xff] %v11919_v24  ;;  %v11929_v58 = vmul.f32 %v11899_v36, %v11899_v36  ;;  %8597 = vmatmul.mubr.f32.gmra.mrb[194].mxu1 %v14686_v50  ;;  %v14690_v24 = vld [vmem:[#allocation34_spill] sm:$0xff]  ;;  %v8451_v10 = vpop.f32.mrb[96].mxu1 }
 0x287   : > { %4912 = vst.msk [vmem:[#allocation5 + $0x138] sm:$0xff] %vm4872_vm1, %v8364_v16  ;;  %14675 = vst [vmem:[#allocation24_spill] sm:$0xff] %v11933_v55  ;;  %v11937_v16 = vadd.f32 0.0001, %v6004_v57  ;;  %v11955_v57 = vmul.f32 %v11842_v60, %v11461_v23  ;;  %v11970_v23 = vadd.f32 0.0001, %v6046_v44  ;;  %8599 = vmatprep.mubr.f32.mxu1 %v14690_v24 }
 0x288   : > { %14673 = vst [vmem:[#allocation143_spill] sm:$0xff] %v11929_v58  ;;  %4911 = vst.msk [vmem:[#allocation5 + $0x130] sm:$0xff] %vm4872_vm1, %v4023_v3  ;;  %v6045_v3 = vadd.f32 %v11830_v0, %v11488_v12  ;;  %v11968_v12 = vadd.f32 0.0001, %v5615_v54  ;;  %v11984_v54 = vmul.f32 %v11899_v36, %v11494_v47  ;;  %v11986_v44 = vadd.f32 0.0001, %v6006_v51 }
 0x289   : > { %14677 = vst [vmem:[#allocation31_spill] sm:$0xff] %v11937_v16  ;;  %14678 = vst [vmem:[#allocation144_spill] sm:$0xff] %v11942_v20  ;;  %v11957_v16 = vadd.f32 0.0001, %v5576_v21  ;;  %v5578_v21 = vmul.f32 2.0, %v11933_v55  ;;  %v6007_v47 = vmul.f32 2.0, %v11964_v19  ;;  %v12002_v51 = vmul.f32 %v11910_v35, %v11510_v49 }
 0x28a   : > { %14680 = vst [vmem:[#allocation33_spill] sm:$0xff] %v11946_v1  ;;  %14681 = vst [vmem:[#allocation145_spill] sm:$0xff] %v11948_v62  ;;  %v4033_v62 = vpop.f32.mrb[153].mxu0  ;;  %v14702_v49 = vld [vmem:[#allocation38_spill] sm:$0xff] }
 0x28b   : > { %14682 = vst [vmem:[#allocation146_spill] sm:$0xff] %v11955_v57  ;;  %14683 = vst [vmem:[#allocation147_spill] sm:$0xff] %v11957_v16  ;;  %v14689_v16 = vld [vmem:[#allocation44_spill] sm:$0xff]  ;;  %v8370_v24 = vpop.f32.mrb[154].mxu0 }
 0x28c   : > { %14684 = vst [vmem:[#allocation148_spill] sm:$0xff] %v11959_v7  ;;  %14685 = vst [vmem:[#allocation149_spill] sm:$0xff] %v11964_v19  ;;  %v5618_v2 = vadd.f32 %v11929_v58, %v14689_v16  ;;  %v14692_v7 = vld [vmem:[#allocation57_spill] sm:$0xff]  ;;  %v6050_v19 = vadd.f32 %v11929_v58, %v11534_v8 }
 0x28d   : > { %4914 = vst.msk [vmem:[#allocation5 + $0x148] sm:$0xff] %vm4872_vm1, %v8367_v42  ;;  %14687 = vst [vmem:[#allocation23_spill] sm:$0xff] %v11968_v12  ;;  %v5577_v42 = vmul.f32 2.0, %v11946_v1  ;;  %v5617_v50 = vadd.f32 %v11942_v20, %v14692_v7  ;;  %v6008_v12 = vmul.f32 2.0, %v11955_v57  ;;  %v11995_v1 = vadd.f32 0.0001, %v6005_v25 }
 0x28e   : > { %14688 = vst [vmem:[#allocation150_spill] sm:$0xff] %v11970_v23  ;;  %4913 = vst.msk [vmem:[#allocation5 + $0x140] sm:$0xff] %vm4872_vm1, %v4033_v62  ;;  %v11988_v23 = vadd.f32 0.0001, %v6045_v3  ;;  %v11993_v62 = vmul.f32 %v11610_v56, %v11428_v14  ;;  %v4043_v3 = vpop.f32.mrb[155].mxu0  ;;  %v4313_v14 = vpop.f32.mrb[97].mxu1 }
 0x28f   : > { %14691 = vst [vmem:[#allocation34_spill] sm:$0xff] %v11977_v40  ;;  %14693 = vst [vmem:[#allocation151_spill] sm:$0xff] %v11984_v54  ;;  %v6048_v40 = vadd.f32 %v11872_v37, %v11517_v34  ;;  %v14699_v57 = vld [vmem:[#allocation36_spill] sm:$0xff]  ;;  %v12009_v25 = vadd.f32 0.0001, %v5618_v2  ;;  %v6049_v2 = vadd.f32 %v11942_v20, %v11561_v46 }
 0x290   : > { %14694 = vst [vmem:[#allocation152_spill] sm:$0xff] %v11986_v44  ;;  %14695 = vst [vmem:[#allocation153_spill] sm:$0xff] %v11988_v23  ;;  %8600 = vmatmul.mubr.f32.gmra.mrb[196].mxu1 %v14699_v57  ;;  %v12007_v23 = vadd.f32 0.0001, %v5578_v21  ;;  %v6010_v57 = vmul.f32 2.0, %v11984_v54  ;;  %v14723_v54 = vld [vmem:[#allocation61_spill] sm:$0xff] }
 0x291   : > { %14696 = vst [vmem:[#allocation154_spill] sm:$0xff] %v11993_v62  ;;  %14697 = vst [vmem:[#allocation155_spill] sm:$0xff] %v11995_v1  ;;  %v6047_v1 = vadd.f32 %v11886_v15, %v11521_v31  ;;  %8602 = vmatprep.mubr.f32.mxu1 %v14702_v49  ;;  %v12023_v21 = vadd.f32 0.0001, %v6008_v12  ;;  %v6009_v49 = vmul.f32 2.0, %v12002_v51  ;;  %v12042_v12 = vmul.f32 %v11704_v30, %v14674_v5 }
 0x292   : > { %14698 = vst [vmem:[#allocation156_spill] sm:$0xff] %v12002_v51  ;;  %4916 = vst.msk [vmem:[#allocation5 + $0x158] sm:$0xff] %vm4872_vm1, %v8370_v24  ;;  %v12018_v24 = vadd.f32 0.0001, %v5577_v42  ;;  %v12035_v42 = vadd.f32 0.0001, %v6048_v40 }
 0x293   : > { %4970 = vst.msk [vmem:[#allocation5 + $0x308] sm:$0xff] %vm4872_vm1, %v8451_v10  ;;  %14700 = vst [vmem:[#allocation36_spill] sm:$0xff] %v12007_v23  ;;  %v12020_v10 = vadd.f32 0.0001, %v5617_v50  ;;  %v12037_v50 = vadd.f32 0.0001, %v6007_v47  ;;  %v5413_v47 = vadd.f32 %v11652_v28, %v11471_v61 }
 0x294   : > { %14701 = vst [vmem:[#allocation157_spill] sm:$0xff] %v12009_v25  ;;  %4915 = vst.msk [vmem:[#allocation5 + $0x150] sm:$0xff] %vm4872_vm1, %v4043_v3  ;;  %v14706_v25 = vld [vmem:[#allocation80_spill] sm:$0xff]  ;;  %v12033_v3 = vmul.f32 %v11654_v33, %v11441_v29  ;;  %v12048_v29 = vadd.f32 0.0001, %v6050_v19  ;;  %v5373_v40 = vmul.f32 2.0, %v11993_v62 }
 0x295   : > { %4969 = vst.msk [vmem:[#allocation5 + $0x300] sm:$0xff] %vm4872_vm1, %v4313_v14  ;;  %14703 = vst [vmem:[#allocation38_spill] sm:$0xff] %v12018_v24  ;;  %v12029_v23 = vmul.f32 %v14706_v25, %v11432_v17  ;;  %v8373_v14 = vpop.f32.mrb[156].mxu0  ;;  %v14712_v17 = vld [vmem:[#allocation41_spill] sm:$0xff]  ;;  %v12046_v24 = vadd.f32 0.0001, %v6047_v1  ;;  %v5415_v1 = vadd.f32 %v11702_v22, %v14672_v27 }
 0x296   : > { %14704 = vst [vmem:[#allocation158_spill] sm:$0xff] %v12020_v10  ;;  %14705 = vst [vmem:[#allocation159_spill] sm:$0xff] %v12023_v21  ;;  %v4053_v21 = vpop.f32.mrb[157].mxu0  ;;  %8603 = vmatmul.mubr.f32.gmra.mrb[198].mxu1 %v14712_v17  ;;  %v12055_v5 = vadd.f32 0.0001, %v6010_v57  ;;  %v14717_v19 = vld [vmem:[#allocation93_spill] sm:$0xff] }
 0x297   : > { %14707 = vst [vmem:[#allocation80_spill] sm:$0xff] %v12029_v23  ;;  %14708 = vst [vmem:[#allocation160_spill] sm:$0xff] %v12033_v3  ;;  %v12063_v17 = vmul.f32 %v14717_v19, %v14679_v53  ;;  %v12065_v62 = vadd.f32 0.0001, %v6049_v2  ;;  %v14720_v51 = vld [vmem:[#allocation59_spill] sm:$0xff]  ;;  %v12078_v53 = vmul.f32 %v11745_v48, %v14723_v54  ;;  %v14728_v48 = vld [vmem:[#allocation22_spill] sm:$0xff] }
 0x298   : > { %14709 = vst [vmem:[#allocation161_spill] sm:$0xff] %v12035_v42  ;;  %14710 = vst [vmem:[#allocation162_spill] sm:$0xff] %v12037_v50  ;;  %v14715_v50 = vld [vmem:[#allocation21_spill] sm:$0xff]  ;;  %v12071_v57 = vmul.f32 %v11729_v52, %v14720_v51  ;;  %v5378_v42 = vmul.f32 2.0, %v12042_v12  ;;  %v12083_v52 = vadd.f32 0.0001, %v5373_v40 }
 0x299   : > { %14711 = vst [vmem:[#allocation163_spill] sm:$0xff] %v12042_v12  ;;  %4918 = vst.msk [vmem:[#allocation5 + $0x168] sm:$0xff] %vm4872_vm1, %v8373_v14  ;;  %8605 = vmatprep.mubr.f32.mxu1 %v14715_v50  ;;  %v5416_v14 = vadd.f32 %v11677_v63, %v11479_v18  ;;  %v8376_v50 = vpop.f32.mrb[158].mxu0  ;;  %v12085_v51 = vadd.f32 0.0001, %v5413_v47  ;;  %v5417_v12 = vadd.f32 %v11749_v26, %v14692_v7  ;;  %v14731_v40 = vld [vmem:[#allocation65_spill] sm:$0xff] }
 0x29a   : > { %14713 = vst [vmem:[#allocation41_spill] sm:$0xff] %v12046_v24  ;;  %14714 = vst [vmem:[#allocation164_spill] sm:$0xff] %v12048_v29  ;;  %v5376_v29 = vmul.f32 2.0, %v12029_v23  ;;  %v12073_v24 = vadd.f32 0.0001, %v6009_v49  ;;  %v4063_v2 = vpop.f32.mrb[159].mxu0  ;;  %v5418_v49 = vadd.f32 %v11733_v38, %v14689_v16  ;;  %v6404_v47 = vadd.f32 %v11769_v9, %v14731_v40 }
 0x29b   : > { %4917 = vst.msk [vmem:[#allocation5 + $0x160] sm:$0xff] %vm4872_vm1, %v4053_v21  ;;  %14716 = vst [vmem:[#allocation21_spill] sm:$0xff] %v12055_v5  ;;  %v5375_v21 = vmul.f32 2.0, %v12033_v3  ;;  %v8454_v5 = vpop.f32.mrb[98].mxu1  ;;  %v14725_v23 = vld [vmem:[#allocation30_spill] sm:$0xff] }
 0x29c   : > { %14718 = vst [vmem:[#allocation93_spill] sm:$0xff] %v12063_v17  ;;  %14719 = vst [vmem:[#allocation165_spill] sm:$0xff] %v12065_v62  ;;  %v4323_v3 = vpop.f32.mrb[99].mxu1  ;;  %8606 = vmatmul.mubr.f32.gmra.mrb[200].mxu1 %v14725_v23  ;;  %v12094_v54 = vadd.f32 0.0001, %v5416_v14  ;;  %v5377_v23 = vmul.f32 2.0, %v12063_v17 }
 0x29d   : > { %14721 = vst [vmem:[#allocation59_spill] sm:$0xff] %v12071_v57  ;;  %14722 = vst [vmem:[#allocation166_spill] sm:$0xff] %v12073_v24  ;;  %8608 = vmatprep.mubr.f32.mxu1 %v14728_v48  ;;  %v5532_v24 = vld [vmem:[#allocation5 + $0x308] sm:$0xff]  ;;  %v12106_v62 = vadd.f32 0.0001, %v5378_v42  ;;  %v6363_v14 = vmul.f32 2.0, %v12078_v53  ;;  %v12123_v42 = vmul.f32 %v11786_v45, %v11610_v56 }
 0x29e   : > { %14724 = vst [vmem:[#allocation61_spill] sm:$0xff] %v12078_v53  ;;  %4920 = vst.msk [vmem:[#allocation5 + $0x178] sm:$0xff] %vm4872_vm1, %v8376_v50  ;;  %v12101_v50 = vadd.f32 0.0001, %v5376_v29  ;;  %v14737_v29 = vld [vmem:[#allocation35_spill] sm:$0xff]  ;;  %v5564_v56 = vsub.f32 %v5532_v24, %v11773_v41  ;;  %v14825_v10 = vld [vmem:[#allocation50_spill] sm:$0xff] }
 0x29f   : > { %4972 = vst.msk [vmem:[#allocation5 + $0x318] sm:$0xff] %vm4872_vm1, %v8454_v5  ;;  %14726 = vst [vmem:[#allocation30_spill] sm:$0xff] %v12083_v52  ;;  %v12096_v5 = vadd.f32 0.0001, %v5415_v1  ;;  %v12103_v52 = vadd.f32 0.0001, %v5375_v21 }
 0x2a0   : > { %14727 = vst [vmem:[#allocation167_spill] sm:$0xff] %v12085_v51  ;;  %4919 = vst.msk [vmem:[#allocation5 + $0x170] sm:$0xff] %vm4872_vm1, %v4063_v2  ;;  %v6364_v51 = vmul.f32 2.0, %v12071_v57  ;;  %v8379_v2 = vpop.f32.mrb[160].mxu0  ;;  %v14735_v1 = vld [vmem:[#allocation67_spill] sm:$0xff]  ;;  %8609 = vmatmul.mubr.f32.gmra.mrb[202].mxu1 %v14737_v29  ;;  %v14740_v57 = vld [vmem:[#allocation69_spill] sm:$0xff]  ;;  %v12135_v29 = vmul.f32 %v11842_v60, %v14706_v25 }
 0x2a1   : > { %4971 = vst.msk [vmem:[#allocation5 + $0x310] sm:$0xff] %vm4872_vm1, %v4323_v3  ;;  %14729 = vst [vmem:[#allocation22_spill] sm:$0xff] %v12094_v54  ;;  %v5531_v3 = vld [vmem:[#allocation5 + $0x300] sm:$0xff]  ;;  %v12111_v48 = vmul.f32 %v11775_v32, %v14735_v1  ;;  %v4073_v17 = vpop.f32.mrb[161].mxu0  ;;  %v12115_v21 = vadd.f32 0.0001, %v5418_v49 }
 0x2a2   : > { %14730 = vst [vmem:[#allocation168_spill] sm:$0xff] %v12096_v5  ;;  %14732 = vst [vmem:[#allocation169_spill] sm:$0xff] %v12101_v50  ;;  %v6403_v50 = vadd.f32 %v11794_v6, %v14740_v57  ;;  %v14742_v32 = vld [vmem:[#allocation37_spill] sm:$0xff]  ;;  %v5100_v1 = vld [vmem:[#allocation5 + $0x148] sm:$0xff]  ;;  %v12129_v53 = vadd.f32 0.0001, %v6404_v47  ;;  %v5563_v45 = vsub.f32 %v5531_v3, %v11781_v13 }
 0x2a3   : > { %14733 = vst [vmem:[#allocation170_spill] sm:$0xff] %v12103_v52  ;;  %14734 = vst [vmem:[#allocation171_spill] sm:$0xff] %v12106_v62  ;;  %v12117_v52 = vadd.f32 0.0001, %v5417_v12  ;;  %8611 = vmatprep.mubr.f32.mxu1 %v14742_v32  ;;  %v14745_v49 = vld [vmem:[#allocation76_spill] sm:$0xff]  ;;  %v5099_v62 = vld [vmem:[#allocation5 + $0x140] sm:$0xff] }
 0x2a4   : > { %14736 = vst [vmem:[#allocation67_spill] sm:$0xff] %v12111_v48  ;;  %4922 = vst.msk [vmem:[#allocation5 + $0x188] sm:$0xff] %vm4872_vm1, %v8379_v2  ;;  %v12127_v2 = vadd.f32 0.0001, %v5377_v23  ;;  %v6406_v12 = vadd.f32 %v11817_v11, %v14745_v49  ;;  %v6405_v23 = vadd.f32 %v11830_v0, %v11652_v28  ;;  %v8382_v32 = vpop.f32.mrb[162].mxu0  ;;  %v8457_v47 = vpop.f32.mrb[100].mxu1 }
 0x2a5   : > { %14738 = vst [vmem:[#allocation35_spill] sm:$0xff] %v12115_v21  ;;  %14739 = vst [vmem:[#allocation172_spill] sm:$0xff] %v12117_v52  ;;  %v6366_v52 = vmul.f32 2.0, %v12111_v48  ;;  %v4083_v60 = vpop.f32.mrb[163].mxu0  ;;  %v4333_v25 = vpop.f32.mrb[101].mxu1  ;;  %v14749_v24 = vld [vmem:[#allocation39_spill] sm:$0xff] }
 0x2a6   : > { %14741 = vst [vmem:[#allocation173_spill] sm:$0xff] %v12123_v42  ;;  %4921 = vst.msk [vmem:[#allocation5 + $0x180] sm:$0xff] %vm4872_vm1, %v4073_v17  ;;  %v12139_v17 = vadd.f32 0.0001, %v6364_v51  ;;  %8612 = vmatmul.mubr.f32.gmra.mrb[204].mxu1 %v14749_v24  ;;  %v12150_v51 = vsub.f32 %v5100_v1, %v11447_v43  ;;  %v12152_v41 = vadd.f32 0.0001, %v6403_v50  ;;  %v6408_v1 = vadd.f32 %v11872_v37, %v11677_v63 }
 0x2a7   : > { %14743 = vst [vmem:[#allocation37_spill] sm:$0xff] %v12127_v2  ;;  %14744 = vst [vmem:[#allocation174_spill] sm:$0xff] %v12129_v53  ;;  %v5534_v53 = vld [vmem:[#allocation5 + $0x318] sm:$0xff]  ;;  %v12143_v2 = vadd.f32 0.0001, %v6363_v14  ;;  %v6365_v13 = vmul.f32 2.0, %v12123_v42 }
 0x2a8   : > { %14746 = vst [vmem:[#allocation175_spill] sm:$0xff] %v12135_v29  ;;  %14747 = vst [vmem:[#allocation176_spill] sm:$0xff] %v12139_v17  ;;  %v5533_v3 = vld [vmem:[#allocation5 + $0x310] sm:$0xff]  ;;  %v6368_v24 = vmul.f32 2.0, %v12135_v29  ;;  %v5102_v50 = vld [vmem:[#allocation5 + $0x158] sm:$0xff]  ;;  %v5588_v43 = vmul.f32 2.0, %v5564_v56  ;;  %v5566_v17 = vsub.f32 %v5534_v53, %v11803_v39 }
 0x2a9   : > { %14748 = vst [vmem:[#allocation177_spill] sm:$0xff] %v12143_v2  ;;  %4924 = vst.msk [vmem:[#allocation5 + $0x198] sm:$0xff] %vm4872_vm1, %v8382_v32  ;;  %v14752_v14 = vld [vmem:[#allocation48_spill] sm:$0xff]  ;;  %v12159_v32 = vsub.f32 %v5099_v62, %v11451_v59  ;;  %v5587_v2 = vmul.f32 2.0, %v5563_v45  ;;  %v12170_v62 = vadd.f32 0.0001, %v6366_v52  ;;  %v12178_v59 = vadd.f32 %v11886_v15, %v11702_v22 }
 0x2aa   : > { %4974 = vst.msk [vmem:[#allocation5 + $0x328] sm:$0xff] %vm4872_vm1, %v8457_v47  ;;  %14750 = vst [vmem:[#allocation39_spill] sm:$0xff] %v12150_v51  ;;  %8614 = vmatprep.mubr.f32.mxu1 %v14752_v14  ;;  %v12161_v47 = vadd.f32 0.0001, %v6406_v12  ;;  %v14756_v14 = vld [vmem:[#allocation119_spill] sm:$0xff]  ;;  %v12174_v12 = vmul.f32 %v11857_v4, %v11654_v33  ;;  %v14760_v53 = vld [vmem:[#allocation40_spill] sm:$0xff]  ;;  %v12189_v33 = vmul.f32 %v11899_v36, %v11704_v30 }
 0x2ab   : > { %14751 = vst [vmem:[#allocation178_spill] sm:$0xff] %v12152_v41  ;;  %4923 = vst.msk [vmem:[#allocation5 + $0x190] sm:$0xff] %vm4872_vm1, %v4083_v60  ;;  %v12167_v60 = vadd.f32 0.0001, %v6405_v23  ;;  %v5108_v41 = vld [vmem:[#allocation5 + $0x188] sm:$0xff]  ;;  %v5565_v42 = vsub.f32 %v5533_v3, %v14756_v14  ;;  %8615 = vmatmul.mubr.f32.gmra.mrb[206].mxu1 %v14760_v53  ;;  %v14761_v45 = vld [vmem:[#allocation26_spill] sm:$0xff]  ;;  %v12193_v4 = vadd.f32 %v11929_v58, %v11733_v38 }
 0x2ac   : > { %4973 = vst.msk [vmem:[#allocation5 + $0x320] sm:$0xff] %vm4872_vm1, %v4333_v25  ;;  %14753 = vst [vmem:[#allocation48_spill] sm:$0xff] %v12159_v32  ;;  %v8385_v25 = vpop.f32.mrb[164].mxu0  ;;  %v12183_v23 = vsub.f32 %v5108_v41, %v14761_v45  ;;  %v5101_v3 = vld [vmem:[#allocation5 + $0x150] sm:$0xff]  ;;  %v12185_v52 = vadd.f32 0.0001, %v6365_v13 }
 0x2ad   : > { %14754 = vst [vmem:[#allocation179_spill] sm:$0xff] %v12161_v47  ;;  %14755 = vst [vmem:[#allocation180_spill] sm:$0xff] %v12167_v60  ;;  %v4093_v56 = vpop.f32.mrb[165].mxu0  ;;  %v5107_v39 = vld [vmem:[#allocation5 + $0x180] sm:$0xff]  ;;  %v5104_v45 = vld [vmem:[#allocation5 + $0x168] sm:$0xff]  ;;  %v5590_v29 = vmul.f32 2.0, %v5566_v17 }
 0x2ae   : > { %14757 = vst [vmem:[#allocation181_spill] sm:$0xff] %v12170_v62  ;;  %14758 = vst [vmem:[#allocation182_spill] sm:$0xff] %v12174_v12  ;;  %v14768_v53 = vld [vmem:[#allocation46_spill] sm:$0xff]  ;;  %v12202_v62 = vadd.f32 0.0001, %v6368_v24  ;;  %v5228_v30 = vadd.f32 %v12183_v23, %v12150_v51  ;;  %v8388_v47 = vpop.f32.mrb[166].mxu0 }
 0x2af   : > { %14759 = vst [vmem:[#allocation183_spill] sm:$0xff] %v12178_v59  ;;  %4926 = vst.msk [vmem:[#allocation5 + $0x1a8] sm:$0xff] %vm4872_vm1, %v8385_v25  ;;  %v14766_v25 = vld [vmem:[#allocation15_spill] sm:$0xff]  ;;  %v12200_v41 = vsub.f32 %v5102_v50, %v14768_v53  ;;  %v12204_v13 = vadd.f32 0.0001, %v6408_v1  ;;  %v12211_v50 = vsub.f32 %v5101_v3, %v11471_v61  ;;  %v5589_v24 = vmul.f32 2.0, %v5565_v42 }
 0x2b0   : > { %14762 = vst [vmem:[#allocation40_spill] sm:$0xff] %v12183_v23  ;;  %14763 = vst [vmem:[#allocation184_spill] sm:$0xff] %v12185_v52  ;;  %v12197_v14 = vsub.f32 %v5107_v39, %v14766_v25  ;;  %v5103_v36 = vld [vmem:[#allocation5 + $0x160] sm:$0xff]  ;;  %v5596_v52 = vadd.f32 0.0009, %v5588_v43  ;;  %v5110_v25 = vld [vmem:[#allocation5 + $0x198] sm:$0xff]  ;;  %v12215_v1 = vmul.f32 %v11910_v35, %v14717_v19  ;;  %v12223_v3 = vsub.f32 %v5104_v45, %v11479_v18 }
 0x2b1   : > { %14764 = vst [vmem:[#allocation185_spill] sm:$0xff] %v12189_v33  ;;  %14765 = vst [vmem:[#allocation186_spill] sm:$0xff] %v12193_v4  ;;  %v5595_v60 = vadd.f32 0.0009, %v5587_v2  ;;  %v5536_v53 = vld [vmem:[#allocation5 + $0x328] sm:$0xff]  ;;  %v4103_v43 = vpop.f32.mrb[167].mxu0 }
 0x2b2   : > { %4925 = vst.msk [vmem:[#allocation5 + $0x1a0] sm:$0xff] %vm4872_vm1, %v4093_v56  ;;  %14767 = vst [vmem:[#allocation187_spill] sm:$0xff] %v12197_v14  ;;  %v8460_v56 = vpop.f32.mrb[102].mxu1  ;;  %v5227_v39 = vadd.f32 %v12197_v14, %v12159_v32  ;;  %v5236_v17 = vadd.f32 0.0009, %v5228_v30  ;;  %v5109_v48 = vld [vmem:[#allocation5 + $0x190] sm:$0xff]  ;;  %v12232_v30 = vsub.f32 %v5103_v36, %v14672_v27 }
 0x2b3   : > { %14769 = vst [vmem:[#allocation188_spill] sm:$0xff] %v12200_v41  ;;  %14770 = vst [vmem:[#allocation189_spill] sm:$0xff] %v12202_v62  ;;  %v4343_v2 = vpop.f32.mrb[103].mxu1  ;;  %v14774_v62 = vld [vmem:[#allocation52_spill] sm:$0xff]  ;;  %v14777_v42 = vld [vmem:[#allocation131_spill] sm:$0xff] }
 0x2b4   : > { %14771 = vst [vmem:[#allocation190_spill] sm:$0xff] %v12204_v13  ;;  %14772 = vst [vmem:[#allocation191_spill] sm:$0xff] %v12211_v50  ;;  %v12220_v13 = vsub.f32 %v5110_v25, %v14774_v62  ;;  %v5568_v61 = vsub.f32 %v5536_v53, %v14777_v42  ;;  %v5535_v4 = vld [vmem:[#allocation5 + $0x320] sm:$0xff]  ;;  %v5235_v35 = vadd.f32 0.0009, %v5227_v39  ;;  %v14781_v25 = vld [vmem:[#allocation137_spill] sm:$0xff] }
 0x2b5   : > { %14773 = vst [vmem:[#allocation192_spill] sm:$0xff] %v12215_v1  ;;  %4928 = vst.msk [vmem:[#allocation5 + $0x1b8] sm:$0xff] %vm4872_vm1, %v8388_v47  ;;  %v14778_v19 = vld [vmem:[#allocation27_spill] sm:$0xff]  ;;  %v5106_v62 = vld [vmem:[#allocation5 + $0x178] sm:$0xff]  ;;  %v8463_v39 = vpop.f32.mrb[104].mxu1 }
 0x2b6   : > { %4976 = vst.msk [vmem:[#allocation5 + $0x338] sm:$0xff] %vm4872_vm1, %v8460_v56  ;;  %14775 = vst [vmem:[#allocation193_spill] sm:$0xff] %v12220_v13  ;;  %v12229_v47 = vsub.f32 %v5109_v48, %v14778_v19  ;;  %v5567_v56 = vsub.f32 %v5535_v4, %v14781_v25  ;;  %v5230_v45 = vadd.f32 %v12220_v13, %v12200_v41  ;;  %v5105_v18 = vld [vmem:[#allocation5 + $0x170] sm:$0xff]  ;;  %v14782_v53 = vld [vmem:[#allocation127_spill] sm:$0xff]  ;;  %v5592_v1 = vmul.f32 2.0, %v5568_v61  ;;  %v4353_v59 = vpop.f32.mrb[105].mxu1 }
 0x2b7   : > { %14776 = vst [vmem:[#allocation194_spill] sm:$0xff] %v12223_v3  ;;  %4927 = vst.msk [vmem:[#allocation5 + $0x1b0] sm:$0xff] %vm4872_vm1, %v4103_v43  ;;  %v12238_v42 = vmul.f32 %v5596_v52, %v14782_v53  ;;  %v5598_v43 = vadd.f32 0.0009, %v5590_v29  ;;  %v14783_v33 = vld [vmem:[#allocation18_spill] sm:$0xff]  ;;  %v5112_v19 = vld [vmem:[#allocation5 + $0x1a8] sm:$0xff] }
 0x2b8   : > { %4975 = vst.msk [vmem:[#allocation5 + $0x330] sm:$0xff] %vm4872_vm1, %v4343_v2  ;;  %14779 = vst [vmem:[#allocation195_spill] sm:$0xff] %v12229_v47  ;;  %v8391_v2 = vpop.f32.mrb[168].mxu0  ;;  %v5244_v48 = vmul.f32 %v5236_v17, %v14783_v33  ;;  %v5229_v36 = vadd.f32 %v12229_v47, %v12211_v50  ;;  %v5597_v27 = vadd.f32 0.0009, %v5589_v24  ;;  %v5591_v4 = vmul.f32 2.0, %v5567_v56 }
 0x2b9   : > { %14780 = vst [vmem:[#allocation196_spill] sm:$0xff] %v12232_v30  ;;  %4930 = vst.msk [vmem:[#allocation5 + $0x1c8] sm:$0xff] %vm4872_vm1, %v8391_v2  ;;  %v4113_v25 = vpop.f32.mrb[169].mxu0  ;;  %v14784_v52 = vld [vmem:[#allocation20_spill] sm:$0xff]  ;;  %v5238_v29 = vadd.f32 0.0009, %v5230_v45  ;;  %v12247_v61 = vsub.f32 %v5112_v19, %v11517_v34  ;;  %v12258_v2 = vsub.f32 %v5106_v62, %v14689_v16 }
 0x2ba   : > { %4978 = vst.msk [vmem:[#allocation5 + $0x348] sm:$0xff] %vm4872_vm1, %v8463_v39  ;;  %v5243_v53 = vmul.f32 %v5235_v35, %v14784_v52  ;;  %v5111_v12 = vld [vmem:[#allocation5 + $0x1a0] sm:$0xff]  ;;  %v14786_v33 = vld [vmem:[#allocation129_spill] sm:$0xff]  ;;  %4929 = vst.msk [vmem:[#allocation5 + $0x1c0] sm:$0xff] %vm4872_vm1, %v4113_v25  ;;  %v5237_v24 = vadd.f32 0.0009, %v5229_v36  ;;  %8982 = vrcp.f32 %v5244_v48 }
 0x2bb   : > { %14785 = vst [vmem:[#allocation18_spill] sm:$0xff] %v12247_v61  ;;  %v12250_v17 = vmul.f32 %v5595_v60, %v14786_v33  ;;  %4977 = vst.msk [vmem:[#allocation5 + $0x340] sm:$0xff] %vm4872_vm1, %v4353_v59  ;;  %v12255_v56 = vsub.f32 %v5111_v12, %v11521_v31  ;;  %v5600_v35 = vadd.f32 0.0009, %v5592_v1  ;;  %v14789_v45 = vld [vmem:[#allocation62_spill] sm:$0xff]  ;;  %v5232_v19 = vadd.f32 %v12247_v61, %v12223_v3  ;;  %v8394_v25 = vpop.f32.mrb[170].mxu0 }
 0x2bc   : > { %14788 = vst [vmem:[#allocation197_spill] sm:$0xff] %v12258_v2  ;;  %v5246_v39 = vmul.f32 %v5238_v29, %v14789_v45  ;;  %v12264_v60 = vsub.f32 %v5105_v18, %v14692_v7  ;;  %v5599_v52 = vadd.f32 0.0009, %v5591_v4  ;;  %v8466_v34 = vpop.f32.mrb[106].mxu1  ;;  %v14791_v59 = vld [vmem:[#allocation64_spill] sm:$0xff]  ;;  %v5114_v62 = vld [vmem:[#allocation5 + $0x1b8] sm:$0xff]  ;;  %8984 = vrcp.f32 %v5243_v53 }
 0x2bd   : > { %14787 = vst [vmem:[#allocation20_spill] sm:$0xff] %v12255_v56  ;;  %v5245_v36 = vmul.f32 %v5237_v24, %v14791_v59  ;;  %v5231_v12 = vadd.f32 %v12255_v56, %v12232_v30  ;;  %v14792_v31 = vld [vmem:[#allocation135_spill] sm:$0xff]  ;;  %v5538_v29 = vld [vmem:[#allocation5 + $0x338] sm:$0xff]  ;;  %4932 = vst.msk [vmem:[#allocation5 + $0x1d8] sm:$0xff] %vm4872_vm1, %v8394_v25  ;;  %v4123_v18 = vpop.f32.mrb[171].mxu0  ;;  %v4363_v45 = vpop.f32.mrb[107].mxu1  ;;  %v12275_v48 = vsub.f32 %v5114_v62, %v11534_v8 }
 0x2be   : > { %14790 = vst [vmem:[#allocation62_spill] sm:$0xff] %v12264_v60  ;;  %v12270_v1 = vmul.f32 %v5598_v43, %v14792_v31  ;;  %4980 = vst.msk [vmem:[#allocation5 + $0x358] sm:$0xff] %vm4872_vm1, %v8466_v34  ;;  %v5240_v4 = vadd.f32 0.0009, %v5232_v19  ;;  %v5113_v24 = vld [vmem:[#allocation5 + $0x1b0] sm:$0xff]  ;;  %v14795_v59 = vld [vmem:[#allocation139_spill] sm:$0xff]  ;;  %v5570_v53 = vsub.f32 %v5538_v29, %v11933_v55  ;;  %8986 = vrcp.f32 %v5246_v39 }
 0x2bf   : > { %14794 = vst [vmem:[#allocation198_spill] sm:$0xff] %v12275_v48  ;;  %v12278_v7 = vmul.f32 %v5597_v27, %v14795_v59  ;;  %4931 = vst.msk [vmem:[#allocation5 + $0x1d0] sm:$0xff] %vm4872_vm1, %v4123_v18  ;;  %v5239_v43 = vadd.f32 0.0009, %v5231_v12  ;;  %v12283_v25 = vsub.f32 %v5113_v24, %v11561_v46  ;;  %v14798_v34 = vld [vmem:[#allocation147_spill] sm:$0xff]  ;;  %v12289_v19 = vld [vmem:[#allocation5 + $0x330] sm:$0xff]  ;;  %v5234_v27 = vadd.f32 %v12275_v48, %v12258_v2 }
 0x2c0   : > { %14793 = vst [vmem:[#allocation64_spill] sm:$0xff] %v12270_v1  ;;  %4979 = vst.msk [vmem:[#allocation5 + $0x350] sm:$0xff] %vm4872_vm1, %v4363_v45  ;;  %v12286_v16 = vmul.f32 %v5600_v35, %v14798_v34  ;;  %v14800_v62 = vld [vmem:[#allocation71_spill] sm:$0xff]  ;;  %v14801_v18 = vld [vmem:[#allocation34_spill] sm:$0xff]  ;;  %v8397_v12 = vpop.f32.mrb[172].mxu0  ;;  %v8469_v45 = vpop.f32.mrb[108].mxu1  ;;  %8988 = vrcp.f32 %v5245_v36 }
 0x2c1   : > { %14796 = vst [vmem:[#allocation199_spill] sm:$0xff] %v12278_v7  ;;  %14797 = vst [vmem:[#allocation200_spill] sm:$0xff] %v12283_v25  ;;  %v5248_v8 = vmul.f32 %v5240_v4, %v14800_v62  ;;  %v12295_v31 = vmul.f32 %v5599_v52, %v14801_v18  ;;  %v5716_v24 = vld [vmem:[#allocation5 + $0x348] sm:$0xff]  ;;  %v14803_v46 = vld [vmem:[#allocation73_spill] sm:$0xff]  ;;  %v5233_v29 = vadd.f32 %v12283_v25, %v12264_v60  ;;  %v5594_v34 = vmul.f32 2.0, %v5570_v53  ;;  %v4133_v39 = vpop.f32.mrb[173].mxu0 }
 0x2c2   : > { %14799 = vst [vmem:[#allocation201_spill] sm:$0xff] %v12286_v16  ;;  %v5247_v35 = vmul.f32 %v5239_v43, %v14803_v46  ;;  %v5324_v55 = vld [vmem:[#allocation5 + $0x1c8] sm:$0xff]  ;;  %4934 = vst.msk [vmem:[#allocation5 + $0x1e8] sm:$0xff] %vm4872_vm1, %v8397_v12  ;;  %v4373_v4 = vpop.f32.mrb[109].mxu1  ;;  %v5715_v18 = vld [vmem:[#allocation5 + $0x340] sm:$0xff]  ;;  %v8400_v43 = vpop.f32.mrb[174].mxu0 }
 0x2c3   : > { %14802 = vst [vmem:[#allocation71_spill] sm:$0xff] %v12295_v31  ;;  %4982 = vst.msk [vmem:[#allocation5 + $0x368] sm:$0xff] %vm4872_vm1, %v8469_v45  ;;  %v14804_v62 = vld [vmem:[#allocation51_spill] sm:$0xff]  ;;  %v5242_v59 = vadd.f32 0.0009, %v5234_v27  ;;  %v12304_v33 = vsub.f32 %v5324_v55, %v14731_v40  ;;  %v14806_v46 = vld [vmem:[#allocation33_spill] sm:$0xff]  ;;  %8990 = vrcp.f32 %v5248_v8 }
 0x2c4   : > { %v5724_v52 = vsub.f32 %v5716_v24, %v14804_v62  ;;  %v5323_v36 = vld [vmem:[#allocation5 + $0x1c0] sm:$0xff]  ;;  %4933 = vst.msk [vmem:[#allocation5 + $0x1e0] sm:$0xff] %vm4872_vm1, %v4133_v39  ;;  %4981 = vst.msk [vmem:[#allocation5 + $0x360] sm:$0xff] %vm4872_vm1, %v4373_v4  ;;  %v5241_v45 = vadd.f32 0.0009, %v5233_v29  ;;  %v8472_v54 = vpop.f32.mrb[110].mxu1  ;;  %8992 = vrcp.f32 %v5247_v35 }
 0x2c5   : > { %14805 = vst [vmem:[#allocation73_spill] sm:$0xff] %v12304_v33  ;;  %v14807_v53 = vld [vmem:[#allocation42_spill] sm:$0xff]  ;;  %v12312_v21 = vsub.f32 %v5323_v36, %v14740_v57  ;;  %v14809_v27 = vld [vmem:[#allocation75_spill] sm:$0xff]  ;;  %v5892_v55 = vadd.f32 %v12304_v33, %v12183_v23  ;;  %v12317_v40 = vadd.f32 0.0009, %v5594_v34  ;;  %v14811_v4 = vld [vmem:[#allocation81_spill] sm:$0xff] }
 0x2c6   : > { %v5723_v12 = vsub.f32 %v5715_v18, %v14807_v53  ;;  %v5732_v24 = vmul.f32 2.0, %v5724_v52  ;;  %v5250_v5 = vmul.f32 %v5242_v59, %v14809_v27  ;;  %v5718_v62 = vld [vmem:[#allocation5 + $0x358] sm:$0xff]  ;;  %v5249_v18 = vmul.f32 %v5241_v45, %v14811_v4  ;;  %4936 = vst.msk [vmem:[#allocation5 + $0x1f8] sm:$0xff] %vm4872_vm1, %v8400_v43  ;;  %4984 = vst.msk [vmem:[#allocation5 + $0x378] sm:$0xff] %vm4872_vm1, %v8472_v54  ;;  %v4143_v59 = vpop.f32.mrb[175].mxu0  ;;  %v4383_v52 = vpop.f32.mrb[111].mxu1 }
 0x2c7   : > { %14808 = vst [vmem:[#allocation202_spill] sm:$0xff] %v12312_v21  ;;  %14810 = vst [vmem:[#allocation75_spill] sm:$0xff] %v12317_v40  ;;  %v5891_v8 = vadd.f32 %v12312_v21, %v12197_v14  ;;  %v5326_v29 = vld [vmem:[#allocation5 + $0x1d8] sm:$0xff]  ;;  %v5717_v57 = vld [vmem:[#allocation5 + $0x350] sm:$0xff]  ;;  %v12328_v45 = vpop.eup %8982  ;;  %v8475_v33 = vpop.f32.mrb[112].mxu1 }
 0x2c8   : > { %v5731_v39 = vmul.f32 2.0, %v5723_v12  ;;  %v5740_v36 = vadd.f32 0.0009, %v5732_v24  ;;  %v14812_v34 = vld [vmem:[#allocation49_spill] sm:$0xff]  ;;  %8994 = vrcp.f32 %v5250_v5  ;;  %v12326_v12 = vsub.f32 %v5326_v29, %v14745_v49  ;;  %14814 = vst [vmem:[#allocation203_spill] sm:$0xff] %v12328_v45  ;;  %4935 = vst.msk [vmem:[#allocation5 + $0x1f0] sm:$0xff] %vm4872_vm1, %v4143_v59  ;;  %v12333_v21 = vpop.eup %8984 }
 0x2c9   : > { %v5726_v27 = vsub.f32 %v5718_v62, %v14812_v34  ;;  %v5325_v35 = vld [vmem:[#allocation5 + $0x1d0] sm:$0xff]  ;;  %4983 = vst.msk [vmem:[#allocation5 + $0x370] sm:$0xff] %vm4872_vm1, %v4383_v52  ;;  %v14815_v54 = vld [vmem:[#allocation54_spill] sm:$0xff]  ;;  %8996 = vrcp.f32 %v5249_v18  ;;  %v5900_v24 = vadd.f32 0.0009, %v5892_v55  ;;  %14816 = vst [vmem:[#allocation204_spill] sm:$0xff] %v12333_v21 }
 0x2ca   : > { %14813 = vst [vmem:[#allocation81_spill] sm:$0xff] %v12326_v12  ;;  %v5739_v43 = vadd.f32 0.0009, %v5731_v39  ;;  %v5725_v4 = vsub.f32 %v5717_v57, %v14815_v54  ;;  %v14817_v62 = vld [vmem:[#allocation28_spill] sm:$0xff]  ;;  %v5899_v29 = vadd.f32 0.0009, %v5891_v8  ;;  %v5894_v49 = vadd.f32 %v12326_v12, %v12220_v13 }
 0x2cb   : > { %v5748_v5 = vmul.f32 %v5740_v36, %v14817_v62  ;;  %v5734_v53 = vmul.f32 2.0, %v5726_v27  ;;  %v8403_v34 = vpop.f32.mrb[176].mxu0  ;;  %v12339_v59 = vld [vmem:[%s9534_s12 + $0x8] sm:$0xff]  ;;  %v14818_v52 = vld [vmem:[#allocation17_spill] sm:$0xff]  ;;  %v12344_v54 = vsub.f32 %v5325_v35, %v11652_v28  ;;  %v12346_v36 = vpop.eup %8986  ;;  %4986 = vst.msk [vmem:[#allocation5 + $0x388] sm:$0xff] %vm4872_vm1, %v8475_v33 }
 0x2cc   : > { %v5747_v39 = vmul.f32 %v5739_v43, %v14818_v52  ;;  %v5733_v31 = vmul.f32 2.0, %v5725_v4  ;;  %v5720_v57 = vld [vmem:[#allocation5 + $0x368] sm:$0xff]  ;;  %14821 = vst [vmem:[#allocation205_spill] sm:$0xff] %v12346_v36  ;;  %4938 = vst.msk [vmem:[#allocation5 + $0x208] sm:$0xff] %vm4872_vm1, %v8403_v34  ;;  %v4153_v8 = vpop.f32.mrb[177].mxu0  ;;  %v4393_v27 = vpop.f32.mrb[113].mxu1 }
 0x2cd   : > { %v14819_v18 = vld [vmem:[#allocation88_spill] sm:$0xff]  ;;  %v5756_v62 = vmul.f32 %v12328_v45, %v5748_v5  ;;  %v12352_v43 = vld [vmem:[%s9534_s12] sm:$0xff]  ;;  %v5742_v4 = vadd.f32 0.0009, %v5734_v53  ;;  %v12356_v12 = vpop.eup %8988  ;;  %4937 = vst.msk [vmem:[#allocation5 + $0x200] sm:$0xff] %vm4872_vm1, %v4153_v8  ;;  %4985 = vst.msk [vmem:[#allocation5 + $0x380] sm:$0xff] %vm4872_vm1, %v4393_v27 }
 0x2ce   : > { %v5908_v55 = vmul.f32 %v5900_v24, %v14819_v18  ;;  %14820 = vst [vmem:[#allocation88_spill] sm:$0xff] %v12344_v54  ;;  %v14822_v52 = vld [vmem:[#allocation43_spill] sm:$0xff]  ;;  %v5755_v33 = vmul.f32 %v12333_v21, %v5747_v39  ;;  %v5741_v34 = vadd.f32 0.0009, %v5733_v31  ;;  %v12364_v53 = vld [vmem:[%s9534_s12 + $0x18] sm:$0xff]  ;;  %v12368_v16 = vld [vmem:[%s9534_s12 + $0x10] sm:$0xff] }
 0x2cf   : > { %v5728_v24 = vsub.f32 %v5720_v57, %v14822_v52  ;;  %v5719_v18 = vld [vmem:[#allocation5 + $0x360] sm:$0xff]  ;;  %v5764_v45 = vmul.f32 %v5756_v62, %v12339_v59  ;;  %v14826_v57 = vld [vmem:[#allocation60_spill] sm:$0xff]  ;;  %v8406_v8 = vpop.f32.mrb[178].mxu0  ;;  %v8478_v27 = vpop.f32.mrb[114].mxu1  ;;  %v14841_v58 = vld [vmem:[#allocation77_spill] sm:$0xff] }
 0x2d0   : > { %v14823_v35 = vld [vmem:[#allocation91_spill] sm:$0xff]  ;;  %v5727_v5 = vsub.f32 %v5719_v18, %v14825_v10  ;;  %8998 = vrcp.f32 %v5908_v55  ;;  %v5750_v52 = vmul.f32 %v5742_v4, %v14826_v57  ;;  %v5763_v39 = vmul.f32 %v5755_v33, %v12352_v43  ;;  %v5722_v55 = vld [vmem:[#allocation5 + $0x378] sm:$0xff]  ;;  %4940 = vst.msk [vmem:[#allocation5 + $0x218] sm:$0xff] %vm4872_vm1, %v8406_v8  ;;  %4988 = vst.msk [vmem:[#allocation5 + $0x398] sm:$0xff] %vm4872_vm1, %v8478_v27  ;;  %v4163_v62 = vpop.f32.mrb[179].mxu0  ;;  %v4403_v4 = vpop.f32.mrb[115].mxu1 }
 0x2d1   : > { %v5907_v28 = vmul.f32 %v5899_v29, %v14823_v35  ;;  %14824 = vst [vmem:[#allocation91_spill] sm:$0xff] %v12356_v12  ;;  %v5736_v29 = vmul.f32 2.0, %v5728_v24  ;;  %v12370_v35 = vpop.eup %8990  ;;  %v14828_v31 = vld [vmem:[#allocation63_spill] sm:$0xff]  ;;  %v5902_v10 = vadd.f32 0.0009, %v5894_v49  ;;  %v5774_v24 = vsel %vm4872_vm1, %v5764_v45, 0.0 }
 0x2d2   : > { %14827 = vst [vmem:[#allocation206_spill] sm:$0xff] %v12370_v35  ;;  %v5749_v21 = vmul.f32 %v5741_v34, %v14828_v31  ;;  %v5735_v18 = vmul.f32 2.0, %v5727_v5  ;;  %v14829_v60 = vld [vmem:[#allocation32_spill] sm:$0xff]  ;;  %v12379_v33 = vpop.eup %8992  ;;  %4939 = vst.msk [vmem:[#allocation5 + $0x210] sm:$0xff] %vm4872_vm1, %v4163_v62  ;;  %5775 = vadd.xlane.f32.xlu1 %v5774_v24  ;;  %v5771_v49 = vsel %vm4872_vm1, %v5763_v39, 0.0  ;;  %v14831_v5 = vld [vmem:[#allocation19_spill] sm:$0xff] }
 0x2d3   : > { %9000 = vrcp.f32 %v5907_v28  ;;  %v5758_v28 = vmul.f32 %v12346_v36, %v5750_v52  ;;  %v5744_v57 = vadd.f32 0.0009, %v5736_v29  ;;  %v5730_v20 = vsub.f32 %v5722_v55, %v14829_v60  ;;  %v5721_v2 = vld [vmem:[#allocation5 + $0x370] sm:$0xff]  ;;  %14830 = vst [vmem:[#allocation207_spill] sm:$0xff] %v12379_v33  ;;  %4987 = vst.msk [vmem:[#allocation5 + $0x390] sm:$0xff] %vm4872_vm1, %v4403_v4  ;;  %v12386_v29 = vpop.eup %8994  ;;  %5772 = vadd.xlane.f32.xlu0 %v5771_v49  ;;  %v8409_v24 = vpop.f32.mrb[180].mxu0 }
 0x2d4   : > { %v5757_v34 = vmul.f32 %v12356_v12, %v5749_v21  ;;  %v5743_v45 = vadd.f32 0.0009, %v5735_v18  ;;  %v5729_v52 = vsub.f32 %v5721_v2, %v14831_v5  ;;  %14832 = vst [vmem:[#allocation208_spill] sm:$0xff] %v12386_v29  ;;  %v14833_v27 = vld [vmem:[#allocation68_spill] sm:$0xff]  ;;  %v14834_v60 = vld [vmem:[#allocation97_spill] sm:$0xff]  ;;  %v12391_v31 = vpop.eup %8996  ;;  %v8481_v36 = vpop.f32.mrb[116].mxu1 }
 0x2d5   : > { %v5766_v8 = vmul.f32 %v5758_v28, %v12364_v53  ;;  %v5752_v55 = vmul.f32 %v5744_v57, %v14833_v27  ;;  %v5738_v62 = vmul.f32 2.0, %v5730_v20  ;;  %v5910_v4 = vmul.f32 %v5902_v10, %v14834_v60  ;;  %v12395_v21 = vld [vmem:[%s9534_s12 + $0x28] sm:$0xff]  ;;  %v12398_v18 = vld [vmem:[%s9534_s12 + $0x20] sm:$0xff]  ;;  %4942 = vst.msk [vmem:[#allocation5 + $0x228] sm:$0xff] %vm4872_vm1, %v8409_v24  ;;  %4990 = vst.msk [vmem:[#allocation5 + $0x3a8] sm:$0xff] %vm4872_vm1, %v8481_v36  ;;  %v4173_v20 = vpop.f32.mrb[181].mxu0 }
 0x2d6   : > { %v5765_v39 = vmul.f32 %v5757_v34, %v12368_v16  ;;  %v14835_v2 = vld [vmem:[#allocation72_spill] sm:$0xff]  ;;  %v5737_v49 = vmul.f32 2.0, %v5729_v52  ;;  %v5893_v57 = vadd.f32 %v12344_v54, %v12229_v47  ;;  %v4413_v10 = vpop.f32.mrb[117].mxu1  ;;  %v14836_v27 = vld [vmem:[#allocation66_spill] sm:$0xff]  ;;  %4941 = vst.msk [vmem:[#allocation5 + $0x220] sm:$0xff] %vm4872_vm1, %v4173_v20 }
 0x2d7   : > { %v5751_v5 = vmul.f32 %v5743_v45, %v14835_v2  ;;  %v5812_v12 = vld [vmem:[#allocation5 + $0x388] sm:$0xff]  ;;  %v5780_v60 = vsel %vm4872_vm1, %v5766_v8, 0.0  ;;  %v5760_v28 = vmul.f32 %v12370_v35, %v5752_v55  ;;  %v5746_v34 = vadd.f32 0.0009, %v5738_v62  ;;  %v5811_v52 = vld [vmem:[#allocation5 + $0x380] sm:$0xff]  ;;  %4989 = vst.msk [vmem:[#allocation5 + $0x3a0] sm:$0xff] %vm4872_vm1, %v4413_v10 }
 0x2d8   : > { %v5828_v45 = vsub.f32 %v5812_v12, %v14836_v27  ;;  %5781 = vadd.xlane.f32.xlu1 %v5780_v60  ;;  %v5777_v24 = vsel %vm4872_vm1, %v5765_v39, 0.0  ;;  %v5745_v2 = vadd.f32 0.0009, %v5737_v49  ;;  %v14837_v54 = vld [vmem:[#allocation70_spill] sm:$0xff]  ;;  %v12419_v27 = vld [vmem:[%s9534_s12 + $0x30] sm:$0xff]  ;;  %9002 = vrcp.f32 %v5910_v4  ;;  %v5328_v10 = vld [vmem:[#allocation5 + $0x1e8] sm:$0xff] }
 0x2d9   : > { %v5759_v36 = vmul.f32 %v12379_v33, %v5751_v5  ;;  %v5827_v40 = vsub.f32 %v5811_v52, %v14837_v54  ;;  %5778 = vadd.xlane.f32.xlu0 %v5777_v24  ;;  %v5768_v8 = vmul.f32 %v5760_v28, %v12395_v21  ;;  %v12415_v55 = vld [vmem:[%s9534_s12 + $0x38] sm:$0xff]  ;;  %v8412_v39 = vpop.f32.mrb[182].mxu0  ;;  %v8484_v35 = vpop.f32.mrb[118].mxu1  ;;  %v5901_v28 = vadd.f32 0.0009, %v5893_v57  ;;  %v14842_v57 = vld [vmem:[#allocation79_spill] sm:$0xff] }
 0x2da   : > { %v14838_v62 = vld [vmem:[#allocation74_spill] sm:$0xff]  ;;  %v5852_v20 = vmul.f32 2.0, %v5828_v45  ;;  %v12421_v60 = vpop.eup %8998  ;;  %4944 = vst.msk [vmem:[#allocation5 + $0x238] sm:$0xff] %vm4872_vm1, %v8412_v39  ;;  %4992 = vst.msk [vmem:[#allocation5 + $0x3b8] sm:$0xff] %vm4872_vm1, %v8484_v35  ;;  %v4423_v4 = vpop.f32.mrb[119].mxu1  ;;  %v5813_v44 = vld [vmem:[#allocation5 + $0x390] sm:$0xff] }
 0x2db   : > { %v5754_v12 = vmul.f32 %v5746_v34, %v14838_v62  ;;  %v5767_v5 = vmul.f32 %v5759_v36, %v12398_v18  ;;  %v14839_v49 = vld [vmem:[#allocation78_spill] sm:$0xff]  ;;  %v5851_v24 = vmul.f32 2.0, %v5827_v40  ;;  %v4183_v34 = vpop.f32.mrb[183].mxu0  ;;  %v5786_v45 = vsel %vm4872_vm1, %v5768_v8, 0.0  ;;  %4991 = vst.msk [vmem:[#allocation5 + $0x3b0] sm:$0xff] %vm4872_vm1, %v4423_v4 }
 0x2dc   : > { %v5753_v52 = vmul.f32 %v5745_v2, %v14839_v49  ;;  %v5814_v54 = vld [vmem:[#allocation5 + $0x398] sm:$0xff]  ;;  %v5860_v7 = vadd.f32 0.0009, %v5852_v20  ;;  %4943 = vst.msk [vmem:[#allocation5 + $0x230] sm:$0xff] %vm4872_vm1, %v4183_v34  ;;  %5787 = vadd.xlane.f32.xlu1 %v5786_v45  ;;  %v5829_v39 = vsub.f32 %v5813_v44, %v14842_v57  ;;  %v8415_v49 = vpop.f32.mrb[184].mxu0  ;;  %v8487_v34 = vpop.f32.mrb[120].mxu1 }
 0x2dd   : > { %v12425_v33 = vpop.eup %9000  ;;  %v5762_v62 = vmul.f32 %v12386_v29, %v5754_v12  ;;  %v5830_v36 = vsub.f32 %v5814_v54, %v14841_v58  ;;  %v5783_v40 = vsel %vm4872_vm1, %v5767_v5, 0.0  ;;  %v5859_v35 = vadd.f32 0.0009, %v5851_v24  ;;  %v14843_v12 = vld [vmem:[#allocation87_spill] sm:$0xff]  ;;  %v14844_v54 = vld [vmem:[#allocation101_spill] sm:$0xff]  ;;  %v14845_v45 = vld [vmem:[#allocation90_spill] sm:$0xff] }
 0x2de   : > { %14840 = vst [vmem:[#allocation97_spill] sm:$0xff] %v12425_v33  ;;  %v5761_v2 = vmul.f32 %v12391_v31, %v5753_v52  ;;  %5784 = vadd.xlane.f32.xlu0 %v5783_v40  ;;  %v5868_v20 = vmul.f32 %v5860_v7, %v14843_v12  ;;  %v5909_v58 = vmul.f32 %v5901_v28, %v14844_v54  ;;  %v5853_v5 = vmul.f32 2.0, %v5829_v39  ;;  %v5816_v24 = vld [vmem:[#allocation5 + $0x3a8] sm:$0xff]  ;;  %v5327_v44 = vld [vmem:[#allocation5 + $0x1e0] sm:$0xff]  ;;  %v4193_v7 = vpop.f32.mrb[185].mxu0 }
 0x2df   : > { %v5770_v8 = vmul.f32 %v5762_v62, %v12415_v55  ;;  %v5854_v29 = vmul.f32 2.0, %v5830_v36  ;;  %v5867_v1 = vmul.f32 %v5859_v35, %v14845_v45  ;;  %v12443_v52 = vsub.f32 %v5328_v10, %v11677_v63  ;;  %4946 = vst.msk [vmem:[#allocation5 + $0x248] sm:$0xff] %vm4872_vm1, %v8415_v49  ;;  %4994 = vst.msk [vmem:[#allocation5 + $0x3c8] sm:$0xff] %vm4872_vm1, %v8487_v34  ;;  %v4433_v62 = vpop.f32.mrb[121].mxu1  ;;  %v14847_v35 = vld [vmem:[#allocation86_spill] sm:$0xff]  ;;  %v5524_v54 = vld [vmem:[#allocation5 + $0x208] sm:$0xff] }
 0x2e0   : > { %v5769_v4 = vmul.f32 %v5761_v2, %v12419_v27  ;;  %v5924_v36 = vmul.f32 %v12421_v60, %v5868_v20  ;;  %9004 = vrcp.f32 %v5909_v58  ;;  %v5815_v2 = vld [vmem:[#allocation5 + $0x3a0] sm:$0xff]  ;;  %4945 = vst.msk [vmem:[#allocation5 + $0x240] sm:$0xff] %vm4872_vm1, %v4193_v7  ;;  %4993 = vst.msk [vmem:[#allocation5 + $0x3c0] sm:$0xff] %vm4872_vm1, %v4433_v62  ;;  %v5832_v39 = vsub.f32 %v5816_v24, %v14847_v35  ;;  %v8490_v62 = vpop.f32.mrb[122].mxu1 }
 0x2e1   : > { %14846 = vst [vmem:[#allocation87_spill] sm:$0xff] %v12443_v52  ;;  %v5792_v28 = vsel %vm4872_vm1, %v5770_v8, 0.0  ;;  %v5862_v40 = vadd.f32 0.0009, %v5854_v29  ;;  %v5923_v49 = vmul.f32 %v12425_v33, %v5867_v1  ;;  %v14848_v8 = vsub.f32 %v12289_v19, %v14806_v46  ;;  %v14849_v29 = vld [vmem:[#allocation96_spill] sm:$0xff]  ;;  %v8418_v1 = vpop.f32.mrb[186].mxu0 }
 0x2e2   : > { %5793 = vadd.xlane.f32.xlu1 %v5792_v28  ;;  %v5789_v10 = vsel %vm4872_vm1, %v5769_v4, 0.0  ;;  %v5932_v58 = vmul.f32 %v5924_v36, %v12339_v59  ;;  %v5896_v7 = vadd.f32 %v12443_v52, %v12247_v61  ;;  %v12464_v4 = vsub.f32 %v5327_v44, %v11702_v22  ;;  %v14851_v19 = vld [vmem:[#allocation89_spill] sm:$0xff]  ;;  %v5523_v46 = vld [vmem:[#allocation5 + $0x200] sm:$0xff]  ;;  %4948 = vst.msk [vmem:[#allocation5 + $0x258] sm:$0xff] %vm4872_vm1, %v8418_v1  ;;  %v4203_v36 = vpop.f32.mrb[187].mxu0 }
 0x2e3   : > { %v12457_v34 = vmul.f32 2.0, %v14848_v8  ;;  %5790 = vadd.xlane.f32.xlu0 %v5789_v10  ;;  %v5870_v20 = vmul.f32 %v5862_v40, %v14849_v29  ;;  %v5931_v24 = vmul.f32 %v5923_v49, %v12352_v43  ;;  %v5861_v28 = vadd.f32 0.0009, %v5853_v5  ;;  %v12468_v10 = vpop.eup %9002  ;;  %4996 = vst.msk [vmem:[#allocation5 + $0x3d8] sm:$0xff] %vm4872_vm1, %v8490_v62  ;;  %v4443_v40 = vpop.f32.mrb[123].mxu1  ;;  %v5330_v49 = vld [vmem:[#allocation5 + $0x1f8] sm:$0xff] }
 0x2e4   : > { %14850 = vst [vmem:[#allocation101_spill] sm:$0xff] %v12464_v4  ;;  %v5856_v63 = vmul.f32 2.0, %v5832_v39  ;;  %v5831_v8 = vsub.f32 %v5815_v2, %v14851_v19  ;;  %14852 = vst [vmem:[#allocation90_spill] sm:$0xff] %v12468_v10  ;;  %v5942_v44 = vsel %vm4872_vm1, %v5932_v58, 0.0  ;;  %v5904_v22 = vadd.f32 0.0009, %v5896_v7 }
 0x2e5   : > { %v5895_v35 = vadd.f32 %v12464_v4, %v12255_v56  ;;  %v12476_v5 = vsub.f32 %v5524_v54, %v11769_v9  ;;  %4947 = vst.msk [vmem:[#allocation5 + $0x250] sm:$0xff] %vm4872_vm1, %v4203_v36  ;;  %4995 = vst.msk [vmem:[#allocation5 + $0x3d0] sm:$0xff] %vm4872_vm1, %v4443_v40  ;;  %v5939_v2 = vsel %vm4872_vm1, %v5931_v24, 0.0  ;;  %v5926_v39 = vmul.f32 %v12468_v10, %v5870_v20  ;;  %v14854_v58 = vld [vmem:[#allocation107_spill] sm:$0xff]  ;;  %v5818_v36 = vld [vmem:[#allocation5 + $0x3b8] sm:$0xff]  ;;  %v8421_v33 = vpop.f32.mrb[188].mxu0 }
 0x2e6   : > { %5943 = vadd.xlane.f32.xlu1 %v5942_v44  ;;  %v5864_v1 = vadd.f32 0.0009, %v5856_v63  ;;  %v5855_v62 = vmul.f32 2.0, %v5831_v8  ;;  %v5912_v7 = vmul.f32 %v5904_v22, %v14854_v58  ;;  %v12486_v9 = vsub.f32 %v5523_v46, %v11794_v6  ;;  %v8493_v40 = vpop.f32.mrb[124].mxu1  ;;  %v14856_v24 = vld [vmem:[#allocation98_spill] sm:$0xff]  ;;  %v5329_v22 = vld [vmem:[#allocation5 + $0x1f0] sm:$0xff] }
 0x2e7   : > { %14853 = vst [vmem:[#allocation209_spill] sm:$0xff] %v12476_v5  ;;  %5940 = vadd.xlane.f32.xlu0 %v5939_v2  ;;  %v5903_v19 = vadd.f32 0.0009, %v5895_v35  ;;  %v5628_v54 = vadd.f32 %v12476_v5, %v12150_v51  ;;  %v5934_v44 = vmul.f32 %v5926_v39, %v12364_v53  ;;  %v5869_v57 = vmul.f32 %v5861_v28, %v14856_v24  ;;  %v14857_v20 = vld [vmem:[#allocation106_spill] sm:$0xff]  ;;  %v4213_v46 = vpop.f32.mrb[189].mxu0  ;;  %v4453_v35 = vpop.f32.mrb[125].mxu1 }
 0x2e8   : > { %14855 = vst [vmem:[#allocation107_spill] sm:$0xff] %v12486_v9  ;;  %v12491_v63 = vmul.f32 %v5864_v1, %v14857_v20  ;;  %v12494_v8 = vsub.f32 %v5330_v49, %v11733_v38  ;;  %4950 = vst.msk [vmem:[#allocation5 + $0x268] sm:$0xff] %vm4872_vm1, %v8421_v33  ;;  %9006 = vrcp.f32 %v5912_v7  ;;  %v14859_v2 = vld [vmem:[#allocation112_spill] sm:$0xff]  ;;  %v5627_v28 = vadd.f32 %v12486_v9, %v12159_v32  ;;  %v5526_v7 = vld [vmem:[#allocation5 + $0x218] sm:$0xff] }
 0x2e9   : > { %4998 = vst.msk [vmem:[#allocation5 + $0x3e8] sm:$0xff] %vm4872_vm1, %v8493_v40  ;;  %v5911_v58 = vmul.f32 %v5903_v19, %v14859_v2  ;;  %v5636_v6 = vadd.f32 0.0009, %v5628_v54  ;;  %v5817_v39 = vld [vmem:[#allocation5 + $0x3b0] sm:$0xff]  ;;  %4949 = vst.msk [vmem:[#allocation5 + $0x260] sm:$0xff] %vm4872_vm1, %v4213_v46  ;;  %v5948_v49 = vsel %vm4872_vm1, %v5934_v44, 0.0  ;;  %v12511_v46 = vsub.f32 %v5329_v22, %v11749_v26 }
 0x2ea   : > { %14858 = vst [vmem:[#allocation210_spill] sm:$0xff] %v12494_v8  ;;  %4997 = vst.msk [vmem:[#allocation5 + $0x3e0] sm:$0xff] %vm4872_vm1, %v4453_v35  ;;  %v5863_v1 = vadd.f32 0.0009, %v5855_v62  ;;  %v14860_v33 = vld [vmem:[#allocation100_spill] sm:$0xff]  ;;  %v5898_v40 = vadd.f32 %v12494_v8, %v12275_v48  ;;  %v12507_v20 = vpop.eup %9004  ;;  %5949 = vadd.xlane.f32.xlu1 %v5948_v49  ;;  %v8424_v44 = vpop.f32.mrb[190].mxu0 }
 0x2eb   : > { %v5834_v38 = vsub.f32 %v5818_v36, %v14860_v33  ;;  %14861 = vst [vmem:[#allocation112_spill] sm:$0xff] %v12507_v20  ;;  %9008 = vrcp.f32 %v5911_v58  ;;  %v14862_v19 = vld [vmem:[#allocation128_spill] sm:$0xff]  ;;  %v5635_v2 = vadd.f32 0.0009, %v5627_v28  ;;  %v5925_v35 = vmul.f32 %v12507_v20, %v5869_v57  ;;  %v8496_v62 = vpop.f32.mrb[126].mxu1  ;;  %v14864_v33 = vld [vmem:[#allocation103_spill] sm:$0xff] }
 0x2ec   : > { %v5644_v54 = vmul.f32 %v5636_v6, %v14862_v19  ;;  %14863 = vst [vmem:[#allocation128_spill] sm:$0xff] %v12511_v46  ;;  %v5906_v36 = vadd.f32 0.0009, %v5898_v40  ;;  %v5833_v10 = vsub.f32 %v5817_v39, %v14864_v33  ;;  %v5525_v29 = vld [vmem:[#allocation5 + $0x210] sm:$0xff]  ;;  %4952 = vst.msk [vmem:[#allocation5 + $0x278] sm:$0xff] %vm4872_vm1, %v8424_v44  ;;  %v4223_v58 = vpop.f32.mrb[191].mxu0  ;;  %v5897_v22 = vadd.f32 %v12511_v46, %v12283_v25 }
 0x2ed   : > { %v5858_v24 = vmul.f32 2.0, %v5834_v38  ;;  %5000 = vst.msk [vmem:[#allocation5 + $0x3f8] sm:$0xff] %vm4872_vm1, %v8496_v62  ;;  %v4463_v49 = vpop.f32.mrb[127].mxu1  ;;  %v14865_v6 = vld [vmem:[#allocation132_spill] sm:$0xff]  ;;  %v12521_v57 = vsub.f32 %v5526_v7, %v11817_v11  ;;  %v5933_v38 = vmul.f32 %v5925_v35, %v12368_v16  ;;  %4951 = vst.msk [vmem:[#allocation5 + $0x270] sm:$0xff] %vm4872_vm1, %v4223_v58  ;;  %v14867_v40 = vld [vmem:[#allocation121_spill] sm:$0xff] }
 0x2ee   : > { %9010 = vrcp.f32 %v5644_v54  ;;  %v5643_v28 = vmul.f32 %v5635_v2, %v14865_v6  ;;  %4999 = vst.msk [vmem:[#allocation5 + $0x3f0] sm:$0xff] %vm4872_vm1, %v4463_v49  ;;  %v5914_v19 = vmul.f32 %v5906_v36, %v14867_v40  ;;  %v5857_v44 = vmul.f32 2.0, %v5833_v10  ;;  %v5980_v62 = vld [vmem:[#allocation5 + $0x3c8] sm:$0xff]  ;;  %v5979_v7 = vld [vmem:[#allocation5 + $0x3c0] sm:$0xff]  ;;  %v8427_v33 = vpop.f32.mrb[192].mxu0  ;;  %v8499_v49 = vpop.f32.mrb[128].mxu1 }
 0x2ef   : > { %14866 = vst [vmem:[#allocation132_spill] sm:$0xff] %v12521_v57  ;;  %v5866_v39 = vadd.f32 0.0009, %v5858_v24  ;;  %v5905_v54 = vadd.f32 0.0009, %v5897_v22  ;;  %v5630_v2 = vadd.f32 %v12521_v57, %v12200_v41  ;;  %v12530_v6 = vsub.f32 %v5525_v29, %v11830_v0  ;;  %v14869_v11 = vld [vmem:[#allocation110_spill] sm:$0xff] }
 0x2f0   : > { %9012 = vrcp.f32 %v5643_v28  ;;  %v5945_v35 = vsel %vm4872_vm1, %v5933_v38, 0.0  ;;  %v5871_v58 = vmul.f32 %v5863_v1, %v14869_v11  ;;  %v14870_v24 = vld [vmem:[#allocation120_spill] sm:$0xff]  ;;  %4954 = vst.msk [vmem:[#allocation5 + $0x288] sm:$0xff] %vm4872_vm1, %v8427_v33  ;;  %5002 = vst.msk [vmem:[#allocation5 + $0x408] sm:$0xff] %vm4872_vm1, %v8499_v49  ;;  %v4233_v10 = vpop.f32.mrb[193].mxu0  ;;  %v4473_v36 = vpop.f32.mrb[129].mxu1  ;;  %v6060_v33 = vadd.f32 %v12476_v5, %v12183_v23 }
 0x2f1   : > { %14868 = vst [vmem:[#allocation121_spill] sm:$0xff] %v12530_v6  ;;  %v12535_v20 = vmul.f32 %v5866_v39, %v14870_v24  ;;  %9014 = vrcp.f32 %v5914_v19  ;;  %5946 = vadd.xlane.f32.xlu0 %v5945_v35  ;;  %v14871_v29 = vld [vmem:[#allocation124_spill] sm:$0xff]  ;;  %v5638_v22 = vadd.f32 0.0009, %v5630_v2  ;;  %v5629_v38 = vadd.f32 %v12530_v6, %v12211_v50  ;;  %v14872_v1 = vld [vmem:[#allocation125_spill] sm:$0xff]  ;;  %4953 = vst.msk [vmem:[#allocation5 + $0x280] sm:$0xff] %vm4872_vm1, %v4233_v10 }
 0x2f2   : > { %v5913_v28 = vmul.f32 %v5905_v54, %v14871_v29  ;;  %v5996_v40 = vsub.f32 %v5980_v62, %v14872_v1  ;;  %v5528_v0 = vld [vmem:[#allocation5 + $0x228] sm:$0xff]  ;;  %5001 = vst.msk [vmem:[#allocation5 + $0x400] sm:$0xff] %vm4872_vm1, %v4473_v36  ;;  %v5865_v39 = vadd.f32 0.0009, %v5857_v44  ;;  %v14873_v19 = vld [vmem:[#allocation126_spill] sm:$0xff]  ;;  %v6059_v54 = vadd.f32 %v12486_v9, %v12197_v14  ;;  %v12550_v2 = vpop.eup %9006  ;;  %v8430_v36 = vpop.f32.mrb[194].mxu0 }
 0x2f3   : > { %v5995_v35 = vsub.f32 %v5979_v7, %v14873_v19  ;;  %v14874_v49 = vld [vmem:[#allocation138_spill] sm:$0xff]  ;;  %v5637_v62 = vadd.f32 0.0009, %v5629_v38  ;;  %v5928_v10 = vmul.f32 %v12550_v2, %v12491_v63  ;;  %v8502_v44 = vpop.f32.mrb[130].mxu1  ;;  %v6068_v24 = vadd.f32 0.0009, %v6060_v33 }
 0x2f4   : > { %9016 = vrcp.f32 %v5913_v28  ;;  %v5646_v29 = vmul.f32 %v5638_v22, %v14874_v49  ;;  %v6020_v1 = vmul.f32 2.0, %v5996_v40  ;;  %v12556_v23 = vsub.f32 %v5528_v0, %v11872_v37  ;;  %4956 = vst.msk [vmem:[#allocation5 + $0x298] sm:$0xff] %vm4872_vm1, %v8430_v36  ;;  %5004 = vst.msk [vmem:[#allocation5 + $0x418] sm:$0xff] %vm4872_vm1, %v8502_v44  ;;  %v4243_v28 = vpop.f32.mrb[195].mxu0  ;;  %v4483_v22 = vpop.f32.mrb[131].mxu1  ;;  %v14876_v38 = vld [vmem:[#allocation141_spill] sm:$0xff] }
 0x2f5   : > { %v6019_v11 = vmul.f32 2.0, %v5995_v35  ;;  %v12558_v7 = vpop.eup %9008  ;;  %v5645_v40 = vmul.f32 %v5637_v62, %v14876_v38  ;;  %v6067_v63 = vadd.f32 0.0009, %v6059_v54  ;;  %v5936_v14 = vmul.f32 %v5928_v10, %v12395_v21  ;;  %4955 = vst.msk [vmem:[#allocation5 + $0x290] sm:$0xff] %vm4872_vm1, %v4243_v28  ;;  %5003 = vst.msk [vmem:[#allocation5 + $0x410] sm:$0xff] %vm4872_vm1, %v4483_v22  ;;  %v14877_v0 = vld [vmem:[#allocation123_spill] sm:$0xff] }
 0x2f6   : > { %14875 = vst [vmem:[#allocation124_spill] sm:$0xff] %v12556_v23  ;;  %9018 = vrcp.f32 %v5646_v29  ;;  %v6028_v49 = vadd.f32 0.0009, %v6020_v1  ;;  %v5927_v33 = vmul.f32 %v12558_v7, %v5871_v58  ;;  %v5873_v35 = vmul.f32 %v5865_v39, %v14877_v0  ;;  %v14878_v36 = vld [vmem:[#allocation133_spill] sm:$0xff]  ;;  %v5527_v44 = vld [vmem:[#allocation5 + $0x220] sm:$0xff]  ;;  %v14880_v62 = vld [vmem:[#allocation136_spill] sm:$0xff] }
 0x2f7   : > { %v6076_v37 = vmul.f32 %v6068_v24, %v14878_v36  ;;  %9020 = vrcp.f32 %v5645_v40  ;;  %v6027_v29 = vadd.f32 0.0009, %v6019_v11  ;;  %v6075_v1 = vmul.f32 %v6067_v63, %v14880_v62  ;;  %v5982_v10 = vld [vmem:[#allocation5 + $0x3d8] sm:$0xff]  ;;  %v8433_v22 = vpop.f32.mrb[196].mxu0  ;;  %v8505_v24 = vpop.f32.mrb[132].mxu1  ;;  %v14882_v63 = vld [vmem:[#allocation31_spill] sm:$0xff] }
 0x2f8   : > { %v12569_v19 = vpop.eup %9010  ;;  %v5632_v54 = vadd.f32 %v12556_v23, %v12223_v3  ;;  %v5954_v58 = vsel %vm4872_vm1, %v5936_v14, 0.0  ;;  %v5935_v28 = vmul.f32 %v5927_v33, %v12398_v18  ;;  %4958 = vst.msk [vmem:[#allocation5 + $0x2a8] sm:$0xff] %vm4872_vm1, %v8433_v22  ;;  %5006 = vst.msk [vmem:[#allocation5 + $0x428] sm:$0xff] %vm4872_vm1, %v8505_v24  ;;  %v4253_v11 = vpop.f32.mrb[197].mxu0  ;;  %v12583_v36 = vmul.f32 %v6028_v49, %v14882_v63  ;;  %v14884_v49 = vld [vmem:[#allocation140_spill] sm:$0xff] }
 0x2f9   : > { %14879 = vst [vmem:[#allocation138_spill] sm:$0xff] %v12569_v19  ;;  %v5660_v39 = vmul.f32 %v12569_v19, %v12238_v42  ;;  %9022 = vrcp.f32 %v6076_v37  ;;  %5955 = vadd.xlane.f32.xlu1 %v5954_v58  ;;  %v4493_v40 = vpop.f32.mrb[133].mxu1  ;;  %v12586_v33 = vsub.f32 %v5527_v44, %v11886_v15  ;;  %v5981_v42 = vld [vmem:[#allocation5 + $0x3d0] sm:$0xff]  ;;  %4957 = vst.msk [vmem:[#allocation5 + $0x2a0] sm:$0xff] %vm4872_vm1, %v4253_v11  ;;  %v8436_v15 = vpop.f32.mrb[198].mxu0  ;;  %v14890_v19 = vld [vmem:[#allocation23_spill] sm:$0xff] }
 0x2fa   : > { %v12578_v38 = vpop.eup %9012  ;;  %9024 = vrcp.f32 %v6075_v1  ;;  %v5640_v14 = vadd.f32 0.0009, %v5632_v54  ;;  %v5951_v37 = vsel %vm4872_vm1, %v5935_v28, 0.0  ;;  %5005 = vst.msk [vmem:[#allocation5 + $0x420] sm:$0xff] %vm4872_vm1, %v4493_v40  ;;  %v5998_v1 = vsub.f32 %v5982_v10, %v14884_v49  ;;  %v14885_v54 = vld [vmem:[#allocation148_spill] sm:$0xff]  ;;  %v8508_v40 = vpop.f32.mrb[134].mxu1 }
 0x2fb   : > { %14881 = vst [vmem:[#allocation141_spill] sm:$0xff] %v12578_v38  ;;  %14883 = vst [vmem:[#allocation133_spill] sm:$0xff] %v12586_v33  ;;  %v12588_v62 = vpop.eup %9014  ;;  %v5668_v58 = vmul.f32 %v5660_v39, %v12339_v59  ;;  %v5659_v22 = vmul.f32 %v12578_v38, %v12250_v17  ;;  %5952 = vadd.xlane.f32.xlu0 %v5951_v37  ;;  %v5631_v28 = vadd.f32 %v12586_v33, %v12232_v30  ;;  %v14886_v10 = vld [vmem:[#allocation142_spill] sm:$0xff] }
 0x2fc   : > { %v5930_v44 = vmul.f32 %v12588_v62, %v12535_v20  ;;  %v5648_v24 = vmul.f32 %v5640_v14, %v14885_v54  ;;  %v6062_v39 = vadd.f32 %v12521_v57, %v12220_v13  ;;  %v6022_v63 = vmul.f32 2.0, %v5998_v1  ;;  %4960 = vst.msk [vmem:[#allocation5 + $0x2b8] sm:$0xff] %vm4872_vm1, %v8436_v15  ;;  %5008 = vst.msk [vmem:[#allocation5 + $0x438] sm:$0xff] %vm4872_vm1, %v8508_v40  ;;  %v4263_v14 = vpop.f32.mrb[199].mxu0  ;;  %v4503_v54 = vpop.f32.mrb[135].mxu1  ;;  %v14889_v15 = vld [vmem:[#allocation145_spill] sm:$0xff] }
 0x2fd   : > { %v5678_v17 = vsel %vm4872_vm1, %v5668_v58, 0.0  ;;  %v5667_v11 = vmul.f32 %v5659_v22, %v12352_v43  ;;  %v5997_v37 = vsub.f32 %v5981_v42, %v14886_v10  ;;  %v5639_v58 = vadd.f32 0.0009, %v5631_v28  ;;  %4959 = vst.msk [vmem:[#allocation5 + $0x2b0] sm:$0xff] %vm4872_vm1, %v4263_v14  ;;  %5007 = vst.msk [vmem:[#allocation5 + $0x430] sm:$0xff] %vm4872_vm1, %v4503_v54  ;;  %v14891_v28 = vld [vmem:[#allocation150_spill] sm:$0xff] }
 0x2fe   : > { %v12607_v49 = vpop.eup %9016  ;;  %5679 = vadd.xlane.f32.xlu1 %v5678_v17  ;;  %v5938_v20 = vmul.f32 %v5930_v44, %v12415_v55  ;;  %9026 = vrcp.f32 %v5648_v24  ;;  %v6070_v13 = vadd.f32 0.0009, %v6062_v39  ;;  %v6030_v42 = vadd.f32 0.0009, %v6022_v63  ;;  %v5530_v44 = vld [vmem:[#allocation5 + $0x238] sm:$0xff]  ;;  %v14892_v54 = vld [vmem:[#allocation64_spill] sm:$0xff] }
 0x2ff   : > { %14887 = vst [vmem:[#allocation136_spill] sm:$0xff] %v12607_v49  ;;  %v5675_v22 = vsel %vm4872_vm1, %v5667_v11, 0.0  ;;  %v5929_v1 = vmul.f32 %v12607_v49, %v5873_v35  ;;  %v6021_v17 = vmul.f32 2.0, %v5997_v37  ;;  %v6035_v40 = vmul.f32 %v6027_v29, %v14889_v15  ;;  %v8439_v37 = vpop.f32.mrb[200].mxu0  ;;  %v8511_v38 = vpop.f32.mrb[136].mxu1  ;;  %v14893_v49 = vld [vmem:[#allocation152_spill] sm:$0xff] }
 0x300   : > { %v12616_v10 = vpop.eup %9018  ;;  %5676 = vadd.xlane.f32.xlu0 %v5675_v22  ;;  %v5647_v24 = vmul.f32 %v5639_v58, %v14890_v19  ;;  %v6078_v39 = vmul.f32 %v6070_v13, %v14891_v28  ;;  %v6061_v11 = vadd.f32 %v12530_v6, %v12229_v47  ;;  %v5960_v35 = vsel %vm4872_vm1, %v5938_v20, 0.0  ;;  %v5529_v29 = vld [vmem:[#allocation5 + $0x230] sm:$0xff]  ;;  %4962 = vst.msk [vmem:[#allocation5 + $0x2c8] sm:$0xff] %vm4872_vm1, %v8439_v37  ;;  %v4273_v13 = vpop.f32.mrb[201].mxu0  ;;  %v14979_v57 = vld [vmem:[#allocation74_spill] sm:$0xff] }
 0x301   : > { %14888 = vst [vmem:[#allocation148_spill] sm:$0xff] %v12616_v10  ;;  %v5937_v14 = vmul.f32 %v5929_v1, %v12419_v27  ;;  %v5662_v63 = vmul.f32 %v12616_v10, %v14892_v54  ;;  %v12628_v22 = vmul.f32 %v6030_v42, %v14893_v49  ;;  %v12630_v15 = vpop.eup %9020  ;;  %5010 = vst.msk [vmem:[#allocation5 + $0x448] sm:$0xff] %vm4872_vm1, %v8511_v38  ;;  %v4513_v19 = vpop.f32.mrb[137].mxu1  ;;  %v6029_v20 = vadd.f32 0.0009, %v6021_v17  ;;  %v14895_v1 = vld [vmem:[#allocation143_spill] sm:$0xff] }
 0x302   : > { %14894 = vst [vmem:[#allocation23_spill] sm:$0xff] %v12630_v15  ;;  %5961 = vadd.xlane.f32.xlu1 %v5960_v35  ;;  %9028 = vrcp.f32 %v5647_v24  ;;  %v6069_v58 = vadd.f32 0.0009, %v6061_v11  ;;  %v12635_v28 = vsub.f32 %v5530_v44, %v14895_v1  ;;  %v14898_v49 = vld [vmem:[#allocation199_spill] sm:$0xff]  ;;  %4961 = vst.msk [vmem:[#allocation5 + $0x2c0] sm:$0xff] %vm4872_vm1, %v4273_v13  ;;  %v14900_v44 = vld [vmem:[#allocation153_spill] sm:$0xff] }
 0x303   : > { %v12637_v54 = vpop.eup %9022  ;;  %v5957_v42 = vsel %vm4872_vm1, %v5937_v14, 0.0  ;;  %v5670_v47 = vmul.f32 %v5662_v63, %v12364_v53  ;;  %v5661_v35 = vmul.f32 %v12630_v15, %v14898_v49  ;;  %5009 = vst.msk [vmem:[#allocation5 + $0x440] sm:$0xff] %vm4872_vm1, %v4513_v19  ;;  %9030 = vrcp.f32 %v6078_v39  ;;  %v14901_v11 = vld [vmem:[#allocation36_spill] sm:$0xff]  ;;  %v14902_v14 = vld [vmem:[#allocation75_spill] sm:$0xff]  ;;  %v14903_v63 = vld [vmem:[#allocation197_spill] sm:$0xff]  ;;  %v8514_v10 = vpop.f32.mrb[138].mxu1 }
 0x304   : > { %14896 = vst [vmem:[#allocation150_spill] sm:$0xff] %v12635_v28  ;;  %14897 = vst [vmem:[#allocation64_spill] sm:$0xff] %v12637_v54  ;;  %v12645_v38 = vpop.eup %9024  ;;  %5958 = vadd.xlane.f32.xlu0 %v5957_v42  ;;  %v6092_v17 = vmul.f32 %v12637_v54, %v12583_v36  ;;  %v6077_v24 = vmul.f32 %v6069_v58, %v14900_v44  ;;  %v12652_v37 = vmul.f32 %v14902_v14, %v14901_v11  ;;  %v5984_v1 = vld [vmem:[#allocation5 + $0x3e8] sm:$0xff]  ;;  %v8442_v42 = vpop.f32.mrb[202].mxu0 }
 0x305   : > { %14899 = vst [vmem:[#allocation199_spill] sm:$0xff] %v12645_v38  ;;  %v5634_v49 = vadd.f32 %v12635_v28, %v14903_v63  ;;  %v5684_v13 = vsel %vm4872_vm1, %v5670_v47, 0.0  ;;  %v5669_v39 = vmul.f32 %v5661_v35, %v12368_v16  ;;  %v6091_v19 = vmul.f32 %v12645_v38, %v6035_v40  ;;  %v14904_v15 = vld [vmem:[#allocation144_spill] sm:$0xff]  ;;  %4964 = vst.msk [vmem:[#allocation5 + $0x2d8] sm:$0xff] %vm4872_vm1, %v8442_v42  ;;  %v4283_v44 = vpop.f32.mrb[203].mxu0  ;;  %v4523_v14 = vpop.f32.mrb[139].mxu1 }
 0x306   : > { %v12660_v36 = vsub.f32 %v5529_v29, %v14904_v15  ;;  %5685 = vadd.xlane.f32.xlu1 %v5684_v13  ;;  %v6100_v58 = vmul.f32 %v6092_v17, %v12339_v59  ;;  %5012 = vst.msk [vmem:[#allocation5 + $0x458] sm:$0xff] %vm4872_vm1, %v8514_v10  ;;  %v14906_v54 = vld [vmem:[#allocation155_spill] sm:$0xff]  ;;  %9032 = vrcp.f32 %v6077_v24  ;;  %4963 = vst.msk [vmem:[#allocation5 + $0x2d0] sm:$0xff] %vm4872_vm1, %v4283_v44  ;;  %v14907_v59 = vld [vmem:[#allocation62_spill] sm:$0xff] }
 0x307   : > { %v12666_v47 = vmul.f32 %v6029_v20, %v14906_v54  ;;  %v5642_v35 = vadd.f32 0.0009, %v5634_v49  ;;  %v5681_v40 = vsel %vm4872_vm1, %v5669_v39, 0.0  ;;  %v6099_v38 = vmul.f32 %v6091_v19, %v12352_v43  ;;  %5011 = vst.msk [vmem:[#allocation5 + $0x450] sm:$0xff] %vm4872_vm1, %v4523_v14  ;;  %v14908_v17 = vld [vmem:[#allocation146_spill] sm:$0xff]  ;;  %v14910_v24 = vld [vmem:[#allocation157_spill] sm:$0xff] }
 0x308   : > { %14905 = vst [vmem:[#allocation153_spill] sm:$0xff] %v12660_v36  ;;  %v5633_v29 = vadd.f32 %v12660_v36, %v14907_v59  ;;  %v6000_v10 = vsub.f32 %v5984_v1, %v14908_v17  ;;  %v5983_v13 = vld [vmem:[#allocation5 + $0x3e0] sm:$0xff]  ;;  %v12675_v42 = vpop.eup %9026  ;;  %5682 = vadd.xlane.f32.xlu0 %v5681_v40  ;;  %v6110_v20 = vsel %vm4872_vm1, %v6100_v58, 0.0  ;;  %v5601_v39 = vadd.f32 0.0009, %v12457_v34  ;;  %v5986_v19 = vld [vmem:[#allocation5 + $0x3f8] sm:$0xff] }
 0x309   : > { %14909 = vst [vmem:[#allocation75_spill] sm:$0xff] %v12675_v42  ;;  %v5650_v49 = vmul.f32 %v5642_v35, %v14910_v24  ;;  %v6064_v43 = vadd.f32 %v12556_v23, %v12247_v61  ;;  %v6107_v44 = vsel %vm4872_vm1, %v6099_v38, 0.0  ;;  %v14911_v14 = vld [vmem:[#allocation201_spill] sm:$0xff]  ;;  %v8445_v1 = vpop.f32.mrb[204].mxu0  ;;  %v8517_v17 = vpop.f32.mrb[140].mxu1  ;;  %v6063_v38 = vadd.f32 %v12586_v33, %v12255_v56 }
 0x30a   : > { %v5664_v54 = vmul.f32 %v12675_v42, %v14911_v14  ;;  %v5641_v11 = vadd.f32 0.0009, %v5633_v29  ;;  %v6024_v6 = vmul.f32 2.0, %v6000_v10  ;;  %6111 = vadd.xlane.f32.xlu1 %v6110_v20  ;;  %4966 = vst.msk [vmem:[#allocation5 + $0x2e8] sm:$0xff] %vm4872_vm1, %v8445_v1  ;;  %5014 = vst.msk [vmem:[#allocation5 + $0x468] sm:$0xff] %vm4872_vm1, %v8517_v17  ;;  %v4293_v58 = vpop.f32.mrb[205].mxu0  ;;  %v6066_v56 = vadd.f32 %v12635_v28, %v12275_v48 }
 0x30b   : > { %v4533_v34 = vpop.f32.mrb[141].mxu1  ;;  %9034 = vrcp.f32 %v5650_v49  ;;  %v6072_v35 = vadd.f32 0.0009, %v6064_v43  ;;  %v14912_v40 = vld [vmem:[#allocation149_spill] sm:$0xff]  ;;  %4965 = vst.msk [vmem:[#allocation5 + $0x2e0] sm:$0xff] %vm4872_vm1, %v4293_v58  ;;  %v14913_v29 = vld [vmem:[#allocation158_spill] sm:$0xff] }
 0x30c   : > { %v5999_v24 = vsub.f32 %v5983_v13, %v14912_v40  ;;  %v5672_v14 = vmul.f32 %v5664_v54, %v12395_v21  ;;  %5013 = vst.msk [vmem:[#allocation5 + $0x460] sm:$0xff] %vm4872_vm1, %v4533_v34  ;;  %v5649_v10 = vmul.f32 %v5641_v11, %v14913_v29  ;;  %v6032_v20 = vadd.f32 0.0009, %v6024_v6  ;;  %v14914_v1 = vld [vmem:[#allocation151_spill] sm:$0xff]  ;;  %v12695_v61 = vpop.eup %9028  ;;  %6108 = vadd.xlane.f32.xlu0 %v6107_v44  ;;  %v14916_v49 = vld [vmem:[#allocation161_spill] sm:$0xff]  ;;  %v14919_v11 = vld [vmem:[#allocation38_spill] sm:$0xff] }
 0x30d   : > { %v6002_v17 = vsub.f32 %v5986_v19, %v14914_v1  ;;  %14915 = vst [vmem:[#allocation157_spill] sm:$0xff] %v12695_v61  ;;  %v6080_v43 = vmul.f32 %v6072_v35, %v14916_v49  ;;  %v6071_v40 = vadd.f32 0.0009, %v6063_v38  ;;  %v5985_v54 = vld [vmem:[#allocation5 + $0x3f0] sm:$0xff]  ;;  %v12700_v42 = vpop.eup %9030  ;;  %v14918_v34 = vld [vmem:[#allocation71_spill] sm:$0xff]  ;;  %v12706_v19 = vmul.f32 %v5601_v39, %v14919_v11  ;;  %v8448_v44 = vpop.f32.mrb[206].mxu0 }
 0x30e   : > { %v6023_v13 = vmul.f32 2.0, %v5999_v24  ;;  %14917 = vst [vmem:[#allocation201_spill] sm:$0xff] %v12700_v42  ;;  %v5690_v58 = vsel %vm4872_vm1, %v5672_v14, 0.0  ;;  %v5663_v6 = vmul.f32 %v12695_v61, %v14918_v34  ;;  %9036 = vrcp.f32 %v5649_v10  ;;  %v8520_v29 = vpop.f32.mrb[142].mxu1  ;;  %4968 = vst.msk [vmem:[#allocation5 + $0x2f8] sm:$0xff] %vm4872_vm1, %v8448_v44  ;;  %v4303_v24 = vpop.f32.mrb[207].mxu0 }
 0x30f   : > { %5691 = vadd.xlane.f32.xlu1 %v5690_v58  ;;  %v6094_v35 = vmul.f32 %v12700_v42, %v12628_v22  ;;  %5016 = vst.msk [vmem:[#allocation5 + $0x478] sm:$0xff] %vm4872_vm1, %v8520_v29  ;;  %v4543_v38 = vpop.f32.mrb[143].mxu1  ;;  %9038 = vrcp.f32 %v6080_v43  ;;  %v14920_v49 = vld [vmem:[#allocation41_spill] sm:$0xff]  ;;  %4967 = vst.msk [vmem:[#allocation5 + $0x2f0] sm:$0xff] %vm4872_vm1, %v4303_v24  ;;  %v6026_v10 = vmul.f32 2.0, %v6002_v17  ;;  %v14921_v48 = vld [vmem:[#allocation156_spill] sm:$0xff] }
 0x310   : > { %v6031_v14 = vadd.f32 0.0009, %v6023_v13  ;;  %v6079_v34 = vmul.f32 %v6071_v40, %v14920_v49  ;;  %v5671_v39 = vmul.f32 %v5663_v6, %v12398_v18  ;;  %5015 = vst.msk [vmem:[#allocation5 + $0x470] sm:$0xff] %vm4872_vm1, %v4543_v38  ;;  %v6074_v58 = vadd.f32 0.0009, %v6066_v56  ;;  %v12717_v1 = vpop.eup %9032  ;;  %v14923_v29 = vld [vmem:[#allocation159_spill] sm:$0xff] }
 0x311   : > { %v6001_v22 = vsub.f32 %v5985_v54, %v14921_v48  ;;  %14922 = vst [vmem:[#allocation158_spill] sm:$0xff] %v12717_v1  ;;  %v6102_v44 = vmul.f32 %v6094_v35, %v12364_v53  ;;  %v6040_v42 = vmul.f32 %v6032_v20, %v14923_v29  ;;  %v6065_v40 = vadd.f32 %v12660_v36, %v12283_v25  ;;  %v6148_v43 = vld [vmem:[#allocation5 + $0x408] sm:$0xff]  ;;  %v8523_v17 = vpop.f32.mrb[144].mxu1  ;;  %v14926_v29 = vld [vmem:[#allocation162_spill] sm:$0xff] }
 0x312   : > { %9040 = vrcp.f32 %v6079_v34  ;;  %v5687_v13 = vsel %vm4872_vm1, %v5671_v39, 0.0  ;;  %v6093_v6 = vmul.f32 %v12717_v1, %v12666_v47  ;;  %v6034_v56 = vadd.f32 0.0009, %v6026_v10  ;;  %v14924_v24 = vld [vmem:[#allocation164_spill] sm:$0xff]  ;;  %5018 = vst.msk [vmem:[#allocation5 + $0x488] sm:$0xff] %vm4872_vm1, %v8523_v17  ;;  %v4553_v20 = vpop.f32.mrb[145].mxu1 }
 0x313   : > { %v6082_v54 = vmul.f32 %v6074_v58, %v14924_v24  ;;  %v5116_v38 = vld [vmem:[#allocation5 + $0x288] sm:$0xff]  ;;  %5688 = vadd.xlane.f32.xlu0 %v5687_v13  ;;  %v6116_v53 = vsel %vm4872_vm1, %v6102_v44, 0.0  ;;  %v6025_v35 = vmul.f32 2.0, %v6001_v22  ;;  %v6073_v49 = vadd.f32 0.0009, %v6065_v40  ;;  %v14925_v34 = vld [vmem:[#allocation73_spill] sm:$0xff] }
 0x314   : > { %v5428_v25 = vadd.f32 %v14925_v34, %v12150_v51  ;;  %v5118_v39 = vld [vmem:[#allocation5 + $0x298] sm:$0xff]  ;;  %6117 = vadd.xlane.f32.xlu1 %v6116_v53  ;;  %v6101_v47 = vmul.f32 %v6093_v6, %v12368_v16  ;;  %v6039_v10 = vmul.f32 %v6031_v14, %v14926_v29  ;;  %5017 = vst.msk [vmem:[#allocation5 + $0x480] sm:$0xff] %vm4872_vm1, %v4553_v20  ;;  %v14927_v58 = vld [vmem:[#allocation83_spill] sm:$0xff]  ;;  %v8526_v14 = vpop.f32.mrb[146].mxu1 }
 0x315   : > { %9042 = vrcp.f32 %v6082_v54  ;;  %v6156_v13 = vsub.f32 %v6148_v43, %v14927_v58  ;;  %v12735_v44 = vpop.eup %9034  ;;  %v6033_v17 = vadd.f32 0.0009, %v6025_v35  ;;  %v14929_v24 = vld [vmem:[#allocation165_spill] sm:$0xff]  ;;  %v14930_v1 = vld [vmem:[#allocation51_spill] sm:$0xff]  ;;  %5020 = vst.msk [vmem:[#allocation5 + $0x498] sm:$0xff] %vm4872_vm1, %v8526_v14  ;;  %v4563_v35 = vpop.f32.mrb[147].mxu1 }
 0x316   : > { %14928 = vst [vmem:[#allocation161_spill] sm:$0xff] %v12735_v44  ;;  %v6081_v22 = vmul.f32 %v6073_v49, %v14929_v24  ;;  %v5436_v40 = vadd.f32 0.0009, %v5428_v25  ;;  %v5164_v48 = vsub.f32 %v5116_v38, %v14930_v1  ;;  %v5115_v51 = vld [vmem:[#allocation5 + $0x280] sm:$0xff]  ;;  %v6113_v53 = vsel %vm4872_vm1, %v6101_v47, 0.0  ;;  %v14931_v20 = vld [vmem:[#allocation49_spill] sm:$0xff] }
 0x317   : > { %v5666_v16 = vmul.f32 %v12735_v44, %v12652_v37  ;;  %v6164_v6 = vmul.f32 2.0, %v6156_v13  ;;  %v5166_v54 = vsub.f32 %v5118_v39, %v14931_v20  ;;  %6114 = vadd.xlane.f32.xlu0 %v6113_v53  ;;  %v14932_v43 = vld [vmem:[#allocation21_spill] sm:$0xff]  ;;  %v14933_v25 = vld [vmem:[#allocation94_spill] sm:$0xff]  ;;  %5019 = vst.msk [vmem:[#allocation5 + $0x490] sm:$0xff] %vm4872_vm1, %v4563_v35  ;;  %v8529_v35 = vpop.f32.mrb[148].mxu1  ;;  %v5120_v44 = vld [vmem:[#allocation5 + $0x2a8] sm:$0xff] }
 0x318   : > { %v6042_v29 = vmul.f32 %v6034_v56, %v14932_v43  ;;  %9044 = vrcp.f32 %v6081_v22  ;;  %v5444_v49 = vmul.f32 %v5436_v40, %v14933_v25  ;;  %v5188_v1 = vmul.f32 2.0, %v5164_v48  ;;  %v12746_v38 = vpop.eup %9036  ;;  %v14935_v24 = vld [vmem:[#allocation166_spill] sm:$0xff]  ;;  %v14938_v48 = vld [vmem:[#allocation81_spill] sm:$0xff]  ;;  %5022 = vst.msk [vmem:[#allocation5 + $0x4a8] sm:$0xff] %vm4872_vm1, %v8529_v35  ;;  %v14959_v36 = vld [vmem:[#allocation167_spill] sm:$0xff] }
 0x319   : > { %14934 = vst [vmem:[#allocation71_spill] sm:$0xff] %v12746_v38  ;;  %v5674_v47 = vmul.f32 %v5666_v16, %v12415_v55  ;;  %v6041_v37 = vmul.f32 %v6033_v17, %v14935_v24  ;;  %v5190_v13 = vmul.f32 2.0, %v5166_v54  ;;  %v14936_v39 = vld [vmem:[#allocation42_spill] sm:$0xff]  ;;  %v12752_v20 = vpop.eup %9038  ;;  %v5665_v56 = vmul.f32 %v12746_v38, %v12706_v19  ;;  %v14944_v35 = vld [vmem:[#allocation105_spill] sm:$0xff] }
 0x31a   : > { %v5163_v53 = vsub.f32 %v5115_v51, %v14936_v39  ;;  %14937 = vst [vmem:[#allocation41_spill] sm:$0xff] %v12752_v20  ;;  %9046 = vrcp.f32 %v5444_v49  ;;  %v5196_v22 = vadd.f32 0.0009, %v5188_v1  ;;  %v5430_v40 = vadd.f32 %v14938_v48, %v12200_v41  ;;  %v6150_v14 = vld [vmem:[#allocation5 + $0x418] sm:$0xff]  ;;  %v14940_v39 = vld [vmem:[#allocation28_spill] sm:$0xff]  ;;  %v4573_v49 = vpop.f32.mrb[149].mxu1 }
 0x31b   : > { %v5696_v16 = vsel %vm4872_vm1, %v5674_v47, 0.0  ;;  %v6096_v17 = vmul.f32 %v12752_v20, %v6040_v42  ;;  %v6172_v25 = vadd.f32 0.0009, %v6164_v6  ;;  %v5198_v54 = vadd.f32 0.0009, %v5190_v13  ;;  %5021 = vst.msk [vmem:[#allocation5 + $0x4a0] sm:$0xff] %vm4872_vm1, %v4573_v49 }
 0x31c   : > { %v12760_v43 = vpop.eup %9040  ;;  %5697 = vadd.xlane.f32.xlu1 %v5696_v16  ;;  %v5673_v51 = vmul.f32 %v5665_v56, %v12419_v27  ;;  %v5204_v19 = vmul.f32 %v5196_v22, %v14940_v39  ;;  %v5187_v1 = vmul.f32 2.0, %v5163_v53  ;;  %v5438_v41 = vadd.f32 0.0009, %v5430_v40  ;;  %v14941_v42 = vld [vmem:[#allocation60_spill] sm:$0xff]  ;;  %v14942_v13 = vld [vmem:[#allocation95_spill] sm:$0xff]  ;;  %v14946_v40 = vld [vmem:[#allocation205_spill] sm:$0xff] }
 0x31d   : > { %14939 = vst [vmem:[#allocation164_spill] sm:$0xff] %v12760_v43  ;;  %v6104_v24 = vmul.f32 %v6096_v17, %v12395_v21  ;;  %v6095_v47 = vmul.f32 %v12760_v43, %v6039_v10  ;;  %v5206_v6 = vmul.f32 %v5198_v54, %v14941_v42  ;;  %v6158_v16 = vsub.f32 %v6150_v14, %v14942_v13  ;;  %v14943_v20 = vld [vmem:[#allocation203_spill] sm:$0xff]  ;;  %v8532_v54 = vpop.f32.mrb[150].mxu1  ;;  %v14957_v61 = vld [vmem:[#allocation154_spill] sm:$0xff] }
 0x31e   : > { %v5693_v56 = vsel %vm4872_vm1, %v5673_v51, 0.0  ;;  %v5260_v22 = vmul.f32 %v14943_v20, %v5204_v19  ;;  %v5195_v39 = vadd.f32 0.0009, %v5187_v1  ;;  %v5446_v38 = vmul.f32 %v5438_v41, %v14944_v35  ;;  %v6147_v14 = vld [vmem:[#allocation5 + $0x400] sm:$0xff]  ;;  %v12780_v20 = vld [vmem:[%s9534_s12 + $0x8] sm:$0xff]  ;;  %v14947_v19 = vld [vmem:[#allocation17_spill] sm:$0xff] }
 0x31f   : > { %v12773_v53 = vpop.eup %9042  ;;  %5694 = vadd.xlane.f32.xlu0 %v5693_v56  ;;  %v6122_v21 = vsel %vm4872_vm1, %v6104_v24, 0.0  ;;  %v6103_v10 = vmul.f32 %v6095_v47, %v12398_v18  ;;  %v5262_v17 = vmul.f32 %v14946_v40, %v5206_v6  ;;  %v6166_v49 = vmul.f32 2.0, %v6158_v16  ;;  %5024 = vst.msk [vmem:[#allocation5 + $0x4b8] sm:$0xff] %vm4872_vm1, %v8532_v54  ;;  %v4583_v24 = vpop.f32.mrb[151].mxu1  ;;  %v14948_v47 = vld [vmem:[#allocation104_spill] sm:$0xff]  ;;  %v12788_v6 = vld [vmem:[%s9534_s12 + $0x18] sm:$0xff] }
 0x320   : > { %14945 = vst [vmem:[#allocation83_spill] sm:$0xff] %v12773_v53  ;;  %6123 = vadd.xlane.f32.xlu1 %v6122_v21  ;;  %v6098_v51 = vmul.f32 %v12773_v53, %v6042_v29  ;;  %v5268_v41 = vmul.f32 %v12780_v20, %v5260_v22  ;;  %v5203_v1 = vmul.f32 %v5195_v39, %v14947_v19  ;;  %9048 = vrcp.f32 %v5446_v38  ;;  %v14949_v29 = vld [vmem:[#allocation202_spill] sm:$0xff]  ;;  %v5117_v22 = vld [vmem:[#allocation5 + $0x290] sm:$0xff] }
 0x321   : > { %v6119_v18 = vsel %vm4872_vm1, %v6103_v10, 0.0  ;;  %v6180_v42 = vmul.f32 %v6172_v25, %v14948_v47  ;;  %v5270_v16 = vmul.f32 %v12788_v6, %v5262_v17  ;;  %5023 = vst.msk [vmem:[#allocation5 + $0x4b0] sm:$0xff] %vm4872_vm1, %v4583_v24  ;;  %v5427_v56 = vadd.f32 %v14949_v29, %v12159_v32  ;;  %v14951_v38 = vld [vmem:[#allocation204_spill] sm:$0xff]  ;;  %v8535_v32 = vpop.f32.mrb[152].mxu1 }
 0x322   : > { %v12794_v39 = vpop.eup %9044  ;;  %v6106_v35 = vmul.f32 %v6098_v51, %v12415_v55  ;;  %v5259_v21 = vmul.f32 %v14951_v38, %v5203_v1  ;;  %v6174_v10 = vadd.f32 0.0009, %v6166_v49  ;;  %v14952_v40 = vld [vmem:[#allocation84_spill] sm:$0xff]  ;;  %v5278_v17 = vsel %vm4872_vm1, %v5268_v41, 0.0  ;;  %v12808_v51 = vld [vmem:[%s9534_s12] sm:$0xff]  ;;  %5026 = vst.msk [vmem:[#allocation5 + $0x4c8] sm:$0xff] %vm4872_vm1, %v8535_v32 }
 0x323   : > { %14950 = vst [vmem:[#allocation165_spill] sm:$0xff] %v12794_v39  ;;  %v6155_v25 = vsub.f32 %v6147_v14, %v14952_v40  ;;  %6120 = vadd.xlane.f32.xlu0 %v6119_v18  ;;  %v6097_v54 = vmul.f32 %v12794_v39, %v6041_v37  ;;  %v12802_v19 = vsel %vm4872_vm1, %v5270_v16, 0.0  ;;  %v5435_v24 = vadd.f32 0.0009, %v5427_v56  ;;  %v6149_v53 = vld [vmem:[#allocation5 + $0x410] sm:$0xff]  ;;  %v4593_v37 = vpop.f32.mrb[153].mxu1 }
 0x324   : > { %v12804_v43 = vpop.eup %9046  ;;  %v6128_v55 = vsel %vm4872_vm1, %v6106_v35, 0.0  ;;  %v5267_v49 = vmul.f32 %v12808_v51, %v5259_v21  ;;  %v14953_v1 = vld [vmem:[#allocation54_spill] sm:$0xff]  ;;  %v14954_v56 = vld [vmem:[#allocation117_spill] sm:$0xff]  ;;  %5025 = vst.msk [vmem:[#allocation5 + $0x4c0] sm:$0xff] %vm4872_vm1, %v4593_v37  ;;  %v14955_v35 = vld [vmem:[#allocation88_spill] sm:$0xff] }
 0x325   : > { %v6163_v14 = vmul.f32 2.0, %v6155_v25  ;;  %v5165_v41 = vsub.f32 %v5117_v22, %v14953_v1  ;;  %6129 = vadd.xlane.f32.xlu1 %v6128_v55  ;;  %v6105_v18 = vmul.f32 %v6097_v54, %v12419_v27  ;;  %v6188_v16 = vmul.f32 %v12804_v43, %v6180_v42  ;;  %v14956_v25 = vld [vmem:[#allocation115_spill] sm:$0xff] }
 0x326   : > { %v5443_v38 = vmul.f32 %v5435_v24, %v14954_v56  ;;  %v5429_v39 = vadd.f32 %v14955_v35, %v12211_v50  ;;  %v5275_v21 = vsel %vm4872_vm1, %v5267_v49, 0.0  ;;  %v6182_v32 = vmul.f32 %v6174_v10, %v14956_v25  ;;  %v5119_v55 = vld [vmem:[#allocation5 + $0x2a0] sm:$0xff]  ;;  %v8538_v24 = vpop.f32.mrb[154].mxu1  ;;  %v6152_v37 = vld [vmem:[#allocation5 + $0x428] sm:$0xff] }
 0x327   : > { %v5189_v11 = vmul.f32 2.0, %v5165_v41  ;;  %v6157_v22 = vsub.f32 %v6149_v53, %v14957_v61  ;;  %v6125_v27 = vsel %vm4872_vm1, %v6105_v18, 0.0  ;;  %v6196_v42 = vmul.f32 %v12780_v20, %v6188_v16  ;;  %5028 = vst.msk [vmem:[#allocation5 + $0x4d8] sm:$0xff] %vm4872_vm1, %v8538_v24  ;;  %v4603_v49 = vpop.f32.mrb[155].mxu1  ;;  %v14958_v10 = vld [vmem:[#allocation43_spill] sm:$0xff]  ;;  %v14960_v18 = vld [vmem:[#allocation50_spill] sm:$0xff] }
 0x328   : > { %9050 = vrcp.f32 %v5443_v38  ;;  %v5437_v54 = vadd.f32 0.0009, %v5429_v39  ;;  %6126 = vadd.xlane.f32.xlu0 %v6125_v27  ;;  %v6171_v1 = vadd.f32 0.0009, %v6163_v14  ;;  %v5168_v41 = vsub.f32 %v5120_v44, %v14958_v10  ;;  %5027 = vst.msk [vmem:[#allocation5 + $0x4d0] sm:$0xff] %vm4872_vm1, %v4603_v49  ;;  %v14962_v24 = vld [vmem:[#allocation80_spill] sm:$0xff] }
 0x329   : > { %v5197_v56 = vadd.f32 0.0009, %v5189_v11  ;;  %v6165_v50 = vmul.f32 2.0, %v6157_v22  ;;  %v6206_v53 = vsel %vm4872_vm1, %v6196_v42, 0.0  ;;  %v5167_v16 = vsub.f32 %v5119_v55, %v14960_v18  ;;  %v14961_v11 = vld [vmem:[#allocation63_spill] sm:$0xff]  ;;  %v14963_v10 = vld [vmem:[#allocation116_spill] sm:$0xff] }
 0x32a   : > { %v5445_v28 = vmul.f32 %v5437_v54, %v14959_v36  ;;  %v5432_v39 = vadd.f32 %v12443_v52, %v12223_v3  ;;  %v12832_v38 = vpop.eup %9048  ;;  %6207 = vadd.xlane.f32.xlu1 %v6206_v53  ;;  %v5192_v27 = vmul.f32 2.0, %v5168_v41  ;;  %v6160_v44 = vsub.f32 %v6152_v37, %v14962_v24  ;;  %v8541_v54 = vpop.f32.mrb[156].mxu1  ;;  %v6151_v55 = vld [vmem:[#allocation5 + $0x420] sm:$0xff] }
 0x32b   : > { %v5205_v14 = vmul.f32 %v5197_v56, %v14961_v11  ;;  %v6173_v22 = vadd.f32 0.0009, %v6165_v50  ;;  %v6190_v42 = vmul.f32 %v12832_v38, %v6182_v32  ;;  %v5191_v36 = vmul.f32 2.0, %v5167_v16  ;;  %v14964_v3 = vld [vmem:[#allocation91_spill] sm:$0xff]  ;;  %5030 = vst.msk [vmem:[#allocation5 + $0x4e8] sm:$0xff] %vm4872_vm1, %v8541_v54  ;;  %v4613_v50 = vpop.f32.mrb[157].mxu1 }
 0x32c   : > { %9052 = vrcp.f32 %v5445_v28  ;;  %v5440_v49 = vadd.f32 0.0009, %v5432_v39  ;;  %5279 = vadd.xlane.f32.xlu0 %v5278_v17  ;;  %v6179_v18 = vmul.f32 %v6171_v1, %v14963_v10  ;;  %v5200_v53 = vadd.f32 0.0009, %v5192_v27  ;;  %5029 = vst.msk [vmem:[#allocation5 + $0x4e0] sm:$0xff] %vm4872_vm1, %v4613_v50  ;;  %v14965_v28 = vld [vmem:[#allocation22_spill] sm:$0xff] }
 0x32d   : > { %v5261_v33 = vmul.f32 %v14964_v3, %v5205_v14  ;;  %v6168_v56 = vmul.f32 2.0, %v6160_v44  ;;  %v6198_v37 = vmul.f32 %v12788_v6, %v6190_v42  ;;  %v5199_v41 = vadd.f32 0.0009, %v5191_v36  ;;  %v12847_v17 = vld [vmem:[%s9534_s12 + $0x10] sm:$0xff]  ;;  %v14966_v1 = vld [vmem:[#allocation30_spill] sm:$0xff] }
 0x32e   : > { %v5448_v32 = vmul.f32 %v5440_v49, %v14965_v28  ;;  %v5431_v16 = vadd.f32 %v12464_v4, %v12232_v30  ;;  %5285 = vadd.xlane.f32.xlu1 %v12802_v19  ;;  %v6181_v39 = vmul.f32 %v6173_v22, %v14966_v1  ;;  %v14967_v11 = vld [vmem:[#allocation68_spill] sm:$0xff]  ;;  %v5122_v42 = vld [vmem:[#allocation5 + $0x2b8] sm:$0xff]  ;;  %v8544_v30 = vpop.f32.mrb[158].mxu1 }
 0x32f   : > { %v5269_v3 = vmul.f32 %v12847_v17, %v5261_v33  ;;  %v5208_v14 = vmul.f32 %v5200_v53, %v14967_v11  ;;  %v14968_v27 = vld [vmem:[#allocation160_spill] sm:$0xff]  ;;  %v6176_v49 = vadd.f32 0.0009, %v6168_v56  ;;  %v6212_v19 = vsel %vm4872_vm1, %v6198_v37, 0.0  ;;  %v14970_v4 = vld [vmem:[#allocation206_spill] sm:$0xff]  ;;  %5032 = vst.msk [vmem:[#allocation5 + $0x4f8] sm:$0xff] %vm4872_vm1, %v8544_v30 }
 0x330   : > { %v6159_v44 = vsub.f32 %v6151_v55, %v14968_v27  ;;  %v5121_v36 = vld [vmem:[#allocation5 + $0x2b0] sm:$0xff]  ;;  %9054 = vrcp.f32 %v5448_v32  ;;  %v5439_v28 = vadd.f32 0.0009, %v5431_v16  ;;  %5276 = vadd.xlane.f32.xlu0 %v5275_v21  ;;  %v4623_v55 = vpop.f32.mrb[159].mxu1  ;;  %v14971_v11 = vld [vmem:[#allocation207_spill] sm:$0xff] }
 0x331   : > { %v14969_v54 = vld [vmem:[#allocation72_spill] sm:$0xff]  ;;  %v5281_v33 = vsel %vm4872_vm1, %v5269_v3, 0.0  ;;  %v5264_v22 = vmul.f32 %v14970_v4, %v5208_v14  ;;  %5031 = vst.msk [vmem:[#allocation5 + $0x4f0] sm:$0xff] %vm4872_vm1, %v4623_v55 }
 0x332   : > { %v5207_v50 = vmul.f32 %v5199_v41, %v14969_v54  ;;  %v6167_v23 = vmul.f32 2.0, %v6159_v44  ;;  %v12858_v53 = vpop.eup %9050  ;;  %v14972_v32 = vld [vmem:[#allocation168_spill] sm:$0xff]  ;;  %v14974_v54 = vld [vmem:[#allocation19_spill] sm:$0xff]  ;;  %6213 = vadd.xlane.f32.xlu1 %v6212_v19  ;;  %v5434_v44 = vadd.f32 %v12494_v8, %v14903_v63 }
 0x333   : > { %v5447_v56 = vmul.f32 %v5439_v28, %v14972_v32  ;;  %v14973_v16 = vld [vmem:[#allocation32_spill] sm:$0xff]  ;;  %v5169_v37 = vsub.f32 %v5121_v36, %v14974_v54  ;;  %v6187_v4 = vmul.f32 %v12858_v53, %v6179_v18  ;;  %v14975_v28 = vld [vmem:[#allocation169_spill] sm:$0xff]  ;;  %v8547_v32 = vpop.f32.mrb[160].mxu1  ;;  %v12876_v18 = vld [vmem:[%s9534_s12 + $0x20] sm:$0xff] }
 0x334   : > { %v5263_v41 = vmul.f32 %v14971_v11, %v5207_v50  ;;  %v5170_v21 = vsub.f32 %v5122_v42, %v14973_v16  ;;  %v12867_v3 = vld [vmem:[%s9534_s12 + $0x28] sm:$0xff]  ;;  %v6175_v14 = vadd.f32 0.0009, %v6167_v23  ;;  %v6154_v50 = vld [vmem:[#allocation5 + $0x438] sm:$0xff]  ;;  %v6184_v11 = vmul.f32 %v6176_v49, %v14975_v28  ;;  %5034 = vst.msk [vmem:[#allocation5 + $0x508] sm:$0xff] %vm4872_vm1, %v8547_v32  ;;  %v4633_v23 = vpop.f32.mrb[161].mxu1 }
 0x335   : > { %v5272_v30 = vmul.f32 %v12867_v3, %v5264_v22  ;;  %9056 = vrcp.f32 %v5447_v56  ;;  %v5193_v42 = vmul.f32 2.0, %v5169_v37  ;;  %v6195_v36 = vmul.f32 %v12808_v51, %v6187_v4  ;;  %v6153_v54 = vld [vmem:[#allocation5 + $0x430] sm:$0xff]  ;;  %v14976_v49 = vld [vmem:[#allocation170_spill] sm:$0xff]  ;;  %5033 = vst.msk [vmem:[#allocation5 + $0x500] sm:$0xff] %vm4872_vm1, %v4633_v23  ;;  %v14977_v4 = vld [vmem:[#allocation163_spill] sm:$0xff] }
 0x336   : > { %v5194_v55 = vmul.f32 2.0, %v5170_v21  ;;  %v5271_v16 = vmul.f32 %v12876_v18, %v5263_v41  ;;  %v5442_v22 = vadd.f32 0.0009, %v5434_v44  ;;  %v12880_v63 = vpop.eup %9052  ;;  %v6183_v56 = vmul.f32 %v6175_v14, %v14976_v49  ;;  %5282 = vadd.xlane.f32.xlu1 %v5281_v33  ;;  %v14978_v32 = vld [vmem:[#allocation35_spill] sm:$0xff]  ;;  %v14981_v23 = vld [vmem:[#allocation93_spill] sm:$0xff] }
 0x337   : > { %v5290_v19 = vsel %vm4872_vm1, %v5272_v30, 0.0  ;;  %v5201_v37 = vadd.f32 0.0009, %v5193_v42  ;;  %v6162_v8 = vsub.f32 %v6154_v50, %v14977_v4  ;;  %v5332_v30 = vld [vmem:[#allocation5 + $0x2c8] sm:$0xff]  ;;  %v6203_v52 = vsel %vm4872_vm1, %v6195_v36, 0.0  ;;  %v8550_v50 = vpop.f32.mrb[162].mxu1 }
 0x338   : > { %v5202_v21 = vadd.f32 0.0009, %v5194_v55  ;;  %v6189_v41 = vmul.f32 %v12880_v63, %v6181_v39  ;;  %v5450_v35 = vmul.f32 %v5442_v22, %v14978_v32  ;;  %v5433_v44 = vadd.f32 %v12511_v46, %v14907_v59  ;;  %6204 = vadd.xlane.f32.xlu0 %v6203_v52  ;;  %v14980_v55 = vld [vmem:[#allocation78_spill] sm:$0xff]  ;;  %5036 = vst.msk [vmem:[#allocation5 + $0x518] sm:$0xff] %vm4872_vm1, %v8550_v50  ;;  %v4643_v39 = vpop.f32.mrb[163].mxu1  ;;  %v14982_v52 = vld [vmem:[#allocation208_spill] sm:$0xff] }
 0x339   : > { %v5209_v42 = vmul.f32 %v5201_v37, %v14980_v55  ;;  %v6170_v48 = vmul.f32 2.0, %v6162_v8  ;;  %v6161_v0 = vsub.f32 %v6153_v54, %v14981_v23  ;;  %v5364_v36 = vsub.f32 %v5332_v30, %v14927_v58  ;;  %5035 = vst.msk [vmem:[#allocation5 + $0x510] sm:$0xff] %vm4872_vm1, %v4643_v39  ;;  %v5331_v37 = vld [vmem:[#allocation5 + $0x2c0] sm:$0xff]  ;;  %v14983_v32 = vld [vmem:[#allocation172_spill] sm:$0xff]  ;;  %v12906_v55 = vld [vmem:[%s9534_s12 + $0x38] sm:$0xff] }
 0x33a   : > { %v5210_v14 = vmul.f32 %v5202_v21, %v14979_v57  ;;  %v6197_v9 = vmul.f32 %v12847_v17, %v6189_v41  ;;  %9058 = vrcp.f32 %v5450_v35  ;;  %v5441_v33 = vadd.f32 0.0009, %v5433_v44  ;;  %v12896_v22 = vpop.eup %9054  ;;  %5291 = vadd.xlane.f32.xlu1 %v5290_v19  ;;  %v6244_v44 = vld [vmem:[#allocation5 + $0x448] sm:$0xff]  ;;  %v8553_v19 = vpop.f32.mrb[164].mxu1  ;;  %v6243_v39 = vld [vmem:[#allocation5 + $0x440] sm:$0xff] }
 0x33b   : > { %v5265_v8 = vmul.f32 %v12391_v31, %v5209_v42  ;;  %v6178_v21 = vadd.f32 0.0009, %v6170_v48  ;;  %v6169_v54 = vmul.f32 2.0, %v6161_v0  ;;  %v6192_v41 = vmul.f32 %v12896_v22, %v6184_v11  ;;  %v12910_v0 = vld [vmem:[%s9534_s12 + $0x30] sm:$0xff]  ;;  %v14984_v42 = vld [vmem:[#allocation171_spill] sm:$0xff]  ;;  %5038 = vst.msk [vmem:[#allocation5 + $0x528] sm:$0xff] %vm4872_vm1, %v8553_v19 }
 0x33c   : > { %v5266_v57 = vmul.f32 %v14982_v52, %v5210_v14  ;;  %v6209_v35 = vsel %vm4872_vm1, %v6197_v9, 0.0  ;;  %v5449_v58 = vmul.f32 %v5441_v33, %v14983_v32  ;;  %v5388_v30 = vmul.f32 2.0, %v5364_v36  ;;  %v5334_v36 = vld [vmem:[#allocation5 + $0x2d8] sm:$0xff]  ;;  %v5333_v52 = vld [vmem:[#allocation5 + $0x2d0] sm:$0xff] }
 0x33d   : > { %6210 = vadd.xlane.f32.xlu0 %v6209_v35  ;;  %v5287_v14 = vsel %vm4872_vm1, %v5271_v16, 0.0  ;;  %v5273_v48 = vmul.f32 %v12910_v0, %v5265_v8  ;;  %v6186_v9 = vmul.f32 %v6178_v21, %v14984_v42  ;;  %v6200_v11 = vmul.f32 %v12867_v3, %v6192_v41  ;;  %v4653_v16 = vpop.f32.mrb[165].mxu1  ;;  %v14985_v41 = vld [vmem:[#allocation66_spill] sm:$0xff] }
 0x33e   : > { %v5274_v31 = vmul.f32 %v12906_v55, %v5266_v57  ;;  %9060 = vrcp.f32 %v5449_v58  ;;  %v5396_v50 = vadd.f32 0.0009, %v5388_v30  ;;  %v5363_v33 = vsub.f32 %v5331_v37, %v14952_v40  ;;  %5037 = vst.msk [vmem:[#allocation5 + $0x520] sm:$0xff] %vm4872_vm1, %v4653_v16  ;;  %v6246_v58 = vld [vmem:[#allocation5 + $0x458] sm:$0xff]  ;;  %v8556_v29 = vpop.f32.mrb[166].mxu1 }
 0x33f   : > { %v12917_v57 = vpop.eup %9056  ;;  %v5293_v8 = vsel %vm4872_vm1, %v5273_v48, 0.0  ;;  %v6177_v21 = vadd.f32 0.0009, %v6169_v54  ;;  %v6252_v32 = vsub.f32 %v6244_v44, %v14985_v41  ;;  %v6218_v40 = vsel %vm4872_vm1, %v6200_v11, 0.0  ;;  %v14986_v46 = vld [vmem:[#allocation70_spill] sm:$0xff]  ;;  %5040 = vst.msk [vmem:[#allocation5 + $0x538] sm:$0xff] %vm4872_vm1, %v8556_v29 }
 0x340   : > { %v5296_v35 = vsel %vm4872_vm1, %v5274_v31, 0.0  ;;  %v6191_v37 = vmul.f32 %v12917_v57, %v6183_v56  ;;  %v5404_v30 = vmul.f32 %v5396_v50, %v14948_v47  ;;  %v5387_v19 = vmul.f32 2.0, %v5363_v33  ;;  %6219 = vadd.xlane.f32.xlu1 %v6218_v40  ;;  %v4663_v56 = vpop.f32.mrb[167].mxu1  ;;  %v14987_v47 = vld [vmem:[#allocation77_spill] sm:$0xff] }
 0x341   : > { %5288 = vadd.xlane.f32.xlu0 %v5287_v14  ;;  %v6260_v59 = vmul.f32 2.0, %v6252_v32  ;;  %v6251_v31 = vsub.f32 %v6243_v39, %v14986_v46  ;;  %v5366_v54 = vsub.f32 %v5334_v36, %v14942_v13  ;;  %v5365_v48 = vsub.f32 %v5333_v52, %v14957_v61  ;;  %5039 = vst.msk [vmem:[#allocation5 + $0x530] sm:$0xff] %vm4872_vm1, %v4663_v56  ;;  %v14988_v13 = vld [vmem:[#allocation37_spill] sm:$0xff]  ;;  %v8559_v40 = vpop.f32.mrb[168].mxu1  ;;  %v14990_v56 = vld [vmem:[#allocation79_spill] sm:$0xff] }
 0x342   : > { %v6199_v44 = vmul.f32 %v12876_v18, %v6191_v37  ;;  %v5460_v16 = vmul.f32 %v12804_v43, %v5404_v30  ;;  %v5395_v11 = vadd.f32 0.0009, %v5387_v19  ;;  %v6254_v50 = vsub.f32 %v6246_v58, %v14987_v47  ;;  %v6245_v37 = vld [vmem:[#allocation5 + $0x450] sm:$0xff]  ;;  %5042 = vst.msk [vmem:[#allocation5 + $0x548] sm:$0xff] %vm4872_vm1, %v8559_v40 }
 0x343   : > { %v6268_v14 = vadd.f32 0.0009, %v6260_v59  ;;  %v6259_v33 = vmul.f32 2.0, %v6251_v31  ;;  %v5390_v46 = vmul.f32 2.0, %v5366_v54  ;;  %v5389_v39 = vmul.f32 2.0, %v5365_v48  ;;  %v14994_v40 = vld [vmem:[#allocation185_spill] sm:$0xff] }
 0x344   : > { %v12934_v41 = vpop.eup %9058  ;;  %v6215_v61 = vsel %vm4872_vm1, %v6199_v44, 0.0  ;;  %v6185_v36 = vmul.f32 %v6177_v21, %v14988_v13  ;;  %v5403_v43 = vmul.f32 %v5395_v11, %v14963_v10  ;;  %v6262_v52 = vmul.f32 2.0, %v6254_v50  ;;  %5297 = vadd.xlane.f32.xlu1 %v5296_v35  ;;  %v4673_v21 = vpop.f32.mrb[169].mxu1 }
 0x345   : > { %6216 = vadd.xlane.f32.xlu0 %v6215_v61  ;;  %v6194_v29 = vmul.f32 %v12934_v41, %v6186_v9  ;;  %v6276_v59 = vmul.f32 %v6268_v14, %v14843_v12  ;;  %v6267_v32 = vadd.f32 0.0009, %v6259_v33  ;;  %v5398_v58 = vadd.f32 0.0009, %v5390_v46  ;;  %5041 = vst.msk [vmem:[#allocation5 + $0x540] sm:$0xff] %vm4872_vm1, %v4673_v21  ;;  %v5336_v14 = vld [vmem:[#allocation5 + $0x2e8] sm:$0xff] }
 0x346   : > { %v5468_v30 = vmul.f32 %v12780_v20, %v5460_v16  ;;  %v5459_v19 = vmul.f32 %v12858_v53, %v5403_v43  ;;  %v5397_v31 = vadd.f32 0.0009, %v5389_v39  ;;  %v6270_v10 = vadd.f32 0.0009, %v6262_v52  ;;  %v14989_v16 = vld [vmem:[#allocation96_spill] sm:$0xff]  ;;  %v14991_v33 = vld [vmem:[#allocation182_spill] sm:$0xff] }
 0x347   : > { %v6202_v54 = vmul.f32 %v12906_v55, %v6194_v29  ;;  %v6284_v35 = vmul.f32 %v12421_v60, %v6276_v59  ;;  %v6275_v9 = vmul.f32 %v6267_v32, %v14845_v45  ;;  %v5406_v12 = vmul.f32 %v5398_v58, %v14956_v25  ;;  %v8562_v25 = vpop.f32.mrb[170].mxu1  ;;  %v14992_v39 = vld [vmem:[#allocation97_spill] sm:$0xff]  ;;  %v5335_v52 = vld [vmem:[#allocation5 + $0x2e0] sm:$0xff]  ;;  %v6248_v58 = vld [vmem:[#allocation5 + $0x468] sm:$0xff] }
 0x348   : > { %v12949_v48 = vpop.eup %9060  ;;  %v5467_v44 = vmul.f32 %v12808_v51, %v5459_v19  ;;  %v5405_v53 = vmul.f32 %v5397_v31, %v14966_v1  ;;  %v6278_v11 = vmul.f32 %v6270_v10, %v14989_v16  ;;  %v6253_v47 = vsub.f32 %v6245_v37, %v14990_v56  ;;  %5044 = vst.msk [vmem:[#allocation5 + $0x558] sm:$0xff] %vm4872_vm1, %v8562_v25  ;;  %v14993_v29 = vld [vmem:[#allocation183_spill] sm:$0xff]  ;;  %v14995_v31 = vld [vmem:[#allocation90_spill] sm:$0xff] }
 0x349   : > { %5294 = vadd.xlane.f32.xlu0 %v5293_v8  ;;  %v6224_v50 = vsel %vm4872_vm1, %v6202_v54, 0.0  ;;  %v6193_v60 = vmul.f32 %v12949_v48, %v6185_v36  ;;  %v6292_v45 = vmul.f32 %v12780_v20, %v6284_v35  ;;  %v12959_v46 = vmul.f32 2.0, %v14991_v33  ;;  %v4683_v8 = vpop.f32.mrb[171].mxu1  ;;  %v6247_v54 = vld [vmem:[#allocation5 + $0x460] sm:$0xff]  ;;  %v5338_v35 = vld [vmem:[#allocation5 + $0x2f8] sm:$0xff] }
 0x34a   : > { %6225 = vadd.xlane.f32.xlu1 %v6224_v50  ;;  %v6283_v61 = vmul.f32 %v14992_v39, %v6275_v9  ;;  %v5462_v1 = vmul.f32 %v12832_v38, %v5406_v12  ;;  %v5461_v43 = vmul.f32 %v12880_v63, %v5405_v53  ;;  %v12966_v36 = vadd.f32 0.0001, %v14993_v29  ;;  %5043 = vst.msk [vmem:[#allocation5 + $0x550] sm:$0xff] %vm4872_vm1, %v4683_v8  ;;  %v6250_v9 = vld [vmem:[#allocation5 + $0x478] sm:$0xff]  ;;  %v5337_v50 = vld [vmem:[#allocation5 + $0x2f0] sm:$0xff] }
 0x34b   : > { %v6201_v59 = vmul.f32 %v12910_v0, %v6193_v60  ;;  %v6261_v32 = vmul.f32 2.0, %v6253_v47  ;;  %v12971_v37 = vmul.f32 2.0, %v14994_v40  ;;  %v12975_v38 = vadd.f32 %v14904_v15, %v11749_v26  ;;  %v8565_v47 = vpop.f32.mrb[172].mxu1  ;;  %v14996_v25 = vld [vmem:[#allocation98_spill] sm:$0xff]  ;;  %v14998_v8 = vld [vmem:[#allocation89_spill] sm:$0xff] }
 0x34c   : > { %v5478_v63 = vsel %vm4872_vm1, %v5468_v30, 0.0  ;;  %v5475_v19 = vsel %vm4872_vm1, %v5467_v44, 0.0  ;;  %v6286_v21 = vmul.f32 %v14995_v31, %v6278_v11  ;;  %v5368_v10 = vsub.f32 %v5336_v14, %v14962_v24  ;;  %5046 = vst.msk [vmem:[#allocation5 + $0x568] sm:$0xff] %vm4872_vm1, %v8565_v47  ;;  %v4693_v60 = vpop.f32.mrb[173].mxu1  ;;  %v15031_v15 = vld [vmem:[#allocation177_spill] sm:$0xff]  ;;  %v6603_v26 = vld [vmem:[#allocation5 + $0x500] sm:$0xff] }
 0x34d   : > { %v6221_v12 = vsel %vm4872_vm1, %v6201_v59, 0.0  ;;  %v6302_v53 = vsel %vm4872_vm1, %v6292_v45, 0.0  ;;  %v6269_v16 = vadd.f32 0.0009, %v6261_v32  ;;  %v5367_v56 = vsub.f32 %v5335_v52, %v14968_v27  ;;  %5045 = vst.msk [vmem:[#allocation5 + $0x560] sm:$0xff] %vm4872_vm1, %v4693_v60  ;;  %v14997_v27 = vld [vmem:[#allocation86_spill] sm:$0xff] }
 0x34e   : > { %6222 = vadd.xlane.f32.xlu0 %v6221_v12  ;;  %5479 = vadd.xlane.f32.xlu1 %v5478_v63  ;;  %v6291_v30 = vmul.f32 %v12808_v51, %v6283_v61  ;;  %v5470_v44 = vmul.f32 %v12788_v6, %v5462_v1  ;;  %v5469_v24 = vmul.f32 %v12847_v17, %v5461_v43  ;;  %v5392_v11 = vmul.f32 2.0, %v5368_v10  ;;  %v14999_v59 = vld [vmem:[#allocation100_spill] sm:$0xff]  ;;  %v8568_v12 = vpop.f32.mrb[174].mxu1 }
 0x34f   : > { %v6277_v14 = vmul.f32 %v6269_v16, %v14996_v25  ;;  %v5391_v45 = vmul.f32 2.0, %v5367_v56  ;;  %v6256_v39 = vsub.f32 %v6248_v58, %v14997_v27  ;;  %v6255_v52 = vsub.f32 %v6247_v54, %v14998_v8  ;;  %5048 = vst.msk [vmem:[#allocation5 + $0x578] sm:$0xff] %vm4872_vm1, %v8568_v12  ;;  %v4703_v58 = vpop.f32.mrb[175].mxu1  ;;  %v15001_v25 = vld [vmem:[#allocation106_spill] sm:$0xff]  ;;  %v6249_v8 = vld [vmem:[#allocation5 + $0x470] sm:$0xff] }
 0x350   : > { %v5400_v29 = vadd.f32 0.0009, %v5392_v11  ;;  %v5370_v61 = vsub.f32 %v5338_v35, %v14977_v4  ;;  %v5369_v1 = vsub.f32 %v5337_v50, %v14981_v23  ;;  %v6258_v43 = vsub.f32 %v6250_v9, %v14999_v59  ;;  %v15000_v35 = vld [vmem:[#allocation112_spill] sm:$0xff]  ;;  %5047 = vst.msk [vmem:[#allocation5 + $0x570] sm:$0xff] %vm4872_vm1, %v4703_v58  ;;  %v15002_v27 = vld [vmem:[#allocation110_spill] sm:$0xff] }
 0x351   : > { %v6294_v32 = vmul.f32 %v12788_v6, %v6286_v21  ;;  %v5399_v63 = vadd.f32 0.0009, %v5391_v45  ;;  %v6264_v31 = vmul.f32 2.0, %v6256_v39  ;;  %v6263_v10 = vmul.f32 2.0, %v6255_v52 }
 0x352   : > { %5476 = vadd.xlane.f32.xlu0 %v5475_v19  ;;  %6303 = vadd.xlane.f32.xlu1 %v6302_v53  ;;  %v5408_v16 = vmul.f32 %v5400_v29, %v14975_v28  ;;  %v5394_v54 = vmul.f32 2.0, %v5370_v61  ;;  %v5393_v56 = vmul.f32 2.0, %v5369_v1  ;;  %v6266_v4 = vmul.f32 2.0, %v6258_v43  ;;  %v6340_v43 = vld [vmem:[#allocation5 + $0x488] sm:$0xff] }
 0x353   : > { %v6285_v23 = vmul.f32 %v15000_v35, %v6277_v14  ;;  %v5407_v9 = vmul.f32 %v5399_v63, %v14976_v49  ;;  %v6272_v47 = vadd.f32 0.0009, %v6264_v31  ;;  %v6271_v21 = vadd.f32 0.0009, %v6263_v10  ;;  %v8571_v14 = vpop.f32.mrb[176].mxu1  ;;  %v15006_v10 = vld [vmem:[#allocation103_spill] sm:$0xff] }
 0x354   : > { %v5464_v50 = vmul.f32 %v12896_v22, %v5408_v16  ;;  %v5402_v19 = vadd.f32 0.0009, %v5394_v54  ;;  %v5401_v53 = vadd.f32 0.0009, %v5393_v56  ;;  %v6274_v11 = vadd.f32 0.0009, %v6266_v4 }
 0x355   : > { %v6299_v28 = vsel %vm4872_vm1, %v6291_v30, 0.0  ;;  %v5484_v60 = vsel %vm4872_vm1, %v5470_v44, 0.0  ;;  %v6280_v45 = vmul.f32 %v6272_v47, %v15001_v25  ;;  %v6279_v39 = vmul.f32 %v6271_v21, %v15002_v27  ;;  %5050 = vst.msk [vmem:[#allocation5 + $0x588] sm:$0xff] %vm4872_vm1, %v8571_v14  ;;  %v4713_v29 = vpop.f32.mrb[177].mxu1  ;;  %v15003_v30 = vld [vmem:[#allocation186_spill] sm:$0xff]  ;;  %v15010_v14 = vld [vmem:[#allocation107_spill] sm:$0xff] }
 0x356   : > { %6300 = vadd.xlane.f32.xlu0 %v6299_v28  ;;  %5485 = vadd.xlane.f32.xlu1 %v5484_v60  ;;  %v5463_v49 = vmul.f32 %v12917_v57, %v5407_v9  ;;  %v5410_v52 = vmul.f32 %v5402_v19, %v14984_v42  ;;  %v5409_v22 = vmul.f32 %v5401_v53, %v14988_v13  ;;  %v13011_v61 = vadd.f32 0.0001, %v15003_v30  ;;  %v15004_v57 = vld [vmem:[#allocation192_spill] sm:$0xff]  ;;  %v8574_v56 = vpop.f32.mrb[178].mxu1  ;;  %v15007_v9 = vld [vmem:[#allocation59_spill] sm:$0xff] }
 0x357   : > { %v6293_v44 = vmul.f32 %v12847_v17, %v6285_v23  ;;  %v5472_v1 = vmul.f32 %v12867_v3, %v5464_v50  ;;  %v6288_v59 = vmul.f32 %v12550_v2, %v6280_v45  ;;  %5049 = vst.msk [vmem:[#allocation5 + $0x580] sm:$0xff] %vm4872_vm1, %v4713_v29  ;;  %v13018_v63 = vmul.f32 2.0, %v15004_v57  ;;  %v15005_v13 = vld [vmem:[#allocation120_spill] sm:$0xff]  ;;  %5052 = vst.msk [vmem:[#allocation5 + $0x598] sm:$0xff] %vm4872_vm1, %v8574_v56  ;;  %v6339_v47 = vld [vmem:[#allocation5 + $0x480] sm:$0xff] }
 0x358   : > { %v6287_v42 = vmul.f32 %v12558_v7, %v6279_v39  ;;  %v6282_v31 = vmul.f32 %v6274_v11, %v15005_v13  ;;  %v6257_v12 = vsub.f32 %v6249_v8, %v15006_v10  ;;  %v13024_v16 = vadd.f32 0.0001, %v12959_v46  ;;  %v4723_v46 = vpop.f32.mrb[179].mxu1  ;;  %v6342_v11 = vld [vmem:[#allocation5 + $0x498] sm:$0xff]  ;;  %v6341_v28 = vld [vmem:[#allocation5 + $0x490] sm:$0xff] }
 0x359   : > { %v5481_v58 = vsel %vm4872_vm1, %v5469_v24, 0.0  ;;  %v6308_v54 = vsel %vm4872_vm1, %v6294_v32, 0.0  ;;  %v5466_v2 = vmul.f32 %v12934_v41, %v5410_v52  ;;  %v13030_v4 = vadd.f32 0.0001, %v12975_v38  ;;  %5051 = vst.msk [vmem:[#allocation5 + $0x590] sm:$0xff] %vm4872_vm1, %v4723_v46  ;;  %v15008_v45 = vld [vmem:[#allocation61_spill] sm:$0xff] }
 0x35a   : > { %5482 = vadd.xlane.f32.xlu0 %v5481_v58  ;;  %6309 = vadd.xlane.f32.xlu1 %v6308_v54  ;;  %v5471_v7 = vmul.f32 %v12876_v18, %v5463_v49  ;;  %v5465_v35 = vmul.f32 %v12949_v48, %v5409_v22  ;;  %v6265_v23 = vmul.f32 2.0, %v6257_v12  ;;  %v6356_v24 = vsub.f32 %v6340_v43, %v15007_v9  ;;  %v15009_v39 = vld [vmem:[#allocation202_spill] sm:$0xff]  ;;  %v8577_v49 = vpop.f32.mrb[180].mxu1  ;;  %v15016_v12 = vld [vmem:[#allocation173_spill] sm:$0xff] }
 0x35b   : > { %v6305_v32 = vsel %vm4872_vm1, %v6293_v44, 0.0  ;;  %v5490_v41 = vsel %vm4872_vm1, %v5472_v1, 0.0  ;;  %v6296_v38 = vmul.f32 %v12867_v3, %v6288_v59  ;;  %v6420_v21 = vadd.f32 %v12476_v5, %v14925_v34  ;;  %5054 = vst.msk [vmem:[#allocation5 + $0x5a8] sm:$0xff] %vm4872_vm1, %v8577_v49  ;;  %v4733_v30 = vpop.f32.mrb[181].mxu1  ;;  %v15012_v44 = vld [vmem:[#allocation81_spill] sm:$0xff]  ;;  %v15013_v1 = vld [vmem:[#allocation132_spill] sm:$0xff] }
 0x35c   : > { %v6295_v48 = vmul.f32 %v12876_v18, %v6287_v42  ;;  %v6290_v50 = vmul.f32 %v12588_v62, %v6282_v31  ;;  %v6273_v19 = vadd.f32 0.0009, %v6265_v23  ;;  %v6380_v53 = vmul.f32 2.0, %v6356_v24  ;;  %v15011_v62 = vld [vmem:[#allocation123_spill] sm:$0xff]  ;;  %v15014_v43 = vld [vmem:[#allocation174_spill] sm:$0xff]  ;;  %5053 = vst.msk [vmem:[#allocation5 + $0x5a0] sm:$0xff] %vm4872_vm1, %v4733_v30 }
 0x35d   : > { %v5474_v60 = vmul.f32 %v12906_v55, %v5466_v2  ;;  %v6428_v25 = vadd.f32 0.0009, %v6420_v21  ;;  %v6355_v27 = vsub.f32 %v6339_v47, %v15008_v45  ;;  %v6419_v8 = vadd.f32 %v15010_v14, %v15009_v39  ;;  %v15015_v31 = vld [vmem:[#allocation67_spill] sm:$0xff]  ;;  %v15018_v24 = vld [vmem:[#allocation178_spill] sm:$0xff] }
 0x35e   : > { %6306 = vadd.xlane.f32.xlu0 %v6305_v32  ;;  %5491 = vadd.xlane.f32.xlu1 %v5490_v41  ;;  %v5487_v52 = vsel %vm4872_vm1, %v5471_v7, 0.0  ;;  %v5473_v22 = vmul.f32 %v12910_v0, %v5465_v35  ;;  %v6281_v29 = vmul.f32 %v6273_v19, %v15011_v62  ;;  %v6422_v59 = vadd.f32 %v15013_v1, %v15012_v44  ;;  %v15017_v35 = vld [vmem:[#allocation136_spill] sm:$0xff]  ;;  %v8580_v32 = vpop.f32.mrb[182].mxu1  ;;  %v15023_v30 = vld [vmem:[#allocation175_spill] sm:$0xff] }
 0x35f   : > { %v6436_v42 = vmul.f32 %v6428_v25, %v15014_v43  ;;  %v6427_v13 = vadd.f32 0.0009, %v6419_v8  ;;  %v6358_v10 = vsub.f32 %v6342_v11, %v15015_v31  ;;  %v6357_v58 = vsub.f32 %v6341_v28, %v15016_v12  ;;  %v6344_v41 = vld [vmem:[#allocation5 + $0x4a8] sm:$0xff]  ;;  %5056 = vst.msk [vmem:[#allocation5 + $0x5b8] sm:$0xff] %vm4872_vm1, %v8580_v32  ;;  %v4743_v25 = vpop.f32.mrb[183].mxu1  ;;  %v6343_v8 = vld [vmem:[#allocation5 + $0x4a0] sm:$0xff] }
 0x360   : > { %v6314_v54 = vsel %vm4872_vm1, %v6296_v38, 0.0  ;;  %v6311_v2 = vsel %vm4872_vm1, %v6295_v48, 0.0  ;;  %v6388_v56 = vadd.f32 0.0009, %v6380_v53  ;;  %v6430_v7 = vadd.f32 0.0009, %v6422_v59 }
 0x361   : > { %v6289_v23 = vmul.f32 %v15017_v35, %v6281_v29  ;;  %9062 = vrcp.f32 %v6436_v42  ;;  %v6379_v46 = vmul.f32 2.0, %v6355_v27  ;;  %v6435_v47 = vmul.f32 %v6427_v13, %v15018_v24  ;;  %v15019_v11 = vld [vmem:[#allocation179_spill] sm:$0xff]  ;;  %v15020_v28 = vld [vmem:[#allocation88_spill] sm:$0xff]  ;;  %v15021_v48 = vld [vmem:[#allocation121_spill] sm:$0xff]  ;;  %5055 = vst.msk [vmem:[#allocation5 + $0x5b0] sm:$0xff] %vm4872_vm1, %v4743_v25  ;;  %v8583_v35 = vpop.f32.mrb[184].mxu1 }
 0x362   : > { %5488 = vadd.xlane.f32.xlu0 %v5487_v52  ;;  %6315 = vadd.xlane.f32.xlu1 %v6314_v54  ;;  %v5496_v21 = vsel %vm4872_vm1, %v5474_v60, 0.0  ;;  %v6298_v19 = vmul.f32 %v12906_v55, %v6290_v50  ;;  %v6438_v38 = vmul.f32 %v6430_v7, %v15019_v11  ;;  %v6421_v53 = vadd.f32 %v15021_v48, %v15020_v28  ;;  %v6346_v52 = vld [vmem:[#allocation5 + $0x4b8] sm:$0xff]  ;;  %v15022_v60 = vld [vmem:[#allocation176_spill] sm:$0xff]  ;;  %v15024_v13 = vld [vmem:[#allocation87_spill] sm:$0xff] }
 0x363   : > { %v5493_v27 = vsel %vm4872_vm1, %v5473_v22, 0.0  ;;  %9064 = vrcp.f32 %v6435_v47  ;;  %v6382_v49 = vmul.f32 2.0, %v6358_v10  ;;  %v6381_v62 = vmul.f32 2.0, %v6357_v58  ;;  %v15025_v54 = vld [vmem:[#allocation124_spill] sm:$0xff]  ;;  %v15028_v47 = vld [vmem:[#allocation133_spill] sm:$0xff]  ;;  %5058 = vst.msk [vmem:[#allocation5 + $0x5c8] sm:$0xff] %vm4872_vm1, %v8583_v35 }
 0x364   : > { %v6396_v29 = vmul.f32 %v6388_v56, %v15022_v60  ;;  %9066 = vrcp.f32 %v6438_v38  ;;  %v6429_v50 = vadd.f32 0.0009, %v6421_v53  ;;  %v6360_v59 = vsub.f32 %v6344_v41, %v15023_v30  ;;  %v15026_v58 = vld [vmem:[#allocation180_spill] sm:$0xff]  ;;  %v15027_v56 = vld [vmem:[#allocation101_spill] sm:$0xff]  ;;  %v4753_v41 = vpop.f32.mrb[185].mxu1 }
 0x365   : > { %v6297_v43 = vmul.f32 %v12910_v0, %v6289_v23  ;;  %v6387_v42 = vadd.f32 0.0009, %v6379_v46  ;;  %v6424_v7 = vadd.f32 %v15025_v54, %v15024_v13  ;;  %v6359_v22 = vsub.f32 %v6343_v8, %v14991_v33  ;;  %v6345_v46 = vld [vmem:[#allocation5 + $0x4b0] sm:$0xff]  ;;  %5057 = vst.msk [vmem:[#allocation5 + $0x5c0] sm:$0xff] %vm4872_vm1, %v4753_v41  ;;  %v15050_v13 = vld [vmem:[#allocation139_spill] sm:$0xff] }
 0x366   : > { %6312 = vadd.xlane.f32.xlu0 %v6311_v2  ;;  %5497 = vadd.xlane.f32.xlu1 %v5496_v21  ;;  %v6320_v10 = vsel %vm4872_vm1, %v6298_v19, 0.0  ;;  %v6437_v24 = vmul.f32 %v6429_v50, %v15026_v58  ;;  %v6423_v32 = vadd.f32 %v15028_v47, %v15027_v56  ;;  %v6362_v23 = vsub.f32 %v6346_v52, %v14994_v40  ;;  %v15029_v2 = vld [vmem:[#allocation210_spill] sm:$0xff]  ;;  %v13085_v58 = vpop.xlane.xlu1 %5775  ;;  %v15036_v47 = vld [vmem:[#allocation184_spill] sm:$0xff] }
 0x367   : > { %v6390_v11 = vadd.f32 0.0009, %v6382_v49  ;;  %v6389_v38 = vadd.f32 0.0009, %v6381_v62  ;;  %v6432_v53 = vadd.f32 0.0009, %v6424_v7  ;;  %v6395_v54 = vmul.f32 %v6387_v42, %v15031_v15  ;;  %v13090_v7 = vpop.xlane.xlu0 %5772 }
 0x368   : > { %v15030_v21 = vld [vmem:[#allocation150_spill] sm:$0xff]  ;;  %9068 = vrcp.f32 %v6437_v24  ;;  %v6384_v19 = vmul.f32 2.0, %v6360_v59  ;;  %v6383_v8 = vmul.f32 2.0, %v6359_v22  ;;  %v6431_v50 = vadd.f32 0.0009, %v6423_v32  ;;  %v8586_v62 = vpop.f32.mrb[186].mxu1 }
 0x369   : > { %v6426_v25 = vadd.f32 %v15030_v21, %v15029_v2  ;;  %v6317_v35 = vsel %vm4872_vm1, %v6297_v43, 0.0  ;;  %v15032_v52 = vld [vmem:[#allocation190_spill] sm:$0xff]  ;;  %v6386_v24 = vmul.f32 2.0, %v6362_v23  ;;  %v6361_v59 = vsub.f32 %v6345_v46, %v15004_v57  ;;  %v15033_v22 = vld [vmem:[#allocation128_spill] sm:$0xff]  ;;  %v15034_v32 = vld [vmem:[#allocation153_spill] sm:$0xff]  ;;  %5060 = vst.msk [vmem:[#allocation5 + $0x5d8] sm:$0xff] %vm4872_vm1, %v8586_v62 }
 0x36a   : > { %v6440_v48 = vmul.f32 %v6432_v53, %v15032_v52  ;;  %5494 = vadd.xlane.f32.xlu0 %v5493_v27  ;;  %6321 = vadd.xlane.f32.xlu1 %v6320_v10  ;;  %v6439_v41 = vmul.f32 %v6431_v50, %v12966_v36  ;;  %v6425_v21 = vadd.f32 %v15034_v32, %v15033_v22  ;;  %v4763_v43 = vpop.f32.mrb[187].mxu1  ;;  %v6507_v42 = vld [vmem:[#allocation5 + $0x4c0] sm:$0xff]  ;;  %v6508_v2 = vld [vmem:[#allocation5 + $0x4c8] sm:$0xff]  ;;  %v6392_v23 = vadd.f32 0.0009, %v6384_v19  ;;  %v13107_v1 = vpop.xlane.xlu1 %5781  ;;  %v6509_v56 = vld [vmem:[#allocation5 + $0x4d0] sm:$0xff] }
 0x36b   : > { %v6434_v49 = vadd.f32 0.0009, %v6426_v25  ;;  %v13097_v53 = vpop.eup %9062  ;;  %v15035_v25 = vld [vmem:[#allocation181_spill] sm:$0xff]  ;;  %v6397_v27 = vmul.f32 %v6389_v38, %v15036_v47  ;;  %5059 = vst.msk [vmem:[#allocation5 + $0x5d0] sm:$0xff] %vm4872_vm1, %v4763_v43  ;;  %v6391_v46 = vadd.f32 0.0009, %v6383_v8 }
 0x36c   : > { %v6398_v52 = vmul.f32 %v6390_v11, %v15035_v25  ;;  %9070 = vrcp.f32 %v6440_v48  ;;  %v6452_v10 = vmul.f32 %v13097_v53, %v6396_v29  ;;  %v6433_v62 = vadd.f32 0.0009, %v6425_v21  ;;  %v15037_v32 = vld [vmem:[#allocation111_spill] sm:$0xff]  ;;  %v15038_v11 = vld [vmem:[#allocation109_spill] sm:$0xff]  ;;  %v8589_v48 = vpop.f32.mrb[188].mxu1 }
 0x36d   : > { %v6442_v36 = vmul.f32 %v6434_v49, %v13011_v61  ;;  %9072 = vrcp.f32 %v6439_v41  ;;  %v13104_v50 = vpop.eup %9064  ;;  %v6515_v5 = vsub.f32 %v6507_v42, %v15037_v32  ;;  %v6516_v38 = vsub.f32 %v6508_v2, %v15038_v11  ;;  %v6510_v61 = vld [vmem:[#allocation5 + $0x4d8] sm:$0xff]  ;;  %5062 = vst.msk [vmem:[#allocation5 + $0x5e8] sm:$0xff] %vm4872_vm1, %v8589_v48  ;;  %v4773_v21 = vpop.f32.mrb[189].mxu1 }
 0x36e   : > { %v13110_v49 = vpop.eup %9066  ;;  %6318 = vadd.xlane.f32.xlu0 %v6317_v35  ;;  %v6460_v29 = vmul.f32 %v12780_v20, %v6452_v10  ;;  %v6451_v19 = vmul.f32 %v13104_v50, %v6395_v54  ;;  %v6394_v8 = vadd.f32 0.0009, %v6386_v24  ;;  %v6385_v41 = vmul.f32 2.0, %v6361_v59  ;;  %5061 = vst.msk [vmem:[#allocation5 + $0x5e0] sm:$0xff] %vm4872_vm1, %v4773_v21  ;;  %v15039_v54 = vld [vmem:[#allocation119_spill] sm:$0xff]  ;;  %v15040_v59 = vld [vmem:[#allocation114_spill] sm:$0xff]  ;;  %v13135_v21 = vpop.xlane.xlu1 %5787 }
 0x36f   : > { %9074 = vrcp.f32 %v6442_v36  ;;  %v6454_v32 = vmul.f32 %v13110_v49, %v6398_v52  ;;  %v6441_v43 = vmul.f32 %v6433_v62, %v13030_v4  ;;  %v6523_v2 = vmul.f32 2.0, %v6515_v5  ;;  %v13117_v36 = vpop.xlane.xlu0 %5778  ;;  %v8592_v4 = vpop.f32.mrb[190].mxu1  ;;  %v6512_v62 = vld [vmem:[#allocation5 + $0x4e8] sm:$0xff] }
 0x370   : > { %v6524_v42 = vmul.f32 2.0, %v6516_v38  ;;  %v6470_v35 = vsel %vm4872_vm1, %v6460_v29, 0.0  ;;  %v6459_v20 = vmul.f32 %v12808_v51, %v6451_v19  ;;  %v6517_v24 = vsub.f32 %v6509_v56, %v15039_v54  ;;  %v15042_v29 = vld [vmem:[#allocation189_spill] sm:$0xff]  ;;  %5064 = vst.msk [vmem:[#allocation5 + $0x5f8] sm:$0xff] %vm4872_vm1, %v8592_v4 }
 0x371   : > { %v6518_v10 = vsub.f32 %v6510_v61, %v15040_v59  ;;  %6471 = vadd.xlane.f32.xlu1 %v6470_v35  ;;  %v6462_v11 = vmul.f32 %v12788_v6, %v6454_v32  ;;  %v13126_v52 = vadd.f32 0.0001, %v12971_v37  ;;  %9076 = vrcp.f32 %v6441_v43  ;;  %v4783_v61 = vpop.f32.mrb[191].mxu1 }
 0x372   : > { %v6531_v5 = vadd.f32 0.0009, %v6523_v2  ;;  %v13128_v38 = vpop.eup %9068  ;;  %v6467_v48 = vsel %vm4872_vm1, %v6459_v20, 0.0  ;;  %v6400_v51 = vmul.f32 %v6392_v23, %v15042_v29  ;;  %v6532_v19 = vadd.f32 0.0009, %v6524_v42  ;;  %5063 = vst.msk [vmem:[#allocation5 + $0x5f0] sm:$0xff] %vm4872_vm1, %v4783_v61 }
 0x373   : > { %15041 = vst [vmem:[#allocation51_spill] sm:$0xff] %v13126_v52  ;;  %v6525_v56 = vmul.f32 2.0, %v6517_v24  ;;  %6468 = vadd.xlane.f32.xlu0 %v6467_v48  ;;  %v6453_v6 = vmul.f32 %v13128_v38, %v6397_v27  ;;  %v6399_v37 = vmul.f32 %v6391_v46, %v13024_v16  ;;  %v6526_v32 = vmul.f32 2.0, %v6518_v10  ;;  %v15043_v42 = vld [vmem:[#allocation131_spill] sm:$0xff]  ;;  %v15045_v24 = vld [vmem:[#allocation129_spill] sm:$0xff]  ;;  %v13145_v4 = vpop.xlane.xlu0 %5784  ;;  %v8595_v10 = vpop.f32.mrb[192].mxu1 }
 0x374   : > { %v6476_v43 = vsel %vm4872_vm1, %v6462_v11, 0.0  ;;  %v6402_v2 = vmul.f32 %v6394_v8, %v13126_v52  ;;  %v6393_v23 = vadd.f32 0.0009, %v6385_v41  ;;  %v6520_v35 = vsub.f32 %v6512_v62, %v15043_v42  ;;  %v6511_v20 = vld [vmem:[#allocation5 + $0x4e0] sm:$0xff]  ;;  %5066 = vst.msk [vmem:[#allocation5 + $0x608] sm:$0xff] %vm4872_vm1, %v8595_v10  ;;  %v15049_v10 = vld [vmem:[#allocation141_spill] sm:$0xff] }
 0x375   : > { %6477 = vadd.xlane.f32.xlu1 %v6476_v43  ;;  %v6461_v27 = vmul.f32 %v12847_v17, %v6453_v6  ;;  %v6539_v46 = vmul.f32 %v6531_v5, %v15045_v24  ;;  %v6533_v59 = vadd.f32 0.0009, %v6525_v56  ;;  %v13151_v8 = vadd.f32 0.0001, %v13018_v63  ;;  %v15046_v41 = vld [vmem:[#allocation127_spill] sm:$0xff]  ;;  %v4793_v43 = vpop.f32.mrb[193].mxu1 }
 0x376   : > { %v13141_v54 = vpop.eup %9070  ;;  %v6540_v62 = vmul.f32 %v6532_v19, %v15046_v41  ;;  %v6528_v61 = vmul.f32 2.0, %v6520_v35  ;;  %v6534_v42 = vadd.f32 0.0009, %v6526_v32  ;;  %v15048_v24 = vld [vmem:[#allocation137_spill] sm:$0xff]  ;;  %5065 = vst.msk [vmem:[#allocation5 + $0x600] sm:$0xff] %vm4872_vm1, %v4793_v43  ;;  %v8598_v32 = vpop.f32.mrb[194].mxu1 }
 0x377   : > { %15044 = vst [vmem:[#allocation49_spill] sm:$0xff] %v13141_v54  ;;  %v13147_v48 = vpop.eup %9072  ;;  %v6456_v11 = vmul.f32 %v13141_v54, %v6400_v51  ;;  %v6473_v5 = vsel %vm4872_vm1, %v6461_v27, 0.0  ;;  %v6519_v14 = vsub.f32 %v6511_v20, %v15048_v24  ;;  %v6401_v19 = vmul.f32 %v6393_v23, %v13151_v8  ;;  %5068 = vst.msk [vmem:[#allocation5 + $0x618] sm:$0xff] %vm4872_vm1, %v8598_v32  ;;  %v6514_v24 = vld [vmem:[#allocation5 + $0x4f8] sm:$0xff]  ;;  %v6604_v32 = vld [vmem:[#allocation5 + $0x508] sm:$0xff] }
 0x378   : > { %v6455_v56 = vmul.f32 %v13147_v48, %v6399_v37  ;;  %6474 = vadd.xlane.f32.xlu0 %v6473_v5  ;;  %v6547_v41 = vmul.f32 %v15049_v10, %v6539_v46  ;;  %v6541_v27 = vmul.f32 %v6533_v59, %v15050_v13  ;;  %v6536_v22 = vadd.f32 0.0009, %v6528_v61  ;;  %v13167_v37 = vpop.xlane.xlu1 %5793  ;;  %v15051_v46 = vld [vmem:[#allocation138_spill] sm:$0xff]  ;;  %v15052_v13 = vld [vmem:[#allocation135_spill] sm:$0xff] }
 0x379   : > { %v13155_v6 = vpop.eup %9074  ;;  %v6464_v63 = vmul.f32 %v12867_v3, %v6456_v11  ;;  %v6548_v5 = vmul.f32 %v15051_v46, %v6540_v62  ;;  %v6542_v59 = vmul.f32 %v6534_v42, %v15052_v13  ;;  %v6527_v61 = vmul.f32 2.0, %v6519_v14  ;;  %v15053_v42 = vld [vmem:[#allocation23_spill] sm:$0xff] }
 0x37a   : > { %15047 = vst [vmem:[#allocation94_spill] sm:$0xff] %v13155_v6  ;;  %v6458_v51 = vmul.f32 %v13155_v6, %v6402_v2  ;;  %v6463_v35 = vmul.f32 %v12876_v18, %v6455_v56  ;;  %v4803_v2 = vpop.f32.mrb[195].mxu1  ;;  %v13177_v56 = vpop.xlane.xlu0 %5790  ;;  %v5795_v10 = vadd.f32 %v13085_v58, %v13090_v7  ;;  %v6549_v14 = vmul.f32 %v15053_v42, %v6541_v27  ;;  %v15056_v58 = vld [vmem:[#allocation33_spill] sm:$0xff]  ;;  %v15058_v42 = vld [vmem:[#allocation34_spill] sm:$0xff] }
 0x37b   : > { %v6482_v20 = vsel %vm4872_vm1, %v6464_v63, 0.0  ;;  %v13172_v11 = vpop.eup %9076  ;;  %v6513_v63 = vld [vmem:[#allocation5 + $0x4f0] sm:$0xff]  ;;  %5067 = vst.msk [vmem:[#allocation5 + $0x610] sm:$0xff] %vm4872_vm1, %v4803_v2  ;;  %v6535_v13 = vadd.f32 0.0009, %v6527_v61  ;;  %v8601_v28 = vpop.f32.mrb[196].mxu1 }
 0x37c   : > { %v6466_v43 = vmul.f32 %v12906_v55, %v6458_v51  ;;  %6483 = vadd.xlane.f32.xlu1 %v6482_v20  ;;  %v6479_v23 = vsel %vm4872_vm1, %v6463_v35, 0.0  ;;  %v6457_v51 = vmul.f32 %v13172_v11, %v6401_v19  ;;  %v13184_v35 = vld [vmem:[%s9534_s12] sm:$0xff]  ;;  %v6521_v7 = vsub.f32 %v6513_v63, %v15056_v58  ;;  %5070 = vst.msk [vmem:[#allocation5 + $0x628] sm:$0xff] %vm4872_vm1, %v8601_v28  ;;  %v4813_v34 = vpop.f32.mrb[197].mxu1  ;;  %v13200_v39 = vpop.xlane.xlu1 %5943 }
 0x37d   : > { %6480 = vadd.xlane.f32.xlu0 %v6479_v23  ;;  %v6555_v62 = vmul.f32 %v13184_v35, %v6547_v41  ;;  %v15054_v20 = vld [vmem:[#allocation147_spill] sm:$0xff]  ;;  %v15055_v23 = vld [vmem:[#allocation24_spill] sm:$0xff]  ;;  %5069 = vst.msk [vmem:[#allocation5 + $0x620] sm:$0xff] %vm4872_vm1, %v4813_v34  ;;  %v8604_v34 = vpop.f32.mrb[198].mxu1 }
 0x37e   : > { %v6544_v46 = vmul.f32 %v6536_v22, %v15054_v20  ;;  %v6488_v2 = vsel %vm4872_vm1, %v6466_v43, 0.0  ;;  %v6465_v19 = vmul.f32 %v12910_v0, %v6457_v51  ;;  %v6522_v44 = vsub.f32 %v6514_v24, %v15055_v23  ;;  %v13195_v41 = vld [vmem:[%s9534_s12 + $0x8] sm:$0xff]  ;;  %v15059_v43 = vld [vmem:[#allocation125_spill] sm:$0xff]  ;;  %v6607_v6 = vld [vmem:[#allocation5 + $0x520] sm:$0xff]  ;;  %5072 = vst.msk [vmem:[#allocation5 + $0x638] sm:$0xff] %vm4872_vm1, %v8604_v34 }
 0x37f   : > { %v6556_v27 = vmul.f32 %v13195_v41, %v6548_v5  ;;  %v15057_v22 = vld [vmem:[#allocation148_spill] sm:$0xff]  ;;  %v6543_v20 = vmul.f32 %v6535_v13, %v15058_v42  ;;  %v6612_v51 = vsub.f32 %v6604_v32, %v15059_v43  ;;  %v6606_v24 = vld [vmem:[#allocation5 + $0x518] sm:$0xff]  ;;  %v6529_v23 = vmul.f32 2.0, %v6521_v7  ;;  %v15061_v13 = vld [vmem:[#allocation75_spill] sm:$0xff]  ;;  %v13209_v42 = vpop.xlane.xlu0 %5940 }
 0x380   : > { %6489 = vadd.xlane.f32.xlu1 %v6488_v2  ;;  %v6550_v61 = vmul.f32 %v15057_v22, %v6542_v59  ;;  %v6485_v63 = vsel %vm4872_vm1, %v6465_v19, 0.0  ;;  %v6530_v28 = vmul.f32 2.0, %v6522_v44  ;;  %v15060_v2 = vld [vmem:[#allocation126_spill] sm:$0xff]  ;;  %v6563_v5 = vsel %vm4872_vm1, %v6555_v62, 0.0  ;;  %v15062_v44 = vld [vmem:[#allocation140_spill] sm:$0xff] }
 0x381   : > { %v6611_v58 = vsub.f32 %v6603_v26, %v15060_v2  ;;  %6486 = vadd.xlane.f32.xlu0 %v6485_v63  ;;  %v6557_v59 = vmul.f32 %v12847_v17, %v6549_v14  ;;  %v6552_v22 = vmul.f32 %v15061_v13, %v6544_v46  ;;  %v6620_v32 = vmul.f32 2.0, %v6612_v51  ;;  %v4823_v26 = vpop.f32.mrb[199].mxu1  ;;  %v15063_v63 = vld [vmem:[#allocation157_spill] sm:$0xff] }
 0x382   : > { %v6538_v43 = vadd.f32 0.0009, %v6530_v28  ;;  %v6537_v52 = vadd.f32 0.0009, %v6529_v23  ;;  %v6614_v7 = vsub.f32 %v6606_v24, %v15062_v44  ;;  %v6566_v62 = vsel %vm4872_vm1, %v6556_v27, 0.0  ;;  %v15064_v46 = vld [vmem:[#allocation149_spill] sm:$0xff] }
 0x383   : > { %v6619_v19 = vmul.f32 2.0, %v6611_v58  ;;  %v6551_v17 = vmul.f32 %v15063_v63, %v6543_v20  ;;  %v6628_v14 = vadd.f32 0.0009, %v6620_v32  ;;  %v6615_v2 = vsub.f32 %v6607_v6, %v15064_v46  ;;  %5071 = vst.msk [vmem:[#allocation5 + $0x630] sm:$0xff] %vm4872_vm1, %v4823_v26  ;;  %v13218_v51 = vld [vmem:[%s9534_s12 + $0x18] sm:$0xff]  ;;  %v15065_v23 = vld [vmem:[#allocation36_spill] sm:$0xff]  ;;  %v13225_v20 = vpop.xlane.xlu1 %5949 }
 0x384   : > { %6564 = vadd.xlane.f32.xlu1 %v6563_v5  ;;  %v6558_v28 = vmul.f32 %v13218_v51, %v6550_v61  ;;  %v6546_v58 = vmul.f32 %v6538_v43, %v15065_v23  ;;  %v15066_v24 = vld [vmem:[#allocation38_spill] sm:$0xff]  ;;  %v5796_v5 = vadd.f32 %v5795_v10, %v13117_v36  ;;  %v15067_v27 = vld [vmem:[#allocation31_spill] sm:$0xff]  ;;  %v6622_v32 = vmul.f32 2.0, %v6614_v7  ;;  %v8607_v6 = vpop.f32.mrb[200].mxu1  ;;  %v15068_v46 = vld [vmem:[#allocation161_spill] sm:$0xff]  ;;  %v13234_v7 = vpop.xlane.xlu0 %5946 }
 0x385   : > { %v6545_v13 = vmul.f32 %v6537_v52, %v15066_v24  ;;  %v6627_v34 = vadd.f32 0.0009, %v6619_v19  ;;  %6567 = vadd.xlane.f32.xlu0 %v6566_v62  ;;  %v6636_v44 = vmul.f32 %v6628_v14, %v15067_v27  ;;  %v6569_v26 = vsel %vm4872_vm1, %v6557_v59, 0.0  ;;  %v6605_v43 = vld [vmem:[#allocation5 + $0x510] sm:$0xff]  ;;  %5074 = vst.msk [vmem:[#allocation5 + $0x648] sm:$0xff] %vm4872_vm1, %v8607_v6  ;;  %v4833_v52 = vpop.f32.mrb[201].mxu1 }
 0x386   : > { %v6560_v63 = vmul.f32 %v12867_v3, %v6552_v22  ;;  %v6554_v61 = vmul.f32 %v15068_v46, %v6546_v58  ;;  %v6623_v54 = vmul.f32 2.0, %v6615_v2  ;;  %v6559_v36 = vmul.f32 %v12876_v18, %v6551_v17  ;;  %v15069_v10 = vld [vmem:[#allocation71_spill] sm:$0xff]  ;;  %v15070_v62 = vld [vmem:[#allocation145_spill] sm:$0xff]  ;;  %5073 = vst.msk [vmem:[#allocation5 + $0x640] sm:$0xff] %vm4872_vm1, %v4833_v52  ;;  %v15071_v59 = vld [vmem:[#allocation64_spill] sm:$0xff] }
 0x387   : > { %v6553_v19 = vmul.f32 %v15069_v10, %v6545_v13  ;;  %v6635_v14 = vmul.f32 %v6627_v34, %v15070_v62  ;;  %v6630_v23 = vadd.f32 0.0009, %v6622_v32  ;;  %v6572_v3 = vsel %vm4872_vm1, %v6558_v28, 0.0  ;;  %v15072_v24 = vld [vmem:[#allocation142_spill] sm:$0xff]  ;;  %v6609_v18 = vld [vmem:[#allocation5 + $0x530] sm:$0xff]  ;;  %v6608_v17 = vld [vmem:[#allocation5 + $0x528] sm:$0xff] }
 0x388   : > { %6570 = vadd.xlane.f32.xlu1 %v6569_v26  ;;  %v6644_v22 = vmul.f32 %v15071_v59, %v6636_v44  ;;  %v6631_v2 = vadd.f32 0.0009, %v6623_v54  ;;  %v5797_v58 = vadd.f32 %v5796_v5, %v13107_v1  ;;  %v6613_v27 = vsub.f32 %v6605_v43, %v15072_v24  ;;  %v8610_v13 = vpop.f32.mrb[202].mxu1  ;;  %v15073_v32 = vld [vmem:[#allocation152_spill] sm:$0xff]  ;;  %v6699_v46 = vld [vmem:[#allocation5 + $0x540] sm:$0xff]  ;;  %v13248_v43 = vpop.xlane.xlu1 %5955 }
 0x389   : > { %6573 = vadd.xlane.f32.xlu0 %v6572_v3  ;;  %v6578_v34 = vsel %vm4872_vm1, %v6560_v63, 0.0  ;;  %v6562_v6 = vmul.f32 %v12906_v55, %v6554_v61  ;;  %v6638_v26 = vmul.f32 %v6630_v23, %v15073_v32  ;;  %5076 = vst.msk [vmem:[#allocation5 + $0x658] sm:$0xff] %vm4872_vm1, %v8610_v13  ;;  %v4843_v28 = vpop.f32.mrb[203].mxu1  ;;  %v6575_v54 = vsel %vm4872_vm1, %v6559_v36, 0.0  ;;  %v15074_v5 = vld [vmem:[#allocation199_spill] sm:$0xff]  ;;  %v15075_v63 = vld [vmem:[#allocation162_spill] sm:$0xff]  ;;  %v13256_v36 = vpop.xlane.xlu0 %5952 }
 0x38a   : > { %v6561_v1 = vmul.f32 %v12910_v0, %v6553_v19  ;;  %v6643_v44 = vmul.f32 %v15074_v5, %v6635_v14  ;;  %v6621_v52 = vmul.f32 2.0, %v6613_v27  ;;  %5075 = vst.msk [vmem:[#allocation5 + $0x650] sm:$0xff] %vm4872_vm1, %v4843_v28  ;;  %v6652_v55 = vmul.f32 %v13195_v41, %v6644_v22  ;;  %v15076_v10 = vld [vmem:[#allocation156_spill] sm:$0xff]  ;;  %v15077_v23 = vld [vmem:[#allocation146_spill] sm:$0xff]  ;;  %v8613_v14 = vpop.f32.mrb[204].mxu1  ;;  %v15078_v27 = vld [vmem:[#allocation201_spill] sm:$0xff] }
 0x38b   : > { %v6639_v61 = vmul.f32 %v6631_v2, %v15075_v63  ;;  %v6617_v62 = vsub.f32 %v6609_v18, %v15076_v10  ;;  %v6616_v3 = vsub.f32 %v6608_v17, %v15077_v23  ;;  %v5798_v59 = vadd.f32 %v5797_v58, %v13145_v4  ;;  %v6610_v2 = vld [vmem:[#allocation5 + $0x538] sm:$0xff]  ;;  %v6701_v32 = vld [vmem:[#allocation5 + $0x550] sm:$0xff]  ;;  %5078 = vst.msk [vmem:[#allocation5 + $0x668] sm:$0xff] %vm4872_vm1, %v8613_v14  ;;  %v4853_v18 = vpop.f32.mrb[205].mxu1  ;;  %v15079_v17 = vld [vmem:[#allocation155_spill] sm:$0xff] }
 0x38c   : > { %6579 = vadd.xlane.f32.xlu1 %v6578_v34  ;;  %v6629_v0 = vadd.f32 0.0009, %v6621_v52  ;;  %v6707_v19 = vsub.f32 %v6699_v46, %v15008_v45  ;;  %v6584_v24 = vsel %vm4872_vm1, %v6562_v6, 0.0  ;;  %v6646_v13 = vmul.f32 %v15078_v27, %v6638_v26  ;;  %v13265_v45 = vpop.xlane.xlu1 %5679  ;;  %5077 = vst.msk [vmem:[#allocation5 + $0x660] sm:$0xff] %vm4872_vm1, %v4853_v18  ;;  %v6700_v6 = vld [vmem:[#allocation5 + $0x548] sm:$0xff]  ;;  %v15081_v10 = vld [vmem:[#allocation158_spill] sm:$0xff] }
 0x38d   : > { %6576 = vadd.xlane.f32.xlu0 %v6575_v54  ;;  %v6625_v22 = vmul.f32 2.0, %v6617_v62  ;;  %v6624_v34 = vmul.f32 2.0, %v6616_v3  ;;  %v6581_v4 = vsel %vm4872_vm1, %v6561_v1, 0.0  ;;  %v6651_v58 = vmul.f32 %v13184_v35, %v6643_v44  ;;  %v15080_v54 = vld [vmem:[#allocation164_spill] sm:$0xff]  ;;  %v13271_v1 = vpop.xlane.xlu0 %5676  ;;  %v15082_v23 = vld [vmem:[#allocation151_spill] sm:$0xff]  ;;  %v8616_v14 = vpop.f32.mrb[206].mxu1 }
 0x38e   : > { %v6637_v28 = vmul.f32 %v6629_v0, %v15079_v17  ;;  %v6715_v46 = vmul.f32 2.0, %v6707_v19  ;;  %v6662_v26 = vsel %vm4872_vm1, %v6652_v55, 0.0  ;;  %v6647_v5 = vmul.f32 %v15080_v54, %v6639_v61  ;;  %v6703_v19 = vld [vmem:[#allocation5 + $0x560] sm:$0xff]  ;;  %5080 = vst.msk [vmem:[#allocation5 + $0x678] sm:$0xff] %vm4872_vm1, %v8616_v14  ;;  %v4863_v18 = vpop.f32.mrb[207].mxu1  ;;  %v6702_v14 = vld [vmem:[#allocation5 + $0x558] sm:$0xff] }
 0x38f   : > { %v6633_v52 = vadd.f32 0.0009, %v6625_v22  ;;  %v6632_v63 = vadd.f32 0.0009, %v6624_v34  ;;  %v6618_v3 = vsub.f32 %v6610_v2, %v15082_v23  ;;  %v6709_v0 = vsub.f32 %v6701_v32, %v15016_v12  ;;  %v15083_v55 = vld [vmem:[#allocation166_spill] sm:$0xff]  ;;  %v15084_v61 = vld [vmem:[#allocation159_spill] sm:$0xff] }
 0x390   : > { %6585 = vadd.xlane.f32.xlu1 %v6584_v24  ;;  %v6645_v62 = vmul.f32 %v15081_v10, %v6637_v28  ;;  %v6723_v44 = vadd.f32 0.0009, %v6715_v46  ;;  %v6654_v24 = vmul.f32 %v13218_v51, %v6646_v13  ;;  %v6708_v34 = vsub.f32 %v6700_v6, %v15007_v9  ;;  %5079 = vst.msk [vmem:[#allocation5 + $0x670] sm:$0xff] %vm4872_vm1, %v4863_v18  ;;  %v13286_v13 = vld [vmem:[%s9534_s12 + $0x20] sm:$0xff]  ;;  %v15086_v9 = vld [vmem:[#allocation165_spill] sm:$0xff] }
 0x391   : > { %6582 = vadd.xlane.f32.xlu0 %v6581_v4  ;;  %v6641_v27 = vmul.f32 %v6633_v52, %v15083_v55  ;;  %v6640_v22 = vmul.f32 %v6632_v63, %v15084_v61  ;;  %v6659_v2 = vsel %vm4872_vm1, %v6651_v58, 0.0  ;;  %v13281_v4 = vpop.xlane.xlu1 %5961  ;;  %v6626_v32 = vmul.f32 2.0, %v6618_v3  ;;  %15085 = vst [vmem:[#allocation42_spill] sm:$0xff] %v13286_v13  ;;  %v13293_v58 = vld [vmem:[%s9534_s12 + $0x10] sm:$0xff]  ;;  %v13296_v52 = vpop.xlane.xlu0 %5958 }
 0x392   : > { %v6731_v12 = vmul.f32 %v6723_v44, %v15031_v15  ;;  %v6717_v17 = vmul.f32 2.0, %v6709_v0  ;;  %v6655_v28 = vmul.f32 %v13286_v13, %v6647_v5  ;;  %v6716_v6 = vmul.f32 2.0, %v6708_v34  ;;  %15087 = vst [vmem:[#allocation28_spill] sm:$0xff] %v13293_v58  ;;  %v15088_v5 = vld [vmem:[#allocation41_spill] sm:$0xff] }
 0x393   : > { %v6649_v46 = vmul.f32 %v15086_v9, %v6641_v27  ;;  %v6711_v54 = vsub.f32 %v6703_v19, %v14991_v33  ;;  %v6653_v15 = vmul.f32 %v13293_v58, %v6645_v62  ;;  %v6634_v63 = vadd.f32 0.0009, %v6626_v32  ;;  %v15089_v0 = vld [vmem:[#allocation21_spill] sm:$0xff] }
 0x394   : > { %6663 = vadd.xlane.f32.xlu1 %v6662_v26  ;;  %v5799_v26 = vadd.f32 %v5798_v59, %v13135_v21  ;;  %v6725_v10 = vadd.f32 0.0009, %v6717_v17  ;;  %v6668_v44 = vsel %vm4872_vm1, %v6654_v24, 0.0  ;;  %v6648_v23 = vmul.f32 %v15088_v5, %v6640_v22  ;;  %v13306_v55 = vld [vmem:[%s9534_s12 + $0x30] sm:$0xff]  ;;  %v13310_v22 = vld [vmem:[#allocation5 + $0x108] sm:$0xff] }
 0x395   : > { %6660 = vadd.xlane.f32.xlu0 %v6659_v2  ;;  %v6724_v3 = vadd.f32 0.0009, %v6716_v6  ;;  %v6739_v33 = vmul.f32 %v13104_v50, %v6731_v12  ;;  %v6642_v21 = vmul.f32 %v6634_v63, %v15089_v0  ;;  %v13302_v59 = vpop.xlane.xlu1 %5685  ;;  %v6719_v19 = vmul.f32 2.0, %v6711_v54  ;;  %v6705_v61 = vld [vmem:[#allocation5 + $0x570] sm:$0xff]  ;;  %v13314_v18 = vpop.xlane.xlu0 %5682  ;;  %v13317_v12 = vld [vmem:[%s9534_s12 + $0x28] sm:$0xff]  ;;  %v13341_v0 = vld [vmem:[%s9534_s12 + $0x38] sm:$0xff] }
 0x396   : > { %v6671_v62 = vsel %vm4872_vm1, %v6655_v28, 0.0  ;;  %v6657_v27 = vmul.f32 %v13306_v55, %v6649_v46  ;;  %v6733_v24 = vmul.f32 %v6725_v10, %v15036_v47  ;;  %v5800_v50 = vadd.f32 %v5799_v26, %v13177_v56  ;;  %v15090_v17 = vld [vmem:[#allocation83_spill] sm:$0xff] }
 0x397   : > { %v6665_v34 = vsel %vm4872_vm1, %v6653_v15, 0.0  ;;  %v6727_v2 = vadd.f32 0.0009, %v6719_v19  ;;  %v6656_v32 = vmul.f32 %v13317_v12, %v6648_v23  ;;  %v6650_v28 = vmul.f32 %v15090_v17, %v6642_v21  ;;  %v6804_v10 = vld [vmem:[#allocation5 + $0x248] sm:$0xff] }
 0x398   : > { %6669 = vadd.xlane.f32.xlu1 %v6668_v44  ;;  %v6732_v9 = vmul.f32 %v6724_v3, %v15022_v60  ;;  %v6710_v47 = vsub.f32 %v6702_v14, %v15015_v31  ;;  %v6747_v46 = vmul.f32 %v13184_v35, %v6739_v33  ;;  %v6713_v6 = vsub.f32 %v6705_v61, %v15004_v57  ;;  %v6704_v31 = vld [vmem:[#allocation5 + $0x568] sm:$0xff] }
 0x399   : > { %6672 = vadd.xlane.f32.xlu0 %v6671_v62  ;;  %v13324_v56 = vpop.xlane.xlu1 %6111  ;;  %v13329_v54 = vmul.f32 %v13310_v22, %v13310_v22  ;;  %v6677_v26 = vsel %vm4872_vm1, %v6657_v27, 0.0  ;;  %v6741_v15 = vmul.f32 %v13128_v38, %v6733_v24  ;;  %v6735_v60 = vmul.f32 %v6727_v2, %v13024_v16  ;;  %v13337_v57 = vpop.xlane.xlu0 %6108  ;;  %v6812_v61 = vld [vmem:[#allocation5 + $0x588] sm:$0xff] }
 0x39a   : > { %v6718_v63 = vmul.f32 2.0, %v6710_v47  ;;  %v5081_v44 = vlaneseq  ;;  %v5801_v5 = vadd.f32 %v5800_v50, %v13167_v37  ;;  %v5963_v23 = vadd.f32 %v13200_v39, %v13209_v42  ;;  %v6706_v47 = vld [vmem:[#allocation5 + $0x578] sm:$0xff] }
 0x39b   : > { %v6721_v3 = vmul.f32 2.0, %v6713_v6  ;;  %v6674_v33 = vsel %vm4872_vm1, %v6656_v32, 0.0  ;;  %v6658_v38 = vmul.f32 %v13341_v0, %v6650_v28  ;;  %v6740_v16 = vmul.f32 %v13097_v53, %v6732_v9 }
 0x39c   : > { %6666 = vadd.xlane.f32.xlu1 %v6665_v34  ;;  %v6726_v21 = vadd.f32 0.0009, %v6718_v63  ;;  %v5964_v19 = vadd.f32 %v5963_v23, %v13234_v7  ;;  %v6712_v39 = vsub.f32 %v6704_v31, %v15023_v30  ;;  %v13350_v42 = vsub.f32 %v6804_v10, %v13329_v54  ;;  %v9166_v34 = vld [vmem:[#allocation5 + $0x8] sm:$0xff] }
 0x39d   : > { %6678 = vadd.xlane.f32.xlu0 %v6677_v26  ;;  %v13346_v37 = vpop.xlane.xlu1 %5691  ;;  %v6729_v14 = vadd.f32 0.0009, %v6721_v3  ;;  %v6755_v62 = vsel %vm4872_vm1, %v6747_v46, 0.0  ;;  %v6749_v27 = vmul.f32 %v13293_v58, %v6741_v15  ;;  %v6743_v24 = vmul.f32 %v13147_v48, %v6735_v60  ;;  %v15091_v30 = vld [vmem:[#allocation16_spill] sm:$0xff]  ;;  %v15093_v26 = vld [vmem:[#allocation39_spill] sm:$0xff] }
 0x39e   : > { %v6734_v53 = vmul.f32 %v6726_v21, %v15035_v25  ;;  %v6720_v50 = vmul.f32 2.0, %v6712_v39  ;;  %v6828_v2 = vmul.f32 %v9166_v34, %v13310_v22  ;;  %v6892_v32 = vadd.f32 %v13329_v54, %v15091_v30  ;;  %v13369_v60 = vld [vmem:[#allocation5 + $0x110] sm:$0xff]  ;;  %v13397_v34 = vld [vmem:[#allocation5 + $0x100] sm:$0xff] }
 0x39f   : > { %v6737_v7 = vmul.f32 %v6729_v14, %v13151_v8  ;;  %v5802_v17 = vrot.slane %v5801_v5, 4  ;;  %v6680_v28 = vsel %vm4872_vm1, %v6658_v38, 0.0  ;;  %v6748_v9 = vmul.f32 %v13195_v41, %v6740_v16  ;;  %v6805_v16 = vld [vmem:[#allocation5 + $0x250] sm:$0xff] }
 0x3a0   : > { %6675 = vadd.xlane.f32.xlu1 %v6674_v33  ;;  %v6742_v48 = vmul.f32 %v13110_v49, %v6734_v53  ;;  %v13363_v25 = vand.u32 127, %v5081_v44  ;;  %v13365_v46 = vpop.xlane.xlu0 %5688  ;;  %v6728_v8 = vadd.f32 0.0009, %v6720_v50  ;;  %v6844_v6 = vsub.f32 %v6812_v61, %v6828_v2  ;;  %v6813_v53 = vld [vmem:[#allocation5 + $0x590] sm:$0xff] }
 0x3a1   : > { %6756 = vadd.xlane.f32.xlu0 %v6755_v62  ;;  %v6908_v15 = vadd.f32 %v13350_v42, %v15093_v26  ;;  %v5965_v63 = vadd.f32 %v5964_v19, %v13225_v20  ;;  %v6761_v31 = vsel %vm4872_vm1, %v6749_v27, 0.0  ;;  %v6751_v10 = vmul.f32 %v13286_v13, %v6743_v24  ;;  %v13376_v23 = vpop.xlane.xlu1 %6117  ;;  %v6803_v26 = vld [vmem:[#allocation5 + $0x240] sm:$0xff] }
 0x3a2   : > { %15092 = vst [vmem:[#allocation60_spill] sm:$0xff] %v13363_v25  ;;  %v6745_v49 = vmul.f32 %v13172_v11, %v6737_v7  ;;  %v6736_v44 = vmul.f32 %v6728_v8, %v15042_v29  ;;  %v6900_v3 = vadd.f32 0.0001, %v6892_v32  ;;  %v6714_v38 = vsub.f32 %v6706_v47, %v14994_v40  ;;  %v15094_v11 = vld [vmem:[#allocation49_spill] sm:$0xff]  ;;  %v15096_v8 = vld [vmem:[#allocation191_spill] sm:$0xff] }
 0x3a3   : > { %v6916_v33 = vadd.f32 0.0009, %v6908_v15  ;;  %v13379_v21 = vadd.f32 %v5802_v17, %v5801_v5  ;;  %v6758_v20 = vsel %vm4872_vm1, %v6748_v9, 0.0  ;;  %v6750_v19 = vmul.f32 %v13218_v51, %v6742_v48  ;;  %v15095_v7 = vld [vmem:[#allocation53_spill] sm:$0xff] }
 0x3a4   : > { %6681 = vadd.xlane.f32.xlu1 %v6680_v28  ;;  %v13385_v14 = vmul.f32 %v13369_v60, %v13369_v60  ;;  %v6744_v29 = vmul.f32 %v15094_v11, %v6736_v44  ;;  %v6868_v39 = vmul.f32 2.0, %v6844_v6  ;;  %v6722_v27 = vmul.f32 2.0, %v6714_v38  ;;  %v13390_v5 = vpop.xlane.xlu0 %6114  ;;  %v9167_v17 = vld [vmem:[#allocation5 + $0x10] sm:$0xff]  ;;  %v13412_v44 = vld [vmem:[#allocation5 + $0x120] sm:$0xff] }
 0x3a5   : > { %6762 = vadd.xlane.f32.xlu0 %v6761_v31  ;;  %v6924_v62 = vmul.f32 %v6916_v33, %v6900_v3  ;;  %v6767_v24 = vsel %vm4872_vm1, %v6751_v10, 0.0  ;;  %v6753_v40 = vmul.f32 %v13306_v55, %v6745_v49  ;;  %v5966_v30 = vadd.f32 %v5965_v63, %v13256_v36  ;;  %v15097_v31 = vld [vmem:[#allocation51_spill] sm:$0xff] }
 0x3a6   : > { %v13393_v61 = vsub.f32 %v6805_v16, %v13385_v14  ;;  %v6893_v50 = vadd.f32 %v13385_v14, %v15095_v7  ;;  %v6730_v32 = vadd.f32 0.0009, %v6722_v27  ;;  %v6829_v28 = vmul.f32 %v9167_v17, %v13369_v60  ;;  %v6811_v16 = vld [vmem:[#allocation5 + $0x580] sm:$0xff]  ;;  %v15101_v17 = vld [vmem:[#allocation48_spill] sm:$0xff] }
 0x3a7   : > { %9078 = vrcp.f32 %v6924_v62  ;;  %v6764_v9 = vsel %vm4872_vm1, %v6750_v19, 0.0  ;;  %v6752_v48 = vmul.f32 %v13317_v12, %v6744_v29  ;;  %v6852_v47 = vmul.f32 2.0, %v6828_v2  ;;  %v9168_v11 = vld [vmem:[#allocation5] sm:$0xff] }
 0x3a8   : > { %6759 = vadd.xlane.f32.xlu1 %v6758_v20  ;;  %v6909_v6 = vadd.f32 %v13393_v61, %v15096_v8  ;;  %v6876_v15 = vadd.f32 0.0009, %v6868_v39  ;;  %v6738_v10 = vmul.f32 %v6730_v32, %v15097_v31  ;;  %v6845_v63 = vsub.f32 %v6813_v53, %v6829_v28  ;;  %v15098_v20 = vld [vmem:[#allocation94_spill] sm:$0xff]  ;;  %v15099_v62 = vld [vmem:[#allocation47_spill] sm:$0xff] }
 0x3a9   : > { %6768 = vadd.xlane.f32.xlu0 %v6767_v24  ;;  %v13406_v36 = vpop.xlane.xlu1 %5697  ;;  %v13410_v49 = vmul.f32 %v13397_v34, %v13397_v34  ;;  %v5699_v2 = vadd.f32 %v13265_v45, %v13271_v1  ;;  %v6773_v3 = vsel %vm4872_vm1, %v6753_v40, 0.0  ;;  %v6901_v33 = vadd.f32 0.0001, %v6893_v50 }
 0x3aa   : > { %v6917_v38 = vadd.f32 0.0009, %v6909_v6  ;;  %v6746_v19 = vmul.f32 %v15098_v20, %v6738_v10  ;;  %v6827_v29 = vmul.f32 %v9168_v11, %v13397_v34  ;;  %v6770_v24 = vsel %vm4872_vm1, %v6752_v48, 0.0  ;;  %v6807_v6 = vld [vmem:[#allocation5 + $0x260] sm:$0xff] }
 0x3ab   : > { %v13420_v39 = vsub.f32 %v6803_v26, %v13410_v49  ;;  %v6891_v27 = vadd.f32 %v13410_v49, %v15099_v62  ;;  %v6860_v45 = vadd.f32 0.0001, %v6852_v47  ;;  %v13429_v53 = vmul.f32 %v13412_v44, %v13412_v44 }
 0x3ac   : > { %6765 = vadd.xlane.f32.xlu1 %v6764_v9  ;;  %v6925_v1 = vmul.f32 %v6917_v38, %v6901_v33  ;;  %v13425_v40 = vpop.xlane.xlu0 %5694  ;;  %v6754_v7 = vmul.f32 %v13341_v0, %v6746_v19  ;;  %v6869_v50 = vmul.f32 2.0, %v6845_v63  ;;  %v6843_v32 = vsub.f32 %v6811_v16, %v6827_v29  ;;  %v6815_v16 = vld [vmem:[#allocation5 + $0x5a0] sm:$0xff] }
 0x3ad   : > { %6774 = vadd.xlane.f32.xlu0 %v6773_v3  ;;  %15100 = vst [vmem:[#allocation95_spill] sm:$0xff] %v13429_v53  ;;  %v6907_v9 = vadd.f32 %v13420_v39, %v15101_v17  ;;  %v13434_v8 = vpop.xlane.xlu1 %6123  ;;  %v5967_v47 = vadd.f32 %v5966_v30, %v13248_v43  ;;  %v6884_v26 = vmul.f32 %v6876_v15, %v6860_v45  ;;  %v6853_v10 = vmul.f32 2.0, %v6829_v28  ;;  %v15103_v19 = vld [vmem:[#allocation55_spill] sm:$0xff]  ;;  %v15104_v45 = vld [vmem:[#allocation196_spill] sm:$0xff] }
 0x3ae   : > { %9080 = vrcp.f32 %v6925_v1  ;;  %v5700_v31 = vadd.f32 %v5699_v2, %v13314_v18  ;;  %v6899_v3 = vadd.f32 0.0001, %v6891_v27  ;;  %v6131_v63 = vadd.f32 %v13324_v56, %v13337_v57  ;;  %v9169_v2 = vld [vmem:[#allocation5 + $0x20] sm:$0xff]  ;;  %v13448_v27 = vld [vmem:[#allocation5 + $0x118] sm:$0xff] }
 0x3af   : > { %v6915_v33 = vadd.f32 0.0009, %v6907_v9  ;;  %v6776_v38 = vsel %vm4872_vm1, %v6754_v7, 0.0  ;;  %v13443_v20 = vsub.f32 %v6807_v6, %v13429_v53  ;;  %v6895_v11 = vadd.f32 %v13429_v53, %v15103_v19 }
 0x3b0   : > { %6771 = vadd.xlane.f32.xlu1 %v6770_v24  ;;  %v6121_v43 = vpop.xlane.xlu0 %6120  ;;  %v6877_v15 = vadd.f32 0.0009, %v6869_v50  ;;  %v6867_v18 = vmul.f32 2.0, %v6843_v32  ;;  %v6831_v62 = vmul.f32 %v9169_v2, %v13412_v44  ;;  %v5968_v56 = vadd.f32 %v5967_v47, %v13296_v52  ;;  %v6806_v32 = vld [vmem:[#allocation5 + $0x258] sm:$0xff] }
 0x3b1   : > { %15102 = vst [vmem:[#allocation203_spill] sm:$0xff] %v13443_v20  ;;  %v9079_v30 = vpop.eup %9078  ;;  %v6923_v28 = vmul.f32 %v6915_v33, %v6899_v3  ;;  %v6132_v24 = vadd.f32 %v6131_v63, %v13390_v5  ;;  %v6911_v1 = vadd.f32 %v13443_v20, %v15104_v45  ;;  %v6861_v17 = vadd.f32 0.0001, %v6853_v10  ;;  %v13461_v47 = vld [vmem:[#allocation5 + $0x138] sm:$0xff] }
 0x3b2   : > { %v6940_v57 = vmul.f32 %v9079_v30, %v6884_v26  ;;  %v13454_v7 = vpop.xlane.xlu1 %6129  ;;  %v6851_v9 = vmul.f32 2.0, %v6827_v29  ;;  %v6847_v50 = vsub.f32 %v6815_v16, %v6831_v62  ;;  %v6903_v3 = vadd.f32 0.0001, %v6895_v11  ;;  %v9170_v10 = vld [vmem:[#allocation5 + $0x18] sm:$0xff] }
 0x3b3   : > { %9082 = vrcp.f32 %v6923_v28  ;;  %v6919_v33 = vadd.f32 0.0009, %v6911_v1  ;;  %v13459_v52 = vmul.f32 %v13448_v27, %v13448_v27  ;;  %v5701_v5 = vadd.f32 %v5700_v31, %v13302_v59  ;;  %v15105_v30 = vld [vmem:[#allocation46_spill] sm:$0xff] }
 0x3b4   : > { %6777 = vadd.xlane.f32.xlu1 %v6776_v38  ;;  %v6948_v6 = vmul.f32 %v13195_v41, %v6940_v57  ;;  %v6885_v26 = vmul.f32 %v6877_v15, %v6861_v17  ;;  %v6875_v63 = vadd.f32 0.0009, %v6867_v18  ;;  %v6814_v38 = vld [vmem:[#allocation5 + $0x598] sm:$0xff]  ;;  %v6830_v29 = vmul.f32 %v9170_v10, %v13448_v27 }
 0x3b5   : > { %v6127_v16 = vpop.xlane.xlu0 %6126  ;;  %v6927_v41 = vmul.f32 %v6919_v33, %v6903_v3  ;;  %v13467_v11 = vsub.f32 %v6806_v32, %v13459_v52  ;;  %v6894_v28 = vadd.f32 %v13459_v52, %v15105_v30  ;;  %v6859_v2 = vadd.f32 0.0001, %v6851_v9  ;;  %v6810_v31 = vld [vmem:[#allocation5 + $0x278] sm:$0xff]  ;;  %v15106_v32 = vld [vmem:[#allocation188_spill] sm:$0xff] }
 0x3b6   : > { %v6958_v19 = vsel %vm4872_vm1, %v6948_v6, 0.0  ;;  %v6871_v57 = vmul.f32 2.0, %v6847_v50  ;;  %v6133_v59 = vadd.f32 %v6132_v24, %v13376_v23  ;;  %v6818_v15 = vld [vmem:[#allocation5 + $0x5b8] sm:$0xff]  ;;  %v13474_v18 = vmul.f32 %v13461_v47, %v13461_v47 }
 0x3b7   : > { %6959 = vadd.xlane.f32.xlu0 %v6958_v19  ;;  %v13476_v45 = vpop.xlane.xlu1 %6207  ;;  %9084 = vrcp.f32 %v6927_v41  ;;  %v6846_v17 = vsub.f32 %v6814_v38, %v6830_v29  ;;  %v6910_v6 = vadd.f32 %v13467_v11, %v15106_v32  ;;  %v9171_v3 = vld [vmem:[#allocation5 + $0x38] sm:$0xff]  ;;  %v6883_v33 = vmul.f32 %v6875_v63, %v6859_v2  ;;  %v15107_v32 = vld [vmem:[#allocation44_spill] sm:$0xff] }
 0x3b8   : > { %v9081_v1 = vpop.eup %9080  ;;  %v6834_v9 = vmul.f32 %v9171_v3, %v13461_v47  ;;  %v6855_v23 = vmul.f32 2.0, %v6831_v62  ;;  %v6134_v24 = vadd.f32 %v6133_v59, %v6121_v43  ;;  %v6902_v19 = vadd.f32 0.0001, %v6894_v28  ;;  %v15108_v63 = vld [vmem:[#allocation197_spill] sm:$0xff]  ;;  %v13496_v2 = vld [vmem:[#allocation5 + $0x128] sm:$0xff] }
 0x3b9   : > { %v6941_v50 = vmul.f32 %v9081_v1, %v6885_v26  ;;  %v13481_v10 = vpop.xlane.xlu0 %5279  ;;  %v6918_v30 = vadd.f32 0.0009, %v6910_v6  ;;  %v13484_v48 = vsub.f32 %v6810_v31, %v13474_v18  ;;  %v6879_v41 = vadd.f32 0.0009, %v6871_v57 }
 0x3ba   : > { %v6850_v25 = vsub.f32 %v6818_v15, %v6834_v9  ;;  %v6854_v20 = vmul.f32 2.0, %v6830_v29  ;;  %v6898_v53 = vadd.f32 %v13474_v18, %v15107_v32  ;;  %v13492_v62 = vadd.f32 %v5968_v56, %v13281_v4  ;;  %v6808_v56 = vld [vmem:[#allocation5 + $0x268] sm:$0xff] }
 0x3bb   : > { %v6949_v38 = vmul.f32 %v13293_v58, %v6941_v50  ;;  %v13489_v3 = vpop.xlane.xlu1 %5285  ;;  %v6870_v43 = vmul.f32 2.0, %v6846_v17  ;;  %v6926_v26 = vmul.f32 %v6918_v30, %v6902_v19  ;;  %v6914_v28 = vadd.f32 %v13484_v48, %v15108_v63 }
 0x3bc   : > { %v5702_v31 = vadd.f32 %v5701_v5, %v13365_v46  ;;  %v6863_v57 = vadd.f32 0.0001, %v6855_v23  ;;  %v6874_v15 = vmul.f32 2.0, %v6850_v25  ;;  %v6906_v6 = vadd.f32 0.0001, %v6898_v53  ;;  %v13507_v46 = vld [vmem:[#allocation5 + $0x130] sm:$0xff] }
 0x3bd   : > { %v9083_v59 = vpop.eup %9082  ;;  %v6961_v29 = vsel %vm4872_vm1, %v6949_v38, 0.0  ;;  %9086 = vrcp.f32 %v6926_v26  ;;  %v6922_v4 = vadd.f32 0.0009, %v6914_v28  ;;  %v13500_v17 = vpop.xlane.xlu0 %5276  ;;  %v6862_v19 = vadd.f32 0.0001, %v6854_v20  ;;  %v6816_v38 = vld [vmem:[#allocation5 + $0x5a8] sm:$0xff] }
 0x3be   : > { %6962 = vadd.xlane.f32.xlu0 %v6961_v29  ;;  %v6939_v1 = vmul.f32 %v9083_v59, %v6883_v33  ;;  %v6887_v50 = vmul.f32 %v6879_v41, %v6863_v57  ;;  %v6135_v30 = vadd.f32 %v6134_v24, %v13434_v8  ;;  %v13505_v32 = vmul.f32 %v13496_v2, %v13496_v2  ;;  %v9172_v41 = vld [vmem:[#allocation5 + $0x28] sm:$0xff]  ;;  %v6809_v24 = vld [vmem:[#allocation5 + $0x270] sm:$0xff] }
 0x3bf   : > { %v13509_v5 = vpop.xlane.xlu1 %6213  ;;  %v6878_v33 = vadd.f32 0.0009, %v6870_v43  ;;  %v6858_v53 = vmul.f32 2.0, %v6834_v9  ;;  %v6930_v23 = vmul.f32 %v6922_v4, %v6906_v6  ;;  %v6882_v26 = vadd.f32 0.0009, %v6874_v15  ;;  %v15110_v29 = vld [vmem:[#allocation56_spill] sm:$0xff] }
 0x3c0   : > { %15109 = vst [vmem:[#allocation105_spill] sm:$0xff] %v13509_v5  ;;  %v6947_v25 = vmul.f32 %v13184_v35, %v6939_v1  ;;  %v6136_v63 = vadd.f32 %v6135_v30, %v6127_v16  ;;  %v6832_v20 = vmul.f32 %v9172_v41, %v13496_v2  ;;  %v13514_v8 = vsub.f32 %v6808_v56, %v13505_v32  ;;  %v6817_v43 = vld [vmem:[#allocation5 + $0x5b0] sm:$0xff] }
 0x3c1   : > { %v9085_v28 = vpop.eup %9084  ;;  %9088 = vrcp.f32 %v6930_v23  ;;  %v6896_v35 = vadd.f32 %v13505_v32, %v15110_v29  ;;  %v13521_v9 = vmul.f32 %v13507_v46, %v13507_v46  ;;  %v9173_v1 = vld [vmem:[#allocation5 + $0x30] sm:$0xff]  ;;  %v15112_v56 = vrot.slane %v13379_v21, 2  ;;  %v15114_v23 = vld [vmem:[#allocation194_spill] sm:$0xff] }
 0x3c2   : > { %v6955_v59 = vsel %vm4872_vm1, %v6947_v25, 0.0  ;;  %v6943_v16 = vmul.f32 %v9085_v28, %v6887_v50  ;;  %v13524_v57 = vadd.f32 %v6136_v63, %v13454_v7  ;;  %v6848_v15 = vsub.f32 %v6816_v38, %v6832_v20 }
 0x3c3   : > { %6956 = vadd.xlane.f32.xlu1 %v6955_v59  ;;  %v6833_v6 = vmul.f32 %v9173_v1, %v13507_v46  ;;  %v13527_v4 = vpop.xlane.xlu1 %5282  ;;  %v13532_v30 = vadd.f32 %v15112_v56, %v13379_v21  ;;  %v6912_v41 = vadd.f32 %v13514_v8, %v15114_v23  ;;  %v13538_v50 = vsub.f32 %v6809_v24, %v13521_v9  ;;  %v15116_v56 = vld [vmem:[#allocation62_spill] sm:$0xff] }
 0x3c4   : > { %15111 = vst [vmem:[#allocation205_spill] sm:$0xff] %v13524_v57  ;;  %v6951_v38 = vmul.f32 %v13286_v13, %v6943_v16  ;;  %v6886_v63 = vmul.f32 %v6878_v33, %v6862_v19  ;;  %v6866_v28 = vadd.f32 0.0001, %v6858_v53  ;;  %v6904_v29 = vadd.f32 0.0001, %v6896_v35  ;;  %v15115_v57 = vld [vmem:[#allocation57_spill] sm:$0xff] }
 0x3c5   : > { %15113 = vst [vmem:[#allocation17_spill] sm:$0xff] %v13532_v30  ;;  %v13540_v7 = vpop.xlane.xlu0 %6204  ;;  %v6849_v59 = vsub.f32 %v6817_v43, %v6833_v6  ;;  %v6920_v1 = vadd.f32 0.0009, %v6912_v41  ;;  %v6897_v21 = vadd.f32 %v13521_v9, %v15115_v57  ;;  %v6913_v25 = vadd.f32 %v13538_v50, %v15116_v56  ;;  %v6995_v43 = vld [vmem:[#allocation5 + $0x5c0] sm:$0xff] }
 0x3c6   : > { %v5703_v23 = vadd.f32 %v5702_v31, %v13346_v37  ;;  %v6967_v24 = vsel %vm4872_vm1, %v6951_v38, 0.0  ;;  %v6890_v30 = vmul.f32 %v6882_v26, %v6866_v28  ;;  %v6872_v5 = vmul.f32 2.0, %v6848_v15  ;;  %v9174_v56 = vld [vmem:[#allocation5 + $0x40] sm:$0xff] }
 0x3c7   : > { %v13549_v58 = vpop.xlane.xlu1 %5291  ;;  %v9087_v16 = vpop.eup %9086  ;;  %6968 = vadd.xlane.f32.xlu0 %v6967_v24  ;;  %v6856_v19 = vmul.f32 2.0, %v6832_v20  ;;  %v6928_v33 = vmul.f32 %v6920_v1, %v6904_v29  ;;  %v6905_v53 = vadd.f32 0.0001, %v6897_v21  ;;  %v6921_v35 = vadd.f32 0.0009, %v6913_v25  ;;  %v15118_v31 = vld [vmem:[#allocation15_spill] sm:$0xff] }
 0x3c8   : > { %15117 = vst [vmem:[#allocation104_spill] sm:$0xff] %v13549_v58  ;;  %v6942_v57 = vmul.f32 %v9087_v16, %v6886_v63  ;;  %v6873_v13 = vmul.f32 2.0, %v6849_v59  ;;  %v7003_v37 = vmul.f32 %v9174_v56, %v13397_v34  ;;  %v7059_v26 = vadd.f32 %v13410_v49, %v15118_v31  ;;  %v15119_v20 = vld [vmem:[#allocation187_spill] sm:$0xff] }
 0x3c9   : > { %v13557_v15 = vadd.f32 %v5703_v23, %v13425_v40  ;;  %9090 = vrcp.f32 %v6928_v33  ;;  %v6929_v38 = vmul.f32 %v6921_v35, %v6905_v53  ;;  %v7075_v28 = vadd.f32 %v13420_v39, %v15119_v20  ;;  %v6996_v59 = vld [vmem:[#allocation5 + $0x5c8] sm:$0xff]  ;;  %v15121_v20 = vld [vmem:[#allocation26_spill] sm:$0xff] }
 0x3ca   : > { %v13551_v41 = vpop.xlane.xlu0 %6210  ;;  %v6950_v25 = vmul.f32 %v13218_v51, %v6942_v57  ;;  %v6880_v29 = vadd.f32 0.0009, %v6872_v5  ;;  %v6857_v1 = vmul.f32 2.0, %v6833_v6  ;;  %v7011_v63 = vsub.f32 %v6995_v43, %v7003_v37  ;;  %v9175_v56 = vld [vmem:[#allocation5 + $0x48] sm:$0xff] }
 0x3cb   : > { %v9089_v21 = vpop.eup %9088  ;;  %9092 = vrcp.f32 %v6929_v38  ;;  %v7067_v24 = vadd.f32 0.0001, %v7059_v26  ;;  %v7083_v16 = vadd.f32 0.0009, %v7075_v28  ;;  %v7004_v31 = vmul.f32 %v9175_v56, %v13310_v22  ;;  %v15122_v56 = vld [vmem:[#allocation40_spill] sm:$0xff] }
 0x3cc   : > { %v6964_v33 = vsel %vm4872_vm1, %v6950_v25, 0.0  ;;  %v6946_v53 = vmul.f32 %v9089_v21, %v6890_v30  ;;  %v6864_v35 = vadd.f32 0.0001, %v6856_v19  ;;  %v6881_v51 = vadd.f32 0.0009, %v6873_v13 }
 0x3cd   : > { %v13565_v23 = vpop.xlane.xlu1 %6219  ;;  %6965 = vadd.xlane.f32.xlu1 %v6964_v33  ;;  %v7019_v5 = vmul.f32 2.0, %v7003_v37  ;;  %v7035_v6 = vmul.f32 2.0, %v7011_v63  ;;  %v7091_v43 = vmul.f32 %v7083_v16, %v7067_v24  ;;  %v7012_v57 = vsub.f32 %v6996_v59, %v7004_v31 }
 0x3ce   : > { %v13563_v40 = vpop.xlane.xlu0 %5288  ;;  %15120 = vst [vmem:[#allocation204_spill] sm:$0xff] %v13565_v23  ;;  %v6954_v26 = vmul.f32 %v13341_v0, %v6946_v53  ;;  %v6865_v38 = vadd.f32 0.0001, %v6857_v1  ;;  %v7060_v28 = vadd.f32 %v13329_v54, %v15121_v20  ;;  %v7076_v58 = vadd.f32 %v13350_v42, %v15122_v56  ;;  %v6998_v1 = vld [vmem:[#allocation5 + $0x5d8] sm:$0xff] }
 0x3cf   : > { %v6888_v23 = vmul.f32 %v6880_v29, %v6864_v35  ;;  %9094 = vrcp.f32 %v7091_v43  ;;  %v7020_v25 = vmul.f32 2.0, %v7004_v31  ;;  %v7036_v30 = vmul.f32 2.0, %v7012_v57  ;;  %v9176_v29 = vld [vmem:[#allocation5 + $0x58] sm:$0xff]  ;;  %v15124_v43 = vld [vmem:[#allocation52_spill] sm:$0xff] }
 0x3d0   : > { %v6976_v37 = vsel %vm4872_vm1, %v6954_v26, 0.0  ;;  %v6889_v63 = vmul.f32 %v6881_v51, %v6865_v38  ;;  %v7068_v59 = vadd.f32 0.0001, %v7060_v28  ;;  %v7084_v21 = vadd.f32 0.0009, %v7076_v58  ;;  %v15125_v20 = vld [vmem:[#allocation193_spill] sm:$0xff] }
 0x3d1   : > { %v13575_v13 = vpop.xlane.xlu1 %5297  ;;  %6977 = vadd.xlane.f32.xlu0 %v6976_v37  ;;  %v7027_v24 = vadd.f32 0.0001, %v7019_v5  ;;  %v7043_v16 = vadd.f32 0.0009, %v7035_v6  ;;  %v5299_v33 = vadd.f32 %v13481_v10, %v13500_v17  ;;  %v7006_v31 = vmul.f32 %v9176_v29, %v13448_v27  ;;  %v9177_v5 = vld [vmem:[#allocation5 + $0x50] sm:$0xff] }
 0x3d2   : > { %v13573_v19 = vpop.xlane.xlu0 %6216  ;;  %15123 = vst [vmem:[#allocation84_spill] sm:$0xff] %v13575_v13  ;;  %v7044_v53 = vadd.f32 0.0009, %v7036_v30  ;;  %v7092_v35 = vmul.f32 %v7084_v21, %v7068_v59  ;;  %v7062_v57 = vadd.f32 %v13459_v52, %v15124_v43  ;;  %v7078_v51 = vadd.f32 %v13467_v11, %v15125_v20  ;;  %v6997_v37 = vld [vmem:[#allocation5 + $0x5d0] sm:$0xff]  ;;  %v15129_v13 = vld [vmem:[#allocation195_spill] sm:$0xff] }
 0x3d3   : > { %v9091_v26 = vpop.eup %9090  ;;  %v7028_v58 = vadd.f32 0.0001, %v7020_v25  ;;  %v7014_v38 = vsub.f32 %v6998_v1, %v7006_v31  ;;  %v7022_v28 = vmul.f32 2.0, %v7006_v31  ;;  %v7005_v6 = vmul.f32 %v9177_v5, %v13369_v60  ;;  %v15128_v31 = vld [vmem:[#allocation27_spill] sm:$0xff] }
 0x3d4   : > { %v6944_v10 = vmul.f32 %v9091_v26, %v6888_v23  ;;  %9096 = vrcp.f32 %v7092_v35  ;;  %v7070_v17 = vadd.f32 0.0001, %v7062_v57  ;;  %v7086_v30 = vadd.f32 0.0009, %v7078_v51 }
 0x3d5   : > { %v9093_v21 = vpop.eup %9092  ;;  %v13592_v29 = vadd.f32 %v13557_v15, %v13406_v36  ;;  %v7051_v25 = vmul.f32 %v7043_v16, %v7027_v24  ;;  %v7038_v1 = vmul.f32 2.0, %v7014_v38  ;;  %v7061_v43 = vadd.f32 %v13385_v14, %v15128_v31  ;;  %v7000_v24 = vld [vmem:[#allocation5 + $0x5e8] sm:$0xff] }
 0x3d6   : > { %v13586_v56 = vpop.xlane.xlu0 %5294  ;;  %v6952_v20 = vmul.f32 %v13317_v12, %v6944_v10  ;;  %v6945_v5 = vmul.f32 %v9093_v21, %v6889_v63  ;;  %v7052_v23 = vmul.f32 %v7044_v53, %v7028_v58  ;;  %v7094_v35 = vmul.f32 %v7086_v30, %v7070_v17  ;;  %v15131_v30 = vld [vmem:[#allocation45_spill] sm:$0xff] }
 0x3d7   : > { %15126 = vst [vmem:[#allocation54_spill] sm:$0xff] %v13586_v56  ;;  %v13588_v59 = vpop.xlane.xlu1 %6225  ;;  %v7030_v57 = vadd.f32 0.0001, %v7022_v28  ;;  %v7013_v51 = vsub.f32 %v6997_v37, %v7005_v6  ;;  %v7021_v26 = vmul.f32 2.0, %v7005_v6  ;;  %v6227_v15 = vadd.f32 %v13476_v45, %v13540_v7  ;;  %v15132_v7 = vld [vmem:[#allocation18_spill] sm:$0xff] }
 0x3d8   : > { %15127 = vst [vmem:[#allocation117_spill] sm:$0xff] %v13588_v59  ;;  %v7077_v59 = vadd.f32 %v13393_v61, %v15129_v13  ;;  %v6970_v56 = vsel %vm4872_vm1, %v6952_v20, 0.0  ;;  %v6953_v36 = vmul.f32 %v13306_v55, %v6945_v5  ;;  %9098 = vrcp.f32 %v7094_v35  ;;  %v9178_v13 = vld [vmem:[#allocation5 + $0x68] sm:$0xff] }
 0x3d9   : > { %v9095_v53 = vpop.eup %9094  ;;  %6971 = vadd.xlane.f32.xlu1 %v6970_v56  ;;  %v7046_v58 = vadd.f32 0.0009, %v7038_v1  ;;  %v7069_v38 = vadd.f32 0.0001, %v7061_v43  ;;  %v7008_v6 = vmul.f32 %v9178_v13, %v13496_v2  ;;  %v7064_v45 = vadd.f32 %v13505_v32, %v15131_v30  ;;  %v13614_v1 = vld [vmem:[%s9534_s12] sm:$0xff] }
 0x3da   : > { %v7085_v28 = vadd.f32 0.0009, %v7077_v59  ;;  %v6973_v10 = vsel %vm4872_vm1, %v6953_v36, 0.0  ;;  %v7107_v17 = vmul.f32 %v9095_v53, %v7051_v25  ;;  %v7080_v37 = vadd.f32 %v13514_v8, %v15132_v7  ;;  %v6999_v25 = vld [vmem:[#allocation5 + $0x5e0] sm:$0xff] }
 0x3db   : > { %v13603_v16 = vpop.xlane.xlu0 %6222  ;;  %v13605_v63 = vpop.xlane.xlu1 %5479  ;;  %6974 = vadd.xlane.f32.xlu0 %v6973_v10  ;;  %v7029_v21 = vadd.f32 0.0001, %v7021_v26  ;;  %v7037_v31 = vmul.f32 2.0, %v7013_v51  ;;  %v7016_v56 = vsub.f32 %v7000_v24, %v7008_v6  ;;  %v7072_v43 = vadd.f32 0.0001, %v7064_v45  ;;  %v9180_v51 = vld [vmem:[#allocation5 + $0x60] sm:$0xff] }
 0x3dc   : > { %15130 = vst [vmem:[#allocation115_spill] sm:$0xff] %v13605_v63  ;;  %v7093_v20 = vmul.f32 %v7085_v28, %v7069_v38  ;;  %v7115_v59 = vmul.f32 %v13614_v1, %v7107_v17  ;;  %v7088_v5 = vadd.f32 0.0009, %v7080_v37  ;;  %v13618_v35 = vadd.f32 %v5299_v33, %v13527_v4  ;;  %v15134_v17 = vld [vmem:[#allocation25_spill] sm:$0xff]  ;;  %v15135_v30 = vld [vmem:[#allocation95_spill] sm:$0xff]  ;;  %v15136_v33 = vld [vmem:[#allocation20_spill] sm:$0xff] }
 0x3dd   : > { %v7054_v13 = vmul.f32 %v7046_v58, %v7030_v57  ;;  %v7040_v26 = vmul.f32 2.0, %v7016_v56  ;;  %v7007_v24 = vmul.f32 %v9180_v51, %v13412_v44  ;;  %v7063_v4 = vadd.f32 %v15135_v30, %v15134_v17  ;;  %v15137_v45 = vld [vmem:[#allocation203_spill] sm:$0xff] }
 0x3de   : > { %9100 = vrcp.f32 %v7093_v20  ;;  %v9097_v38 = vpop.eup %9096  ;;  %v7123_v28 = vsel %vm4872_vm1, %v7115_v59, 0.0  ;;  %v7096_v10 = vmul.f32 %v7088_v5, %v7072_v43  ;;  %v7079_v7 = vadd.f32 %v15137_v45, %v15136_v33  ;;  %v13638_v43 = vld [vmem:[%s9534_s12 + $0x8] sm:$0xff] }
 0x3df   : > { %v13620_v36 = vpop.xlane.xlu0 %5476  ;;  %v13622_v53 = vpop.xlane.xlu1 %6303  ;;  %7124 = vadd.xlane.f32.xlu1 %v7123_v28  ;;  %v7108_v37 = vmul.f32 %v9097_v38, %v7052_v23  ;;  %v7024_v57 = vmul.f32 2.0, %v7008_v6  ;;  %v7015_v58 = vsub.f32 %v6999_v25, %v7007_v24  ;;  %v7071_v20 = vadd.f32 0.0001, %v7063_v4  ;;  %v9182_v38 = vld [vmem:[#allocation5 + $0x70] sm:$0xff]  ;;  %v15140_v4 = vld [vmem:[#allocation58_spill] sm:$0xff] }
 0x3e0   : > { %15133 = vst [vmem:[#allocation154_spill] sm:$0xff] %v13622_v53  ;;  %v7045_v53 = vadd.f32 0.0009, %v7037_v31  ;;  %9102 = vrcp.f32 %v7096_v10  ;;  %v7087_v56 = vadd.f32 0.0009, %v7079_v7  ;;  %v13631_v44 = vadd.f32 %v6227_v15, %v13551_v41  ;;  %v7001_v31 = vld [vmem:[#allocation5 + $0x5f0] sm:$0xff] }
 0x3e1   : > { %v7116_v5 = vmul.f32 %v13638_v43, %v7108_v37  ;;  %v7048_v17 = vadd.f32 0.0009, %v7040_v26  ;;  %v7023_v28 = vmul.f32 2.0, %v7007_v24  ;;  %v7039_v23 = vmul.f32 2.0, %v7015_v58  ;;  %v15141_v15 = vld [vmem:[#allocation200_spill] sm:$0xff]  ;;  %v7002_v24 = vld [vmem:[#allocation5 + $0x5f8] sm:$0xff] }
 0x3e2   : > { %v9099_v6 = vpop.eup %9098  ;;  %v7095_v25 = vmul.f32 %v7087_v56, %v7071_v20  ;;  %v7009_v10 = vmul.f32 %v9182_v38, %v13507_v46  ;;  %v7065_v41 = vadd.f32 %v13521_v9, %v15140_v4  ;;  %v7081_v33 = vadd.f32 %v13538_v50, %v15141_v15  ;;  %v9183_v56 = vld [vmem:[#allocation5 + $0x78] sm:$0xff] }
 0x3e3   : > { %v13633_v51 = vpop.xlane.xlu0 %6300  ;;  %v13635_v59 = vpop.xlane.xlu1 %5485  ;;  %v7126_v7 = vsel %vm4872_vm1, %v7116_v5, 0.0  ;;  %v7053_v37 = vmul.f32 %v7045_v53, %v7029_v21  ;;  %v7032_v26 = vadd.f32 0.0001, %v7024_v57  ;;  %v7047_v58 = vadd.f32 0.0009, %v7039_v23 }
 0x3e4   : > { %15138 = vst [vmem:[#allocation43_spill] sm:$0xff] %v13633_v51  ;;  %15139 = vst [vmem:[#allocation167_spill] sm:$0xff] %v13635_v59  ;;  %v7110_v59 = vmul.f32 %v9099_v6, %v7054_v13  ;;  %7127 = vadd.xlane.f32.xlu0 %v7126_v7  ;;  %9104 = vrcp.f32 %v7095_v25  ;;  %v7017_v20 = vsub.f32 %v7001_v31, %v7009_v10  ;;  %v15144_v15 = vrot.slane %v13492_v62, 4  ;;  %v13658_v13 = vld [vmem:[%s9534_s12 + $0x18] sm:$0xff] }
 0x3e5   : > { %v7010_v38 = vmul.f32 %v9183_v56, %v13461_v47  ;;  %v7073_v53 = vadd.f32 0.0001, %v7065_v41  ;;  %v7089_v57 = vadd.f32 0.0009, %v7081_v33  ;;  %v7056_v5 = vmul.f32 %v7048_v17, %v7032_v26  ;;  %v15145_v6 = vld [vmem:[#allocation29_spill] sm:$0xff] }
 0x3e6   : > { %v13655_v63 = vadd.f32 %v15144_v15, %v13492_v62  ;;  %v7118_v21 = vmul.f32 %v13658_v13, %v7110_v59  ;;  %v7031_v23 = vadd.f32 0.0001, %v7023_v28  ;;  %v7066_v47 = vadd.f32 %v13474_v18, %v15145_v6  ;;  %v9185_v15 = vld [vmem:[#allocation5 + $0x80] sm:$0xff] }
 0x3e7   : > { %v13648_v51 = vpop.xlane.xlu0 %5482  ;;  %v13650_v4 = vpop.xlane.xlu1 %6309  ;;  %v7018_v31 = vsub.f32 %v7002_v24, %v7010_v38  ;;  %v7025_v56 = vmul.f32 2.0, %v7009_v10  ;;  %v7041_v33 = vmul.f32 2.0, %v7017_v20  ;;  %v5301_v10 = vadd.f32 %v13618_v35, %v13489_v3 }
 0x3e8   : > { %15142 = vst [vmem:[#allocation50_spill] sm:$0xff] %v13648_v51  ;;  %15143 = vst [vmem:[#allocation63_spill] sm:$0xff] %v13650_v4  ;;  %v9101_v25 = vpop.eup %9100  ;;  %v7132_v7 = vsel %vm4872_vm1, %v7118_v21, 0.0  ;;  %v7097_v4 = vmul.f32 %v7089_v57, %v7073_v53  ;;  %v15146_v51 = vld [vmem:[#allocation198_spill] sm:$0xff]  ;;  %v7055_v41 = vmul.f32 %v7047_v58, %v7031_v23  ;;  %v7074_v26 = vadd.f32 0.0001, %v7066_v47 }
 0x3e9   : > { %v7082_v62 = vadd.f32 %v13484_v48, %v15146_v51  ;;  %7133 = vadd.xlane.f32.xlu1 %v7132_v7  ;;  %v7109_v59 = vmul.f32 %v9101_v25, %v7053_v37  ;;  %v7163_v21 = vld [vmem:[#allocation5 + $0x600] sm:$0xff]  ;;  %v15149_v57 = vld [vmem:[#allocation28_spill] sm:$0xff]  ;;  %v7042_v6 = vmul.f32 2.0, %v7018_v31  ;;  %v7171_v37 = vmul.f32 %v9185_v15, %v13397_v34  ;;  %v15150_v58 = vld [vmem:[#allocation69_spill] sm:$0xff] }
 0x3ea   : > { %9106 = vrcp.f32 %v7097_v4  ;;  %v9103_v53 = vpop.eup %9102  ;;  %v7227_v20 = vadd.f32 %v13410_v49, %v15150_v58  ;;  %v7033_v25 = vadd.f32 0.0001, %v7025_v56  ;;  %v13678_v4 = vadd.f32 %v5301_v10, %v13563_v40 }
 0x3eb   : > { %v13667_v17 = vpop.xlane.xlu0 %6306  ;;  %v13669_v28 = vpop.xlane.xlu1 %5491  ;;  %v7090_v24 = vadd.f32 0.0009, %v7082_v62  ;;  %v7117_v51 = vmul.f32 %v15149_v57, %v7109_v59  ;;  %v7112_v23 = vmul.f32 %v9103_v53, %v7056_v5  ;;  %v7049_v3 = vadd.f32 0.0009, %v7041_v33  ;;  %v15153_v5 = vld [vmem:[#allocation202_spill] sm:$0xff]  ;;  %v15155_v53 = vld [vmem:[#allocation73_spill] sm:$0xff] }
 0x3ec   : > { %15147 = vst [vmem:[#allocation80_spill] sm:$0xff] %v13667_v17  ;;  %15148 = vst [vmem:[#allocation116_spill] sm:$0xff] %v13669_v28  ;;  %v7026_v35 = vmul.f32 2.0, %v7010_v38  ;;  %v7179_v62 = vsub.f32 %v7163_v21, %v7171_v37  ;;  %v7164_v28 = vld [vmem:[#allocation5 + $0x608] sm:$0xff]  ;;  %v7243_v56 = vadd.f32 %v13420_v39, %v15153_v5  ;;  %v7050_v10 = vadd.f32 0.0009, %v7042_v6 }
 0x3ed   : > { %v7098_v7 = vmul.f32 %v7090_v24, %v7074_v26  ;;  %v7129_v47 = vsel %vm4872_vm1, %v7117_v51, 0.0  ;;  %v7120_v15 = vmul.f32 %v13317_v12, %v7112_v23  ;;  %v9186_v26 = vld [vmem:[#allocation5 + $0x88] sm:$0xff]  ;;  %v7235_v33 = vadd.f32 0.0001, %v7227_v20  ;;  %v15154_v38 = vld [vmem:[#allocation65_spill] sm:$0xff]  ;;  %v15157_v20 = vld [vmem:[#allocation42_spill] sm:$0xff] }
 0x3ee   : > { %7130 = vadd.xlane.f32.xlu0 %v7129_v47  ;;  %v7172_v40 = vmul.f32 %v9186_v26, %v13310_v22  ;;  %v9105_v24 = vpop.eup %9104  ;;  %v7228_v21 = vadd.f32 %v13329_v54, %v15154_v38  ;;  %v7244_v57 = vadd.f32 %v13350_v42, %v15155_v53  ;;  %v7251_v12 = vadd.f32 0.0009, %v7243_v56 }
 0x3ef   : > { %v13681_v59 = vpop.xlane.xlu0 %5488  ;;  %v13683_v31 = vpop.xlane.xlu1 %6315  ;;  %9108 = vrcp.f32 %v7098_v7  ;;  %v7138_v51 = vsel %vm4872_vm1, %v7120_v15, 0.0  ;;  %v7111_v58 = vmul.f32 %v9105_v24, %v7055_v41  ;;  %v7057_v7 = vmul.f32 %v7049_v3, %v7033_v25  ;;  %v7166_v25 = vld [vmem:[#allocation5 + $0x618] sm:$0xff] }
 0x3f0   : > { %15151 = vst [vmem:[#allocation91_spill] sm:$0xff] %v13681_v59  ;;  %15152 = vst [vmem:[#allocation22_spill] sm:$0xff] %v13683_v31  ;;  %v7180_v23 = vsub.f32 %v7164_v28, %v7172_v40  ;;  %7139 = vadd.xlane.f32.xlu1 %v7138_v51  ;;  %v7034_v47 = vadd.f32 0.0001, %v7026_v35  ;;  %v7203_v5 = vmul.f32 2.0, %v7179_v62  ;;  %v15156_v31 = vld [vmem:[#allocation105_spill] sm:$0xff]  ;;  %v7259_v38 = vmul.f32 %v7251_v12, %v7235_v33 }
 0x3f1   : > { %v6229_v22 = vadd.f32 %v13631_v44, %v15156_v31  ;;  %v7119_v26 = vmul.f32 %v15157_v20, %v7111_v58  ;;  %v7236_v59 = vadd.f32 0.0001, %v7228_v21  ;;  %v7252_v17 = vadd.f32 0.0009, %v7244_v57  ;;  %v9187_v62 = vld [vmem:[#allocation5 + $0x98] sm:$0xff]  ;;  %v15158_v57 = vld [vmem:[#allocation76_spill] sm:$0xff] }
 0x3f2   : > { %v7058_v15 = vmul.f32 %v7050_v10, %v7034_v47  ;;  %v7187_v41 = vmul.f32 2.0, %v7171_v37  ;;  %v7204_v56 = vmul.f32 2.0, %v7180_v23  ;;  %9110 = vrcp.f32 %v7259_v38  ;;  %v7165_v10 = vld [vmem:[#allocation5 + $0x610] sm:$0xff] }
 0x3f3   : > { %v13696_v6 = vpop.xlane.xlu1 %5497  ;;  %v13699_v53 = vpop.xlane.xlu0 %6312  ;;  %v13702_v28 = vadd.f32 %v6229_v22, %v13573_v19  ;;  %v7135_v35 = vsel %vm4872_vm1, %v7119_v26, 0.0  ;;  %v7260_v44 = vmul.f32 %v7252_v17, %v7236_v59  ;;  %v7174_v31 = vmul.f32 %v9187_v62, %v13448_v27  ;;  %v15159_v51 = vld [vmem:[#allocation81_spill] sm:$0xff] }
 0x3f4   : > { %v9107_v3 = vpop.eup %9106  ;;  %7136 = vadd.xlane.f32.xlu0 %v7135_v35  ;;  %v7211_v33 = vadd.f32 0.0009, %v7203_v5  ;;  %v7188_v21 = vmul.f32 2.0, %v7172_v40  ;;  %v7230_v37 = vadd.f32 %v13459_v52, %v15158_v57  ;;  %v7246_v58 = vadd.f32 %v13467_v11, %v15159_v51  ;;  %v9188_v12 = vld [vmem:[#allocation5 + $0x90] sm:$0xff] }
 0x3f5   : > { %v7113_v24 = vmul.f32 %v9107_v3, %v7057_v7  ;;  %9112 = vrcp.f32 %v7260_v44  ;;  %v7182_v19 = vsub.f32 %v7166_v25, %v7174_v31  ;;  %v7173_v23 = vmul.f32 %v9188_v12, %v13369_v60  ;;  %v15161_v25 = vld [vmem:[#allocation82_spill] sm:$0xff]  ;;  %v15162_v57 = vld [vmem:[#allocation88_spill] sm:$0xff] }
 0x3f6   : > { %v15160_v59 = vrot.slane %v13592_v29, 4  ;;  %v7195_v47 = vadd.f32 0.0001, %v7187_v41  ;;  %v7212_v5 = vadd.f32 0.0009, %v7204_v56  ;;  %v7229_v3 = vadd.f32 %v13385_v14, %v15161_v25 }
 0x3f7   : > { %v13711_v17 = vpop.xlane.xlu1 %6321  ;;  %v7121_v40 = vmul.f32 %v13306_v55, %v7113_v24  ;;  %v7238_v20 = vadd.f32 0.0001, %v7230_v37  ;;  %v7254_v26 = vadd.f32 0.0009, %v7246_v58  ;;  %v7181_v38 = vsub.f32 %v7165_v10, %v7173_v23  ;;  %v13721_v35 = vpop.xlane.xlu0 %5494  ;;  %v15163_v58 = vld [vmem:[#allocation104_spill] sm:$0xff] }
 0x3f8   : > { %v13716_v7 = vadd.f32 %v15160_v59, %v13592_v29  ;;  %v7219_v62 = vmul.f32 %v7211_v33, %v7195_v47  ;;  %v7245_v29 = vadd.f32 %v13393_v61, %v15162_v57  ;;  %v7196_v55 = vadd.f32 0.0001, %v7188_v21  ;;  %v7169_v59 = vld [vmem:[#allocation5 + $0x630] sm:$0xff] }
 0x3f9   : > { %v9109_v22 = vpop.eup %9108  ;;  %v7141_v60 = vsel %vm4872_vm1, %v7121_v40, 0.0  ;;  %v7190_v41 = vmul.f32 2.0, %v7174_v31  ;;  %v7206_v56 = vmul.f32 2.0, %v7182_v19  ;;  %v7262_v24 = vmul.f32 %v7254_v26, %v7238_v20  ;;  %v9189_v33 = vld [vmem:[#allocation5 + $0xb0] sm:$0xff]  ;;  %v15164_v19 = vld [vmem:[#allocation54_spill] sm:$0xff] }
 0x3fa   : > { %v7114_v44 = vmul.f32 %v9109_v22, %v7058_v15  ;;  %7142 = vadd.xlane.f32.xlu1 %v7141_v60  ;;  %v7237_v10 = vadd.f32 0.0001, %v7229_v3  ;;  %v7253_v51 = vadd.f32 0.0009, %v7245_v29  ;;  %v5303_v12 = vadd.f32 %v13678_v4, %v15163_v58  ;;  %v15166_v3 = vld [vmem:[#allocation17_spill] sm:$0xff]  ;;  %v15167_v60 = vld [vmem:[#allocation128_spill] sm:$0xff] }
 0x3fb   : > { %v7220_v25 = vmul.f32 %v7212_v5, %v7196_v55  ;;  %9114 = vrcp.f32 %v7262_v24  ;;  %v7205_v15 = vmul.f32 2.0, %v7181_v38  ;;  %v7177_v40 = vmul.f32 %v9189_v33, %v13507_v46  ;;  %v15168_v55 = vld [vmem:[#allocation84_spill] sm:$0xff] }
 0x3fc   : > { %v7122_v37 = vmul.f32 %v13341_v0, %v7114_v44  ;;  %v7261_v21 = vmul.f32 %v7253_v51, %v7237_v10  ;;  %v5304_v22 = vadd.f32 %v5303_v12, %v15164_v19  ;;  %v15165_v0 = vld [vmem:[#allocation102_spill] sm:$0xff]  ;;  %v9111_v26 = vpop.eup %9110  ;;  %v5806_v4 = vrot.slane %v15166_v3, 1  ;;  %v13740_v44 = vpop.xlane.xlu0 %6318 }
 0x3fd   : > { %v7233_v20 = vadd.f32 %v13521_v9, %v15165_v0  ;;  %v5972_v5 = vrot.slane %v13655_v63, 2  ;;  %v7185_v38 = vsub.f32 %v7169_v59, %v7177_v40  ;;  %v7249_v46 = vadd.f32 %v13538_v50, %v15167_v60  ;;  %v7168_v60 = vld [vmem:[#allocation5 + $0x628] sm:$0xff] }
 0x3fe   : > { %v13730_v47 = vpop.xlane.xlu1 %6471  ;;  %v7144_v31 = vsel %vm4872_vm1, %v7122_v37, 0.0  ;;  %v7275_v57 = vmul.f32 %v9111_v26, %v7219_v62  ;;  %v7214_v29 = vadd.f32 0.0009, %v7206_v56  ;;  %9116 = vrcp.f32 %v7261_v21  ;;  %v9190_v21 = vld [vmem:[#allocation5 + $0xa8] sm:$0xff]  ;;  %v15169_v26 = vld [vmem:[#allocation85_spill] sm:$0xff] }
 0x3ff   : > { %7145 = vadd.xlane.f32.xlu0 %v7144_v31  ;;  %v13743_v24 = vadd.f32 %v5304_v22, %v15168_v55  ;;  %v9113_v37 = vpop.eup %9112  ;;  %v5708_v10 = vrot.slane %v13716_v7, 2  ;;  %v7189_v51 = vmul.f32 2.0, %v7173_v23  ;;  %v7241_v58 = vadd.f32 0.0001, %v7233_v20 }
 0x400   : > { %v7257_v12 = vadd.f32 0.0009, %v7249_v46  ;;  %v7283_v59 = vmul.f32 %v13614_v1, %v7275_v57  ;;  %v7276_v31 = vmul.f32 %v9113_v37, %v7220_v25  ;;  %v7198_v19 = vadd.f32 0.0001, %v7190_v41 }
 0x401   : > { %v7213_v0 = vadd.f32 0.0009, %v7205_v15  ;;  %v7209_v62 = vmul.f32 2.0, %v7185_v38  ;;  %v7176_v22 = vmul.f32 %v9190_v21, %v13496_v2  ;;  %v7232_v55 = vadd.f32 %v13505_v32, %v15169_v26  ;;  %v13757_v38 = vpop.xlane.xlu0 %6468  ;;  %v9191_v21 = vld [vmem:[#allocation5 + $0xc0] sm:$0xff] }
 0x402   : > { %v13746_v33 = vpop.xlane.xlu1 %6477  ;;  %v7265_v56 = vmul.f32 %v7257_v12, %v7241_v58  ;;  %v13753_v23 = vadd.f32 %v5972_v5, %v13655_v63  ;;  %v7291_v20 = vsel %vm4872_vm1, %v7283_v59, 0.0  ;;  %v7284_v46 = vmul.f32 %v13638_v43, %v7276_v31  ;;  %v15172_v58 = vld [vmem:[#allocation87_spill] sm:$0xff]  ;;  %v15173_v5 = vld [vmem:[#allocation204_spill] sm:$0xff] }
 0x403   : > { %v7222_v57 = vmul.f32 %v7214_v29, %v7198_v19  ;;  %7292 = vadd.xlane.f32.xlu1 %v7291_v20  ;;  %v7197_v41 = vadd.f32 0.0001, %v7189_v51  ;;  %v7193_v25 = vmul.f32 2.0, %v7177_v40  ;;  %v7184_v15 = vsub.f32 %v7168_v60, %v7176_v22  ;;  %v7331_v19 = vld [vmem:[#allocation5 + $0x640] sm:$0xff] }
 0x404   : > { %15170 = vst [vmem:[#allocation30_spill] sm:$0xff] %v13753_v23  ;;  %9118 = vrcp.f32 %v7265_v56  ;;  %v13760_v2 = vadd.f32 %v5806_v4, %v15166_v3  ;;  %v7294_v37 = vsel %vm4872_vm1, %v7284_v46, 0.0  ;;  %v7248_v63 = vadd.f32 %v13514_v8, %v15172_v58  ;;  %v15177_v58 = vld [vmem:[#allocation205_spill] sm:$0xff] }
 0x405   : > { %v6231_v12 = vadd.f32 %v13702_v28, %v15173_v5  ;;  %v9115_v59 = vpop.eup %9114  ;;  %v13768_v29 = vadd.f32 %v5708_v10, %v13716_v7  ;;  %7295 = vadd.xlane.f32.xlu0 %v7294_v37  ;;  %v7221_v40 = vmul.f32 %v7213_v0, %v7197_v41  ;;  %v7217_v51 = vadd.f32 0.0009, %v7209_v62  ;;  %v15175_v7 = vld [vmem:[#allocation113_spill] sm:$0xff]  ;;  %v15178_v5 = vld [vmem:[#allocation107_spill] sm:$0xff] }
 0x406   : > { %15171 = vst [vmem:[#allocation68_spill] sm:$0xff] %v13760_v2  ;;  %v7240_v31 = vadd.f32 0.0001, %v7232_v55  ;;  %v7278_v3 = vmul.f32 %v9115_v59, %v7222_v57  ;;  %v7256_v4 = vadd.f32 0.0009, %v7248_v63  ;;  %v7339_v26 = vmul.f32 %v9191_v21, %v13397_v34  ;;  %v15176_v41 = vld [vmem:[#allocation117_spill] sm:$0xff] }
 0x407   : > { %15174 = vst [vmem:[#allocation160_spill] sm:$0xff] %v13768_v29  ;;  %v6232_v56 = vadd.f32 %v6231_v12, %v13603_v16  ;;  %v7201_v20 = vadd.f32 0.0001, %v7193_v25  ;;  %v7208_v46 = vmul.f32 2.0, %v7184_v15  ;;  %v7395_v10 = vadd.f32 %v13410_v49, %v15175_v7  ;;  %v13785_v15 = vpop.xlane.xlu0 %6474  ;;  %v7334_v2 = vld [vmem:[#allocation5 + $0x658] sm:$0xff] }
 0x408   : > { %v9117_v0 = vpop.eup %9116  ;;  %v7286_v62 = vmul.f32 %v13658_v13, %v7278_v3  ;;  %v7264_v55 = vmul.f32 %v7256_v4, %v7240_v31  ;;  %v7347_v37 = vsub.f32 %v7331_v19, %v7339_v26  ;;  %v6138_v34 = vrot.slane %v15177_v58, 4  ;;  %v7167_v31 = vld [vmem:[#allocation5 + $0x620] sm:$0xff]  ;;  %v13789_v3 = vld [vmem:[%s9534_s12 + $0x10] sm:$0xff] }
 0x409   : > { %v13770_v60 = vpop.xlane.xlu1 %6483  ;;  %v13779_v57 = vadd.f32 %v6232_v56, %v15176_v41  ;;  %v7277_v63 = vmul.f32 %v9117_v0, %v7221_v40  ;;  %v7411_v25 = vadd.f32 %v13420_v39, %v15178_v5  ;;  %v7225_v12 = vmul.f32 %v7217_v51, %v7201_v20  ;;  %v9193_v39 = vld [vmem:[#allocation5 + $0xa0] sm:$0xff]  ;;  %v15179_v51 = vld [vmem:[#allocation92_spill] sm:$0xff]  ;;  %v15180_v20 = vld [vmem:[#allocation101_spill] sm:$0xff] }
 0x40a   : > { %v7300_v49 = vsel %vm4872_vm1, %v7286_v62, 0.0  ;;  %v7192_v59 = vmul.f32 2.0, %v7176_v22  ;;  %9120 = vrcp.f32 %v7264_v55  ;;  %v7216_v4 = vadd.f32 0.0009, %v7208_v46  ;;  %v13794_v0 = vld [vmem:[#allocation5 + $0x120] sm:$0xff] }
 0x40b   : > { %7301 = vadd.xlane.f32.xlu1 %v7300_v49  ;;  %v7285_v19 = vmul.f32 %v13789_v3, %v7277_v63  ;;  %v7403_v56 = vadd.f32 0.0001, %v7395_v10  ;;  %v7419_v21 = vadd.f32 0.0009, %v7411_v25  ;;  %v7371_v7 = vmul.f32 2.0, %v7347_v37 }
 0x40c   : > { %v7175_v62 = vmul.f32 %v13794_v0, %v9193_v39  ;;  %v7231_v22 = vadd.f32 %v15135_v30, %v15179_v51  ;;  %v7247_v55 = vadd.f32 %v15137_v45, %v15180_v20  ;;  %v13802_v46 = vadd.f32 %v6138_v34, %v15177_v58  ;;  %v15181_v20 = vld [vmem:[#allocation115_spill] sm:$0xff]  ;;  %v13810_v58 = vpop.xlane.xlu0 %6480  ;;  %v13813_v34 = vld [vmem:[%s9534_s12 + $0x30] sm:$0xff] }
 0x40d   : > { %v13792_v40 = vpop.xlane.xlu1 %6489  ;;  %v7297_v10 = vsel %vm4872_vm1, %v7285_v19, 0.0  ;;  %v7355_v63 = vmul.f32 2.0, %v7339_v26  ;;  %v7427_v37 = vmul.f32 %v7419_v21, %v7403_v56  ;;  %v5306_v5 = vrot.slane %v13743_v24, 4  ;;  %15182 = vst [vmem:[#allocation72_spill] sm:$0xff] %v13813_v34  ;;  %v9196_v21 = vld [vmem:[#allocation5 + $0xd8] sm:$0xff] }
 0x40e   : > { %v9119_v41 = vpop.eup %9118  ;;  %7298 = vadd.xlane.f32.xlu0 %v7297_v10  ;;  %v7200_v49 = vadd.f32 0.0001, %v7192_v59  ;;  %v7183_v39 = vsub.f32 %v7167_v31, %v7175_v62  ;;  %v7239_v51 = vadd.f32 0.0001, %v7231_v22  ;;  %v7255_v28 = vadd.f32 0.0009, %v7247_v55 }
 0x40f   : > { %v7281_v25 = vmul.f32 %v9119_v41, %v7225_v12  ;;  %9122 = vrcp.f32 %v7427_v37  ;;  %v13808_v16 = vadd.f32 %v15181_v20, %v13620_v36  ;;  %v7379_v56 = vadd.f32 0.0009, %v7371_v7  ;;  %v15183_v22 = vld [vmem:[#allocation118_spill] sm:$0xff]  ;;  %v15184_v41 = vld [vmem:[#allocation132_spill] sm:$0xff] }
 0x410   : > { %v7224_v19 = vmul.f32 %v7216_v4, %v7200_v49  ;;  %v7342_v12 = vmul.f32 %v9196_v21, %v13448_v27  ;;  %v7363_v59 = vadd.f32 0.0001, %v7355_v63  ;;  %v7263_v31 = vmul.f32 %v7255_v28, %v7239_v51  ;;  %v7332_v28 = vld [vmem:[#allocation5 + $0x648] sm:$0xff] }
 0x411   : > { %v7289_v26 = vmul.f32 %v13813_v34, %v7281_v25  ;;  %v7398_v55 = vadd.f32 %v13459_v52, %v15183_v22  ;;  %v7414_v36 = vadd.f32 %v13467_v11, %v15184_v41  ;;  %v13821_v10 = vpop.xlane.xlu1 %6564  ;;  %v7191_v20 = vmul.f32 2.0, %v7175_v62  ;;  %v9197_v51 = vld [vmem:[#allocation5 + $0xc8] sm:$0xff]  ;;  %v15186_v41 = vld [vmem:[#allocation209_spill] sm:$0xff] }
 0x412   : > { %v7207_v23 = vmul.f32 2.0, %v7183_v39  ;;  %v7350_v25 = vsub.f32 %v7334_v2, %v7342_v12  ;;  %9124 = vrcp.f32 %v7263_v31  ;;  %v13826_v52 = vadd.f32 %v5306_v5, %v13743_v24  ;;  %v9198_v21 = vld [vmem:[#allocation5 + $0x108] sm:$0xff] }
 0x413   : > { %v7309_v37 = vsel %vm4872_vm1, %v7289_v26, 0.0  ;;  %v7406_v27 = vadd.f32 0.0001, %v7398_v55  ;;  %v7422_v7 = vadd.f32 0.0009, %v7414_v36  ;;  %v7387_v11 = vmul.f32 %v7379_v56, %v7363_v59  ;;  %v15185_v2 = vld [vmem:[#allocation108_spill] sm:$0xff]  ;;  %v13832_v55 = vpop.xlane.xlu0 %6486 }
 0x414   : > { %7310 = vadd.xlane.f32.xlu1 %v7309_v37  ;;  %v9121_v63 = vpop.eup %9120  ;;  %v7374_v49 = vmul.f32 2.0, %v7350_v25  ;;  %v7340_v26 = vmul.f32 %v9198_v21, %v9197_v51  ;;  %v7396_v22 = vadd.f32 %v13329_v54, %v15185_v2  ;;  %v7412_v31 = vadd.f32 %v13350_v42, %v15186_v41  ;;  %v13835_v5 = vld [vmem:[%s9534_s12 + $0x28] sm:$0xff]  ;;  %v15188_v42 = vld [vmem:[#allocation154_spill] sm:$0xff]  ;;  %v15190_v41 = vld [vmem:[#allocation133_spill] sm:$0xff] }
 0x415   : > { %v7280_v62 = vmul.f32 %v9121_v63, %v7224_v19  ;;  %v7430_v39 = vmul.f32 %v7422_v7, %v7406_v27  ;;  %v7199_v36 = vadd.f32 0.0001, %v7191_v20  ;;  %v7215_v37 = vadd.f32 0.0009, %v7207_v23  ;;  %v13838_v25 = vpop.xlane.xlu1 %6570  ;;  %v15187_v63 = vld [vmem:[#allocation43_spill] sm:$0xff] }
 0x416   : > { %v7358_v4 = vmul.f32 2.0, %v7342_v12  ;;  %v7348_v24 = vsub.f32 %v7332_v28, %v7340_v26  ;;  %v7404_v59 = vadd.f32 0.0001, %v7396_v22  ;;  %v7420_v19 = vadd.f32 0.0009, %v7412_v31  ;;  %v7335_v20 = vld [vmem:[#allocation5 + $0x660] sm:$0xff] }
 0x417   : > { %v7288_v56 = vmul.f32 %v13835_v5, %v7280_v62  ;;  %9126 = vrcp.f32 %v7430_v39  ;;  %v7382_v27 = vadd.f32 0.0009, %v7374_v49  ;;  %v7356_v54 = vmul.f32 2.0, %v7340_v26  ;;  %v9200_v21 = vld [vmem:[#allocation5 + $0xe0] sm:$0xff]  ;;  %v7333_v22 = vld [vmem:[#allocation5 + $0x650] sm:$0xff] }
 0x418   : > { %v7372_v7 = vmul.f32 2.0, %v7348_v24  ;;  %v13842_v51 = vadd.f32 %v15188_v42, %v15187_v63  ;;  %v7428_v28 = vmul.f32 %v7420_v19, %v7404_v59  ;;  %v7343_v62 = vmul.f32 %v9200_v21, %v13794_v0  ;;  %v15189_v39 = vld [vmem:[#allocation134_spill] sm:$0xff]  ;;  %v9201_v24 = vld [vmem:[#allocation5 + $0xd0] sm:$0xff]  ;;  %v13850_v59 = vpop.xlane.xlu0 %6567 }
 0x419   : > { %v9123_v23 = vpop.eup %9122  ;;  %v7306_v12 = vsel %vm4872_vm1, %v7288_v56, 0.0  ;;  %v7399_v2 = vadd.f32 %v15135_v30, %v15189_v39  ;;  %v7223_v26 = vmul.f32 %v7215_v37, %v7199_v36  ;;  %v7415_v31 = vadd.f32 %v15137_v45, %v15190_v41  ;;  %v9202_v63 = vld [vmem:[#allocation5 + $0x110] sm:$0xff] }
 0x41a   : > { %7307 = vadd.xlane.f32.xlu0 %v7306_v12  ;;  %v7443_v49 = vmul.f32 %v9123_v23, %v7387_v11  ;;  %v7341_v42 = vmul.f32 %v9202_v63, %v9201_v24  ;;  %v7366_v29 = vadd.f32 0.0001, %v7358_v4  ;;  %v7380_v34 = vadd.f32 0.0009, %v7372_v7  ;;  %v15191_v23 = vld [vmem:[#allocation122_spill] sm:$0xff]  ;;  %v13856_v4 = vpop.xlane.xlu1 %6579 }
 0x41b   : > { %9128 = vrcp.f32 %v7428_v28  ;;  %v7351_v56 = vsub.f32 %v7335_v20, %v7343_v62  ;;  %v7407_v19 = vadd.f32 0.0001, %v7399_v2  ;;  %v7423_v30 = vadd.f32 0.0009, %v7415_v31  ;;  %v13862_v31 = vld [vmem:[%s9534_s12 + $0x20] sm:$0xff] }
 0x41c   : > { %v7451_v0 = vmul.f32 %v13614_v1, %v7443_v49  ;;  %v7349_v21 = vsub.f32 %v7333_v22, %v7341_v42  ;;  %v9125_v11 = vpop.eup %9124  ;;  %v7390_v37 = vmul.f32 %v7382_v27, %v7366_v29  ;;  %v7364_v45 = vadd.f32 0.0001, %v7356_v54  ;;  %v15192_v49 = vld [vmem:[#allocation121_spill] sm:$0xff]  ;;  %v15193_v27 = vld [vmem:[#allocation50_spill] sm:$0xff] }
 0x41d   : > { %v7397_v12 = vadd.f32 %v13385_v14, %v15191_v23  ;;  %v7279_v20 = vmul.f32 %v9125_v11, %v7223_v26  ;;  %v7359_v28 = vmul.f32 2.0, %v7343_v62  ;;  %v7431_v39 = vmul.f32 %v7423_v30, %v7407_v19  ;;  %v7170_v26 = vld [vmem:[#allocation5 + $0x638] sm:$0xff]  ;;  %v13871_v19 = vpop.xlane.xlu0 %6573 }
 0x41e   : > { %v7459_v7 = vsel %vm4872_vm1, %v7451_v0, 0.0  ;;  %v7388_v1 = vmul.f32 %v7380_v34, %v7364_v45  ;;  %v7375_v2 = vmul.f32 2.0, %v7351_v56  ;;  %v7357_v22 = vmul.f32 2.0, %v7341_v42  ;;  %v9204_v34 = vld [vmem:[#allocation5 + $0xb8] sm:$0xff]  ;;  %v15194_v0 = vld [vmem:[#allocation99_spill] sm:$0xff] }
 0x41f   : > { %7460 = vadd.xlane.f32.xlu1 %v7459_v7  ;;  %v7413_v41 = vadd.f32 %v13393_v61, %v15192_v49  ;;  %v7287_v29 = vmul.f32 %v13862_v31, %v7279_v20  ;;  %9130 = vrcp.f32 %v7431_v39  ;;  %v7373_v14 = vmul.f32 2.0, %v7349_v21  ;;  %v9205_v56 = vld [vmem:[#allocation5 + $0x138] sm:$0xff]  ;;  %v7336_v39 = vld [vmem:[#allocation5 + $0x668] sm:$0xff]  ;;  %v13876_v49 = vpop.xlane.xlu1 %6585 }
 0x420   : > { %v13867_v54 = vadd.f32 %v13808_v16, %v15193_v27  ;;  %v7405_v24 = vadd.f32 0.0001, %v7397_v12  ;;  %v7178_v42 = vmul.f32 %v9205_v56, %v9204_v34  ;;  %v7234_v61 = vadd.f32 %v13474_v18, %v15194_v0  ;;  %v15195_v45 = vld [vmem:[#allocation210_spill] sm:$0xff]  ;;  %v9206_v34 = vld [vmem:[#allocation5 + $0xe8] sm:$0xff] }
 0x421   : > { %v9127_v62 = vpop.eup %9126  ;;  %v7421_v63 = vadd.f32 0.0009, %v7413_v41  ;;  %v7303_v30 = vsel %vm4872_vm1, %v7287_v29, 0.0  ;;  %v7367_v21 = vadd.f32 0.0001, %v7359_v28  ;;  %v7250_v16 = vadd.f32 %v13484_v48, %v15195_v45  ;;  %v9207_v0 = vld [vmem:[#allocation5 + $0x128] sm:$0xff] }
 0x422   : > { %v7446_v11 = vmul.f32 %v9127_v62, %v7390_v37  ;;  %7304 = vadd.xlane.f32.xlu0 %v7303_v30  ;;  %v7383_v23 = vadd.f32 0.0009, %v7375_v2  ;;  %v7186_v12 = vsub.f32 %v7170_v26, %v7178_v42  ;;  %v7242_v20 = vadd.f32 0.0001, %v7234_v61  ;;  %v15196_v29 = vld [vmem:[#allocation130_spill] sm:$0xff]  ;;  %v15197_v2 = vld [vmem:[#allocation124_spill] sm:$0xff] }
 0x423   : > { %v7429_v7 = vmul.f32 %v7421_v63, %v7405_v24  ;;  %v7258_v27 = vadd.f32 0.0009, %v7250_v16  ;;  %v7344_v36 = vmul.f32 %v9207_v0, %v9206_v34  ;;  %v7400_v37 = vadd.f32 %v13505_v32, %v15196_v29  ;;  %v15198_v34 = vld [vmem:[#allocation80_spill] sm:$0xff]  ;;  %v13886_v32 = vpop.xlane.xlu0 %6576 }
 0x424   : > { %v7454_v41 = vmul.f32 %v13658_v13, %v7446_v11  ;;  %v7365_v62 = vadd.f32 0.0001, %v7357_v22  ;;  %v7381_v45 = vadd.f32 0.0009, %v7373_v14  ;;  %v7416_v26 = vadd.f32 %v13514_v8, %v15197_v2  ;;  %v7338_v8 = vld [vmem:[#allocation5 + $0x678] sm:$0xff] }
 0x425   : > { %v9129_v28 = vpop.eup %9128  ;;  %9132 = vrcp.f32 %v7429_v7  ;;  %v7266_v61 = vmul.f32 %v7258_v27, %v7242_v20  ;;  %v7352_v30 = vsub.f32 %v7336_v39, %v7344_v36  ;;  %v7391_v13 = vmul.f32 %v7383_v23, %v7367_v21  ;;  %v9208_v21 = vld [vmem:[#allocation5 + $0xf8] sm:$0xff]  ;;  %v15200_v23 = vld [vmem:[#allocation143_spill] sm:$0xff] }
 0x426   : > { %v7468_v24 = vsel %vm4872_vm1, %v7454_v41, 0.0  ;;  %v7444_v63 = vmul.f32 %v9129_v28, %v7388_v1  ;;  %v7194_v11 = vmul.f32 2.0, %v7178_v42  ;;  %v7210_v16 = vmul.f32 2.0, %v7186_v12 }
 0x427   : > { %7469 = vadd.xlane.f32.xlu1 %v7468_v24  ;;  %v6324_v0 = vadd.f32 %v13842_v51, %v15198_v34  ;;  %9134 = vrcp.f32 %v7266_v61  ;;  %v7408_v14 = vadd.f32 0.0001, %v7400_v37  ;;  %v7424_v7 = vadd.f32 0.0009, %v7416_v26  ;;  %v13896_v51 = vpop.xlane.xlu1 %6663  ;;  %v15201_v37 = vld [vmem:[#allocation150_spill] sm:$0xff] }
 0x428   : > { %v7452_v22 = vmul.f32 %v13638_v43, %v7444_v63  ;;  %v15199_v1 = vrot.slane %v13826_v52, 2  ;;  %v7376_v39 = vmul.f32 2.0, %v7352_v30  ;;  %v7346_v42 = vmul.f32 %v9208_v21, %v9205_v56 }
 0x429   : > { %v7402_v12 = vadd.f32 %v13474_v18, %v15200_v23  ;;  %v9131_v41 = vpop.eup %9130  ;;  %v7389_v27 = vmul.f32 %v7381_v45, %v7365_v62  ;;  %v7432_v29 = vmul.f32 %v7424_v7, %v7408_v14  ;;  %v7418_v28 = vadd.f32 %v13484_v48, %v15201_v37  ;;  %v13904_v45 = vpop.xlane.xlu0 %6582  ;;  %v15203_v7 = vld [vmem:[#allocation153_spill] sm:$0xff] }
 0x42a   : > { %v13892_v20 = vadd.f32 %v15199_v1, %v13826_v52  ;;  %v7462_v43 = vsel %vm4872_vm1, %v7452_v22, 0.0  ;;  %v7447_v2 = vmul.f32 %v9131_v41, %v7391_v13  ;;  %v7202_v52 = vadd.f32 0.0001, %v7194_v11  ;;  %v7337_v1 = vld [vmem:[#allocation5 + $0x670] sm:$0xff] }
 0x42b   : > { %7463 = vadd.xlane.f32.xlu0 %v7462_v43  ;;  %v7218_v26 = vadd.f32 0.0009, %v7210_v16  ;;  %v7354_v24 = vsub.f32 %v7338_v8, %v7346_v42  ;;  %v7360_v63 = vmul.f32 2.0, %v7344_v36  ;;  %9136 = vrcp.f32 %v7432_v29  ;;  %v15202_v22 = vld [vmem:[#allocation144_spill] sm:$0xff] }
 0x42c   : > { %v7410_v56 = vadd.f32 0.0001, %v7402_v12  ;;  %v7426_v61 = vadd.f32 0.0009, %v7418_v28  ;;  %v7455_v18 = vmul.f32 %v13862_v31, %v7447_v2  ;;  %v7384_v30 = vadd.f32 0.0009, %v7376_v39 }
 0x42d   : > { %v7362_v34 = vmul.f32 2.0, %v7346_v42  ;;  %v7401_v62 = vadd.f32 %v13521_v9, %v15202_v22  ;;  %v7378_v48 = vmul.f32 2.0, %v7354_v24  ;;  %v9209_v13 = vld [vmem:[#allocation5 + $0xf0] sm:$0xff]  ;;  %v7417_v36 = vadd.f32 %v13538_v50, %v15203_v7  ;;  %v15204_v42 = vld [vmem:[#allocation167_spill] sm:$0xff]  ;;  %v6670_v9 = vpop.xlane.xlu1 %6669  ;;  %v9211_v7 = vld [vmem:[%s9534_s12 + $0x38] sm:$0xff]  ;;  %s8045_s12 = sshll.u32 %s9396_s19, 4 }
 0x42e   : > { %v7434_v14 = vmul.f32 %v7426_v61, %v7410_v56  ;;  %v9210_v11 = vld [vmem:[#allocation5 + $0x130] sm:$0xff]  ;;  %v6234_v21 = vrot.slane %v13779_v57, 4  ;;  %v7471_v31 = vsel %vm4872_vm1, %v7455_v18, 0.0  ;;  %v7226_v39 = vmul.f32 %v7218_v26, %v7202_v52  ;;  %v15205_v28 = vld [vmem:[#allocation91_spill] sm:$0xff]  ;;  %s13994_s11 = scalar_lea.hbm %s14041_s4, %s8045_s12  ;;  %s9349_s19 = smov [#allocation11]  }
 0x42f   : > { %v7345_v16 = vmul.f32 %v9210_v11, %v9209_v13  ;;  %v9133_v8 = vpop.eup %9132  ;;  %v5501_v23 = vadd.f32 %v13867_v54, %v15204_v42  ;;  %7472 = vadd.xlane.f32.xlu1 %v7471_v31  ;;  %v7368_v41 = vadd.f32 0.0001, %v7360_v63  ;;  %v7409_v29 = vadd.f32 0.0001, %v7401_v62  ;;  %v15206_v50 = vld [vmem:[#allocation63_spill] sm:$0xff]  ;;  %v15207_v63 = vld [vmem:[#allocation116_spill] sm:$0xff] }
 0x430   : > { %v7445_v12 = vmul.f32 %v9133_v8, %v7389_v27  ;;  %9138 = vrcp.f32 %v7434_v14  ;;  %v7425_v37 = vadd.f32 0.0009, %v7417_v36  ;;  %v6325_v24 = vadd.f32 %v6324_v0, %v15206_v50  ;;  %s9276_s22 = sshll.u32 %s9349_s19, 4  ;;  %s9277_s22 = int_to_ptr.vmem [resolvable:$false] %s9276_s22 }
 0x431   : > { %v7353_v43 = vsub.f32 %v7337_v1, %v7345_v16  ;;  %v5502_v2 = vadd.f32 %v5501_v23, %v15205_v28  ;;  %v9135_v56 = vpop.eup %9134  ;;  %v7392_v52 = vmul.f32 %v7384_v30, %v7368_v41  ;;  %v7370_v26 = vadd.f32 0.0001, %v7362_v34  ;;  %v6661_v1 = vpop.xlane.xlu0 %6660  ;;  %v15208_v34 = vld [vmem:[#allocation22_spill] sm:$0xff]  ;;  %s9278_s28 = scalar_lea.vmem %s9277_s22, 32  ;;  %p9279_p4 = scmp.lt.s32.totalorder %s13996_s20, %s9277_s22 }
 0x432   : > { %v7453_v61 = vmul.f32 %v13789_v3, %v7445_v12  ;;  %v7386_v18 = vadd.f32 0.0009, %v7378_v48  ;;  %v7282_v54 = vmul.f32 %v9135_v56, %v7226_v39  ;;  %v7433_v22 = vmul.f32 %v7425_v37, %v7409_v29  ;;  %v6667_v36 = vpop.xlane.xlu1 %6666  ;;  %p9280_p5 = scmp.lt.s32.totalorder %s9278_s28, %s9272_s13 }
 0x433   : > { %v6326_v27 = vadd.f32 %v6325_v24, %v13699_v53  ;;  %v5503_v14 = vadd.f32 %v5502_v2, %v15207_v63  ;;  %v7361_v13 = vmul.f32 2.0, %v7345_v16  ;;  %v7377_v11 = vmul.f32 2.0, %v7353_v43 }
 0x434   : > { %v7465_v62 = vsel %vm4872_vm1, %v7453_v61, 0.0  ;;  %v6491_v0 = vadd.f32 %v13730_v47, %v13757_v38  ;;  %v7290_v3 = vmul.f32 %v9211_v7, %v7282_v54  ;;  %9140 = vrcp.f32 %v7433_v22  ;;  %p9281_p10 = por %p9280_p5, %p9279_p4 }
 0x435   : > { %7466 = vadd.xlane.f32.xlu0 %v7465_v62  ;;  %v5504_v30 = vadd.f32 %v5503_v14, %v13721_v35  ;;  %v6327_v48 = vadd.f32 %v6326_v27, %v15208_v34  ;;  %v9137_v53 = vpop.eup %9136  ;;  %v7394_v8 = vmul.f32 %v7386_v18, %v7370_v26  ;;  %v6587_v16 = vadd.f32 %v13850_v59, %v13821_v10  ;;  %v6673_v29 = vpop.xlane.xlu0 %6672 }
 0x436   : > { %v6492_v31 = vadd.f32 %v6491_v0, %v13785_v15  ;;  %v6683_v39 = vadd.f32 %v13896_v51, %v6661_v1  ;;  %v7312_v47 = vsel %vm4872_vm1, %v7290_v3, 0.0  ;;  %v7448_v38 = vmul.f32 %v9137_v53, %v7392_v52  ;;  %v6676_v56 = vpop.xlane.xlu1 %6675  ;;  %v15211_v3 = vld [vmem:[#allocation72_spill] sm:$0xff]  ;;  %p9282_p11 = pnand %p9281_p10, %p9275_p9 }
 0x437   : > { %v5505_v42 = vadd.f32 %v5504_v30, %v13696_v6  ;;  %v6328_v23 = vadd.f32 %v6327_v48, %v13740_v44  ;;  %7313 = vadd.xlane.f32.xlu1 %v7312_v47  ;;  %v7385_v35 = vadd.f32 0.0009, %v7377_v11  ;;  %v6588_v41 = vadd.f32 %v6587_v16, %v13838_v25  ;;  %v15212_v53 = vld [vmem:[#allocation160_spill] sm:$0xff] }
 0x438   : > { %v6493_v12 = vadd.f32 %v6492_v31, %v13746_v33  ;;  %v6684_v43 = vadd.f32 %v6683_v39, %v6667_v36  ;;  %v6235_v15 = vadd.f32 %v6234_v21, %v13779_v57  ;;  %v7456_v10 = vmul.f32 %v13835_v5, %v7448_v38 }
 0x439   : > { %v5506_v59 = vrot.slane %v5505_v42, 4  ;;  %v6329_v51 = vadd.f32 %v6328_v23, %v13711_v17  ;;  %v7369_v28 = vadd.f32 0.0001, %v7361_v13  ;;  %v6589_v44 = vadd.f32 %v6588_v41, %v13871_v19  ;;  %v15209_v19 = vld [vmem:[#allocation60_spill] sm:$0xff]  ;;  %v6679_v1 = vpop.xlane.xlu0 %6678 }
 0x43a   : > { %v9139_v37 = vpop.eup %9138  ;;  %v6494_v6 = vadd.f32 %v6493_v12, %v13810_v58  ;;  %v6685_v2 = vadd.f32 %v6684_v43, %v6670_v9  ;;  %v7474_v33 = vsel %vm4872_vm1, %v7456_v10, 0.0  ;;  %v5310_v61 = vrot.slane %v13892_v20, 1 }
 0x43b   : > { %v7450_v50 = vmul.f32 %v9139_v37, %v7394_v8  ;;  %v5507_v25 = vadd.f32 %v5506_v59, %v5505_v42  ;;  %v6330_v24 = vrot.slane %v6329_v51, 4  ;;  %7475 = vadd.xlane.f32.xlu0 %v7474_v33  ;;  %v7393_v57 = vmul.f32 %v7385_v35, %v7369_v28 }
 0x43c   : > { %v6495_v5 = vadd.f32 %v6494_v6, %v13770_v60  ;;  %v6590_v17 = vadd.f32 %v6589_v44, %v13886_v32  ;;  %v6686_v21 = vadd.f32 %v6685_v2, %v6673_v29  ;;  %vm5808_vm2 = vcmp.eq.s32.totalorder %v15209_v19, 3  ;;  %v15216_v2 = vld [vmem:[#allocation68_spill] sm:$0xff] }
 0x43d   : > { %v7458_v52 = vmul.f32 %v9211_v7, %v7450_v50  ;;  %v5508_v58 = vrot.slane %v5507_v25, 2  ;;  %v6331_v26 = vadd.f32 %v6330_v24, %v6329_v51  ;;  %v15210_v9 = vrot.slane %v13802_v46, 2  ;;  %v6682_v7 = vpop.xlane.xlu1 %6681 }
 0x43e   : > { %v6496_v54 = vadd.f32 %v6495_v5, %v13832_v55  ;;  %v6591_v22 = vadd.f32 %v6590_v17, %v13856_v4  ;;  %v6687_v27 = vadd.f32 %v6686_v21, %v6676_v56  ;;  %v9141_v60 = vpop.eup %9140  ;;  %vm5312_vm3 = vcmp.eq.s32.totalorder %v15209_v19, 0 }
 0x43f   : > { %v6141_v18 = vadd.f32 %v15210_v9, %v13802_v46  ;;  %v6236_v32 = vrot.slane %v6235_v15, 2  ;;  %v7480_v63 = vsel %vm4872_vm1, %v7458_v52, 0.0  ;;  %v5509_v14 = vadd.f32 %v5508_v58, %v5507_v25 }
 0x440   : > { %7481 = vadd.xlane.f32.xlu1 %v7480_v63  ;;  %v7449_v62 = vmul.f32 %v9141_v60, %v7393_v57  ;;  %v6497_v13 = vadd.f32 %v6496_v54, %v13792_v40  ;;  %v6592_v11 = vadd.f32 %v6591_v22, %v13904_v45  ;;  %v6688_v46 = vadd.f32 %v6687_v27, %v6679_v1 }
 0x441   : > { %v5311_v55 = vadd.f32 %v5310_v61, %v13892_v20  ;;  %vm5512_vm4 = vcmp.eq.s32.totalorder %v15209_v19, 1  ;;  %v5510_v4 = vrot.slane %v5509_v14, 1  ;;  %v6332_v0 = vrot.slane %v6331_v26, 2 }
 0x442   : > { %v7457_v30 = vmul.f32 %v15211_v3, %v7449_v62  ;;  %v6498_v34 = vrot.slane %v6497_v13, 4  ;;  %v6593_v48 = vadd.f32 %v6592_v11, %v13876_v49  ;;  %v6689_v36 = vadd.f32 %v6688_v46, %v6682_v7  ;;  %v6757_v46 = vpop.xlane.xlu0 %6756  ;;  %v6760_v7 = vpop.xlane.xlu1 %6759 }
 0x443   : > { %vm5712_vm5 = vcmp.eq.s32.totalorder %v15209_v19, 2  ;;  %v15213_v40 = vrot.slane %v15212_v53, 1  ;;  %v6237_v8 = vadd.f32 %v6236_v32, %v6235_v15  ;;  %v5511_v31 = vadd.f32 %v5510_v4, %v5509_v14  ;;  %v15214_v15 = vld [vmem:[#allocation30_spill] sm:$0xff] }
 0x444   : > { %v7477_v20 = vsel %vm4872_vm1, %v7457_v30, 0.0  ;;  %v6499_v16 = vadd.f32 %v6498_v34, %v6497_v13  ;;  %v6594_v39 = vrot.slane %v6593_v48, 4  ;;  %v6690_v47 = vrot.slane %v6689_v36, 4 }
 0x445   : > { %v5711_v45 = vadd.f32 %v15213_v40, %v15212_v53  ;;  %v6142_v38 = vrot.slane %v6141_v18, 1  ;;  %v5313_v42 = vsel %vm5312_vm3, %v5311_v55, 0.0  ;;  %7478 = vadd.xlane.f32.xlu0 %v7477_v20  ;;  %v5513_v49 = vsel %vm5512_vm4, %v5511_v31, 0.0 }
 0x446   : > { %v6333_v23 = vadd.f32 %v6332_v0, %v6331_v26  ;;  %v5514_v35 = vadd.f32 %v5513_v49, %v5313_v42  ;;  %v6500_v12 = vrot.slane %v6499_v16, 2  ;;  %v6595_v41 = vadd.f32 %v6594_v39, %v6593_v48  ;;  %v6763_v0 = vpop.xlane.xlu0 %6762  ;;  %v6766_v30 = vpop.xlane.xlu1 %6765 }
 0x447   : > { %v6691_v43 = vadd.f32 %v6690_v47, %v6689_v36  ;;  %vm5976_vm6 = vcmp.eq.s32.totalorder %v15209_v19, 4  ;;  %v15215_v10 = vrot.slane %v15214_v15, 1  ;;  %v5713_v51 = vsel %vm5712_vm5, %v5711_v45, 0.0 }
 0x448   : > { %v6238_v29 = vrot.slane %v6237_v8, 1  ;;  %v5714_v37 = vadd.f32 %v5713_v51, %v5514_v35  ;;  %v6501_v28 = vadd.f32 %v6500_v12, %v6499_v16  ;;  %v6596_v6 = vrot.slane %v6595_v41, 2 }
 0x449   : > { %v5975_v59 = vadd.f32 %v15215_v10, %v15214_v15  ;;  %v6692_v44 = vrot.slane %v6691_v43, 2  ;;  %v5809_v33 = vsel %vm5808_vm2, %v15216_v2, 0.0  ;;  %vm6144_vm7 = vcmp.eq.s32.totalorder %v15209_v19, 5 }
 0x44a   : > { %v6143_v50 = vadd.f32 %v6142_v38, %v6141_v18  ;;  %v6334_v25 = vrot.slane %v6333_v23, 1  ;;  %v5810_v24 = vadd.f32 %v5809_v33, %v5714_v37  ;;  %v6502_v56 = vrot.slane %v6501_v28, 1  ;;  %v6769_v3 = vpop.xlane.xlu0 %6768  ;;  %v6772_v48 = vpop.xlane.xlu1 %6771 }
 0x44b   : > { %v6597_v57 = vadd.f32 %v6596_v6, %v6595_v41  ;;  %v6693_v5 = vadd.f32 %v6692_v44, %v6691_v43  ;;  %v5977_v17 = vsel %vm5976_vm6, %v5975_v59, 0.0  ;;  %v6239_v21 = vadd.f32 %v6238_v29, %v6237_v8 }
 0x44c   : > { %vm6240_vm8 = vcmp.eq.s32.totalorder %v15209_v19, 6  ;;  %v5978_v61 = vadd.f32 %v5977_v17, %v5810_v24  ;;  %v6145_v58 = vsel %vm6144_vm7, %v6143_v50, 0.0  ;;  %v6335_v26 = vadd.f32 %v6334_v25, %v6333_v23 }
 0x44d   : > { %v6598_v52 = vrot.slane %v6597_v57, 1  ;;  %v6503_v9 = vadd.f32 %v6502_v56, %v6501_v28  ;;  %v6694_v54 = vrot.slane %v6693_v5, 1  ;;  %vm6336_vm9 = vcmp.eq.s32.totalorder %v15209_v19, 7 }
 0x44e   : > { %v6146_v22 = vadd.f32 %v6145_v58, %v5978_v61  ;;  %vm6504_vm10 = vcmp.eq.s32.totalorder %v15209_v19, 8  ;;  %v6241_v18 = vsel %vm6240_vm8, %v6239_v21, 0.0  ;;  %vm6600_vm11 = vcmp.eq.s32.totalorder %v15209_v19, 9  ;;  %v6775_v34 = vpop.xlane.xlu0 %6774  ;;  %v6778_v53 = vpop.xlane.xlu1 %6777 }
 0x44f   : > { %v6599_v27 = vadd.f32 %v6598_v52, %v6597_v57  ;;  %v6337_v32 = vsel %vm6336_vm9, %v6335_v26, 0.0  ;;  %v6505_v63 = vsel %vm6504_vm10, %v6503_v9, 0.0  ;;  %v6695_v14 = vadd.f32 %v6694_v54, %v6693_v5 }
 0x450   : > { %v6242_v60 = vadd.f32 %v6241_v18, %v6146_v22  ;;  %vm6696_vm12 = vcmp.eq.s32.totalorder %v15209_v19, 10  ;;  %v6779_v10 = vadd.f32 %v6760_v7, %v6757_v46  ;;  %vm6792_vm13 = vcmp.eq.s32.totalorder %v15209_v19, 11 }
 0x451   : > { %v6601_v62 = vsel %vm6600_vm11, %v6599_v27, 0.0  ;;  %v6697_v11 = vsel %vm6696_vm12, %v6695_v14, 0.0  ;;  %vm6992_vm14 = vcmp.eq.s32.totalorder %v15209_v19, 12  ;;  %vm7160_vm15 = vcmp.eq.s32.totalorder %v15209_v19, 13 }
 0x452   : > { %v6338_v1 = vadd.f32 %v6337_v32, %v6242_v60  ;;  %v6960_v36 = vpop.xlane.xlu0 %6959  ;;  %v6957_v45 = vpop.xlane.xlu1 %6956  ;;  %v6780_v29 = vadd.f32 %v6779_v10, %v6763_v0  ;;  %vm7328_vm0 = vcmp.eq.s32.totalorder %v15209_v19, 14  ;;  %vm7496_vm1 = vcmp.eq.s32.totalorder %v15209_v19, 15 }
 0x453   : > { %v6979_v59 = vadd.f32 %v6960_v36, %v6957_v45 }
 0x454   : > { %v6506_v13 = vadd.f32 %v6505_v63, %v6338_v1  ;;  %v6781_v44 = vadd.f32 %v6780_v29, %v6766_v30 }
 0x456   : > { %v6602_v55 = vadd.f32 %v6601_v62, %v6506_v13  ;;  %v6963_v40 = vpop.xlane.xlu0 %6962  ;;  %v6782_v24 = vadd.f32 %v6781_v44, %v6769_v3 }
 0x457   : > { %v6980_v28 = vadd.f32 %v6979_v59, %v6963_v40 }
 0x458   : > { %v13981_v4 = vadd.f32 %v6697_v11, %v6602_v55  ;;  %v6783_v21 = vadd.f32 %v6782_v24, %v6772_v48 }
 0x45a   : > { %v6969_v8 = vpop.xlane.xlu0 %6968  ;;  %v6966_v31 = vpop.xlane.xlu1 %6965  ;;  %v6784_v9 = vadd.f32 %v6783_v21, %v6775_v34 }
 0x45b   : > { %v6981_v50 = vadd.f32 %v6980_v28, %v6966_v31 }
 0x45c   : > { %v6785_v63 = vadd.f32 %v6784_v9, %v6778_v53 }
 0x45d   : > { %v6982_v57 = vadd.f32 %v6981_v50, %v6969_v8 }
 0x45e   : > { %v6978_v20 = vpop.xlane.xlu0 %6977  ;;  %v6786_v11 = vrot.slane %v6785_v63, 4 }
 0x460   : > { %v6787_v48 = vadd.f32 %v6786_v11, %v6785_v63 }
 0x466   : > { %v6972_v16 = vpop.xlane.xlu1 %6971 }
 0x467   : > { %v6983_v26 = vadd.f32 %v6982_v57, %v6972_v16  ;;  %v6788_v16 = vrot.slane %v6787_v48, 2 }
 0x468   : > { %v6975_v39 = vpop.xlane.xlu0 %6974 }
 0x469   : > { %v6984_v27 = vadd.f32 %v6983_v26, %v6975_v39 }
 0x46b   : > { %v6985_v1 = vadd.f32 %v6984_v27, %v6978_v20 }
 0x46c   : > { %v7125_v47 = vpop.xlane.xlu1 %7124 }
 0x46d   : > { %v6986_v7 = vrot.slane %v6985_v1, 4 }
 0x46f   : > { %v6987_v45 = vadd.f32 %v6986_v7, %v6985_v1 }
 0x471   : > { %v7128_v38 = vpop.xlane.xlu0 %7127  ;;  %v6988_v39 = vrot.slane %v6987_v45, 2 }
 0x472   : > { %v7147_v6 = vadd.f32 %v7128_v38, %v7125_v47 }
 0x476   : > { %v7134_v42 = vpop.xlane.xlu1 %7133 }
 0x47b   : > { %v7131_v49 = vpop.xlane.xlu0 %7130 }
 0x47c   : > { %v7148_v2 = vadd.f32 %v7147_v6, %v7131_v49 }
 0x47d   : > { %v7140_v23 = vpop.xlane.xlu1 %7139 }
 0x47e   : > { %v7149_v56 = vadd.f32 %v7148_v2, %v7134_v42  ;;  %v6789_v42 = vadd.f32 %v6788_v16, %v6787_v48 }
 0x481   : > { %v7137_v35 = vpop.xlane.xlu0 %7136 }
 0x482   : > { %v7150_v61 = vadd.f32 %v7149_v56, %v7137_v35 }
 0x484   : > { %v7151_v54 = vadd.f32 %v7150_v61, %v7140_v23  ;;  %v6989_v23 = vadd.f32 %v6988_v39, %v6987_v45 }
 0x486   : > { %v6990_v10 = vrot.slane %v6989_v23, 1 }
 0x487   : > { %v7143_v12 = vpop.xlane.xlu1 %7142 }
 0x488   : > { %v7152_v14 = vadd.f32 %v7151_v54, %v7143_v12  ;;  %v6991_v44 = vadd.f32 %v6990_v10, %v6989_v23 }
 0x48a   : > { %v6993_v56 = vsel %vm6992_vm14, %v6991_v44, 0.0 }
 0x48c   : > { %v7146_v41 = vpop.xlane.xlu0 %7145 }
 0x48d   : > { %v7153_v46 = vadd.f32 %v7152_v14, %v7146_v41  ;;  %v6790_v41 = vrot.slane %v6789_v42, 1 }
 0x48f   : > { %v7154_v34 = vrot.slane %v7153_v46, 4 }
 0x490   : > { %v7293_v43 = vpop.xlane.xlu1 %7292 }
 0x491   : > { %v7155_v53 = vadd.f32 %v7154_v34, %v7153_v46 }
 0x492   : > { %v7296_v15 = vpop.xlane.xlu0 %7295 }
 0x493   : > { %v7315_v17 = vadd.f32 %v7296_v15, %v7293_v43  ;;  %v7156_v49 = vrot.slane %v7155_v53, 2 }
 0x495   : > { %v7157_v43 = vadd.f32 %v7156_v49, %v7155_v53 }
 0x497   : > { %v7158_v28 = vrot.slane %v7157_v43, 1 }
 0x498   : > { %v7302_v51 = vpop.xlane.xlu1 %7301 }
 0x49b   : > { %v7299_v37 = vpop.xlane.xlu0 %7298 }
 0x49c   : > { %v7316_v52 = vadd.f32 %v7315_v17, %v7299_v37  ;;  %v6791_v37 = vadd.f32 %v6790_v41, %v6789_v42 }
 0x49e   : > { %v7317_v18 = vadd.f32 %v7316_v52, %v7302_v51  ;;  %v6793_v50 = vsel %vm6792_vm13, %v6791_v37, 0.0 }
 0x49f   : > { %v6794_v17 = vadd.f32 %v6793_v50, %v13981_v4 }
 0x4a1   : > { %v7311_v33 = vpop.xlane.xlu1 %7310  ;;  %v6994_v52 = vadd.f32 %v6993_v56, %v6794_v17 }
 0x4a7   : > { %v7308_v25 = vpop.xlane.xlu0 %7307 }
 0x4ac   : > { %v7461_v5 = vpop.xlane.xlu1 %7460 }
 0x4af   : > { %v7305_v58 = vpop.xlane.xlu0 %7304 }
 0x4b0   : > { %v7318_v60 = vadd.f32 %v7317_v18, %v7305_v58 }
 0x4b2   : > { %v7319_v13 = vadd.f32 %v7318_v60, %v7308_v25  ;;  %v7159_v25 = vadd.f32 %v7158_v28, %v7157_v43 }
 0x4b4   : > { %v7470_v22 = vpop.xlane.xlu1 %7469  ;;  %v7320_v30 = vadd.f32 %v7319_v13, %v7311_v33  ;;  %v7161_v21 = vsel %vm7160_vm15, %v7159_v25, 0.0 }
 0x4b5   : > { %v7162_v9 = vadd.f32 %v7161_v21, %v6994_v52 }
 0x4b8   : > { %v7464_v32 = vpop.xlane.xlu0 %7463 }
 0x4b9   : > { %v7483_v55 = vadd.f32 %v7464_v32, %v7461_v5 }
 0x4bc   : > { %v7473_v62 = vpop.xlane.xlu1 %7472 }
 0x4c2   : > { %v7467_v0 = vpop.xlane.xlu0 %7466 }
 0x4c3   : > { %v7484_v3 = vadd.f32 %v7483_v55, %v7467_v0 }
 0x4c4   : > { %v7314_v36 = vpop.xlane.xlu1 %7313 }
 0x4c5   : > { %v7321_v40 = vadd.f32 %v7320_v30, %v7314_v36  ;;  %v7485_v8 = vadd.f32 %v7484_v3, %v7470_v22 }
 0x4c7   : > { %v7322_v31 = vrot.slane %v7321_v40, 4  ;;  %v7486_v47 = vadd.f32 %v7485_v8, %v7473_v62 }
 0x4c8   : > { %v7476_v38 = vpop.xlane.xlu0 %7475 }
 0x4c9   : > { %v7323_v20 = vadd.f32 %v7322_v31, %v7321_v40  ;;  %v7487_v12 = vadd.f32 %v7486_v47, %v7476_v38 }
 0x4cb   : > { %v7324_v35 = vrot.slane %v7323_v20, 2 }
 0x4cd   : > { %v7325_v59 = vadd.f32 %v7324_v35, %v7323_v20  ;;  %v7482_v29 = vpop.xlane.xlu1 %7481 }
 0x4cf   : > { %v7326_v2 = vrot.slane %v7325_v59, 1 }
 0x4d1   : > { %v7327_v57 = vadd.f32 %v7326_v2, %v7325_v59 }
 0x4d2   : > { %v7479_v15 = vpop.xlane.xlu0 %7478 }
 0x4d3   : > { %v7488_v51 = vadd.f32 %v7487_v12, %v7479_v15  ;;  %v7329_v58 = vsel %vm7328_vm0, %v7327_v57, 0.0 }
 0x4d4   : > { %v7330_v22 = vadd.f32 %v7329_v58, %v7162_v9 }
 0x4d5   : > { %v7489_v6 = vadd.f32 %v7488_v51, %v7482_v29 }
 0x4d7   : > { %v7490_v33 = vrot.slane %v7489_v6, 4 }
 0x4d9   : > { %v7491_v24 = vadd.f32 %v7490_v33, %v7489_v6 }
 0x4db   : > { %v7492_v5 = vrot.slane %v7491_v24, 2 }
 0x4dd   : > { %v7493_v61 = vadd.f32 %v7492_v5, %v7491_v24 }
 0x4df   : > { %v7494_v26 = vrot.slane %v7493_v61, 1 }
 0x4e1   : > { %v7495_v54 = vadd.f32 %v7494_v26, %v7493_v61 }
 0x4e3   : > { %v7497_v18 = vsel %vm7496_vm1, %v7495_v54, 0.0 }
 0x4e4   : > { %v7498_v27 = vadd.f32 %v7497_v18, %v7330_v22 }
 0x4e6   : > { %7499 = vst [vmem:[%s254_s7] sm:$0x1] %v7498_v27 }
 0x4e7   : > { %9285 = shalt.err (!%p9282_p11)
}
 0x4e8   : > { %s9286_s10 = scalar_lea.hbm %s13994_s11, 16  ;;  %s9290_s14 = scalar_lea.hbm %s14041_s4, 64 }
 0x4e9   : > { %p9287_p7 = scmp.ne.s32.totalorder %s13994_s11, %s9286_s10  ;;  %p9291_p1 = scmp.lt.u32.totalorder %s13994_s11, %s14041_s4 }
 0x4ea   : > { %p9292_p3 = scmp.lt.u32.totalorder %s9290_s14, %s9286_s10  ;;  %p9294_p12 = scmp.lt.u32.totalorder %s9286_s10, %s13994_s11 }
 0x4eb   : > { %p9288_p8 = pnand %p9287_p7, %p15217_p0 }
 0x4ec   : > { %p9293_p6 = por %p9292_p3, %p9291_p1 }
 0x4ed   : > { %p9289_p13 = pneg %p9288_p8 }
 0x4ee   : > { %p9295_p2 = por %p9294_p12, %p9293_p6 }
 0x4f0   : > { %p9296_p9 = pnand %p9295_p2, %p9289_p13 }
 0x4f2   : > { %9299 = shalt.err (!%p9296_p9)
}
 0x4f3   : > { %8932 = dma.vmem_to_hbm [thread:$0]  (%p15217_p0), %s13996_s20, 16, %s13994_s11, %s7501_s6  }
 0x4f4 PF: > { %p8946_p4 = scmp.ge.s32.totalorder %s9342_s18, 2  ;;  %s7525_s8 = sand.u32 1, %s9330_s15  }
 0x4f5   : > { %p15218_p5 = scmp.ne.s32.totalorder %s14407_s27, 0  ;;  %s7526_s12 = scalar_lea.sflag [#allocation8], %s7525_s8 }
 0x4f7   : > { %p8942_p10 = pnand %p8946_p4, %p15218_p5 }
 0x4f9   : > { %9325 = dma.done.wait (!%p8942_p10), %s7526_s12, 16  }
 0x4fa   : > { %9327 = vsyncadd (!%p8942_p10), %s7526_s12, 4294967280  ;;  %p20_p11 = scmp.ge.s32.totalorder %s9400_s21, 6   ;;  %s15219_s15 = smov %s9334_s16 }
 0x4fb   : > { %s15220_s16 = smov %s9338_s17  ;;  %s15221_s17 = smov %s9412_s24 }
 0x4fc   : > { %s15222_s18 = smov %s9400_s21  ;;  %22 = sbr.rel (!%p20_p11) target bundleno = 7 (0x7), region = 98 }
 0x503   :  { %7530 = vsyncpa [#allocation7], 1 }
 0x504   :  { %7532 = vsyncpa [#allocation7 + $0x1], 1 }
 0x505   :  { %7533 = vsyncpa [#allocation10], 1 }
 0x506   :  { %7535 = vsyncpa [#allocation10 + $0x1], 1 }
 0x507   :  { %7536 = vsyncpa [#allocation8], 1 }
 0x508   :  { %7538 = vsyncpa [#allocation8 + $0x1], 1 }

</bundles_post_ra>
